<compile_context>
chip_gen: v6e
topology: v6e:2x2x1
jax: 0.10.0
libtpu: 0.0.40
codegen_flags: <defaults>
</compile_context>

<pallas_src>
import math
from functools import partial

import jax
import jax.numpy as jnp
from jax import lax
from jax.experimental import pallas as pl
from jax.experimental.pallas import tpu as pltpu


# ----------------------------- kernel helpers --------------------------------

def _softmax_last(s):
    m = jnp.max(s, axis=-1, keepdims=True)
    e = jnp.exp(s - m)
    # reciprocal on the EUP slot instead of a VALU divide
    return e * pl.reciprocal(jnp.sum(e, axis=-1, keepdims=True), approx=True)


def _mha_core(q, k, v, n_heads):
    """Head-batched scaled-dot-product attention. q:(Sq,E), k/v:(Skv,E) f32 -> (Sq,E) f32."""
    Sq, E = q.shape
    Skv = k.shape[0]
    hd = E // n_heads
    scale = 1.0 / math.sqrt(hd)
    # (S, E) -> (H, S, hd): split the lane dim, then swap leading dims (layout-aware einshape).
    qh = pltpu.einshape("shd->hsd", q.reshape(Sq, n_heads, hd)).astype(jnp.bfloat16)
    kh = pltpu.einshape("shd->hsd", k.reshape(Skv, n_heads, hd)).astype(jnp.bfloat16)
    vh = pltpu.einshape("shd->hsd", v.reshape(Skv, n_heads, hd)).astype(jnp.bfloat16)
    s = jnp.einsum("hqd,hkd->hqk", qh, kh, preferred_element_type=jnp.float32) * scale
    p = _softmax_last(s)                                              # (H, Sq, Skv) f32
    o = jnp.einsum("hqk,hkd->hqd", p.astype(jnp.bfloat16), vh,
                   preferred_element_type=jnp.float32)                # (H, Sq, hd)
    # back to (Sq, E) so the output projection is a single K=E matmul
    return pltpu.einshape("hsd->shd", o).reshape(Sq, E)


def _forward_one(x, adj,
                 ch_wqkv, ch_bqkv, ch_wo, ch_bo,
                 tk_wqkv, tk_bqkv, tk_wo, tk_bo,
                 cr_wq, cr_bq, cr_wkv, cr_bkv, cr_wo, cr_bo,
                 ln_g, ln_b, f_w1, f_b1, f_w2, f_b2, *, n_heads):
    """Full GridSelfAttention forward for one batch element. x:(S,E) f32 -> (S,E) f32."""
    E = x.shape[-1]
    x_bf = x.astype(jnp.bfloat16)

    # ---------------- ChannelAttention + residual ----------------
    qkv = jnp.dot(x_bf, ch_wqkv, preferred_element_type=jnp.float32) + ch_bqkv
    qkv = jnp.maximum(qkv, 0.0)                                       # ReLU on q, k, v
    cq, ck, cv = qkv[:, :E], qkv[:, E:2 * E], qkv[:, 2 * E:]
    # scores = q^T k / sqrt(E): contract over the token axis (axis 0), bf16 MXU operands.
    scores = lax.dot_general(cq.astype(jnp.bfloat16), ck.astype(jnp.bfloat16),
                             (((0,), (0,)), ((), ())),
                             preferred_element_type=jnp.float32) * (1.0 / math.sqrt(E))
    attn = _softmax_last(scores)                                      # (E, E)
    if adj is not None:
        attn = attn * adj                                             # optional elementwise mask
    y = jnp.dot(cv.astype(jnp.bfloat16), attn.astype(jnp.bfloat16),
                preferred_element_type=jnp.float32)                   # (S, E)
    ch = x + jnp.dot(y.astype(jnp.bfloat16), ch_wo,
                     preferred_element_type=jnp.float32) + ch_bo

    # ---------------- token self-attention + residual ----------------
    qkv_t = jnp.dot(x_bf, tk_wqkv, preferred_element_type=jnp.float32) + tk_bqkv
    at = _mha_core(qkv_t[:, :E], qkv_t[:, E:2 * E], qkv_t[:, 2 * E:], n_heads)
    tkn = x + jnp.dot(at.astype(jnp.bfloat16), tk_wo,
                      preferred_element_type=jnp.float32) + tk_bo

    # ------------ cross attention (query=tkn, key/value=ch) + residual ------------
    q_c = jnp.dot(tkn.astype(jnp.bfloat16), cr_wq,
                  preferred_element_type=jnp.float32) + cr_bq
    kv_c = jnp.dot(ch.astype(jnp.bfloat16), cr_wkv,
                   preferred_element_type=jnp.float32) + cr_bkv
    ac = _mha_core(q_c, kv_c[:, :E], kv_c[:, E:], n_heads)
    x2 = jnp.dot(ac.astype(jnp.bfloat16), cr_wo,
                 preferred_element_type=jnp.float32) + cr_bo + x

    # -------- LayerNorm -> Linear(E,4E) -> GELU -> Linear(4E,E) + residual --------
    mu = jnp.mean(x2, axis=-1, keepdims=True)
    var = jnp.mean((x2 - mu) ** 2, axis=-1, keepdims=True)
    xn = (x2 - mu) * lax.rsqrt(var + 1e-5) * ln_g + ln_b
    h = jnp.dot(xn.astype(jnp.bfloat16), f_w1, preferred_element_type=jnp.float32) + f_b1
    # exact-erf GELU to match nn.GELU default (tanh-approx would be cheaper on v5e's VALU)
    h = 0.5 * h * (1.0 + lax.erf(h * (1.0 / math.sqrt(2.0))))
    ffn = jnp.dot(h.astype(jnp.bfloat16), f_w2, preferred_element_type=jnp.float32) + f_b2

    return x2 + ffn


# ------------------------------- fused kernel ---------------------------------

def grid_attn_kernel(x_ref, *rest, n_heads, bb, has_adj):
    adj = None
    if has_adj:
        adj = rest[0][...]
        rest = rest[1:]
    *wrefs, o_ref = rest
    w = [r[...] for r in wrefs]          # weights read once per grid step (hoisted out of bb loop)
    for i in range(bb):                  # static batch-block loop (bb small by construction)
        o_ref[i] = _forward_one(x_ref[i], adj, *w, n_heads=n_heads)


# ------------------------------- wrapper --------------------------------------

def _pick_batch_block(B, S, E, H):
    """Largest divisor of B whose per-step activation footprint stays under ~2 MiB."""
    per_elem = 4 * (16 * S * E + 2 * E * E + 3 * H * S * S + 3 * S * 4 * E)
    budget = 2 << 20
    for cand in range(B, 0, -1):
        if B % cand == 0 and cand * per_elem <= budget:
            return cand
    return 1


def _vmem_budget(bb, S, E, H, weight_bytes):
    """Explicit scoped-VMEM budget: weights + double-buffered I/O blocks + peak activations."""
    f32 = 4
    io = 2 * 2 * bb * S * E * f32                      # x block + out block, double-buffered
    acts = bb * f32 * (13 * S * E + 2 * E * E + 3 * H * S * S + 3 * S * 4 * E)
    total = 2 * (weight_bytes + io + acts)             # 2x headroom for compiler temporaries
    return int(min(max(total, 32 << 20), 128 << 20))


def grid_self_attention(x, params, n_heads, adj=None, single_buffer_weights=True):
    """Single fused Pallas forward of GridSelfAttention (eval mode; dropout = identity)."""
    B, S, E = x.shape
    p_ch, p_tk, p_cr, p_f = params["ch"], params["tkn"], params["cross"], params["ffn"]
    weights = (
        p_ch["wqkv"], p_ch["bqkv"], p_ch["wo"], p_ch["bo"],
        p_tk["w_in"], p_tk["b_in"], p_tk["wo"], p_tk["bo"],
        p_cr["wq"], p_cr["bq"], p_cr["wkv"], p_cr["bkv"], p_cr["wo"], p_cr["bo"],
        p_f["g"], p_f["b"], p_f["w1"], p_f["b1"], p_f["w2"], p_f["b2"],
    )
    has_adj = adj is not None
    args = (x,) + ((adj,) if has_adj else ()) + weights

    bb = _pick_batch_block(B, S, E, n_heads)
    row_spec = pl.BlockSpec((bb, S, E), lambda b: (b, 0, 0))

    def wspec(shape):
        nd = len(shape)
        imap = lambda b, _nd=nd: (0,) * _nd
        if single_buffer_weights:
            # constant block index across the grid -> double-buffering is pure VMEM waste
            return pl.BlockSpec(shape, imap, pipeline_mode=pl.Buffered(buffer_count=1))
        return pl.BlockSpec(shape, imap)

    in_specs = [row_spec] + [wspec(a.shape) for a in args[1:]]

    weight_bytes = sum(int(a.size) * a.dtype.itemsize for a in args[1:])
    vmem_limit = _vmem_budget(bb, S, E, n_heads, weight_bytes)

    return pl.pallas_call(
        partial(grid_attn_kernel, n_heads=n_heads, bb=bb, has_adj=has_adj),
        out_shape=jax.ShapeDtypeStruct((B, S, E), jnp.float32),
        grid=(B // bb,),
        in_specs=in_specs,
        out_specs=row_spec,
        compiler_params=pltpu.CompilerParams(
            dimension_semantics=("parallel",),
            vmem_limit_bytes=vmem_limit,
        ),
    )(*args)


# -------------------------- parameter init / prep -----------------------------

def init_params(key, E):
    ks = iter(jax.random.split(key, 24))

    def w(shape, scale=0.1):
        return scale * jax.random.normal(next(ks), shape, jnp.float32)

    return dict(
        ch=dict(wqkv=w((E, 3 * E)), bqkv=w((1, 3 * E)), wo=w((E, E)), bo=w((1, E))),
        tkn=dict(w_in=w((E, 3 * E)), b_in=w((1, 3 * E)), wo=w((E, E)), bo=w((1, E))),
        cross=dict(wq=w((E, E)), bq=w((1, E)), wkv=w((E, 2 * E)), bkv=w((1, 2 * E)),
                   wo=w((E, E)), bo=w((1, E))),
        ffn=dict(g=jnp.ones((1, E), jnp.float32), b=jnp.zeros((1, E), jnp.float32),
                 w1=w((E, 4 * E)), b1=w((1, 4 * E)), w2=w((4 * E, E)), b2=w((1, E))),
    )


def prepare_params(params):
    """Pre-cast matmul weights to bf16 ONCE (outside jit) — halves per-forward weight DMA and
    avoids re-emitting f32->bf16 converts inside the jitted call.  Biases / LN stay f32."""
    bf = lambda a: a.astype(jnp.bfloat16)
    c, t, r, f = params["ch"], params["tkn"], params["cross"], params["ffn"]
    return dict(
        ch=dict(wqkv=bf(c["wqkv"]), bqkv=c["bqkv"], wo=bf(c["wo"]), bo=c["bo"]),
        tkn=dict(w_in=bf(t["w_in"]), b_in=t["b_in"], wo=bf(t["wo"]), bo=t["bo"]),
        cross=dict(wq=bf(r["wq"]), bq=r["bq"], wkv=bf(r["wkv"]), bkv=r["bkv"],
                   wo=bf(r["wo"]), bo=r["bo"]),
        ffn=dict(g=f["g"], b=f["b"], w1=bf(f["w1"]), b1=f["b1"], w2=bf(f["w2"]), b2=f["b2"]),
    )


# ------------------------ pure-JAX f32 reference -------------------------------

def _ref_channel_attention(x, p, adj=None):
    E = x.shape[-1]
    qkv = jnp.maximum(x @ p["wqkv"] + p["bqkv"][0], 0.0)
    q, k, v = qkv[..., :E], qkv[..., E:2 * E], qkv[..., 2 * E:]
    scores = jnp.einsum("bse,bsf->bef", q, k) / math.sqrt(E)
    attn = jax.nn.softmax(scores, axis=-1)
    if adj is not None:
        attn = attn * adj
    y = jnp.einsum("bse,bef->bsf", v, attn)
    return y @ p["wo"] + p["bo"][0]


def _ref_mha(xq, xkv, wq, bq, wk, bk, wv, bv, wo, bo, H):
    E = xq.shape[-1]
    hd = E // H
    B, Sq, _ = xq.shape
    Skv = xkv.shape[1]
    q = (xq @ wq + bq).reshape(B, Sq, H, hd).transpose(0, 2, 1, 3)
    k = (xkv @ wk + bk).reshape(B, Skv, H, hd).transpose(0, 2, 1, 3)
    v = (xkv @ wv + bv).reshape(B, Skv, H, hd).transpose(0, 2, 1, 3)
    s = jnp.einsum("bhqd,bhkd->bhqk", q, k) / math.sqrt(hd)
    a = jax.nn.softmax(s, axis=-1)
    o = jnp.einsum("bhqk,bhkd->bhqd", a, v).transpose(0, 2, 1, 3).reshape(B, Sq, E)
    return o @ wo + bo


def _ref_forward(x, params, H, adj=None):
    E = x.shape[-1]
    ch = x + _ref_channel_attention(x, params["ch"], adj)
    pt = params["tkn"]
    tkn = x + _ref_mha(x, x,
                       pt["w_in"][:, :E], pt["b_in"][0, :E],
                       pt["w_in"][:, E:2 * E], pt["b_in"][0, E:2 * E],
                       pt["w_in"][:, 2 * E:], pt["b_in"][0, 2 * E:],
                       pt["wo"], pt["bo"][0], H)
    pc = params["cross"]
    x2 = _ref_mha(tkn, ch,
                  pc["wq"], pc["bq"][0],
                  pc["wkv"][:, :E], pc["bkv"][0, :E],
                  pc["wkv"][:, E:], pc["bkv"][0, E:],
                  pc["wo"], pc["bo"][0], H) + x
    pf = params["ffn"]
    mu = x2.mean(-1, keepdims=True)
    var = ((x2 - mu) ** 2).mean(-1, keepdims=True)
    xn = (x2 - mu) / jnp.sqrt(var + 1e-5) * pf["g"][0] + pf["b"][0]
    h = xn @ pf["w1"] + pf["b1"][0]
    h = 0.5 * h * (1.0 + jax.lax.erf(h / math.sqrt(2.0)))
    return x2 + h @ pf["w2"] + pf["b2"][0]


# ----------------------------------- main --------------------------------------

if __name__ == "__main__":
    B, S, E, H = 2, 8, 32, 4            # batch, seq, embed_dim, n_heads (E % H == 0)

    key = jax.random.PRNGKey(0)
    k_x, k_p, k_a = jax.random.split(key, 3)
    x = jax.random.normal(k_x, (B, S, E), jnp.float32)
    params = init_params(k_p, E)
    prepared = prepare_params(params)    # bf16 weight cast done once, outside jit

    def run(sb, **kw):
        return jax.jit(partial(grid_self_attention, n_heads=H,
                               single_buffer_weights=sb))(x, prepared, **kw)

    try:
        out = jax.block_until_ready(run(True))
        sb_ok = True
    except Exception:
        # Fallback if this jax build rejects Buffered(1) single-buffering of weight specs.
        out = jax.block_until_ready(run(False))
        sb_ok = False

    ref = _ref_forward(x, params, H)
    assert out.shape == (B, S, E)
    assert jnp.all(jnp.isfinite(out))
    max_err = float(jnp.max(jnp.abs(out - ref)))
    # bf16 MXU operands (f32 accumulation) + approx-reciprocal softmax vs f32 reference
    assert jnp.allclose(out, ref, atol=5e-2, rtol=5e-2), max_err

    # optional `adj` elementwise channel-attention mask path
    adj = (jax.random.uniform(k_a, (E, E)) > 0.5).astype(jnp.float32)
    out_adj = jax.block_until_ready(run(sb_ok, adj=adj))
    ref_adj = _ref_forward(x, params, H, adj=adj)
    max_err_adj = float(jnp.max(jnp.abs(out_adj - ref_adj)))
    assert jnp.allclose(out_adj, ref_adj, atol=5e-2, rtol=5e-2), max_err_adj

    print("KERNEL_OK")
</pallas_src>

<mosaic_0001>
module attributes {stable_mosaic.version = 11 : i64} {
  func.func @grid_attn_kernel(%arg0: i32, %arg1: memref<2x8x32xf32, #tpu.memory_space<vmem>>, %arg2: memref<32x96xbf16, #tpu.memory_space<vmem>>, %arg3: memref<1x96xf32, #tpu.memory_space<vmem>>, %arg4: memref<32x32xbf16, #tpu.memory_space<vmem>>, %arg5: memref<1x32xf32, #tpu.memory_space<vmem>>, %arg6: memref<32x96xbf16, #tpu.memory_space<vmem>>, %arg7: memref<1x96xf32, #tpu.memory_space<vmem>>, %arg8: memref<32x32xbf16, #tpu.memory_space<vmem>>, %arg9: memref<1x32xf32, #tpu.memory_space<vmem>>, %arg10: memref<32x32xbf16, #tpu.memory_space<vmem>>, %arg11: memref<1x32xf32, #tpu.memory_space<vmem>>, %arg12: memref<32x64xbf16, #tpu.memory_space<vmem>>, %arg13: memref<1x64xf32, #tpu.memory_space<vmem>>, %arg14: memref<32x32xbf16, #tpu.memory_space<vmem>>, %arg15: memref<1x32xf32, #tpu.memory_space<vmem>>, %arg16: memref<1x32xf32, #tpu.memory_space<vmem>>, %arg17: memref<1x32xf32, #tpu.memory_space<vmem>>, %arg18: memref<32x128xbf16, #tpu.memory_space<vmem>>, %arg19: memref<1x128xf32, #tpu.memory_space<vmem>>, %arg20: memref<128x32xbf16, #tpu.memory_space<vmem>>, %arg21: memref<1x32xf32, #tpu.memory_space<vmem>>, %arg22: memref<2x8x32xf32, #tpu.memory_space<vmem>>) attributes {dimension_semantics = [#tpu.dimension_semantics<parallel>], iteration_bounds = array<i64: 1>, scalar_prefetch = 0 : i64, scratch_operands = 0 : i64, tpu.core_type = #tpu.core_type<tc>, window_params = [{transform_indices = @transform_0, window_bounds = array<i64: 2, 8, 32>}, {pipeline_mode = #tpu.pipeline_mode<synchronous>, transform_indices = @transform_1, window_bounds = array<i64: 32, 96>}, {pipeline_mode = #tpu.pipeline_mode<synchronous>, transform_indices = @transform_2, window_bounds = array<i64: 1, 96>}, {pipeline_mode = #tpu.pipeline_mode<synchronous>, transform_indices = @transform_3, window_bounds = array<i64: 32, 32>}, {pipeline_mode = #tpu.pipeline_mode<synchronous>, transform_indices = @transform_4, window_bounds = array<i64: 1, 32>}, {pipeline_mode = #tpu.pipeline_mode<synchronous>, transform_indices = @transform_5, window_bounds = array<i64: 32, 96>}, {pipeline_mode = #tpu.pipeline_mode<synchronous>, transform_indices = @transform_6, window_bounds = array<i64: 1, 96>}, {pipeline_mode = #tpu.pipeline_mode<synchronous>, transform_indices = @transform_7, window_bounds = array<i64: 32, 32>}, {pipeline_mode = #tpu.pipeline_mode<synchronous>, transform_indices = @transform_8, window_bounds = array<i64: 1, 32>}, {pipeline_mode = #tpu.pipeline_mode<synchronous>, transform_indices = @transform_9, window_bounds = array<i64: 32, 32>}, {pipeline_mode = #tpu.pipeline_mode<synchronous>, transform_indices = @transform_10, window_bounds = array<i64: 1, 32>}, {pipeline_mode = #tpu.pipeline_mode<synchronous>, transform_indices = @transform_11, window_bounds = array<i64: 32, 64>}, {pipeline_mode = #tpu.pipeline_mode<synchronous>, transform_indices = @transform_12, window_bounds = array<i64: 1, 64>}, {pipeline_mode = #tpu.pipeline_mode<synchronous>, transform_indices = @transform_13, window_bounds = array<i64: 32, 32>}, {pipeline_mode = #tpu.pipeline_mode<synchronous>, transform_indices = @transform_14, window_bounds = array<i64: 1, 32>}, {pipeline_mode = #tpu.pipeline_mode<synchronous>, transform_indices = @transform_15, window_bounds = array<i64: 1, 32>}, {pipeline_mode = #tpu.pipeline_mode<synchronous>, transform_indices = @transform_16, window_bounds = array<i64: 1, 32>}, {pipeline_mode = #tpu.pipeline_mode<synchronous>, transform_indices = @transform_17, window_bounds = array<i64: 32, 128>}, {pipeline_mode = #tpu.pipeline_mode<synchronous>, transform_indices = @transform_18, window_bounds = array<i64: 1, 128>}, {pipeline_mode = #tpu.pipeline_mode<synchronous>, transform_indices = @transform_19, window_bounds = array<i64: 128, 32>}, {pipeline_mode = #tpu.pipeline_mode<synchronous>, transform_indices = @transform_20, window_bounds = array<i64: 1, 32>}, {transform_indices = @transform_21, window_bounds = array<i64: 2, 8, 32>}]} {
    %c0 = arith.constant 0 : index
    %c0_0 = arith.constant 0 : index
    %0 = vector.load %arg2[%c0, %c0_0] : memref<32x96xbf16, #tpu.memory_space<vmem>>, vector<32x96xbf16>
    %c0_1 = arith.constant 0 : index
    %c0_2 = arith.constant 0 : index
    %1 = vector.load %arg3[%c0_1, %c0_2] : memref<1x96xf32, #tpu.memory_space<vmem>>, vector<1x96xf32>
    %c0_3 = arith.constant 0 : index
    %c0_4 = arith.constant 0 : index
    %2 = vector.load %arg4[%c0_3, %c0_4] : memref<32x32xbf16, #tpu.memory_space<vmem>>, vector<32x32xbf16>
    %c0_5 = arith.constant 0 : index
    %c0_6 = arith.constant 0 : index
    %3 = vector.load %arg5[%c0_5, %c0_6] : memref<1x32xf32, #tpu.memory_space<vmem>>, vector<1x32xf32>
    %c0_7 = arith.constant 0 : index
    %c0_8 = arith.constant 0 : index
    %4 = vector.load %arg6[%c0_7, %c0_8] : memref<32x96xbf16, #tpu.memory_space<vmem>>, vector<32x96xbf16>
    %c0_9 = arith.constant 0 : index
    %c0_10 = arith.constant 0 : index
    %5 = vector.load %arg7[%c0_9, %c0_10] : memref<1x96xf32, #tpu.memory_space<vmem>>, vector<1x96xf32>
    %c0_11 = arith.constant 0 : index
    %c0_12 = arith.constant 0 : index
    %6 = vector.load %arg8[%c0_11, %c0_12] : memref<32x32xbf16, #tpu.memory_space<vmem>>, vector<32x32xbf16>
    %c0_13 = arith.constant 0 : index
    %c0_14 = arith.constant 0 : index
    %7 = vector.load %arg9[%c0_13, %c0_14] : memref<1x32xf32, #tpu.memory_space<vmem>>, vector<1x32xf32>
    %c0_15 = arith.constant 0 : index
    %c0_16 = arith.constant 0 : index
    %8 = vector.load %arg10[%c0_15, %c0_16] : memref<32x32xbf16, #tpu.memory_space<vmem>>, vector<32x32xbf16>
    %c0_17 = arith.constant 0 : index
    %c0_18 = arith.constant 0 : index
    %9 = vector.load %arg11[%c0_17, %c0_18] : memref<1x32xf32, #tpu.memory_space<vmem>>, vector<1x32xf32>
    %c0_19 = arith.constant 0 : index
    %c0_20 = arith.constant 0 : index
    %10 = vector.load %arg12[%c0_19, %c0_20] : memref<32x64xbf16, #tpu.memory_space<vmem>>, vector<32x64xbf16>
    %c0_21 = arith.constant 0 : index
    %c0_22 = arith.constant 0 : index
    %11 = vector.load %arg13[%c0_21, %c0_22] : memref<1x64xf32, #tpu.memory_space<vmem>>, vector<1x64xf32>
    %c0_23 = arith.constant 0 : index
    %c0_24 = arith.constant 0 : index
    %12 = vector.load %arg14[%c0_23, %c0_24] : memref<32x32xbf16, #tpu.memory_space<vmem>>, vector<32x32xbf16>
    %c0_25 = arith.constant 0 : index
    %c0_26 = arith.constant 0 : index
    %13 = vector.load %arg15[%c0_25, %c0_26] : memref<1x32xf32, #tpu.memory_space<vmem>>, vector<1x32xf32>
    %c0_27 = arith.constant 0 : index
    %c0_28 = arith.constant 0 : index
    %14 = vector.load %arg16[%c0_27, %c0_28] : memref<1x32xf32, #tpu.memory_space<vmem>>, vector<1x32xf32>
    %c0_29 = arith.constant 0 : index
    %c0_30 = arith.constant 0 : index
    %15 = vector.load %arg17[%c0_29, %c0_30] : memref<1x32xf32, #tpu.memory_space<vmem>>, vector<1x32xf32>
    %c0_31 = arith.constant 0 : index
    %c0_32 = arith.constant 0 : index
    %16 = vector.load %arg18[%c0_31, %c0_32] : memref<32x128xbf16, #tpu.memory_space<vmem>>, vector<32x128xbf16>
    %c0_33 = arith.constant 0 : index
    %c0_34 = arith.constant 0 : index
    %17 = vector.load %arg19[%c0_33, %c0_34] : memref<1x128xf32, #tpu.memory_space<vmem>>, vector<1x128xf32>
    %c0_35 = arith.constant 0 : index
    %c0_36 = arith.constant 0 : index
    %18 = vector.load %arg20[%c0_35, %c0_36] : memref<128x32xbf16, #tpu.memory_space<vmem>>, vector<128x32xbf16>
    %c0_37 = arith.constant 0 : index
    %c0_38 = arith.constant 0 : index
    %19 = vector.load %arg21[%c0_37, %c0_38] : memref<1x32xf32, #tpu.memory_space<vmem>>, vector<1x32xf32>
    %c0_39 = arith.constant 0 : index
    %c0_40 = arith.constant 0 : index
    %c0_41 = arith.constant 0 : index
    %20 = vector.load %arg1[%c0_39, %c0_40, %c0_41] : memref<2x8x32xf32, #tpu.memory_space<vmem>>, vector<1x8x32xf32>
    %21 = vector.shape_cast %20 : vector<1x8x32xf32> to vector<8x32xf32>
    %22 = arith.truncf %21 : vector<8x32xf32> to vector<8x32xbf16>
    %cst = arith.constant dense<0.000000e+00> : vector<8x96xf32>
    %23 = tpu.matmul %22, %0, %cst {dimension_numbers = #tpu.dot_dimension_numbers<[1], [0], [0], [1], [0, 0, 1, 1], [], []>} : vector<8x32xbf16>, vector<32x96xbf16>, vector<8x96xf32> -> vector<8x96xf32>
    %24 = vector.broadcast %1 : vector<1x96xf32> to vector<8x96xf32>
    %25 = arith.addf %23, %24 : vector<8x96xf32>
    %cst_42 = arith.constant 0.000000e+00 : f32
    %26 = vector.broadcast %cst_42 : f32 to vector<8x96xf32>
    %27 = arith.maximumf %25, %26 : vector<8x96xf32>
    %28 = vector.extract_strided_slice %27 {offsets = [0, 0], sizes = [8, 32], strides = [1, 1]} : vector<8x96xf32> to vector<8x32xf32>
    %29 = vector.extract_strided_slice %27 {offsets = [0, 32], sizes = [8, 32], strides = [1, 1]} : vector<8x96xf32> to vector<8x32xf32>
    %30 = vector.extract_strided_slice %27 {offsets = [0, 64], sizes = [8, 32], strides = [1, 1]} : vector<8x96xf32> to vector<8x32xf32>
    %31 = arith.truncf %28 : vector<8x32xf32> to vector<8x32xbf16>
    %32 = arith.truncf %29 : vector<8x32xf32> to vector<8x32xbf16>
    %cst_43 = arith.constant dense<0.000000e+00> : vector<32x32xf32>
    %33 = tpu.matmul %31, %32, %cst_43 {dimension_numbers = #tpu.dot_dimension_numbers<[0], [0], [1], [1], [0, 1, 1, 1], [], []>} : vector<8x32xbf16>, vector<8x32xbf16>, vector<32x32xf32> -> vector<32x32xf32>
    %cst_44 = arith.constant 0.176776692 : f32
    %34 = vector.broadcast %cst_44 : f32 to vector<32x32xf32>
    %35 = arith.mulf %33, %34 : vector<32x32xf32>
    %cst_45 = arith.constant dense<0xFF800000> : vector<32xf32>
    %36 = vector.multi_reduction <maximumf>, %35, %cst_45 [1] : vector<32x32xf32> to vector<32xf32>
    %37 = vector.shape_cast %36 : vector<32xf32> to vector<32x1xf32>
    %38 = vector.broadcast %37 : vector<32x1xf32> to vector<32x32xf32>
    %39 = arith.subf %35, %38 : vector<32x32xf32>
    %40 = math.exp %39 : vector<32x32xf32>
    %cst_46 = arith.constant dense<0.000000e+00> : vector<32xf32>
    %41 = vector.multi_reduction <add>, %40, %cst_46 [1] : vector<32x32xf32> to vector<32xf32>
    %42 = vector.shape_cast %41 : vector<32xf32> to vector<32x1xf32>
    %43 = tpu.reciprocal %42 {approx = true} : vector<32x1xf32> -> vector<32x1xf32>
    %44 = vector.broadcast %43 : vector<32x1xf32> to vector<32x32xf32>
    %45 = arith.mulf %40, %44 : vector<32x32xf32>
    %46 = arith.truncf %30 : vector<8x32xf32> to vector<8x32xbf16>
    %47 = arith.truncf %45 : vector<32x32xf32> to vector<32x32xbf16>
    %cst_47 = arith.constant dense<0.000000e+00> : vector<8x32xf32>
    %48 = tpu.matmul %46, %47, %cst_47 {dimension_numbers = #tpu.dot_dimension_numbers<[1], [0], [0], [1], [0, 0, 1, 1], [], []>} : vector<8x32xbf16>, vector<32x32xbf16>, vector<8x32xf32> -> vector<8x32xf32>
    %49 = arith.truncf %48 : vector<8x32xf32> to vector<8x32xbf16>
    %cst_48 = arith.constant dense<0.000000e+00> : vector<8x32xf32>
    %50 = tpu.matmul %49, %2, %cst_48 {dimension_numbers = #tpu.dot_dimension_numbers<[1], [0], [0], [1], [0, 0, 1, 1], [], []>} : vector<8x32xbf16>, vector<32x32xbf16>, vector<8x32xf32> -> vector<8x32xf32>
    %51 = arith.addf %21, %50 : vector<8x32xf32>
    %52 = vector.broadcast %3 : vector<1x32xf32> to vector<8x32xf32>
    %53 = arith.addf %51, %52 : vector<8x32xf32>
    %cst_49 = arith.constant dense<0.000000e+00> : vector<8x96xf32>
    %54 = tpu.matmul %22, %4, %cst_49 {dimension_numbers = #tpu.dot_dimension_numbers<[1], [0], [0], [1], [0, 0, 1, 1], [], []>} : vector<8x32xbf16>, vector<32x96xbf16>, vector<8x96xf32> -> vector<8x96xf32>
    %55 = vector.broadcast %5 : vector<1x96xf32> to vector<8x96xf32>
    %56 = arith.addf %54, %55 : vector<8x96xf32>
    %57 = vector.extract_strided_slice %56 {offsets = [0, 0], sizes = [8, 32], strides = [1, 1]} : vector<8x96xf32> to vector<8x32xf32>
    %58 = vector.extract_strided_slice %56 {offsets = [0, 32], sizes = [8, 32], strides = [1, 1]} : vector<8x96xf32> to vector<8x32xf32>
    %59 = vector.extract_strided_slice %56 {offsets = [0, 64], sizes = [8, 32], strides = [1, 1]} : vector<8x96xf32> to vector<8x32xf32>
    %60 = vector.shape_cast %57 : vector<8x32xf32> to vector<8x4x8xf32>
    %61 = tpu.transpose %60, [1, 0, 2] : vector<8x4x8xf32> -> vector<4x8x8xf32>
    %62 = arith.truncf %61 : vector<4x8x8xf32> to vector<4x8x8xbf16>
    %63 = vector.shape_cast %58 : vector<8x32xf32> to vector<8x4x8xf32>
    %64 = tpu.transpose %63, [1, 0, 2] : vector<8x4x8xf32> -> vector<4x8x8xf32>
    %65 = arith.truncf %64 : vector<4x8x8xf32> to vector<4x8x8xbf16>
    %66 = vector.shape_cast %59 : vector<8x32xf32> to vector<8x4x8xf32>
    %67 = tpu.transpose %66, [1, 0, 2] : vector<8x4x8xf32> -> vector<4x8x8xf32>
    %68 = arith.truncf %67 : vector<4x8x8xf32> to vector<4x8x8xbf16>
    "tpu.trace_start"() <{level = 10 : i32, message = "hqd,hkd->hqk"}> : () -> ()
    %cst_50 = arith.constant dense<0.000000e+00> : vector<4x8x8xf32>
    %69 = tpu.matmul %62, %65, %cst_50 {dimension_numbers = #tpu.dot_dimension_numbers<[2], [2], [1], [1], [0, 0, 0, 1, 1, 1], [0], [0]>} : vector<4x8x8xbf16>, vector<4x8x8xbf16>, vector<4x8x8xf32> -> vector<4x8x8xf32>
    "tpu.trace_stop"() : () -> ()
    %cst_51 = arith.constant 0.353553385 : f32
    %70 = vector.broadcast %cst_51 : f32 to vector<4x8x8xf32>
    %71 = arith.mulf %69, %70 : vector<4x8x8xf32>
    %cst_52 = arith.constant dense<0xFF800000> : vector<4x8xf32>
    %72 = vector.multi_reduction <maximumf>, %71, %cst_52 [2] : vector<4x8x8xf32> to vector<4x8xf32>
    %73 = vector.shape_cast %72 : vector<4x8xf32> to vector<4x8x1xf32>
    %74 = vector.broadcast %73 : vector<4x8x1xf32> to vector<4x8x8xf32>
    %75 = arith.subf %71, %74 : vector<4x8x8xf32>
    %76 = math.exp %75 : vector<4x8x8xf32>
    %cst_53 = arith.constant dense<0.000000e+00> : vector<4x8xf32>
    %77 = vector.multi_reduction <add>, %76, %cst_53 [2] : vector<4x8x8xf32> to vector<4x8xf32>
    %78 = vector.shape_cast %77 : vector<4x8xf32> to vector<4x8x1xf32>
    %79 = tpu.reciprocal %78 {approx = true} : vector<4x8x1xf32> -> vector<4x8x1xf32>
    %80 = vector.broadcast %79 : vector<4x8x1xf32> to vector<4x8x8xf32>
    %81 = arith.mulf %76, %80 : vector<4x8x8xf32>
    %82 = arith.truncf %81 : vector<4x8x8xf32> to vector<4x8x8xbf16>
    "tpu.trace_start"() <{level = 10 : i32, message = "hqk,hkd->hqd"}> : () -> ()
    %cst_54 = arith.constant dense<0.000000e+00> : vector<4x8x8xf32>
    %83 = tpu.matmul %82, %68, %cst_54 {dimension_numbers = #tpu.dot_dimension_numbers<[2], [1], [1], [2], [0, 0, 0, 1, 1, 2], [0], [0]>} : vector<4x8x8xbf16>, vector<4x8x8xbf16>, vector<4x8x8xf32> -> vector<4x8x8xf32>
    "tpu.trace_stop"() : () -> ()
    %84 = tpu.transpose %83, [1, 0, 2] : vector<4x8x8xf32> -> vector<8x4x8xf32>
    %85 = vector.shape_cast %84 : vector<8x4x8xf32> to vector<8x32xf32>
    %86 = arith.truncf %85 : vector<8x32xf32> to vector<8x32xbf16>
    %cst_55 = arith.constant dense<0.000000e+00> : vector<8x32xf32>
    %87 = tpu.matmul %86, %6, %cst_55 {dimension_numbers = #tpu.dot_dimension_numbers<[1], [0], [0], [1], [0, 0, 1, 1], [], []>} : vector<8x32xbf16>, vector<32x32xbf16>, vector<8x32xf32> -> vector<8x32xf32>
    %88 = arith.addf %21, %87 : vector<8x32xf32>
    %89 = vector.broadcast %7 : vector<1x32xf32> to vector<8x32xf32>
    %90 = arith.addf %88, %89 : vector<8x32xf32>
    %91 = arith.truncf %90 : vector<8x32xf32> to vector<8x32xbf16>
    %cst_56 = arith.constant dense<0.000000e+00> : vector<8x32xf32>
    %92 = tpu.matmul %91, %8, %cst_56 {dimension_numbers = #tpu.dot_dimension_numbers<[1], [0], [0], [1], [0, 0, 1, 1], [], []>} : vector<8x32xbf16>, vector<32x32xbf16>, vector<8x32xf32> -> vector<8x32xf32>
    %93 = vector.broadcast %9 : vector<1x32xf32> to vector<8x32xf32>
    %94 = arith.addf %92, %93 : vector<8x32xf32>
    %95 = arith.truncf %53 : vector<8x32xf32> to vector<8x32xbf16>
    %cst_57 = arith.constant dense<0.000000e+00> : vector<8x64xf32>
    %96 = tpu.matmul %95, %10, %cst_57 {dimension_numbers = #tpu.dot_dimension_numbers<[1], [0], [0], [1], [0, 0, 1, 1], [], []>} : vector<8x32xbf16>, vector<32x64xbf16>, vector<8x64xf32> -> vector<8x64xf32>
    %97 = vector.broadcast %11 : vector<1x64xf32> to vector<8x64xf32>
    %98 = arith.addf %96, %97 : vector<8x64xf32>
    %99 = vector.extract_strided_slice %98 {offsets = [0, 0], sizes = [8, 32], strides = [1, 1]} : vector<8x64xf32> to vector<8x32xf32>
    %100 = vector.extract_strided_slice %98 {offsets = [0, 32], sizes = [8, 32], strides = [1, 1]} : vector<8x64xf32> to vector<8x32xf32>
    %101 = vector.shape_cast %94 : vector<8x32xf32> to vector<8x4x8xf32>
    %102 = tpu.transpose %101, [1, 0, 2] : vector<8x4x8xf32> -> vector<4x8x8xf32>
    %103 = arith.truncf %102 : vector<4x8x8xf32> to vector<4x8x8xbf16>
    %104 = vector.shape_cast %99 : vector<8x32xf32> to vector<8x4x8xf32>
    %105 = tpu.transpose %104, [1, 0, 2] : vector<8x4x8xf32> -> vector<4x8x8xf32>
    %106 = arith.truncf %105 : vector<4x8x8xf32> to vector<4x8x8xbf16>
    %107 = vector.shape_cast %100 : vector<8x32xf32> to vector<8x4x8xf32>
    %108 = tpu.transpose %107, [1, 0, 2] : vector<8x4x8xf32> -> vector<4x8x8xf32>
    %109 = arith.truncf %108 : vector<4x8x8xf32> to vector<4x8x8xbf16>
    "tpu.trace_start"() <{level = 10 : i32, message = "hqd,hkd->hqk"}> : () -> ()
    %cst_58 = arith.constant dense<0.000000e+00> : vector<4x8x8xf32>
    %110 = tpu.matmul %103, %106, %cst_58 {dimension_numbers = #tpu.dot_dimension_numbers<[2], [2], [1], [1], [0, 0, 0, 1, 1, 1], [0], [0]>} : vector<4x8x8xbf16>, vector<4x8x8xbf16>, vector<4x8x8xf32> -> vector<4x8x8xf32>
    "tpu.trace_stop"() : () -> ()
    %cst_59 = arith.constant 0.353553385 : f32
    %111 = vector.broadcast %cst_59 : f32 to vector<4x8x8xf32>
    %112 = arith.mulf %110, %111 : vector<4x8x8xf32>
    %cst_60 = arith.constant dense<0xFF800000> : vector<4x8xf32>
    %113 = vector.multi_reduction <maximumf>, %112, %cst_60 [2] : vector<4x8x8xf32> to vector<4x8xf32>
    %114 = vector.shape_cast %113 : vector<4x8xf32> to vector<4x8x1xf32>
    %115 = vector.broadcast %114 : vector<4x8x1xf32> to vector<4x8x8xf32>
    %116 = arith.subf %112, %115 : vector<4x8x8xf32>
    %117 = math.exp %116 : vector<4x8x8xf32>
    %cst_61 = arith.constant dense<0.000000e+00> : vector<4x8xf32>
    %118 = vector.multi_reduction <add>, %117, %cst_61 [2] : vector<4x8x8xf32> to vector<4x8xf32>
    %119 = vector.shape_cast %118 : vector<4x8xf32> to vector<4x8x1xf32>
    %120 = tpu.reciprocal %119 {approx = true} : vector<4x8x1xf32> -> vector<4x8x1xf32>
    %121 = vector.broadcast %120 : vector<4x8x1xf32> to vector<4x8x8xf32>
    %122 = arith.mulf %117, %121 : vector<4x8x8xf32>
    %123 = arith.truncf %122 : vector<4x8x8xf32> to vector<4x8x8xbf16>
    "tpu.trace_start"() <{level = 10 : i32, message = "hqk,hkd->hqd"}> : () -> ()
    %cst_62 = arith.constant dense<0.000000e+00> : vector<4x8x8xf32>
    %124 = tpu.matmul %123, %109, %cst_62 {dimension_numbers = #tpu.dot_dimension_numbers<[2], [1], [1], [2], [0, 0, 0, 1, 1, 2], [0], [0]>} : vector<4x8x8xbf16>, vector<4x8x8xbf16>, vector<4x8x8xf32> -> vector<4x8x8xf32>
    "tpu.trace_stop"() : () -> ()
    %125 = tpu.transpose %124, [1, 0, 2] : vector<4x8x8xf32> -> vector<8x4x8xf32>
    %126 = vector.shape_cast %125 : vector<8x4x8xf32> to vector<8x32xf32>
    %127 = arith.truncf %126 : vector<8x32xf32> to vector<8x32xbf16>
    %cst_63 = arith.constant dense<0.000000e+00> : vector<8x32xf32>
    %128 = tpu.matmul %127, %12, %cst_63 {dimension_numbers = #tpu.dot_dimension_numbers<[1], [0], [0], [1], [0, 0, 1, 1], [], []>} : vector<8x32xbf16>, vector<32x32xbf16>, vector<8x32xf32> -> vector<8x32xf32>
    %129 = vector.broadcast %13 : vector<1x32xf32> to vector<8x32xf32>
    %130 = arith.addf %128, %129 : vector<8x32xf32>
    %131 = arith.addf %130, %21 : vector<8x32xf32>
    %cst_64 = arith.constant dense<0.000000e+00> : vector<8xf32>
    %132 = vector.multi_reduction <add>, %131, %cst_64 [1] : vector<8x32xf32> to vector<8xf32>
    %133 = vector.shape_cast %132 : vector<8xf32> to vector<8x1xf32>
    %cst_65 = arith.constant 3.200000e+01 : f32
    %134 = vector.broadcast %cst_65 : f32 to vector<8x1xf32>
    %135 = arith.divf %133, %134 : vector<8x1xf32>
    %136 = vector.broadcast %135 : vector<8x1xf32> to vector<8x32xf32>
    %137 = arith.subf %131, %136 : vector<8x32xf32>
    %138 = arith.mulf %137, %137 : vector<8x32xf32>
    %cst_66 = arith.constant dense<0.000000e+00> : vector<8xf32>
    %139 = vector.multi_reduction <add>, %138, %cst_66 [1] : vector<8x32xf32> to vector<8xf32>
    %140 = vector.shape_cast %139 : vector<8xf32> to vector<8x1xf32>
    %cst_67 = arith.constant 3.200000e+01 : f32
    %141 = vector.broadcast %cst_67 : f32 to vector<8x1xf32>
    %142 = arith.divf %140, %141 : vector<8x1xf32>
    %143 = vector.broadcast %135 : vector<8x1xf32> to vector<8x32xf32>
    %144 = arith.subf %131, %143 : vector<8x32xf32>
    %cst_68 = arith.constant 9.99999974E-6 : f32
    %145 = vector.broadcast %cst_68 : f32 to vector<8x1xf32>
    %146 = arith.addf %142, %145 : vector<8x1xf32>
    %147 = math.rsqrt %146 : vector<8x1xf32>
    %148 = vector.broadcast %147 : vector<8x1xf32> to vector<8x32xf32>
    %149 = arith.mulf %144, %148 : vector<8x32xf32>
    %150 = vector.broadcast %14 : vector<1x32xf32> to vector<8x32xf32>
    %151 = arith.mulf %149, %150 : vector<8x32xf32>
    %152 = vector.broadcast %15 : vector<1x32xf32> to vector<8x32xf32>
    %153 = arith.addf %151, %152 : vector<8x32xf32>
    %154 = arith.truncf %153 : vector<8x32xf32> to vector<8x32xbf16>
    %cst_69 = arith.constant dense<0.000000e+00> : vector<8x128xf32>
    %155 = tpu.matmul %154, %16, %cst_69 {dimension_numbers = #tpu.dot_dimension_numbers<[1], [0], [0], [1], [0, 0, 1, 1], [], []>} : vector<8x32xbf16>, vector<32x128xbf16>, vector<8x128xf32> -> vector<8x128xf32>
    %156 = vector.broadcast %17 : vector<1x128xf32> to vector<8x128xf32>
    %157 = arith.addf %155, %156 : vector<8x128xf32>
    %cst_70 = arith.constant 5.000000e-01 : f32
    %158 = vector.broadcast %cst_70 : f32 to vector<8x128xf32>
    %159 = arith.mulf %158, %157 : vector<8x128xf32>
    %cst_71 = arith.constant 0.707106769 : f32
    %160 = vector.broadcast %cst_71 : f32 to vector<8x128xf32>
    %161 = arith.mulf %157, %160 : vector<8x128xf32>
    %162 = math.erf %161 : vector<8x128xf32>
    %cst_72 = arith.constant 1.000000e+00 : f32
    %163 = vector.broadcast %cst_72 : f32 to vector<8x128xf32>
    %164 = arith.addf %163, %162 : vector<8x128xf32>
    %165 = arith.mulf %159, %164 : vector<8x128xf32>
    %166 = arith.truncf %165 : vector<8x128xf32> to vector<8x128xbf16>
    %cst_73 = arith.constant dense<0.000000e+00> : vector<8x32xf32>
    %167 = tpu.matmul %166, %18, %cst_73 {dimension_numbers = #tpu.dot_dimension_numbers<[1], [0], [0], [1], [0, 0, 1, 1], [], []>} : vector<8x128xbf16>, vector<128x32xbf16>, vector<8x32xf32> -> vector<8x32xf32>
    %168 = vector.broadcast %19 : vector<1x32xf32> to vector<8x32xf32>
    %169 = arith.addf %167, %168 : vector<8x32xf32>
    %170 = arith.addf %131, %169 : vector<8x32xf32>
    %c0_74 = arith.constant 0 : index
    %c0_75 = arith.constant 0 : index
    %c0_76 = arith.constant 0 : index
    %171 = vector.load %arg22[%c0_74, %c0_75, %c0_76] : memref<2x8x32xf32, #tpu.memory_space<vmem>>, vector<1x8x32xf32>
    %172 = vector.shape_cast %171 : vector<1x8x32xf32> to vector<8x32xf32>
    %173 = vector.shape_cast %170 : vector<8x32xf32> to vector<1x8x32xf32>
    tpu.vector_store %arg22[%c0_74, %c0_75, %c0_76], %173 {strides = array<i32>} : memref<2x8x32xf32, #tpu.memory_space<vmem>>, vector<1x8x32xf32>,
    %c1 = arith.constant 1 : index
    %c0_77 = arith.constant 0 : index
    %c0_78 = arith.constant 0 : index
    %174 = vector.load %arg1[%c1, %c0_77, %c0_78] : memref<2x8x32xf32, #tpu.memory_space<vmem>>, vector<1x8x32xf32>
    %175 = vector.shape_cast %174 : vector<1x8x32xf32> to vector<8x32xf32>
    %176 = arith.truncf %175 : vector<8x32xf32> to vector<8x32xbf16>
    %cst_79 = arith.constant dense<0.000000e+00> : vector<8x96xf32>
    %177 = tpu.matmul %176, %0, %cst_79 {dimension_numbers = #tpu.dot_dimension_numbers<[1], [0], [0], [1], [0, 0, 1, 1], [], []>} : vector<8x32xbf16>, vector<32x96xbf16>, vector<8x96xf32> -> vector<8x96xf32>
    %178 = vector.broadcast %1 : vector<1x96xf32> to vector<8x96xf32>
    %179 = arith.addf %177, %178 : vector<8x96xf32>
    %cst_80 = arith.constant 0.000000e+00 : f32
    %180 = vector.broadcast %cst_80 : f32 to vector<8x96xf32>
    %181 = arith.maximumf %179, %180 : vector<8x96xf32>
    %182 = vector.extract_strided_slice %181 {offsets = [0, 0], sizes = [8, 32], strides = [1, 1]} : vector<8x96xf32> to vector<8x32xf32>
    %183 = vector.extract_strided_slice %181 {offsets = [0, 32], sizes = [8, 32], strides = [1, 1]} : vector<8x96xf32> to vector<8x32xf32>
    %184 = vector.extract_strided_slice %181 {offsets = [0, 64], sizes = [8, 32], strides = [1, 1]} : vector<8x96xf32> to vector<8x32xf32>
    %185 = arith.truncf %182 : vector<8x32xf32> to vector<8x32xbf16>
    %186 = arith.truncf %183 : vector<8x32xf32> to vector<8x32xbf16>
    %cst_81 = arith.constant dense<0.000000e+00> : vector<32x32xf32>
    %187 = tpu.matmul %185, %186, %cst_81 {dimension_numbers = #tpu.dot_dimension_numbers<[0], [0], [1], [1], [0, 1, 1, 1], [], []>} : vector<8x32xbf16>, vector<8x32xbf16>, vector<32x32xf32> -> vector<32x32xf32>
    %cst_82 = arith.constant 0.176776692 : f32
    %188 = vector.broadcast %cst_82 : f32 to vector<32x32xf32>
    %189 = arith.mulf %187, %188 : vector<32x32xf32>
    %cst_83 = arith.constant dense<0xFF800000> : vector<32xf32>
    %190 = vector.multi_reduction <maximumf>, %189, %cst_83 [1] : vector<32x32xf32> to vector<32xf32>
    %191 = vector.shape_cast %190 : vector<32xf32> to vector<32x1xf32>
    %192 = vector.broadcast %191 : vector<32x1xf32> to vector<32x32xf32>
    %193 = arith.subf %189, %192 : vector<32x32xf32>
    %194 = math.exp %193 : vector<32x32xf32>
    %cst_84 = arith.constant dense<0.000000e+00> : vector<32xf32>
    %195 = vector.multi_reduction <add>, %194, %cst_84 [1] : vector<32x32xf32> to vector<32xf32>
    %196 = vector.shape_cast %195 : vector<32xf32> to vector<32x1xf32>
    %197 = tpu.reciprocal %196 {approx = true} : vector<32x1xf32> -> vector<32x1xf32>
    %198 = vector.broadcast %197 : vector<32x1xf32> to vector<32x32xf32>
    %199 = arith.mulf %194, %198 : vector<32x32xf32>
    %200 = arith.truncf %184 : vector<8x32xf32> to vector<8x32xbf16>
    %201 = arith.truncf %199 : vector<32x32xf32> to vector<32x32xbf16>
    %cst_85 = arith.constant dense<0.000000e+00> : vector<8x32xf32>
    %202 = tpu.matmul %200, %201, %cst_85 {dimension_numbers = #tpu.dot_dimension_numbers<[1], [0], [0], [1], [0, 0, 1, 1], [], []>} : vector<8x32xbf16>, vector<32x32xbf16>, vector<8x32xf32> -> vector<8x32xf32>
    %203 = arith.truncf %202 : vector<8x32xf32> to vector<8x32xbf16>
    %cst_86 = arith.constant dense<0.000000e+00> : vector<8x32xf32>
    %204 = tpu.matmul %203, %2, %cst_86 {dimension_numbers = #tpu.dot_dimension_numbers<[1], [0], [0], [1], [0, 0, 1, 1], [], []>} : vector<8x32xbf16>, vector<32x32xbf16>, vector<8x32xf32> -> vector<8x32xf32>
    %205 = arith.addf %175, %204 : vector<8x32xf32>
    %206 = vector.broadcast %3 : vector<1x32xf32> to vector<8x32xf32>
    %207 = arith.addf %205, %206 : vector<8x32xf32>
    %cst_87 = arith.constant dense<0.000000e+00> : vector<8x96xf32>
    %208 = tpu.matmul %176, %4, %cst_87 {dimension_numbers = #tpu.dot_dimension_numbers<[1], [0], [0], [1], [0, 0, 1, 1], [], []>} : vector<8x32xbf16>, vector<32x96xbf16>, vector<8x96xf32> -> vector<8x96xf32>
    %209 = vector.broadcast %5 : vector<1x96xf32> to vector<8x96xf32>
    %210 = arith.addf %208, %209 : vector<8x96xf32>
    %211 = vector.extract_strided_slice %210 {offsets = [0, 0], sizes = [8, 32], strides = [1, 1]} : vector<8x96xf32> to vector<8x32xf32>
    %212 = vector.extract_strided_slice %210 {offsets = [0, 32], sizes = [8, 32], strides = [1, 1]} : vector<8x96xf32> to vector<8x32xf32>
    %213 = vector.extract_strided_slice %210 {offsets = [0, 64], sizes = [8, 32], strides = [1, 1]} : vector<8x96xf32> to vector<8x32xf32>
    %214 = vector.shape_cast %211 : vector<8x32xf32> to vector<8x4x8xf32>
    %215 = tpu.transpose %214, [1, 0, 2] : vector<8x4x8xf32> -> vector<4x8x8xf32>
    %216 = arith.truncf %215 : vector<4x8x8xf32> to vector<4x8x8xbf16>
    %217 = vector.shape_cast %212 : vector<8x32xf32> to vector<8x4x8xf32>
    %218 = tpu.transpose %217, [1, 0, 2] : vector<8x4x8xf32> -> vector<4x8x8xf32>
    %219 = arith.truncf %218 : vector<4x8x8xf32> to vector<4x8x8xbf16>
    %220 = vector.shape_cast %213 : vector<8x32xf32> to vector<8x4x8xf32>
    %221 = tpu.transpose %220, [1, 0, 2] : vector<8x4x8xf32> -> vector<4x8x8xf32>
    %222 = arith.truncf %221 : vector<4x8x8xf32> to vector<4x8x8xbf16>
    "tpu.trace_start"() <{level = 10 : i32, message = "hqd,hkd->hqk"}> : () -> ()
    %cst_88 = arith.constant dense<0.000000e+00> : vector<4x8x8xf32>
    %223 = tpu.matmul %216, %219, %cst_88 {dimension_numbers = #tpu.dot_dimension_numbers<[2], [2], [1], [1], [0, 0, 0, 1, 1, 1], [0], [0]>} : vector<4x8x8xbf16>, vector<4x8x8xbf16>, vector<4x8x8xf32> -> vector<4x8x8xf32>
    "tpu.trace_stop"() : () -> ()
    %cst_89 = arith.constant 0.353553385 : f32
    %224 = vector.broadcast %cst_89 : f32 to vector<4x8x8xf32>
    %225 = arith.mulf %223, %224 : vector<4x8x8xf32>
    %cst_90 = arith.constant dense<0xFF800000> : vector<4x8xf32>
    %226 = vector.multi_reduction <maximumf>, %225, %cst_90 [2] : vector<4x8x8xf32> to vector<4x8xf32>
    %227 = vector.shape_cast %226 : vector<4x8xf32> to vector<4x8x1xf32>
    %228 = vector.broadcast %227 : vector<4x8x1xf32> to vector<4x8x8xf32>
    %229 = arith.subf %225, %228 : vector<4x8x8xf32>
    %230 = math.exp %229 : vector<4x8x8xf32>
    %cst_91 = arith.constant dense<0.000000e+00> : vector<4x8xf32>
    %231 = vector.multi_reduction <add>, %230, %cst_91 [2] : vector<4x8x8xf32> to vector<4x8xf32>
    %232 = vector.shape_cast %231 : vector<4x8xf32> to vector<4x8x1xf32>
    %233 = tpu.reciprocal %232 {approx = true} : vector<4x8x1xf32> -> vector<4x8x1xf32>
    %234 = vector.broadcast %233 : vector<4x8x1xf32> to vector<4x8x8xf32>
    %235 = arith.mulf %230, %234 : vector<4x8x8xf32>
    %236 = arith.truncf %235 : vector<4x8x8xf32> to vector<4x8x8xbf16>
    "tpu.trace_start"() <{level = 10 : i32, message = "hqk,hkd->hqd"}> : () -> ()
    %cst_92 = arith.constant dense<0.000000e+00> : vector<4x8x8xf32>
    %237 = tpu.matmul %236, %222, %cst_92 {dimension_numbers = #tpu.dot_dimension_numbers<[2], [1], [1], [2], [0, 0, 0, 1, 1, 2], [0], [0]>} : vector<4x8x8xbf16>, vector<4x8x8xbf16>, vector<4x8x8xf32> -> vector<4x8x8xf32>
    "tpu.trace_stop"() : () -> ()
    %238 = tpu.transpose %237, [1, 0, 2] : vector<4x8x8xf32> -> vector<8x4x8xf32>
    %239 = vector.shape_cast %238 : vector<8x4x8xf32> to vector<8x32xf32>
    %240 = arith.truncf %239 : vector<8x32xf32> to vector<8x32xbf16>
    %cst_93 = arith.constant dense<0.000000e+00> : vector<8x32xf32>
    %241 = tpu.matmul %240, %6, %cst_93 {dimension_numbers = #tpu.dot_dimension_numbers<[1], [0], [0], [1], [0, 0, 1, 1], [], []>} : vector<8x32xbf16>, vector<32x32xbf16>, vector<8x32xf32> -> vector<8x32xf32>
    %242 = arith.addf %175, %241 : vector<8x32xf32>
    %243 = vector.broadcast %7 : vector<1x32xf32> to vector<8x32xf32>
    %244 = arith.addf %242, %243 : vector<8x32xf32>
    %245 = arith.truncf %244 : vector<8x32xf32> to vector<8x32xbf16>
    %cst_94 = arith.constant dense<0.000000e+00> : vector<8x32xf32>
    %246 = tpu.matmul %245, %8, %cst_94 {dimension_numbers = #tpu.dot_dimension_numbers<[1], [0], [0], [1], [0, 0, 1, 1], [], []>} : vector<8x32xbf16>, vector<32x32xbf16>, vector<8x32xf32> -> vector<8x32xf32>
    %247 = vector.broadcast %9 : vector<1x32xf32> to vector<8x32xf32>
    %248 = arith.addf %246, %247 : vector<8x32xf32>
    %249 = arith.truncf %207 : vector<8x32xf32> to vector<8x32xbf16>
    %cst_95 = arith.constant dense<0.000000e+00> : vector<8x64xf32>
    %250 = tpu.matmul %249, %10, %cst_95 {dimension_numbers = #tpu.dot_dimension_numbers<[1], [0], [0], [1], [0, 0, 1, 1], [], []>} : vector<8x32xbf16>, vector<32x64xbf16>, vector<8x64xf32> -> vector<8x64xf32>
    %251 = vector.broadcast %11 : vector<1x64xf32> to vector<8x64xf32>
    %252 = arith.addf %250, %251 : vector<8x64xf32>
    %253 = vector.extract_strided_slice %252 {offsets = [0, 0], sizes = [8, 32], strides = [1, 1]} : vector<8x64xf32> to vector<8x32xf32>
    %254 = vector.extract_strided_slice %252 {offsets = [0, 32], sizes = [8, 32], strides = [1, 1]} : vector<8x64xf32> to vector<8x32xf32>
    %255 = vector.shape_cast %248 : vector<8x32xf32> to vector<8x4x8xf32>
    %256 = tpu.transpose %255, [1, 0, 2] : vector<8x4x8xf32> -> vector<4x8x8xf32>
    %257 = arith.truncf %256 : vector<4x8x8xf32> to vector<4x8x8xbf16>
    %258 = vector.shape_cast %253 : vector<8x32xf32> to vector<8x4x8xf32>
    %259 = tpu.transpose %258, [1, 0, 2] : vector<8x4x8xf32> -> vector<4x8x8xf32>
    %260 = arith.truncf %259 : vector<4x8x8xf32> to vector<4x8x8xbf16>
    %261 = vector.shape_cast %254 : vector<8x32xf32> to vector<8x4x8xf32>
    %262 = tpu.transpose %261, [1, 0, 2] : vector<8x4x8xf32> -> vector<4x8x8xf32>
    %263 = arith.truncf %262 : vector<4x8x8xf32> to vector<4x8x8xbf16>
    "tpu.trace_start"() <{level = 10 : i32, message = "hqd,hkd->hqk"}> : () -> ()
    %cst_96 = arith.constant dense<0.000000e+00> : vector<4x8x8xf32>
    %264 = tpu.matmul %257, %260, %cst_96 {dimension_numbers = #tpu.dot_dimension_numbers<[2], [2], [1], [1], [0, 0, 0, 1, 1, 1], [0], [0]>} : vector<4x8x8xbf16>, vector<4x8x8xbf16>, vector<4x8x8xf32> -> vector<4x8x8xf32>
    "tpu.trace_stop"() : () -> ()
    %cst_97 = arith.constant 0.353553385 : f32
    %265 = vector.broadcast %cst_97 : f32 to vector<4x8x8xf32>
    %266 = arith.mulf %264, %265 : vector<4x8x8xf32>
    %cst_98 = arith.constant dense<0xFF800000> : vector<4x8xf32>
    %267 = vector.multi_reduction <maximumf>, %266, %cst_98 [2] : vector<4x8x8xf32> to vector<4x8xf32>
    %268 = vector.shape_cast %267 : vector<4x8xf32> to vector<4x8x1xf32>
    %269 = vector.broadcast %268 : vector<4x8x1xf32> to vector<4x8x8xf32>
    %270 = arith.subf %266, %269 : vector<4x8x8xf32>
    %271 = math.exp %270 : vector<4x8x8xf32>
    %cst_99 = arith.constant dense<0.000000e+00> : vector<4x8xf32>
    %272 = vector.multi_reduction <add>, %271, %cst_99 [2] : vector<4x8x8xf32> to vector<4x8xf32>
    %273 = vector.shape_cast %272 : vector<4x8xf32> to vector<4x8x1xf32>
    %274 = tpu.reciprocal %273 {approx = true} : vector<4x8x1xf32> -> vector<4x8x1xf32>
    %275 = vector.broadcast %274 : vector<4x8x1xf32> to vector<4x8x8xf32>
    %276 = arith.mulf %271, %275 : vector<4x8x8xf32>
    %277 = arith.truncf %276 : vector<4x8x8xf32> to vector<4x8x8xbf16>
    "tpu.trace_start"() <{level = 10 : i32, message = "hqk,hkd->hqd"}> : () -> ()
    %cst_100 = arith.constant dense<0.000000e+00> : vector<4x8x8xf32>
    %278 = tpu.matmul %277, %263, %cst_100 {dimension_numbers = #tpu.dot_dimension_numbers<[2], [1], [1], [2], [0, 0, 0, 1, 1, 2], [0], [0]>} : vector<4x8x8xbf16>, vector<4x8x8xbf16>, vector<4x8x8xf32> -> vector<4x8x8xf32>
    "tpu.trace_stop"() : () -> ()
    %279 = tpu.transpose %278, [1, 0, 2] : vector<4x8x8xf32> -> vector<8x4x8xf32>
    %280 = vector.shape_cast %279 : vector<8x4x8xf32> to vector<8x32xf32>
    %281 = arith.truncf %280 : vector<8x32xf32> to vector<8x32xbf16>
    %cst_101 = arith.constant dense<0.000000e+00> : vector<8x32xf32>
    %282 = tpu.matmul %281, %12, %cst_101 {dimension_numbers = #tpu.dot_dimension_numbers<[1], [0], [0], [1], [0, 0, 1, 1], [], []>} : vector<8x32xbf16>, vector<32x32xbf16>, vector<8x32xf32> -> vector<8x32xf32>
    %283 = vector.broadcast %13 : vector<1x32xf32> to vector<8x32xf32>
    %284 = arith.addf %282, %283 : vector<8x32xf32>
    %285 = arith.addf %284, %175 : vector<8x32xf32>
    %cst_102 = arith.constant dense<0.000000e+00> : vector<8xf32>
    %286 = vector.multi_reduction <add>, %285, %cst_102 [1] : vector<8x32xf32> to vector<8xf32>
    %287 = vector.shape_cast %286 : vector<8xf32> to vector<8x1xf32>
    %cst_103 = arith.constant 3.200000e+01 : f32
    %288 = vector.broadcast %cst_103 : f32 to vector<8x1xf32>
    %289 = arith.divf %287, %288 : vector<8x1xf32>
    %290 = vector.broadcast %289 : vector<8x1xf32> to vector<8x32xf32>
    %291 = arith.subf %285, %290 : vector<8x32xf32>
    %292 = arith.mulf %291, %291 : vector<8x32xf32>
    %cst_104 = arith.constant dense<0.000000e+00> : vector<8xf32>
    %293 = vector.multi_reduction <add>, %292, %cst_104 [1] : vector<8x32xf32> to vector<8xf32>
    %294 = vector.shape_cast %293 : vector<8xf32> to vector<8x1xf32>
    %cst_105 = arith.constant 3.200000e+01 : f32
    %295 = vector.broadcast %cst_105 : f32 to vector<8x1xf32>
    %296 = arith.divf %294, %295 : vector<8x1xf32>
    %297 = vector.broadcast %289 : vector<8x1xf32> to vector<8x32xf32>
    %298 = arith.subf %285, %297 : vector<8x32xf32>
    %cst_106 = arith.constant 9.99999974E-6 : f32
    %299 = vector.broadcast %cst_106 : f32 to vector<8x1xf32>
    %300 = arith.addf %296, %299 : vector<8x1xf32>
    %301 = math.rsqrt %300 : vector<8x1xf32>
    %302 = vector.broadcast %301 : vector<8x1xf32> to vector<8x32xf32>
    %303 = arith.mulf %298, %302 : vector<8x32xf32>
    %304 = vector.broadcast %14 : vector<1x32xf32> to vector<8x32xf32>
    %305 = arith.mulf %303, %304 : vector<8x32xf32>
    %306 = vector.broadcast %15 : vector<1x32xf32> to vector<8x32xf32>
    %307 = arith.addf %305, %306 : vector<8x32xf32>
    %308 = arith.truncf %307 : vector<8x32xf32> to vector<8x32xbf16>
    %cst_107 = arith.constant dense<0.000000e+00> : vector<8x128xf32>
    %309 = tpu.matmul %308, %16, %cst_107 {dimension_numbers = #tpu.dot_dimension_numbers<[1], [0], [0], [1], [0, 0, 1, 1], [], []>} : vector<8x32xbf16>, vector<32x128xbf16>, vector<8x128xf32> -> vector<8x128xf32>
    %310 = vector.broadcast %17 : vector<1x128xf32> to vector<8x128xf32>
    %311 = arith.addf %309, %310 : vector<8x128xf32>
    %cst_108 = arith.constant 5.000000e-01 : f32
    %312 = vector.broadcast %cst_108 : f32 to vector<8x128xf32>
    %313 = arith.mulf %312, %311 : vector<8x128xf32>
    %cst_109 = arith.constant 0.707106769 : f32
    %314 = vector.broadcast %cst_109 : f32 to vector<8x128xf32>
    %315 = arith.mulf %311, %314 : vector<8x128xf32>
    %316 = math.erf %315 : vector<8x128xf32>
    %cst_110 = arith.constant 1.000000e+00 : f32
    %317 = vector.broadcast %cst_110 : f32 to vector<8x128xf32>
    %318 = arith.addf %317, %316 : vector<8x128xf32>
    %319 = arith.mulf %313, %318 : vector<8x128xf32>
    %320 = arith.truncf %319 : vector<8x128xf32> to vector<8x128xbf16>
    %cst_111 = arith.constant dense<0.000000e+00> : vector<8x32xf32>
    %321 = tpu.matmul %320, %18, %cst_111 {dimension_numbers = #tpu.dot_dimension_numbers<[1], [0], [0], [1], [0, 0, 1, 1], [], []>} : vector<8x128xbf16>, vector<128x32xbf16>, vector<8x32xf32> -> vector<8x32xf32>
    %322 = vector.broadcast %19 : vector<1x32xf32> to vector<8x32xf32>
    %323 = arith.addf %321, %322 : vector<8x32xf32>
    %324 = arith.addf %285, %323 : vector<8x32xf32>
    %c1_112 = arith.constant 1 : index
    %c0_113 = arith.constant 0 : index
    %c0_114 = arith.constant 0 : index
    %325 = vector.load %arg22[%c1_112, %c0_113, %c0_114] : memref<2x8x32xf32, #tpu.memory_space<vmem>>, vector<1x8x32xf32>
    %326 = vector.shape_cast %325 : vector<1x8x32xf32> to vector<8x32xf32>
    %327 = vector.shape_cast %324 : vector<8x32xf32> to vector<1x8x32xf32>
    tpu.vector_store %arg22[%c1_112, %c0_113, %c0_114], %327 {strides = array<i32>} : memref<2x8x32xf32, #tpu.memory_space<vmem>>, vector<1x8x32xf32>,
    return
  }
  func.func @transform_0(%arg0: i32) -> (i32, i32, i32) {
    %c0_i32 = arith.constant 0 : i32
    %c0_i32_0 = arith.constant 0 : i32
    %c0_i32_1 = arith.constant 0 : i32
    return %arg0, %c0_i32, %c0_i32_0 : i32, i32, i32
  }
  func.func @transform_1(%arg0: i32) -> (i32, i32) {
    %c0_i32 = arith.constant 0 : i32
    %c0_i32_0 = arith.constant 0 : i32
    %c0_i32_1 = arith.constant 0 : i32
    return %c0_i32, %c0_i32_0 : i32, i32
  }
  func.func @transform_2(%arg0: i32) -> (i32, i32) {
    %c0_i32 = arith.constant 0 : i32
    %c0_i32_0 = arith.constant 0 : i32
    %c0_i32_1 = arith.constant 0 : i32
    return %c0_i32, %c0_i32_0 : i32, i32
  }
  func.func @transform_3(%arg0: i32) -> (i32, i32) {
    %c0_i32 = arith.constant 0 : i32
    %c0_i32_0 = arith.constant 0 : i32
    %c0_i32_1 = arith.constant 0 : i32
    return %c0_i32, %c0_i32_0 : i32, i32
  }
  func.func @transform_4(%arg0: i32) -> (i32, i32) {
    %c0_i32 = arith.constant 0 : i32
    %c0_i32_0 = arith.constant 0 : i32
    %c0_i32_1 = arith.constant 0 : i32
    return %c0_i32, %c0_i32_0 : i32, i32
  }
  func.func @transform_5(%arg0: i32) -> (i32, i32) {
    %c0_i32 = arith.constant 0 : i32
    %c0_i32_0 = arith.constant 0 : i32
    %c0_i32_1 = arith.constant 0 : i32
    return %c0_i32, %c0_i32_0 : i32, i32
  }
  func.func @transform_6(%arg0: i32) -> (i32, i32) {
    %c0_i32 = arith.constant 0 : i32
    %c0_i32_0 = arith.constant 0 : i32
    %c0_i32_1 = arith.constant 0 : i32
    return %c0_i32, %c0_i32_0 : i32, i32
  }
  func.func @transform_7(%arg0: i32) -> (i32, i32) {
    %c0_i32 = arith.constant 0 : i32
    %c0_i32_0 = arith.constant 0 : i32
    %c0_i32_1 = arith.constant 0 : i32
    return %c0_i32, %c0_i32_0 : i32, i32
  }
  func.func @transform_8(%arg0: i32) -> (i32, i32) {
    %c0_i32 = arith.constant 0 : i32
    %c0_i32_0 = arith.constant 0 : i32
    %c0_i32_1 = arith.constant 0 : i32
    return %c0_i32, %c0_i32_0 : i32, i32
  }
  func.func @transform_9(%arg0: i32) -> (i32, i32) {
    %c0_i32 = arith.constant 0 : i32
    %c0_i32_0 = arith.constant 0 : i32
    %c0_i32_1 = arith.constant 0 : i32
    return %c0_i32, %c0_i32_0 : i32, i32
  }
  func.func @transform_10(%arg0: i32) -> (i32, i32) {
    %c0_i32 = arith.constant 0 : i32
    %c0_i32_0 = arith.constant 0 : i32
    %c0_i32_1 = arith.constant 0 : i32
    return %c0_i32, %c0_i32_0 : i32, i32
  }
  func.func @transform_11(%arg0: i32) -> (i32, i32) {
    %c0_i32 = arith.constant 0 : i32
    %c0_i32_0 = arith.constant 0 : i32
    %c0_i32_1 = arith.constant 0 : i32
    return %c0_i32, %c0_i32_0 : i32, i32
  }
  func.func @transform_12(%arg0: i32) -> (i32, i32) {
    %c0_i32 = arith.constant 0 : i32
    %c0_i32_0 = arith.constant 0 : i32
    %c0_i32_1 = arith.constant 0 : i32
    return %c0_i32, %c0_i32_0 : i32, i32
  }
  func.func @transform_13(%arg0: i32) -> (i32, i32) {
    %c0_i32 = arith.constant 0 : i32
    %c0_i32_0 = arith.constant 0 : i32
    %c0_i32_1 = arith.constant 0 : i32
    return %c0_i32, %c0_i32_0 : i32, i32
  }
  func.func @transform_14(%arg0: i32) -> (i32, i32) {
    %c0_i32 = arith.constant 0 : i32
    %c0_i32_0 = arith.constant 0 : i32
    %c0_i32_1 = arith.constant 0 : i32
    return %c0_i32, %c0_i32_0 : i32, i32
  }
  func.func @transform_15(%arg0: i32) -> (i32, i32) {
    %c0_i32 = arith.constant 0 : i32
    %c0_i32_0 = arith.constant 0 : i32
    %c0_i32_1 = arith.constant 0 : i32
    return %c0_i32, %c0_i32_0 : i32, i32
  }
  func.func @transform_16(%arg0: i32) -> (i32, i32) {
    %c0_i32 = arith.constant 0 : i32
    %c0_i32_0 = arith.constant 0 : i32
    %c0_i32_1 = arith.constant 0 : i32
    return %c0_i32, %c0_i32_0 : i32, i32
  }
  func.func @transform_17(%arg0: i32) -> (i32, i32) {
    %c0_i32 = arith.constant 0 : i32
    %c0_i32_0 = arith.constant 0 : i32
    %c0_i32_1 = arith.constant 0 : i32
    return %c0_i32, %c0_i32_0 : i32, i32
  }
  func.func @transform_18(%arg0: i32) -> (i32, i32) {
    %c0_i32 = arith.constant 0 : i32
    %c0_i32_0 = arith.constant 0 : i32
    %c0_i32_1 = arith.constant 0 : i32
    return %c0_i32, %c0_i32_0 : i32, i32
  }
  func.func @transform_19(%arg0: i32) -> (i32, i32) {
    %c0_i32 = arith.constant 0 : i32
    %c0_i32_0 = arith.constant 0 : i32
    %c0_i32_1 = arith.constant 0 : i32
    return %c0_i32, %c0_i32_0 : i32, i32
  }
  func.func @transform_20(%arg0: i32) -> (i32, i32) {
    %c0_i32 = arith.constant 0 : i32
    %c0_i32_0 = arith.constant 0 : i32
    %c0_i32_1 = arith.constant 0 : i32
    return %c0_i32, %c0_i32_0 : i32, i32
  }
  func.func @transform_21(%arg0: i32) -> (i32, i32, i32) {
    %c0_i32 = arith.constant 0 : i32
    %c0_i32_0 = arith.constant 0 : i32
    %c0_i32_1 = arith.constant 0 : i32
    return %arg0, %c0_i32, %c0_i32_0 : i32, i32, i32
  }
}

module attributes {stable_mosaic.version = 11 : i64} {
  func.func @grid_attn_kernel(%arg0: i32, %arg1: memref<2x8x32xf32, #tpu.memory_space<vmem>>, %arg2: memref<32x96xbf16, #tpu.memory_space<vmem>>, %arg3: memref<1x96xf32, #tpu.memory_space<vmem>>, %arg4: memref<32x32xbf16, #tpu.memory_space<vmem>>, %arg5: memref<1x32xf32, #tpu.memory_space<vmem>>, %arg6: memref<32x96xbf16, #tpu.memory_space<vmem>>, %arg7: memref<1x96xf32, #tpu.memory_space<vmem>>, %arg8: memref<32x32xbf16, #tpu.memory_space<vmem>>, %arg9: memref<1x32xf32, #tpu.memory_space<vmem>>, %arg10: memref<32x32xbf16, #tpu.memory_space<vmem>>, %arg11: memref<1x32xf32, #tpu.memory_space<vmem>>, %arg12: memref<32x64xbf16, #tpu.memory_space<vmem>>, %arg13: memref<1x64xf32, #tpu.memory_space<vmem>>, %arg14: memref<32x32xbf16, #tpu.memory_space<vmem>>, %arg15: memref<1x32xf32, #tpu.memory_space<vmem>>, %arg16: memref<1x32xf32, #tpu.memory_space<vmem>>, %arg17: memref<1x32xf32, #tpu.memory_space<vmem>>, %arg18: memref<32x128xbf16, #tpu.memory_space<vmem>>, %arg19: memref<1x128xf32, #tpu.memory_space<vmem>>, %arg20: memref<128x32xbf16, #tpu.memory_space<vmem>>, %arg21: memref<1x32xf32, #tpu.memory_space<vmem>>, %arg22: memref<2x8x32xf32, #tpu.memory_space<vmem>>) attributes {dimension_semantics = [#tpu.dimension_semantics<parallel>], iteration_bounds = array<i64: 1>, scalar_prefetch = 0 : i64, scratch_operands = 0 : i64, tpu.core_type = #tpu.core_type<tc>, window_params = [{transform_indices = @transform_0, window_bounds = array<i64: 2, 8, 32>}, {pipeline_mode = #tpu.pipeline_mode<synchronous>, transform_indices = @transform_1, window_bounds = array<i64: 32, 96>}, {pipeline_mode = #tpu.pipeline_mode<synchronous>, transform_indices = @transform_2, window_bounds = array<i64: 1, 96>}, {pipeline_mode = #tpu.pipeline_mode<synchronous>, transform_indices = @transform_3, window_bounds = array<i64: 32, 32>}, {pipeline_mode = #tpu.pipeline_mode<synchronous>, transform_indices = @transform_4, window_bounds = array<i64: 1, 32>}, {pipeline_mode = #tpu.pipeline_mode<synchronous>, transform_indices = @transform_5, window_bounds = array<i64: 32, 96>}, {pipeline_mode = #tpu.pipeline_mode<synchronous>, transform_indices = @transform_6, window_bounds = array<i64: 1, 96>}, {pipeline_mode = #tpu.pipeline_mode<synchronous>, transform_indices = @transform_7, window_bounds = array<i64: 32, 32>}, {pipeline_mode = #tpu.pipeline_mode<synchronous>, transform_indices = @transform_8, window_bounds = array<i64: 1, 32>}, {pipeline_mode = #tpu.pipeline_mode<synchronous>, transform_indices = @transform_9, window_bounds = array<i64: 32, 32>}, {pipeline_mode = #tpu.pipeline_mode<synchronous>, transform_indices = @transform_10, window_bounds = array<i64: 1, 32>}, {pipeline_mode = #tpu.pipeline_mode<synchronous>, transform_indices = @transform_11, window_bounds = array<i64: 32, 64>}, {pipeline_mode = #tpu.pipeline_mode<synchronous>, transform_indices = @transform_12, window_bounds = array<i64: 1, 64>}, {pipeline_mode = #tpu.pipeline_mode<synchronous>, transform_indices = @transform_13, window_bounds = array<i64: 32, 32>}, {pipeline_mode = #tpu.pipeline_mode<synchronous>, transform_indices = @transform_14, window_bounds = array<i64: 1, 32>}, {pipeline_mode = #tpu.pipeline_mode<synchronous>, transform_indices = @transform_15, window_bounds = array<i64: 1, 32>}, {pipeline_mode = #tpu.pipeline_mode<synchronous>, transform_indices = @transform_16, window_bounds = array<i64: 1, 32>}, {pipeline_mode = #tpu.pipeline_mode<synchronous>, transform_indices = @transform_17, window_bounds = array<i64: 32, 128>}, {pipeline_mode = #tpu.pipeline_mode<synchronous>, transform_indices = @transform_18, window_bounds = array<i64: 1, 128>}, {pipeline_mode = #tpu.pipeline_mode<synchronous>, transform_indices = @transform_19, window_bounds = array<i64: 128, 32>}, {pipeline_mode = #tpu.pipeline_mode<synchronous>, transform_indices = @transform_20, window_bounds = array<i64: 1, 32>}, {transform_indices = @transform_21, window_bounds = array<i64: 2, 8, 32>}]} {
    %c0 = arith.constant 0 : index
    %c0_0 = arith.constant 0 : index
    %0 = vector.load %arg2[%c0, %c0_0] : memref<32x96xbf16, #tpu.memory_space<vmem>>, vector<32x96xbf16>
    %c0_1 = arith.constant 0 : index
    %c0_2 = arith.constant 0 : index
    %1 = vector.load %arg3[%c0_1, %c0_2] : memref<1x96xf32, #tpu.memory_space<vmem>>, vector<1x96xf32>
    %c0_3 = arith.constant 0 : index
    %c0_4 = arith.constant 0 : index
    %2 = vector.load %arg4[%c0_3, %c0_4] : memref<32x32xbf16, #tpu.memory_space<vmem>>, vector<32x32xbf16>
    %c0_5 = arith.constant 0 : index
    %c0_6 = arith.constant 0 : index
    %3 = vector.load %arg5[%c0_5, %c0_6] : memref<1x32xf32, #tpu.memory_space<vmem>>, vector<1x32xf32>
    %c0_7 = arith.constant 0 : index
    %c0_8 = arith.constant 0 : index
    %4 = vector.load %arg6[%c0_7, %c0_8] : memref<32x96xbf16, #tpu.memory_space<vmem>>, vector<32x96xbf16>
    %c0_9 = arith.constant 0 : index
    %c0_10 = arith.constant 0 : index
    %5 = vector.load %arg7[%c0_9, %c0_10] : memref<1x96xf32, #tpu.memory_space<vmem>>, vector<1x96xf32>
    %c0_11 = arith.constant 0 : index
    %c0_12 = arith.constant 0 : index
    %6 = vector.load %arg8[%c0_11, %c0_12] : memref<32x32xbf16, #tpu.memory_space<vmem>>, vector<32x32xbf16>
    %c0_13 = arith.constant 0 : index
    %c0_14 = arith.constant 0 : index
    %7 = vector.load %arg9[%c0_13, %c0_14] : memref<1x32xf32, #tpu.memory_space<vmem>>, vector<1x32xf32>
    %c0_15 = arith.constant 0 : index
    %c0_16 = arith.constant 0 : index
    %8 = vector.load %arg10[%c0_15, %c0_16] : memref<32x32xbf16, #tpu.memory_space<vmem>>, vector<32x32xbf16>
    %c0_17 = arith.constant 0 : index
    %c0_18 = arith.constant 0 : index
    %9 = vector.load %arg11[%c0_17, %c0_18] : memref<1x32xf32, #tpu.memory_space<vmem>>, vector<1x32xf32>
    %c0_19 = arith.constant 0 : index
    %c0_20 = arith.constant 0 : index
    %10 = vector.load %arg12[%c0_19, %c0_20] : memref<32x64xbf16, #tpu.memory_space<vmem>>, vector<32x64xbf16>
    %c0_21 = arith.constant 0 : index
    %c0_22 = arith.constant 0 : index
    %11 = vector.load %arg13[%c0_21, %c0_22] : memref<1x64xf32, #tpu.memory_space<vmem>>, vector<1x64xf32>
    %c0_23 = arith.constant 0 : index
    %c0_24 = arith.constant 0 : index
    %12 = vector.load %arg14[%c0_23, %c0_24] : memref<32x32xbf16, #tpu.memory_space<vmem>>, vector<32x32xbf16>
    %c0_25 = arith.constant 0 : index
    %c0_26 = arith.constant 0 : index
    %13 = vector.load %arg15[%c0_25, %c0_26] : memref<1x32xf32, #tpu.memory_space<vmem>>, vector<1x32xf32>
    %c0_27 = arith.constant 0 : index
    %c0_28 = arith.constant 0 : index
    %14 = vector.load %arg16[%c0_27, %c0_28] : memref<1x32xf32, #tpu.memory_space<vmem>>, vector<1x32xf32>
    %c0_29 = arith.constant 0 : index
    %c0_30 = arith.constant 0 : index
    %15 = vector.load %arg17[%c0_29, %c0_30] : memref<1x32xf32, #tpu.memory_space<vmem>>, vector<1x32xf32>
    %c0_31 = arith.constant 0 : index
    %c0_32 = arith.constant 0 : index
    %16 = vector.load %arg18[%c0_31, %c0_32] : memref<32x128xbf16, #tpu.memory_space<vmem>>, vector<32x128xbf16>
    %c0_33 = arith.constant 0 : index
    %c0_34 = arith.constant 0 : index
    %17 = vector.load %arg19[%c0_33, %c0_34] : memref<1x128xf32, #tpu.memory_space<vmem>>, vector<1x128xf32>
    %c0_35 = arith.constant 0 : index
    %c0_36 = arith.constant 0 : index
    %18 = vector.load %arg20[%c0_35, %c0_36] : memref<128x32xbf16, #tpu.memory_space<vmem>>, vector<128x32xbf16>
    %c0_37 = arith.constant 0 : index
    %c0_38 = arith.constant 0 : index
    %19 = vector.load %arg21[%c0_37, %c0_38] : memref<1x32xf32, #tpu.memory_space<vmem>>, vector<1x32xf32>
    %c0_39 = arith.constant 0 : index
    %c0_40 = arith.constant 0 : index
    %c0_41 = arith.constant 0 : index
    %20 = vector.load %arg1[%c0_39, %c0_40, %c0_41] : memref<2x8x32xf32, #tpu.memory_space<vmem>>, vector<1x8x32xf32>
    %21 = vector.shape_cast %20 : vector<1x8x32xf32> to vector<8x32xf32>
    %22 = arith.truncf %21 : vector<8x32xf32> to vector<8x32xbf16>
    %cst = arith.constant dense<0.000000e+00> : vector<8x96xf32>
    %23 = tpu.matmul %22, %0, %cst {dimension_numbers = #tpu.dot_dimension_numbers<[1], [0], [0], [1], [0, 0, 1, 1], [], []>} : vector<8x32xbf16>, vector<32x96xbf16>, vector<8x96xf32> -> vector<8x96xf32>
    %24 = vector.broadcast %1 : vector<1x96xf32> to vector<8x96xf32>
    %25 = arith.addf %23, %24 : vector<8x96xf32>
    %cst_42 = arith.constant 0.000000e+00 : f32
    %26 = vector.broadcast %cst_42 : f32 to vector<8x96xf32>
    %27 = arith.maximumf %25, %26 : vector<8x96xf32>
    %28 = vector.extract_strided_slice %27 {offsets = [0, 0], sizes = [8, 32], strides = [1, 1]} : vector<8x96xf32> to vector<8x32xf32>
    %29 = vector.extract_strided_slice %27 {offsets = [0, 32], sizes = [8, 32], strides = [1, 1]} : vector<8x96xf32> to vector<8x32xf32>
    %30 = vector.extract_strided_slice %27 {offsets = [0, 64], sizes = [8, 32], strides = [1, 1]} : vector<8x96xf32> to vector<8x32xf32>
    %31 = arith.truncf %28 : vector<8x32xf32> to vector<8x32xbf16>
    %32 = arith.truncf %29 : vector<8x32xf32> to vector<8x32xbf16>
    %cst_43 = arith.constant dense<0.000000e+00> : vector<32x32xf32>
    %33 = tpu.matmul %31, %32, %cst_43 {dimension_numbers = #tpu.dot_dimension_numbers<[0], [0], [1], [1], [0, 1, 1, 1], [], []>} : vector<8x32xbf16>, vector<8x32xbf16>, vector<32x32xf32> -> vector<32x32xf32>
    %cst_44 = arith.constant 0.176776692 : f32
    %34 = vector.broadcast %cst_44 : f32 to vector<32x32xf32>
    %35 = arith.mulf %33, %34 : vector<32x32xf32>
    %cst_45 = arith.constant dense<0xFF800000> : vector<32xf32>
    %36 = vector.multi_reduction <maximumf>, %35, %cst_45 [1] : vector<32x32xf32> to vector<32xf32>
    %37 = vector.shape_cast %36 : vector<32xf32> to vector<32x1xf32>
    %38 = vector.broadcast %37 : vector<32x1xf32> to vector<32x32xf32>
    %39 = arith.subf %35, %38 : vector<32x32xf32>
    %40 = math.exp %39 : vector<32x32xf32>
    %cst_46 = arith.constant dense<0.000000e+00> : vector<32xf32>
    %41 = vector.multi_reduction <add>, %40, %cst_46 [1] : vector<32x32xf32> to vector<32xf32>
    %42 = vector.shape_cast %41 : vector<32xf32> to vector<32x1xf32>
    %43 = tpu.reciprocal %42 {approx = true} : vector<32x1xf32> -> vector<32x1xf32>
    %44 = vector.broadcast %43 : vector<32x1xf32> to vector<32x32xf32>
    %45 = arith.mulf %40, %44 : vector<32x32xf32>
    %46 = arith.truncf %30 : vector<8x32xf32> to vector<8x32xbf16>
    %47 = arith.truncf %45 : vector<32x32xf32> to vector<32x32xbf16>
    %cst_47 = arith.constant dense<0.000000e+00> : vector<8x32xf32>
    %48 = tpu.matmul %46, %47, %cst_47 {dimension_numbers = #tpu.dot_dimension_numbers<[1], [0], [0], [1], [0, 0, 1, 1], [], []>} : vector<8x32xbf16>, vector<32x32xbf16>, vector<8x32xf32> -> vector<8x32xf32>
    %49 = arith.truncf %48 : vector<8x32xf32> to vector<8x32xbf16>
    %cst_48 = arith.constant dense<0.000000e+00> : vector<8x32xf32>
    %50 = tpu.matmul %49, %2, %cst_48 {dimension_numbers = #tpu.dot_dimension_numbers<[1], [0], [0], [1], [0, 0, 1, 1], [], []>} : vector<8x32xbf16>, vector<32x32xbf16>, vector<8x32xf32> -> vector<8x32xf32>
    %51 = arith.addf %21, %50 : vector<8x32xf32>
    %52 = vector.broadcast %3 : vector<1x32xf32> to vector<8x32xf32>
    %53 = arith.addf %51, %52 : vector<8x32xf32>
    %cst_49 = arith.constant dense<0.000000e+00> : vector<8x96xf32>
    %54 = tpu.matmul %22, %4, %cst_49 {dimension_numbers = #tpu.dot_dimension_numbers<[1], [0], [0], [1], [0, 0, 1, 1], [], []>} : vector<8x32xbf16>, vector<32x96xbf16>, vector<8x96xf32> -> vector<8x96xf32>
    %55 = vector.broadcast %5 : vector<1x96xf32> to vector<8x96xf32>
    %56 = arith.addf %54, %55 : vector<8x96xf32>
    %57 = vector.extract_strided_slice %56 {offsets = [0, 0], sizes = [8, 32], strides = [1, 1]} : vector<8x96xf32> to vector<8x32xf32>
    %58 = vector.extract_strided_slice %56 {offsets = [0, 32], sizes = [8, 32], strides = [1, 1]} : vector<8x96xf32> to vector<8x32xf32>
    %59 = vector.extract_strided_slice %56 {offsets = [0, 64], sizes = [8, 32], strides = [1, 1]} : vector<8x96xf32> to vector<8x32xf32>
    %60 = vector.shape_cast %57 : vector<8x32xf32> to vector<8x4x8xf32>
    %61 = tpu.transpose %60, [1, 0, 2] : vector<8x4x8xf32> -> vector<4x8x8xf32>
    %62 = arith.truncf %61 : vector<4x8x8xf32> to vector<4x8x8xbf16>
    %63 = vector.shape_cast %58 : vector<8x32xf32> to vector<8x4x8xf32>
    %64 = tpu.transpose %63, [1, 0, 2] : vector<8x4x8xf32> -> vector<4x8x8xf32>
    %65 = arith.truncf %64 : vector<4x8x8xf32> to vector<4x8x8xbf16>
    %66 = vector.shape_cast %59 : vector<8x32xf32> to vector<8x4x8xf32>
    %67 = tpu.transpose %66, [1, 0, 2] : vector<8x4x8xf32> -> vector<4x8x8xf32>
    %68 = arith.truncf %67 : vector<4x8x8xf32> to vector<4x8x8xbf16>
    "tpu.trace_start"() <{level = 10 : i32, message = "hqd,hkd->hqk"}> : () -> ()
    %cst_50 = arith.constant dense<0.000000e+00> : vector<4x8x8xf32>
    %69 = tpu.matmul %62, %65, %cst_50 {dimension_numbers = #tpu.dot_dimension_numbers<[2], [2], [1], [1], [0, 0, 0, 1, 1, 1], [0], [0]>} : vector<4x8x8xbf16>, vector<4x8x8xbf16>, vector<4x8x8xf32> -> vector<4x8x8xf32>
    "tpu.trace_stop"() : () -> ()
    %cst_51 = arith.constant 0.353553385 : f32
    %70 = vector.broadcast %cst_51 : f32 to vector<4x8x8xf32>
    %71 = arith.mulf %69, %70 : vector<4x8x8xf32>
    %cst_52 = arith.constant dense<0xFF800000> : vector<4x8xf32>
    %72 = vector.multi_reduction <maximumf>, %71, %cst_52 [2] : vector<4x8x8xf32> to vector<4x8xf32>
    %73 = vector.shape_cast %72 : vector<4x8xf32> to vector<4x8x1xf32>
    %74 = vector.broadcast %73 : vector<4x8x1xf32> to vector<4x8x8xf32>
    %75 = arith.subf %71, %74 : vector<4x8x8xf32>
    %76 = math.exp %75 : vector<4x8x8xf32>
    %cst_53 = arith.constant dense<0.000000e+00> : vector<4x8xf32>
    %77 = vector.multi_reduction <add>, %76, %cst_53 [2] : vector<4x8x8xf32> to vector<4x8xf32>
    %78 = vector.shape_cast %77 : vector<4x8xf32> to vector<4x8x1xf32>
    %79 = tpu.reciprocal %78 {approx = true} : vector<4x8x1xf32> -> vector<4x8x1xf32>
    %80 = vector.broadcast %79 : vector<4x8x1xf32> to vector<4x8x8xf32>
    %81 = arith.mulf %76, %80 : vector<4x8x8xf32>
    %82 = arith.truncf %81 : vector<4x8x8xf32> to vector<4x8x8xbf16>
    "tpu.trace_start"() <{level = 10 : i32, message = "hqk,hkd->hqd"}> : () -> ()
    %cst_54 = arith.constant dense<0.000000e+00> : vector<4x8x8xf32>
    %83 = tpu.matmul %82, %68, %cst_54 {dimension_numbers = #tpu.dot_dimension_numbers<[2], [1], [1], [2], [0, 0, 0, 1, 1, 2], [0], [0]>} : vector<4x8x8xbf16>, vector<4x8x8xbf16>, vector<4x8x8xf32> -> vector<4x8x8xf32>
    "tpu.trace_stop"() : () -> ()
    %84 = tpu.transpose %83, [1, 0, 2] : vector<4x8x8xf32> -> vector<8x4x8xf32>
    %85 = vector.shape_cast %84 : vector<8x4x8xf32> to vector<8x32xf32>
    %86 = arith.truncf %85 : vector<8x32xf32> to vector<8x32xbf16>
    %cst_55 = arith.constant dense<0.000000e+00> : vector<8x32xf32>
    %87 = tpu.matmul %86, %6, %cst_55 {dimension_numbers = #tpu.dot_dimension_numbers<[1], [0], [0], [1], [0, 0, 1, 1], [], []>} : vector<8x32xbf16>, vector<32x32xbf16>, vector<8x32xf32> -> vector<8x32xf32>
    %88 = arith.addf %21, %87 : vector<8x32xf32>
    %89 = vector.broadcast %7 : vector<1x32xf32> to vector<8x32xf32>
    %90 = arith.addf %88, %89 : vector<8x32xf32>
    %91 = arith.truncf %90 : vector<8x32xf32> to vector<8x32xbf16>
    %cst_56 = arith.constant dense<0.000000e+00> : vector<8x32xf32>
    %92 = tpu.matmul %91, %8, %cst_56 {dimension_numbers = #tpu.dot_dimension_numbers<[1], [0], [0], [1], [0, 0, 1, 1], [], []>} : vector<8x32xbf16>, vector<32x32xbf16>, vector<8x32xf32> -> vector<8x32xf32>
    %93 = vector.broadcast %9 : vector<1x32xf32> to vector<8x32xf32>
    %94 = arith.addf %92, %93 : vector<8x32xf32>
    %95 = arith.truncf %53 : vector<8x32xf32> to vector<8x32xbf16>
    %cst_57 = arith.constant dense<0.000000e+00> : vector<8x64xf32>
    %96 = tpu.matmul %95, %10, %cst_57 {dimension_numbers = #tpu.dot_dimension_numbers<[1], [0], [0], [1], [0, 0, 1, 1], [], []>} : vector<8x32xbf16>, vector<32x64xbf16>, vector<8x64xf32> -> vector<8x64xf32>
    %97 = vector.broadcast %11 : vector<1x64xf32> to vector<8x64xf32>
    %98 = arith.addf %96, %97 : vector<8x64xf32>
    %99 = vector.extract_strided_slice %98 {offsets = [0, 0], sizes = [8, 32], strides = [1, 1]} : vector<8x64xf32> to vector<8x32xf32>
    %100 = vector.extract_strided_slice %98 {offsets = [0, 32], sizes = [8, 32], strides = [1, 1]} : vector<8x64xf32> to vector<8x32xf32>
    %101 = vector.shape_cast %94 : vector<8x32xf32> to vector<8x4x8xf32>
    %102 = tpu.transpose %101, [1, 0, 2] : vector<8x4x8xf32> -> vector<4x8x8xf32>
    %103 = arith.truncf %102 : vector<4x8x8xf32> to vector<4x8x8xbf16>
    %104 = vector.shape_cast %99 : vector<8x32xf32> to vector<8x4x8xf32>
    %105 = tpu.transpose %104, [1, 0, 2] : vector<8x4x8xf32> -> vector<4x8x8xf32>
    %106 = arith.truncf %105 : vector<4x8x8xf32> to vector<4x8x8xbf16>
    %107 = vector.shape_cast %100 : vector<8x32xf32> to vector<8x4x8xf32>
    %108 = tpu.transpose %107, [1, 0, 2] : vector<8x4x8xf32> -> vector<4x8x8xf32>
    %109 = arith.truncf %108 : vector<4x8x8xf32> to vector<4x8x8xbf16>
    "tpu.trace_start"() <{level = 10 : i32, message = "hqd,hkd->hqk"}> : () -> ()
    %cst_58 = arith.constant dense<0.000000e+00> : vector<4x8x8xf32>
    %110 = tpu.matmul %103, %106, %cst_58 {dimension_numbers = #tpu.dot_dimension_numbers<[2], [2], [1], [1], [0, 0, 0, 1, 1, 1], [0], [0]>} : vector<4x8x8xbf16>, vector<4x8x8xbf16>, vector<4x8x8xf32> -> vector<4x8x8xf32>
    "tpu.trace_stop"() : () -> ()
    %cst_59 = arith.constant 0.353553385 : f32
    %111 = vector.broadcast %cst_59 : f32 to vector<4x8x8xf32>
    %112 = arith.mulf %110, %111 : vector<4x8x8xf32>
    %cst_60 = arith.constant dense<0xFF800000> : vector<4x8xf32>
    %113 = vector.multi_reduction <maximumf>, %112, %cst_60 [2] : vector<4x8x8xf32> to vector<4x8xf32>
    %114 = vector.shape_cast %113 : vector<4x8xf32> to vector<4x8x1xf32>
    %115 = vector.broadcast %114 : vector<4x8x1xf32> to vector<4x8x8xf32>
    %116 = arith.subf %112, %115 : vector<4x8x8xf32>
    %117 = math.exp %116 : vector<4x8x8xf32>
    %cst_61 = arith.constant dense<0.000000e+00> : vector<4x8xf32>
    %118 = vector.multi_reduction <add>, %117, %cst_61 [2] : vector<4x8x8xf32> to vector<4x8xf32>
    %119 = vector.shape_cast %118 : vector<4x8xf32> to vector<4x8x1xf32>
    %120 = tpu.reciprocal %119 {approx = true} : vector<4x8x1xf32> -> vector<4x8x1xf32>
    %121 = vector.broadcast %120 : vector<4x8x1xf32> to vector<4x8x8xf32>
    %122 = arith.mulf %117, %121 : vector<4x8x8xf32>
    %123 = arith.truncf %122 : vector<4x8x8xf32> to vector<4x8x8xbf16>
    "tpu.trace_start"() <{level = 10 : i32, message = "hqk,hkd->hqd"}> : () -> ()
    %cst_62 = arith.constant dense<0.000000e+00> : vector<4x8x8xf32>
    %124 = tpu.matmul %123, %109, %cst_62 {dimension_numbers = #tpu.dot_dimension_numbers<[2], [1], [1], [2], [0, 0, 0, 1, 1, 2], [0], [0]>} : vector<4x8x8xbf16>, vector<4x8x8xbf16>, vector<4x8x8xf32> -> vector<4x8x8xf32>
    "tpu.trace_stop"() : () -> ()
    %125 = tpu.transpose %124, [1, 0, 2] : vector<4x8x8xf32> -> vector<8x4x8xf32>
    %126 = vector.shape_cast %125 : vector<8x4x8xf32> to vector<8x32xf32>
    %127 = arith.truncf %126 : vector<8x32xf32> to vector<8x32xbf16>
    %cst_63 = arith.constant dense<0.000000e+00> : vector<8x32xf32>
    %128 = tpu.matmul %127, %12, %cst_63 {dimension_numbers = #tpu.dot_dimension_numbers<[1], [0], [0], [1], [0, 0, 1, 1], [], []>} : vector<8x32xbf16>, vector<32x32xbf16>, vector<8x32xf32> -> vector<8x32xf32>
    %129 = vector.broadcast %13 : vector<1x32xf32> to vector<8x32xf32>
    %130 = arith.addf %128, %129 : vector<8x32xf32>
    %131 = arith.addf %130, %21 : vector<8x32xf32>
    %cst_64 = arith.constant dense<0.000000e+00> : vector<8xf32>
    %132 = vector.multi_reduction <add>, %131, %cst_64 [1] : vector<8x32xf32> to vector<8xf32>
    %133 = vector.shape_cast %132 : vector<8xf32> to vector<8x1xf32>
    %cst_65 = arith.constant 3.200000e+01 : f32
    %134 = vector.broadcast %cst_65 : f32 to vector<8x1xf32>
    %135 = arith.divf %133, %134 : vector<8x1xf32>
    %136 = vector.broadcast %135 : vector<8x1xf32> to vector<8x32xf32>
    %137 = arith.subf %131, %136 : vector<8x32xf32>
    %138 = arith.mulf %137, %137 : vector<8x32xf32>
    %cst_66 = arith.constant dense<0.000000e+00> : vector<8xf32>
    %139 = vector.multi_reduction <add>, %138, %cst_66 [1] : vector<8x32xf32> to vector<8xf32>
    %140 = vector.shape_cast %139 : vector<8xf32> to vector<8x1xf32>
    %cst_67 = arith.constant 3.200000e+01 : f32
    %141 = vector.broadcast %cst_67 : f32 to vector<8x1xf32>
    %142 = arith.divf %140, %141 : vector<8x1xf32>
    %143 = vector.broadcast %135 : vector<8x1xf32> to vector<8x32xf32>
    %144 = arith.subf %131, %143 : vector<8x32xf32>
    %cst_68 = arith.constant 9.99999974E-6 : f32
    %145 = vector.broadcast %cst_68 : f32 to vector<8x1xf32>
    %146 = arith.addf %142, %145 : vector<8x1xf32>
    %147 = math.rsqrt %146 : vector<8x1xf32>
    %148 = vector.broadcast %147 : vector<8x1xf32> to vector<8x32xf32>
    %149 = arith.mulf %144, %148 : vector<8x32xf32>
    %150 = vector.broadcast %14 : vector<1x32xf32> to vector<8x32xf32>
    %151 = arith.mulf %149, %150 : vector<8x32xf32>
    %152 = vector.broadcast %15 : vector<1x32xf32> to vector<8x32xf32>
    %153 = arith.addf %151, %152 : vector<8x32xf32>
    %154 = arith.truncf %153 : vector<8x32xf32> to vector<8x32xbf16>
    %cst_69 = arith.constant dense<0.000000e+00> : vector<8x128xf32>
    %155 = tpu.matmul %154, %16, %cst_69 {dimension_numbers = #tpu.dot_dimension_numbers<[1], [0], [0], [1], [0, 0, 1, 1], [], []>} : vector<8x32xbf16>, vector<32x128xbf16>, vector<8x128xf32> -> vector<8x128xf32>
    %156 = vector.broadcast %17 : vector<1x128xf32> to vector<8x128xf32>
    %157 = arith.addf %155, %156 : vector<8x128xf32>
    %cst_70 = arith.constant 5.000000e-01 : f32
    %158 = vector.broadcast %cst_70 : f32 to vector<8x128xf32>
    %159 = arith.mulf %158, %157 : vector<8x128xf32>
    %cst_71 = arith.constant 0.707106769 : f32
    %160 = vector.broadcast %cst_71 : f32 to vector<8x128xf32>
    %161 = arith.mulf %157, %160 : vector<8x128xf32>
    %162 = math.erf %161 : vector<8x128xf32>
    %cst_72 = arith.constant 1.000000e+00 : f32
    %163 = vector.broadcast %cst_72 : f32 to vector<8x128xf32>
    %164 = arith.addf %163, %162 : vector<8x128xf32>
    %165 = arith.mulf %159, %164 : vector<8x128xf32>
    %166 = arith.truncf %165 : vector<8x128xf32> to vector<8x128xbf16>
    %cst_73 = arith.constant dense<0.000000e+00> : vector<8x32xf32>
    %167 = tpu.matmul %166, %18, %cst_73 {dimension_numbers = #tpu.dot_dimension_numbers<[1], [0], [0], [1], [0, 0, 1, 1], [], []>} : vector<8x128xbf16>, vector<128x32xbf16>, vector<8x32xf32> -> vector<8x32xf32>
    %168 = vector.broadcast %19 : vector<1x32xf32> to vector<8x32xf32>
    %169 = arith.addf %167, %168 : vector<8x32xf32>
    %170 = arith.addf %131, %169 : vector<8x32xf32>
    %c0_74 = arith.constant 0 : index
    %c0_75 = arith.constant 0 : index
    %c0_76 = arith.constant 0 : index
    %171 = vector.load %arg22[%c0_74, %c0_75, %c0_76] : memref<2x8x32xf32, #tpu.memory_space<vmem>>, vector<1x8x32xf32>
    %172 = vector.shape_cast %171 : vector<1x8x32xf32> to vector<8x32xf32>
    %173 = vector.shape_cast %170 : vector<8x32xf32> to vector<1x8x32xf32>
    tpu.vector_store %arg22[%c0_74, %c0_75, %c0_76], %173 {strides = array<i32>} : memref<2x8x32xf32, #tpu.memory_space<vmem>>, vector<1x8x32xf32>,
    %c1 = arith.constant 1 : index
    %c0_77 = arith.constant 0 : index
    %c0_78 = arith.constant 0 : index
    %174 = vector.load %arg1[%c1, %c0_77, %c0_78] : memref<2x8x32xf32, #tpu.memory_space<vmem>>, vector<1x8x32xf32>
    %175 = vector.shape_cast %174 : vector<1x8x32xf32> to vector<8x32xf32>
    %176 = arith.truncf %175 : vector<8x32xf32> to vector<8x32xbf16>
    %cst_79 = arith.constant dense<0.000000e+00> : vector<8x96xf32>
    %177 = tpu.matmul %176, %0, %cst_79 {dimension_numbers = #tpu.dot_dimension_numbers<[1], [0], [0], [1], [0, 0, 1, 1], [], []>} : vector<8x32xbf16>, vector<32x96xbf16>, vector<8x96xf32> -> vector<8x96xf32>
    %178 = vector.broadcast %1 : vector<1x96xf32> to vector<8x96xf32>
    %179 = arith.addf %177, %178 : vector<8x96xf32>
    %cst_80 = arith.constant 0.000000e+00 : f32
    %180 = vector.broadcast %cst_80 : f32 to vector<8x96xf32>
    %181 = arith.maximumf %179, %180 : vector<8x96xf32>
    %182 = vector.extract_strided_slice %181 {offsets = [0, 0], sizes = [8, 32], strides = [1, 1]} : vector<8x96xf32> to vector<8x32xf32>
    %183 = vector.extract_strided_slice %181 {offsets = [0, 32], sizes = [8, 32], strides = [1, 1]} : vector<8x96xf32> to vector<8x32xf32>
    %184 = vector.extract_strided_slice %181 {offsets = [0, 64], sizes = [8, 32], strides = [1, 1]} : vector<8x96xf32> to vector<8x32xf32>
    %185 = arith.truncf %182 : vector<8x32xf32> to vector<8x32xbf16>
    %186 = arith.truncf %183 : vector<8x32xf32> to vector<8x32xbf16>
    %cst_81 = arith.constant dense<0.000000e+00> : vector<32x32xf32>
    %187 = tpu.matmul %185, %186, %cst_81 {dimension_numbers = #tpu.dot_dimension_numbers<[0], [0], [1], [1], [0, 1, 1, 1], [], []>} : vector<8x32xbf16>, vector<8x32xbf16>, vector<32x32xf32> -> vector<32x32xf32>
    %cst_82 = arith.constant 0.176776692 : f32
    %188 = vector.broadcast %cst_82 : f32 to vector<32x32xf32>
    %189 = arith.mulf %187, %188 : vector<32x32xf32>
    %cst_83 = arith.constant dense<0xFF800000> : vector<32xf32>
    %190 = vector.multi_reduction <maximumf>, %189, %cst_83 [1] : vector<32x32xf32> to vector<32xf32>
    %191 = vector.shape_cast %190 : vector<32xf32> to vector<32x1xf32>
    %192 = vector.broadcast %191 : vector<32x1xf32> to vector<32x32xf32>
    %193 = arith.subf %189, %192 : vector<32x32xf32>
    %194 = math.exp %193 : vector<32x32xf32>
    %cst_84 = arith.constant dense<0.000000e+00> : vector<32xf32>
    %195 = vector.multi_reduction <add>, %194, %cst_84 [1] : vector<32x32xf32> to vector<32xf32>
    %196 = vector.shape_cast %195 : vector<32xf32> to vector<32x1xf32>
    %197 = tpu.reciprocal %196 {approx = true} : vector<32x1xf32> -> vector<32x1xf32>
    %198 = vector.broadcast %197 : vector<32x1xf32> to vector<32x32xf32>
    %199 = arith.mulf %194, %198 : vector<32x32xf32>
    %200 = arith.truncf %184 : vector<8x32xf32> to vector<8x32xbf16>
    %201 = arith.truncf %199 : vector<32x32xf32> to vector<32x32xbf16>
    %cst_85 = arith.constant dense<0.000000e+00> : vector<8x32xf32>
    %202 = tpu.matmul %200, %201, %cst_85 {dimension_numbers = #tpu.dot_dimension_numbers<[1], [0], [0], [1], [0, 0, 1, 1], [], []>} : vector<8x32xbf16>, vector<32x32xbf16>, vector<8x32xf32> -> vector<8x32xf32>
    %203 = arith.truncf %202 : vector<8x32xf32> to vector<8x32xbf16>
    %cst_86 = arith.constant dense<0.000000e+00> : vector<8x32xf32>
    %204 = tpu.matmul %203, %2, %cst_86 {dimension_numbers = #tpu.dot_dimension_numbers<[1], [0], [0], [1], [0, 0, 1, 1], [], []>} : vector<8x32xbf16>, vector<32x32xbf16>, vector<8x32xf32> -> vector<8x32xf32>
    %205 = arith.addf %175, %204 : vector<8x32xf32>
    %206 = vector.broadcast %3 : vector<1x32xf32> to vector<8x32xf32>
    %207 = arith.addf %205, %206 : vector<8x32xf32>
    %cst_87 = arith.constant dense<0.000000e+00> : vector<8x96xf32>
    %208 = tpu.matmul %176, %4, %cst_87 {dimension_numbers = #tpu.dot_dimension_numbers<[1], [0], [0], [1], [0, 0, 1, 1], [], []>} : vector<8x32xbf16>, vector<32x96xbf16>, vector<8x96xf32> -> vector<8x96xf32>
    %209 = vector.broadcast %5 : vector<1x96xf32> to vector<8x96xf32>
    %210 = arith.addf %208, %209 : vector<8x96xf32>
    %211 = vector.extract_strided_slice %210 {offsets = [0, 0], sizes = [8, 32], strides = [1, 1]} : vector<8x96xf32> to vector<8x32xf32>
    %212 = vector.extract_strided_slice %210 {offsets = [0, 32], sizes = [8, 32], strides = [1, 1]} : vector<8x96xf32> to vector<8x32xf32>
    %213 = vector.extract_strided_slice %210 {offsets = [0, 64], sizes = [8, 32], strides = [1, 1]} : vector<8x96xf32> to vector<8x32xf32>
    %214 = vector.shape_cast %211 : vector<8x32xf32> to vector<8x4x8xf32>
    %215 = tpu.transpose %214, [1, 0, 2] : vector<8x4x8xf32> -> vector<4x8x8xf32>
    %216 = arith.truncf %215 : vector<4x8x8xf32> to vector<4x8x8xbf16>
    %217 = vector.shape_cast %212 : vector<8x32xf32> to vector<8x4x8xf32>
    %218 = tpu.transpose %217, [1, 0, 2] : vector<8x4x8xf32> -> vector<4x8x8xf32>
    %219 = arith.truncf %218 : vector<4x8x8xf32> to vector<4x8x8xbf16>
    %220 = vector.shape_cast %213 : vector<8x32xf32> to vector<8x4x8xf32>
    %221 = tpu.transpose %220, [1, 0, 2] : vector<8x4x8xf32> -> vector<4x8x8xf32>
    %222 = arith.truncf %221 : vector<4x8x8xf32> to vector<4x8x8xbf16>
    "tpu.trace_start"() <{level = 10 : i32, message = "hqd,hkd->hqk"}> : () -> ()
    %cst_88 = arith.constant dense<0.000000e+00> : vector<4x8x8xf32>
    %223 = tpu.matmul %216, %219, %cst_88 {dimension_numbers = #tpu.dot_dimension_numbers<[2], [2], [1], [1], [0, 0, 0, 1, 1, 1], [0], [0]>} : vector<4x8x8xbf16>, vector<4x8x8xbf16>, vector<4x8x8xf32> -> vector<4x8x8xf32>
    "tpu.trace_stop"() : () -> ()
    %cst_89 = arith.constant 0.353553385 : f32
    %224 = vector.broadcast %cst_89 : f32 to vector<4x8x8xf32>
    %225 = arith.mulf %223, %224 : vector<4x8x8xf32>
    %cst_90 = arith.constant dense<0xFF800000> : vector<4x8xf32>
    %226 = vector.multi_reduction <maximumf>, %225, %cst_90 [2] : vector<4x8x8xf32> to vector<4x8xf32>
    %227 = vector.shape_cast %226 : vector<4x8xf32> to vector<4x8x1xf32>
    %228 = vector.broadcast %227 : vector<4x8x1xf32> to vector<4x8x8xf32>
    %229 = arith.subf %225, %228 : vector<4x8x8xf32>
    %230 = math.exp %229 : vector<4x8x8xf32>
    %cst_91 = arith.constant dense<0.000000e+00> : vector<4x8xf32>
    %231 = vector.multi_reduction <add>, %230, %cst_91 [2] : vector<4x8x8xf32> to vector<4x8xf32>
    %232 = vector.shape_cast %231 : vector<4x8xf32> to vector<4x8x1xf32>
    %233 = tpu.reciprocal %232 {approx = true} : vector<4x8x1xf32> -> vector<4x8x1xf32>
    %234 = vector.broadcast %233 : vector<4x8x1xf32> to vector<4x8x8xf32>
    %235 = arith.mulf %230, %234 : vector<4x8x8xf32>
    %236 = arith.truncf %235 : vector<4x8x8xf32> to vector<4x8x8xbf16>
    "tpu.trace_start"() <{level = 10 : i32, message = "hqk,hkd->hqd"}> : () -> ()
    %cst_92 = arith.constant dense<0.000000e+00> : vector<4x8x8xf32>
    %237 = tpu.matmul %236, %222, %cst_92 {dimension_numbers = #tpu.dot_dimension_numbers<[2], [1], [1], [2], [0, 0, 0, 1, 1, 2], [0], [0]>} : vector<4x8x8xbf16>, vector<4x8x8xbf16>, vector<4x8x8xf32> -> vector<4x8x8xf32>
    "tpu.trace_stop"() : () -> ()
    %238 = tpu.transpose %237, [1, 0, 2] : vector<4x8x8xf32> -> vector<8x4x8xf32>
    %239 = vector.shape_cast %238 : vector<8x4x8xf32> to vector<8x32xf32>
    %240 = arith.truncf %239 : vector<8x32xf32> to vector<8x32xbf16>
    %cst_93 = arith.constant dense<0.000000e+00> : vector<8x32xf32>
    %241 = tpu.matmul %240, %6, %cst_93 {dimension_numbers = #tpu.dot_dimension_numbers<[1], [0], [0], [1], [0, 0, 1, 1], [], []>} : vector<8x32xbf16>, vector<32x32xbf16>, vector<8x32xf32> -> vector<8x32xf32>
    %242 = arith.addf %175, %241 : vector<8x32xf32>
    %243 = vector.broadcast %7 : vector<1x32xf32> to vector<8x32xf32>
    %244 = arith.addf %242, %243 : vector<8x32xf32>
    %245 = arith.truncf %244 : vector<8x32xf32> to vector<8x32xbf16>
    %cst_94 = arith.constant dense<0.000000e+00> : vector<8x32xf32>
    %246 = tpu.matmul %245, %8, %cst_94 {dimension_numbers = #tpu.dot_dimension_numbers<[1], [0], [0], [1], [0, 0, 1, 1], [], []>} : vector<8x32xbf16>, vector<32x32xbf16>, vector<8x32xf32> -> vector<8x32xf32>
    %247 = vector.broadcast %9 : vector<1x32xf32> to vector<8x32xf32>
    %248 = arith.addf %246, %247 : vector<8x32xf32>
    %249 = arith.truncf %207 : vector<8x32xf32> to vector<8x32xbf16>
    %cst_95 = arith.constant dense<0.000000e+00> : vector<8x64xf32>
    %250 = tpu.matmul %249, %10, %cst_95 {dimension_numbers = #tpu.dot_dimension_numbers<[1], [0], [0], [1], [0, 0, 1, 1], [], []>} : vector<8x32xbf16>, vector<32x64xbf16>, vector<8x64xf32> -> vector<8x64xf32>
    %251 = vector.broadcast %11 : vector<1x64xf32> to vector<8x64xf32>
    %252 = arith.addf %250, %251 : vector<8x64xf32>
    %253 = vector.extract_strided_slice %252 {offsets = [0, 0], sizes = [8, 32], strides = [1, 1]} : vector<8x64xf32> to vector<8x32xf32>
    %254 = vector.extract_strided_slice %252 {offsets = [0, 32], sizes = [8, 32], strides = [1, 1]} : vector<8x64xf32> to vector<8x32xf32>
    %255 = vector.shape_cast %248 : vector<8x32xf32> to vector<8x4x8xf32>
    %256 = tpu.transpose %255, [1, 0, 2] : vector<8x4x8xf32> -> vector<4x8x8xf32>
    %257 = arith.truncf %256 : vector<4x8x8xf32> to vector<4x8x8xbf16>
    %258 = vector.shape_cast %253 : vector<8x32xf32> to vector<8x4x8xf32>
    %259 = tpu.transpose %258, [1, 0, 2] : vector<8x4x8xf32> -> vector<4x8x8xf32>
    %260 = arith.truncf %259 : vector<4x8x8xf32> to vector<4x8x8xbf16>
    %261 = vector.shape_cast %254 : vector<8x32xf32> to vector<8x4x8xf32>
    %262 = tpu.transpose %261, [1, 0, 2] : vector<8x4x8xf32> -> vector<4x8x8xf32>
    %263 = arith.truncf %262 : vector<4x8x8xf32> to vector<4x8x8xbf16>
    "tpu.trace_start"() <{level = 10 : i32, message = "hqd,hkd->hqk"}> : () -> ()
    %cst_96 = arith.constant dense<0.000000e+00> : vector<4x8x8xf32>
    %264 = tpu.matmul %257, %260, %cst_96 {dimension_numbers = #tpu.dot_dimension_numbers<[2], [2], [1], [1], [0, 0, 0, 1, 1, 1], [0], [0]>} : vector<4x8x8xbf16>, vector<4x8x8xbf16>, vector<4x8x8xf32> -> vector<4x8x8xf32>
    "tpu.trace_stop"() : () -> ()
    %cst_97 = arith.constant 0.353553385 : f32
    %265 = vector.broadcast %cst_97 : f32 to vector<4x8x8xf32>
    %266 = arith.mulf %264, %265 : vector<4x8x8xf32>
    %cst_98 = arith.constant dense<0xFF800000> : vector<4x8xf32>
    %267 = vector.multi_reduction <maximumf>, %266, %cst_98 [2] : vector<4x8x8xf32> to vector<4x8xf32>
    %268 = vector.shape_cast %267 : vector<4x8xf32> to vector<4x8x1xf32>
    %269 = vector.broadcast %268 : vector<4x8x1xf32> to vector<4x8x8xf32>
    %270 = arith.subf %266, %269 : vector<4x8x8xf32>
    %271 = math.exp %270 : vector<4x8x8xf32>
    %cst_99 = arith.constant dense<0.000000e+00> : vector<4x8xf32>
    %272 = vector.multi_reduction <add>, %271, %cst_99 [2] : vector<4x8x8xf32> to vector<4x8xf32>
    %273 = vector.shape_cast %272 : vector<4x8xf32> to vector<4x8x1xf32>
    %274 = tpu.reciprocal %273 {approx = true} : vector<4x8x1xf32> -> vector<4x8x1xf32>
    %275 = vector.broadcast %274 : vector<4x8x1xf32> to vector<4x8x8xf32>
    %276 = arith.mulf %271, %275 : vector<4x8x8xf32>
    %277 = arith.truncf %276 : vector<4x8x8xf32> to vector<4x8x8xbf16>
    "tpu.trace_start"() <{level = 10 : i32, message = "hqk,hkd->hqd"}> : () -> ()
    %cst_100 = arith.constant dense<0.000000e+00> : vector<4x8x8xf32>
    %278 = tpu.matmul %277, %263, %cst_100 {dimension_numbers = #tpu.dot_dimension_numbers<[2], [1], [1], [2], [0, 0, 0, 1, 1, 2], [0], [0]>} : vector<4x8x8xbf16>, vector<4x8x8xbf16>, vector<4x8x8xf32> -> vector<4x8x8xf32>
    "tpu.trace_stop"() : () -> ()
    %279 = tpu.transpose %278, [1, 0, 2] : vector<4x8x8xf32> -> vector<8x4x8xf32>
    %280 = vector.shape_cast %279 : vector<8x4x8xf32> to vector<8x32xf32>
    %281 = arith.truncf %280 : vector<8x32xf32> to vector<8x32xbf16>
    %cst_101 = arith.constant dense<0.000000e+00> : vector<8x32xf32>
    %282 = tpu.matmul %281, %12, %cst_101 {dimension_numbers = #tpu.dot_dimension_numbers<[1], [0], [0], [1], [0, 0, 1, 1], [], []>} : vector<8x32xbf16>, vector<32x32xbf16>, vector<8x32xf32> -> vector<8x32xf32>
    %283 = vector.broadcast %13 : vector<1x32xf32> to vector<8x32xf32>
    %284 = arith.addf %282, %283 : vector<8x32xf32>
    %285 = arith.addf %284, %175 : vector<8x32xf32>
    %cst_102 = arith.constant dense<0.000000e+00> : vector<8xf32>
    %286 = vector.multi_reduction <add>, %285, %cst_102 [1] : vector<8x32xf32> to vector<8xf32>
    %287 = vector.shape_cast %286 : vector<8xf32> to vector<8x1xf32>
    %cst_103 = arith.constant 3.200000e+01 : f32
    %288 = vector.broadcast %cst_103 : f32 to vector<8x1xf32>
    %289 = arith.divf %287, %288 : vector<8x1xf32>
    %290 = vector.broadcast %289 : vector<8x1xf32> to vector<8x32xf32>
    %291 = arith.subf %285, %290 : vector<8x32xf32>
    %292 = arith.mulf %291, %291 : vector<8x32xf32>
    %cst_104 = arith.constant dense<0.000000e+00> : vector<8xf32>
    %293 = vector.multi_reduction <add>, %292, %cst_104 [1] : vector<8x32xf32> to vector<8xf32>
    %294 = vector.shape_cast %293 : vector<8xf32> to vector<8x1xf32>
    %cst_105 = arith.constant 3.200000e+01 : f32
    %295 = vector.broadcast %cst_105 : f32 to vector<8x1xf32>
    %296 = arith.divf %294, %295 : vector<8x1xf32>
    %297 = vector.broadcast %289 : vector<8x1xf32> to vector<8x32xf32>
    %298 = arith.subf %285, %297 : vector<8x32xf32>
    %cst_106 = arith.constant 9.99999974E-6 : f32
    %299 = vector.broadcast %cst_106 : f32 to vector<8x1xf32>
    %300 = arith.addf %296, %299 : vector<8x1xf32>
    %301 = math.rsqrt %300 : vector<8x1xf32>
    %302 = vector.broadcast %301 : vector<8x1xf32> to vector<8x32xf32>
    %303 = arith.mulf %298, %302 : vector<8x32xf32>
    %304 = vector.broadcast %14 : vector<1x32xf32> to vector<8x32xf32>
    %305 = arith.mulf %303, %304 : vector<8x32xf32>
    %306 = vector.broadcast %15 : vector<1x32xf32> to vector<8x32xf32>
    %307 = arith.addf %305, %306 : vector<8x32xf32>
    %308 = arith.truncf %307 : vector<8x32xf32> to vector<8x32xbf16>
    %cst_107 = arith.constant dense<0.000000e+00> : vector<8x128xf32>
    %309 = tpu.matmul %308, %16, %cst_107 {dimension_numbers = #tpu.dot_dimension_numbers<[1], [0], [0], [1], [0, 0, 1, 1], [], []>} : vector<8x32xbf16>, vector<32x128xbf16>, vector<8x128xf32> -> vector<8x128xf32>
    %310 = vector.broadcast %17 : vector<1x128xf32> to vector<8x128xf32>
    %311 = arith.addf %309, %310 : vector<8x128xf32>
    %cst_108 = arith.constant 5.000000e-01 : f32
    %312 = vector.broadcast %cst_108 : f32 to vector<8x128xf32>
    %313 = arith.mulf %312, %311 : vector<8x128xf32>
    %cst_109 = arith.constant 0.707106769 : f32
    %314 = vector.broadcast %cst_109 : f32 to vector<8x128xf32>
    %315 = arith.mulf %311, %314 : vector<8x128xf32>
    %316 = math.erf %315 : vector<8x128xf32>
    %cst_110 = arith.constant 1.000000e+00 : f32
    %317 = vector.broadcast %cst_110 : f32 to vector<8x128xf32>
    %318 = arith.addf %317, %316 : vector<8x128xf32>
    %319 = arith.mulf %313, %318 : vector<8x128xf32>
    %320 = arith.truncf %319 : vector<8x128xf32> to vector<8x128xbf16>
    %cst_111 = arith.constant dense<0.000000e+00> : vector<8x32xf32>
    %321 = tpu.matmul %320, %18, %cst_111 {dimension_numbers = #tpu.dot_dimension_numbers<[1], [0], [0], [1], [0, 0, 1, 1], [], []>} : vector<8x128xbf16>, vector<128x32xbf16>, vector<8x32xf32> -> vector<8x32xf32>
    %322 = vector.broadcast %19 : vector<1x32xf32> to vector<8x32xf32>
    %323 = arith.addf %321, %322 : vector<8x32xf32>
    %324 = arith.addf %285, %323 : vector<8x32xf32>
    %c1_112 = arith.constant 1 : index
    %c0_113 = arith.constant 0 : index
    %c0_114 = arith.constant 0 : index
    %325 = vector.load %arg22[%c1_112, %c0_113, %c0_114] : memref<2x8x32xf32, #tpu.memory_space<vmem>>, vector<1x8x32xf32>
    %326 = vector.shape_cast %325 : vector<1x8x32xf32> to vector<8x32xf32>
    %327 = vector.shape_cast %324 : vector<8x32xf32> to vector<1x8x32xf32>
    tpu.vector_store %arg22[%c1_112, %c0_113, %c0_114], %327 {strides = array<i32>} : memref<2x8x32xf32, #tpu.memory_space<vmem>>, vector<1x8x32xf32>,
    return
  }
  func.func @transform_0(%arg0: i32) -> (i32, i32, i32) {
    %c0_i32 = arith.constant 0 : i32
    %c0_i32_0 = arith.constant 0 : i32
    %c0_i32_1 = arith.constant 0 : i32
    return %arg0, %c0_i32, %c0_i32_0 : i32, i32, i32
  }
  func.func @transform_1(%arg0: i32) -> (i32, i32) {
    %c0_i32 = arith.constant 0 : i32
    %c0_i32_0 = arith.constant 0 : i32
    %c0_i32_1 = arith.constant 0 : i32
    return %c0_i32, %c0_i32_0 : i32, i32
  }
  func.func @transform_2(%arg0: i32) -> (i32, i32) {
    %c0_i32 = arith.constant 0 : i32
    %c0_i32_0 = arith.constant 0 : i32
    %c0_i32_1 = arith.constant 0 : i32
    return %c0_i32, %c0_i32_0 : i32, i32
  }
  func.func @transform_3(%arg0: i32) -> (i32, i32) {
    %c0_i32 = arith.constant 0 : i32
    %c0_i32_0 = arith.constant 0 : i32
    %c0_i32_1 = arith.constant 0 : i32
    return %c0_i32, %c0_i32_0 : i32, i32
  }
  func.func @transform_4(%arg0: i32) -> (i32, i32) {
    %c0_i32 = arith.constant 0 : i32
    %c0_i32_0 = arith.constant 0 : i32
    %c0_i32_1 = arith.constant 0 : i32
    return %c0_i32, %c0_i32_0 : i32, i32
  }
  func.func @transform_5(%arg0: i32) -> (i32, i32) {
    %c0_i32 = arith.constant 0 : i32
    %c0_i32_0 = arith.constant 0 : i32
    %c0_i32_1 = arith.constant 0 : i32
    return %c0_i32, %c0_i32_0 : i32, i32
  }
  func.func @transform_6(%arg0: i32) -> (i32, i32) {
    %c0_i32 = arith.constant 0 : i32
    %c0_i32_0 = arith.constant 0 : i32
    %c0_i32_1 = arith.constant 0 : i32
    return %c0_i32, %c0_i32_0 : i32, i32
  }
  func.func @transform_7(%arg0: i32) -> (i32, i32) {
    %c0_i32 = arith.constant 0 : i32
    %c0_i32_0 = arith.constant 0 : i32
    %c0_i32_1 = arith.constant 0 : i32
    return %c0_i32, %c0_i32_0 : i32, i32
  }
  func.func @transform_8(%arg0: i32) -> (i32, i32) {
    %c0_i32 = arith.constant 0 : i32
    %c0_i32_0 = arith.constant 0 : i32
    %c0_i32_1 = arith.constant 0 : i32
    return %c0_i32, %c0_i32_0 : i32, i32
  }
  func.func @transform_9(%arg0: i32) -> (i32, i32) {
    %c0_i32 = arith.constant 0 : i32
    %c0_i32_0 = arith.constant 0 : i32
    %c0_i32_1 = arith.constant 0 : i32
    return %c0_i32, %c0_i32_0 : i32, i32
  }
  func.func @transform_10(%arg0: i32) -> (i32, i32) {
    %c0_i32 = arith.constant 0 : i32
    %c0_i32_0 = arith.constant 0 : i32
    %c0_i32_1 = arith.constant 0 : i32
    return %c0_i32, %c0_i32_0 : i32, i32
  }
  func.func @transform_11(%arg0: i32) -> (i32, i32) {
    %c0_i32 = arith.constant 0 : i32
    %c0_i32_0 = arith.constant 0 : i32
    %c0_i32_1 = arith.constant 0 : i32
    return %c0_i32, %c0_i32_0 : i32, i32
  }
  func.func @transform_12(%arg0: i32) -> (i32, i32) {
    %c0_i32 = arith.constant 0 : i32
    %c0_i32_0 = arith.constant 0 : i32
    %c0_i32_1 = arith.constant 0 : i32
    return %c0_i32, %c0_i32_0 : i32, i32
  }
  func.func @transform_13(%arg0: i32) -> (i32, i32) {
    %c0_i32 = arith.constant 0 : i32
    %c0_i32_0 = arith.constant 0 : i32
    %c0_i32_1 = arith.constant 0 : i32
    return %c0_i32, %c0_i32_0 : i32, i32
  }
  func.func @transform_14(%arg0: i32) -> (i32, i32) {
    %c0_i32 = arith.constant 0 : i32
    %c0_i32_0 = arith.constant 0 : i32
    %c0_i32_1 = arith.constant 0 : i32
    return %c0_i32, %c0_i32_0 : i32, i32
  }
  func.func @transform_15(%arg0: i32) -> (i32, i32) {
    %c0_i32 = arith.constant 0 : i32
    %c0_i32_0 = arith.constant 0 : i32
    %c0_i32_1 = arith.constant 0 : i32
    return %c0_i32, %c0_i32_0 : i32, i32
  }
  func.func @transform_16(%arg0: i32) -> (i32, i32) {
    %c0_i32 = arith.constant 0 : i32
    %c0_i32_0 = arith.constant 0 : i32
    %c0_i32_1 = arith.constant 0 : i32
    return %c0_i32, %c0_i32_0 : i32, i32
  }
  func.func @transform_17(%arg0: i32) -> (i32, i32) {
    %c0_i32 = arith.constant 0 : i32
    %c0_i32_0 = arith.constant 0 : i32
    %c0_i32_1 = arith.constant 0 : i32
    return %c0_i32, %c0_i32_0 : i32, i32
  }
  func.func @transform_18(%arg0: i32) -> (i32, i32) {
    %c0_i32 = arith.constant 0 : i32
    %c0_i32_0 = arith.constant 0 : i32
    %c0_i32_1 = arith.constant 0 : i32
    return %c0_i32, %c0_i32_0 : i32, i32
  }
  func.func @transform_19(%arg0: i32) -> (i32, i32) {
    %c0_i32 = arith.constant 0 : i32
    %c0_i32_0 = arith.constant 0 : i32
    %c0_i32_1 = arith.constant 0 : i32
    return %c0_i32, %c0_i32_0 : i32, i32
  }
  func.func @transform_20(%arg0: i32) -> (i32, i32) {
    %c0_i32 = arith.constant 0 : i32
    %c0_i32_0 = arith.constant 0 : i32
    %c0_i32_1 = arith.constant 0 : i32
    return %c0_i32, %c0_i32_0 : i32, i32
  }
  func.func @transform_21(%arg0: i32) -> (i32, i32, i32) {
    %c0_i32 = arith.constant 0 : i32
    %c0_i32_0 = arith.constant 0 : i32
    %c0_i32_1 = arith.constant 0 : i32
    return %arg0, %c0_i32, %c0_i32_0 : i32, i32, i32
  }
}

</mosaic_0001>

<bundles_post_ra>
// kernel: grid_self_attention.1
= control target key start
LH: loop header
LB: loop body
LE: loop exit
PB: predicated region body
PF: predicated region fallthrough
CT: control target
= control target key end

     0   :  { %s7897_s0 = inlined_call_operand.vmem [shape: f32[2,8,32], index: 0, kind: input, shape index: {}]   ;;  %s7898_s1 = inlined_call_operand.vmem [shape: bf16[32,96], index: 1, kind: input, shape index: {}]   ;;  %s7899_s2 = inlined_call_operand.vmem [shape: f32[1,96], index: 2, kind: input, shape index: {}]   ;;  %s7900_s3 = inlined_call_operand.vmem [shape: bf16[32,32], index: 3, kind: input, shape index: {}]   ;;  %s7901_s4 = inlined_call_operand.hbm [shape: f32[1,32], index: 4, kind: input, shape index: {}]   ;;  %s7902_s5 = inlined_call_operand.vmem [shape: bf16[32,96], index: 5, kind: input, shape index: {}]   ;;  %s7903_s6 = inlined_call_operand.vmem [shape: f32[1,96], index: 6, kind: input, shape index: {}]   ;;  %s7904_s7 = inlined_call_operand.vmem [shape: bf16[32,32], index: 7, kind: input, shape index: {}]   ;;  %s7905_s8 = inlined_call_operand.vmem [shape: f32[1,32], index: 8, kind: input, shape index: {}]   ;;  %s7906_s9 = inlined_call_operand.hbm [shape: bf16[32,32], index: 9, kind: input, shape index: {}]   ;;  %s7907_s10 = inlined_call_operand.vmem [shape: f32[1,32], index: 10, kind: input, shape index: {}]   ;;  %s7908_s11 = inlined_call_operand.hbm [shape: bf16[32,64], index: 11, kind: input, shape index: {}]   ;;  %s7909_s12 = inlined_call_operand.vmem [shape: f32[1,64], index: 12, kind: input, shape index: {}]   ;;  %s7910_s13 = inlined_call_operand.hbm [shape: bf16[32,32], index: 13, kind: input, shape index: {}]   ;;  %s7911_s14 = inlined_call_operand.vmem [shape: f32[1,32], index: 14, kind: input, shape index: {}]   ;;  %s7912_s15 = inlined_call_operand.vmem [shape: f32[1,32], index: 15, kind: input, shape index: {}]   ;;  %s7913_s16 = inlined_call_operand.vmem [shape: f32[1,32], index: 16, kind: input, shape index: {}]   ;;  %s7914_s17 = inlined_call_operand.hbm [shape: bf16[32,128], index: 17, kind: input, shape index: {}]   ;;  %s7915_s18 = inlined_call_operand.vmem [shape: f32[1,128], index: 18, kind: input, shape index: {}]   ;;  %s7916_s19 = inlined_call_operand.vmem [shape: bf16[128,32], index: 19, kind: input, shape index: {}]   ;;  %s7917_s20 = inlined_call_operand.vmem [shape: f32[1,32], index: 20, kind: input, shape index: {}]   ;;  %s7918_s21 = inlined_call_operand.hbm [shape: f32[2,8,32], index: 21, kind: output, shape index: {}]  }
   0x1   :  { %7926 = sst [smem:[#allocation16_spill]] %s7897_s0 }
   0x2   :  { %7927 = sst [smem:[#allocation17_spill]] %s7898_s1 }
   0x3   :  { %7928 = sst [smem:[#allocation18_spill]] %s7899_s2 }
   0x4   :  { %7929 = sst [smem:[#allocation19_spill]] %s7900_s3 }
   0x5   :  { %7930 = sst [smem:[#allocation20_spill]] %s7901_s4 }
   0x6   :  { %7931 = sst [smem:[#allocation21_spill]] %s7902_s5 }
   0x7   :  { %26 = vsyncpa [#allocation3], 0 }
   0x8   :  { %27 = vsyncpa [#allocation6], 0 }
   0x9   :  { %28 = vsyncpa [#allocation9], 0 }
   0xa   :  { %29 = vsyncpa [#allocation4], 0  ;;  %s6678_s2 = smov [#allocation5]  }
   0xb   :  { %s61_s25 = sshll.u32 %s6678_s2, 4  ;;  %s62_s25 = int_to_ptr.vmem [resolvable:$true] %s61_s25 }
   0xc   :  { %s6558_s26 = scalar_lea.vmem %s62_s25, 256  ;;  %p6563_p1 = scmp.lt.s32.totalorder %s62_s25, %s62_s25 }
   0xd   :  { %p6559_p0 = scmp.ne.s32.totalorder %s62_s25, %s6558_s26  ;;  %p6564_p2 = scmp.lt.s32.totalorder %s6558_s26, %s6558_s26 }
   0xf   :  { %p6565_p3 = por %p6564_p2, %p6563_p1 }
  0x11   :  { %p6566_p4 = pnand %p6565_p3, %p6559_p0 }
  0x13   :  { %6569 = shalt.err (!%p6566_p4)
}
  0x14   :  { %s6679_s27 = smov 64   ;;  %s6680_s3 = smov 4  }
  0x15   :  { %67 = dma.hbm_to_vmem [thread:$0]  %s7906_s9, 256, %s62_s25, [#allocation6], %s6679_s27, %s6679_s27, %s6680_s3  }
  0x16   :  { %s6681_s0 = smov [#allocation8]   ;;  %s6682_s30 = smov [#allocation2]  }
  0x17   :  { %s89_s4 = sshll.u32 %s6681_s0, 4  ;;  %s44_s5 = sshll.u32 %s6682_s30, 4  ;;  %s90_s4 = int_to_ptr.vmem [resolvable:$true] %s89_s4  ;;  %s45_s5 = int_to_ptr.vmem [resolvable:$true] %s44_s5 }
  0x18   :  { %s6578_s22 = scalar_lea.vmem %s90_s4, 256  ;;  %p6583_p6 = scmp.lt.s32.totalorder %s90_s4, %s90_s4 }
  0x19   :  { %p6579_p5 = scmp.ne.s32.totalorder %s90_s4, %s6578_s22  ;;  %p6584_p7 = scmp.lt.s32.totalorder %s6578_s22, %s6578_s22 }
  0x1b   :  { %p6585_p8 = por %p6584_p7, %p6583_p6 }
  0x1d   :  { %p6586_p9 = pnand %p6585_p8, %p6579_p5 }
  0x1f   :  { %6589 = shalt.err (!%p6586_p9)
}
  0x20   :  { %95 = dma.hbm_to_vmem [thread:$0]  %s7910_s13, 256, %s90_s4, [#allocation9], %s6679_s27, %s6679_s27, %s6680_s3  }
  0x21   :  { %s6598_s9 = scalar_lea.vmem %s45_s5, 16  ;;  %s6602_s24 = scalar_lea.vmem %s45_s5, 32 }
  0x22   :  { %p6599_p10 = scmp.ne.s32.totalorder %s45_s5, %s6598_s9  ;;  %p6603_p11 = scmp.lt.s32.totalorder %s45_s5, %s45_s5 }
  0x23   :  { %p6604_p12 = scmp.lt.s32.totalorder %s6602_s24, %s6598_s9 }
  0x25   :  { %p6605_p13 = por %p6604_p12, %p6603_p11 }
  0x27   :  { %p6606_p0 = pnand %p6605_p13, %p6599_p10 }
  0x29   :  { %6609 = shalt.err (!%p6606_p0)
}
  0x2a   :  { %s7932_s26 = sld [smem:[#allocation20_spill]]  ;;  %s6683_s28 = smov [#allocation7]  }
  0x2b   :  { %s75_s29 = sshll.u32 %s6683_s28, 4  ;;  %s6684_s0 = smov [#allocation10]   ;;  %s76_s29 = int_to_ptr.vmem [resolvable:$true] %s75_s29 }
  0x2c   :  { %s107_s30 = sshll.u32 %s6684_s0, 4  ;;  %s6618_s22 = scalar_lea.vmem %s76_s29, 256  ;;  %s108_s30 = int_to_ptr.vmem [resolvable:$true] %s107_s30 }
  0x2d   :  { %p6619_p1 = scmp.ne.s32.totalorder %s76_s29, %s6618_s22  ;;  %p6623_p2 = scmp.lt.s32.totalorder %s76_s29, %s76_s29 }
  0x2e   :  { %p6624_p3 = scmp.lt.s32.totalorder %s6618_s22, %s6618_s22 }
  0x30   :  { %47 = dma.hbm_to_vmem [thread:$0]  %s7932_s26, 16, %s45_s5, [#allocation3]  }
  0x31   :  { %p6625_p4 = por %p6624_p3, %p6623_p2 }
  0x33   :  { %p6626_p5 = pnand %p6625_p4, %p6619_p1 }
  0x35   :  { %6629 = shalt.err (!%p6626_p5)
}
  0x36   :  { %81 = dma.hbm_to_vmem [thread:$0]  %s7908_s11, 256, %s76_s29, [#allocation6], %s6679_s27, %s6679_s27, %s6680_s3  }
  0x37   :  { %s6638_s5 = scalar_lea.vmem %s108_s30, 256  ;;  %p6643_p7 = scmp.lt.s32.totalorder %s108_s30, %s108_s30 }
  0x38   :  { %p6639_p6 = scmp.ne.s32.totalorder %s108_s30, %s6638_s5  ;;  %p6644_p8 = scmp.lt.s32.totalorder %s6638_s5, %s6638_s5 }
  0x3a   :  { %p6645_p9 = por %p6644_p8, %p6643_p7 }
  0x3c   :  { %p6646_p10 = pnand %p6645_p9, %p6639_p6 }
  0x3e   :  { %6649 = shalt.err (!%p6646_p10)
}
  0x3f   :  { %113 = dma.hbm_to_vmem [thread:$0]  %s7914_s17, 256, %s108_s30, [#allocation9], %s6679_s27, %s6679_s27, %s6680_s3  }
  0x40   :  { %6670 = dma.done.wait [#allocation3], 16  }
  0x41   :  { %6671 = vsyncadd [#allocation3], 4294967280 }
  0x42   :  { %6672 = dma.done.wait [#allocation6], 512  }
  0x43   :  { %6673 = vsyncadd [#allocation6], 4294966784 }
  0x44   :  { %6674 = dma.done.wait [#allocation9], 512  }
  0x45   :  { %6675 = vsyncadd [#allocation9], 4294966784  ;;  %v6685_v0 = vmov 0.0   ;;  %vm6686_vm0 = vmmov 0   ;;  %s7933_s3 = sld [smem:[#allocation17_spill]]  ;;  %vm215_vm1 = vcmask 261120  }
  0x46   :  { %5974 = vmatprep.subr.bf16.mxu0 %v6685_v0  ;;  %5978 = vmatprep.mubr.msk.bf16.mxu0 %vm6686_vm0, %v6685_v0  ;;  %s7934_s26 = sld [smem:[#allocation16_spill]]  ;;  %s6687_s30 = smov 96   ;;  %vm287_vm2 = vcmask 1043456   ;;  %vm280_vm3 = vcmask 64512   ;;  %v5721_v31 = vld [vmem:[%s7903_s6] ss:$0 sm:$0xff] }
  0x47   :  { %6004 = vmatprep.subr.bf16.mxu1 %v6685_v0  ;;  %6008 = vmatprep.mubr.msk.bf16.mxu1 %vm6686_vm0, %v6685_v0  ;;  %s7935_s0 = sld [smem:[#allocation18_spill]]  ;;  %s6688_s17 = smov 120   ;;  %v6691_v62 = vmov 1983009808   ;;  %vm1580_vm4 = vcmask 130048   ;;  %vm1582_vm5 = vcmask 195584  }
  0x48   :  { %s7936_s4 = sld [smem:[#allocation21_spill]]  ;;  %s6689_s9 = smov 112   ;;  %v570_v63 = vunpack.c.l.s4 %v6691_v62 }
  0x49   :  { %s6690_s24 = smov 104   ;;  %s7937_s28 = sld [smem:[#allocation19_spill]] }
  0x4a   :  { %s6693_s11 = smov 16   ;;  %s6694_s2 = smov 8  }
  0x4b   :  { %v6385_v1 = vld [vmem:[%s7933_s3 + $0x8] sm:$0xff]   ;;  %v6386_v2 = vld [vmem:[%s7933_s3] sm:$0xff]   ;;  %s7924_s25 = smov 24  }
  0x4c   :  { %5975 = vmatpush3.bf16.msra.mxu0 %v6385_v1  ;;  %v195_v3 = vld [vmem:[%s7934_s26] sm:$0xff]  ;;  %v572_v1 = vlaneseq }
  0x4d   :  { %5976 = vmatprep.subr.bf16.mxu0 %v6685_v0  ;;  %v196_v4 = vpack.c.bf16 %v195_v3, %v195_v3  ;;  %v5710_v5 = vld [vmem:[%s7935_s0] ss:$0 sm:$0xff]  ;;  %v571_v3 = vunpack.c.0.s8 %v570_v63 }
  0x4e   :  { %v6387_v13 = vld [vmem:[%s7936_s4 + $0x8] sm:$0xff]   ;;  %v6388_v14 = vld [vmem:[%s7936_s4] sm:$0xff]  }
  0x4f   :  { %6005 = vmatpush3.bf16.msra.mxu1 %v6387_v13 }
  0x50   :  { %5977 = vmatpush3.bf16.msra.mxu0 %v6386_v2  ;;  %6006 = vmatprep.subr.bf16.mxu1 %v6685_v0 }
  0x53   :  { %5979 = vmatmul.mubr.msk.bf16.vlgmr.msra.gmra.mxu0 %vm215_vm1, %v196_v4  ;;  %6007 = vmatpush3.bf16.msra.mxu1 %v6388_v14 }
  0x54   :  { %6018 = vmatprep.subr.bf16.mxu1 %v6685_v0 }
  0x56   :  { %6009 = vmatmul.mubr.msk.bf16.vlgmr.msra.gmra.mxu1 %vm215_vm1, %v196_v4  ;;  %v573_v4 = vshrl.u32 %v572_v1, 7 }
  0x57   :  { %6020 = vmatprep.mubr.msk.bf16.mxu1 %vm6686_vm0, %v6685_v0 }
 0x113   :  { %v253_v6 = vpop.f32.mrf.mxu0 }
 0x114   :  { %v254_v7 = vadd.f32 %v5710_v5, %v253_v6  ;;  %v6692_v5 = vmov 1934713408  }
 0x115   :  { %v5980_v8 = vpop.f32.mrf.mxu0  ;;  %v602_v6 = vunpack.c.l.s4 %v6692_v5 }
 0x116   :  { %v259_v9 = vmax.f32 %v254_v7, 0.0  ;;  %v551_v32 = vpop.f32.mrf.mxu1  ;;  %v6909_v8 = vsub.s32 %v571_v3, %v573_v4 }
 0x117   :  { %v256_v10 = vpop.f32.mrf.mxu0  ;;  %v6885_v33 = vadd.f32 %v5721_v31, %v551_v32 }
 0x118   :  { %v6855_v11 = vpack.c.bf16 %v259_v9, %v259_v9  ;;  %v6010_v34 = vpop.f32.mrf.mxu1 }
 0x119   :  { %v5981_v12 = vpop.f32.mrf.mxu0 }
 0x11a   :  { %278 = vrot.lane.b32.xlu0 %v6855_v11, %s6687_s30  ;;  %v554_v35 = vpop.f32.mrf.mxu1 }
 0x11c   :  { %v6011_v36 = vpop.f32.mrf.mxu1 }
 0x138   :  { %261 = vxpose.xlu0.c.b16.start.end [1/1] (short) (narrow) %v6855_v11, 32 }
 0x145   :  { %558 = vrot.lane.b32.xlu0 %v6885_v33, %s6688_s17 }
 0x149   :  { %561 = vrot.lane.b32.xlu0 %v6885_v33, %s6689_s9 }
 0x14d   :  { %707 = vrot.lane.b32.xlu0 %v6885_v33, %s6687_s30 }
 0x18c   :  { %v279_v15 = vpop.permute.xlu0 %278 }
 0x18d   :  { %6362 = vmatprep.subr.msk.bf16.mxu0 %vm287_vm2, %v279_v15  ;;  %v289_v16 = vsel %vm287_vm2, %v279_v15, 0 }
 0x18e   :  { %5983 = vmatpush3.bf16.msra.mxu0 %v289_v16 }
 0x18f   :  { %5988 = vmatprep.subr.bf16.mxu0 %v6685_v0 }
 0x19a   :  { %v269_v17 = vpop.trf.xlu0 }
 0x19b   :  { %5984 = vmatprep.mubr.msk.bf16.mxu0 %vm280_vm3, %v269_v17 }
 0x19e   :  { %v270_v18 = vpop.trf.xlu0 }
 0x19f   :  { %5985 = vmatmul.mubr.msk.bf16.vlgmr.msra.gmra.mxu0 %vm280_vm3, %v270_v18 }
 0x1a0   :  { %5992 = vmatprep.mubr.msk.bf16.mxu0 %vm6686_vm0, %v6685_v0 }
 0x1b7   :  { %v6893_v37 = vpop.permute.xlu0 %558 }
 0x1bb   :  { %v6895_v41 = vpop.permute.xlu0 %561 }
 0x1bc   :  { %711 = vrot.lane.b32.xlu0 %v6895_v41, %s6687_s30  ;;  %v567_v9 = vcombine.low %v6885_v33, %v6895_v41  ;;  %v568_v10 = vcombine.high %v6885_v33, %v6895_v41 }
 0x1be   :  { %v575_v17 = vrot.slane %v567_v9, %v6909_v8  ;;  %v582_v18 = vrot.slane %v568_v10, %v6909_v8 }
 0x25f   :  { %v5986_v19 = vpop.f32.mrf.mxu0 }
 0x260   :  { %v342_v20 = vmul.f32 0.17677669, %v5986_v19 }
 0x261   :  { %v325_v21 = vpop.f32.mrf.mxu0 }
 0x262   :  { %v340_v22 = vmul.f32 0.17677669, %v325_v21  ;;  %v350_v23 = vsel %vm215_vm1, %v342_v20, -inf }
 0x263   :  { %351 = vmax.xlane.f32.xlu1 %v350_v23  ;;  %v5987_v24 = vpop.f32.mrf.mxu0 }
 0x264   :  { %v343_v25 = vmul.f32 0.17677669, %v5987_v24  ;;  %v344_v26 = vsel %vm215_vm1, %v340_v22, -inf }
 0x265   :  { %v328_v27 = vpop.f32.mrf.mxu0 }
 0x266   :  { %v341_v28 = vmul.f32 0.17677669, %v328_v27  ;;  %v353_v29 = vsel %vm215_vm1, %v343_v25, -inf }
 0x267   :  { %345 = vmax.xlane.f32.xlu1 %v344_v26 }
 0x268   :  { %v347_v30 = vsel %vm215_vm1, %v341_v28, -inf }
 0x26b   :  { %354 = vmax.xlane.f32.xlu1 %v353_v29 }
 0x26f   :  { %348 = vmax.xlane.f32.xlu1 %v347_v30 }
 0x2ec   :  { %v352_v38 = vpop.xlane.xlu1 %351 }
 0x2ed   :  { %v358_v39 = vsub.f32 %v342_v20, %v352_v38 }
 0x2ef   :  { %v364_v40 = vmul.f32 1.442695, %v358_v39 }
 0x2f0   :  { %v346_v42 = vpop.xlane.xlu1 %345 }
 0x2f1   :  { %6409 = vpow2.f32 %v364_v40  ;;  %v356_v43 = vsub.f32 %v340_v22, %v346_v42 }
 0x2f3   :  { %v360_v44 = vmul.f32 1.442695, %v356_v43 }
 0x2f4   :  { %v355_v45 = vpop.xlane.xlu1 %354 }
 0x2f5   :  { %6411 = vpow2.f32 %v360_v44  ;;  %v359_v46 = vsub.f32 %v343_v25, %v355_v45 }
 0x2f7   :  { %v366_v47 = vmul.f32 1.442695, %v359_v46 }
 0x2f8   :  { %v349_v48 = vpop.xlane.xlu1 %348 }
 0x2f9   :  { %6413 = vpow2.f32 %v366_v47  ;;  %v357_v49 = vsub.f32 %v341_v28, %v349_v48 }
 0x2fb   :  { %v362_v50 = vmul.f32 1.442695, %v357_v49 }
 0x2fd   :  { %6415 = vpow2.f32 %v362_v50 }
 0x2fe   :  { %v6410_v51 = vpop.eup %6409 }
 0x2ff   :  { %v374_v52 = vsel %vm215_vm1, %v6410_v51, 0.0 }
 0x300   :  { %375 = vadd.xlane.f32.xlu1 %v374_v52 }
 0x302   :  { %v6412_v53 = vpop.eup %6411 }
 0x303   :  { %v368_v54 = vsel %vm215_vm1, %v6412_v53, 0.0 }
 0x304   :  { %369 = vadd.xlane.f32.xlu1 %v368_v54 }
 0x306   :  { %v6414_v55 = vpop.eup %6413 }
 0x307   :  { %v377_v56 = vsel %vm215_vm1, %v6414_v55, 0.0 }
 0x308   :  { %378 = vadd.xlane.f32.xlu1 %v377_v56 }
 0x30a   :  { %v6416_v57 = vpop.eup %6415 }
 0x30b   :  { %v371_v58 = vsel %vm215_vm1, %v6416_v57, 0.0 }
 0x30c   :  { %372 = vadd.xlane.f32.xlu1 %v371_v58 }
 0x31d   :  { %390 = vrot.lane.b32.xlu1 %v6855_v11, %s6679_s27  ;;  %v603_v11 = vunpack.c.0.s8 %v602_v6 }
 0x31f   :  { %v6925_v19 = vsub.s32 %v603_v11, %v573_v4 }
 0x321   :  { %564 = vrot.lane.b32.xlu1 %v6885_v33, %s6690_s24 }
 0x325   :  { %709 = vrot.lane.b32.xlu1 %v6893_v37, %s6687_s30 }
 0x389   :  { %v376_v59 = vpop.xlane.xlu1 %375 }
 0x38a   :  { %6417 = vrcp.f32 %v376_v59  ;;  %v6389_v59 = vld [vmem:[%s7937_s28 + $0x8] sm:$0xff]  }
 0x38d   :  { %v370_v60 = vpop.xlane.xlu1 %369 }
 0x391   :  { %v379_v61 = vpop.xlane.xlu1 %378 }
 0x392   :  { %6419 = vrcp.f32 %v379_v61  ;;  %v708_v61 = vpop.permute.xlu0 %707 }
 0x393   :  { %6421 = vrcp.f32 %v370_v60  ;;  %v6390_v60 = vld [vmem:[%s7937_s28] sm:$0xff]  }
 0x395   :  { %v373_v2 = vpop.xlane.xlu1 %372 }
 0x396   :  { %6423 = vrcp.f32 %v373_v2  ;;  %v712_v63 = vpop.permute.xlu0 %711 }
 0x397   :  { %v6418_v13 = vpop.eup %6417  ;;  %v719_v1 = vcombine.low %v708_v61, %v712_v63  ;;  %v720_v2 = vcombine.high %v708_v61, %v712_v63 }
 0x398   :  { %v386_v23 = vmul.f32 %v6418_v13, %v6410_v51 }
 0x399   :  { %v391_v7 = vpop.permute.xlu1 %390  ;;  %v727_v6 = vrot.slane %v719_v1, %v6909_v8 }
 0x39d   :  { %v6915_v12 = vpop.permute.xlu1 %564 }
 0x39e   :  { %v583_v14 = vcombine.low %v6893_v37, %v6915_v12  ;;  %v584_v15 = vcombine.high %v6893_v37, %v6915_v12  ;;  %713 = vrot.lane.b32.xlu1 %v6915_v12, %s6687_s30 }
 0x39f   :  { %v6420_v16 = vpop.eup %6419 }
 0x3a0   :  { %v591_v20 = vrot.slane %v583_v14, %v6909_v8  ;;  %v598_v21 = vrot.slane %v584_v15, %v6909_v8  ;;  %v387_v22 = vmul.f32 %v6420_v16, %v6414_v55  ;;  %v6422_v24 = vpop.eup %6421 }
 0x3a1   :  { %v384_v36 = vmul.f32 %v6422_v24, %v6412_v53  ;;  %v710_v62 = vpop.permute.xlu1 %709 }
 0x3a2   :  { %v599_v25 = vcombine.low %v575_v17, %v591_v20  ;;  %v600_v26 = vcombine.high %v575_v17, %v591_v20  ;;  %v615_v27 = vcombine.low %v582_v18, %v598_v21  ;;  %v616_v28 = vcombine.high %v582_v18, %v598_v21 }
 0x3a3   :  { %v6424_v29 = vpop.eup %6423  ;;  %v389_v30 = vpack.c.bf16 %v387_v22, %v386_v23 }
 0x3a4   :  { %v607_v31 = vrot.slane %v599_v25, %v6925_v19  ;;  %v614_v32 = vrot.slane %v600_v26, %v6925_v19  ;;  %v623_v34 = vrot.slane %v615_v27, %v6925_v19  ;;  %v630_v35 = vrot.slane %v616_v28, %v6925_v19 }
 0x3a5   :  { %5989 = vmatpush3.bf16.msra.mxu0 %v389_v30  ;;  %v385_v38 = vmul.f32 %v6424_v29, %v6416_v57 }
 0x3a6   :  { %v635_v39 = vcombine.low %v607_v31, %v614_v32  ;;  %v5725_v40 = vcombine.high %v607_v31, %v614_v32  ;;  %v651_v42 = vcombine.low %v623_v34, %v630_v35  ;;  %v5726_v43 = vcombine.high %v623_v34, %v630_v35  ;;  %5990 = vmatprep.subr.bf16.mxu0 %v6685_v0 }
 0x3a7   :  { %v388_v44 = vpack.c.bf16 %v385_v38, %v384_v36 }
 0x3a8   :  { %v642_v45 = vrot.slane %v635_v39, %v6909_v8  ;;  %v650_v46 = vrot.slane %v5725_v40, %v6909_v8  ;;  %v658_v47 = vrot.slane %v651_v42, %v6909_v8  ;;  %v666_v48 = vrot.slane %v5726_v43, %v6909_v8 }
 0x3a9   :  { %5991 = vmatpush3.bf16.msra.mxu0 %v388_v44 }
 0x3aa   :  { %v667_v49 = vcombine.low %v642_v45, %v650_v46  ;;  %v683_v50 = vcombine.low %v658_v47, %v666_v48  ;;  %v668_v51 = vcombine.high %v642_v45, %v650_v46  ;;  %v684_v52 = vcombine.high %v658_v47, %v666_v48  ;;  %5996 = vmatprep.subr.bf16.mxu0 %v6685_v0 }
 0x3ac   :  { %5993 = vmatmul.mubr.msk.bf16.vlgmr.msra.gmra.mxu0 %vm215_vm1, %v391_v7  ;;  %v675_v53 = vrot.slane %v667_v49, %v6925_v19  ;;  %v691_v54 = vrot.slane %v683_v50, %v6925_v19  ;;  %v682_v55 = vrot.slane %v668_v51, %v6925_v19  ;;  %v698_v56 = vrot.slane %v684_v52, %v6925_v19 }
 0x3ad   :  { %6000 = vmatprep.mubr.msk.bf16.mxu0 %vm6686_vm0, %v6685_v0  ;;  %5997 = vmatpush3.bf16.msra.mxu0 %v6389_v59  ;;  %v734_v7 = vrot.slane %v720_v2, %v6909_v8 }
 0x3ae   :  { %v6946_v57 = vcombine.low %v675_v53, %v691_v54  ;;  %v6948_v58 = vcombine.low %v682_v55, %v698_v56  ;;  %5998 = vmatprep.subr.bf16.mxu0 %v6685_v0  ;;  %v700_v46 = vcombine.high %v675_v53, %v691_v54  ;;  %v702_v50 = vcombine.high %v682_v55, %v698_v56 }
 0x3b0   :  { %v704_v48 = vpack.c.bf16 %v700_v46, %v700_v46  ;;  %v706_v51 = vpack.c.bf16 %v702_v50, %v702_v50  ;;  %v705_v1 = vpack.c.bf16 %v6948_v58, %v6948_v58 }
 0x3b1   :  { %5999 = vmatpush3.bf16.msra.mxu0 %v6390_v60 }
 0x3b2   :  { %6012 = vmatprep.subr.bf16.mxu0 %v6685_v0 }
 0x410   :  { %v714_v3 = vpop.permute.xlu1 %713 }
 0x411   :  { %v735_v4 = vcombine.low %v710_v62, %v714_v3  ;;  %v736_v5 = vcombine.high %v710_v62, %v714_v3  ;;  %v703_v62 = vpack.c.bf16 %v6946_v57, %v6946_v57 }
 0x413   :  { %v743_v9 = vrot.slane %v735_v4, %v6909_v8  ;;  %v750_v10 = vrot.slane %v736_v5, %v6909_v8 }
 0x415   :  { %v751_v11 = vcombine.low %v727_v6, %v743_v9  ;;  %v752_v13 = vcombine.high %v727_v6, %v743_v9  ;;  %v767_v14 = vcombine.low %v734_v7, %v750_v10  ;;  %v768_v15 = vcombine.high %v734_v7, %v750_v10 }
 0x417   :  { %v759_v16 = vrot.slane %v751_v11, %v6925_v19  ;;  %v766_v17 = vrot.slane %v752_v13, %v6925_v19  ;;  %v775_v18 = vrot.slane %v767_v14, %v6925_v19  ;;  %v782_v20 = vrot.slane %v768_v15, %v6925_v19 }
 0x419   :  { %v787_v21 = vcombine.low %v759_v16, %v766_v17  ;;  %v5727_v22 = vcombine.high %v759_v16, %v766_v17  ;;  %v803_v23 = vcombine.low %v775_v18, %v782_v20  ;;  %v5728_v24 = vcombine.high %v775_v18, %v782_v20 }
 0x41b   :  { %v794_v25 = vrot.slane %v787_v21, %v6909_v8  ;;  %v802_v26 = vrot.slane %v5727_v22, %v6909_v8  ;;  %v810_v27 = vrot.slane %v803_v23, %v6909_v8  ;;  %v818_v28 = vrot.slane %v5728_v24, %v6909_v8 }
 0x41d   :  { %v819_v29 = vcombine.low %v794_v25, %v802_v26  ;;  %v835_v30 = vcombine.low %v810_v27, %v818_v28  ;;  %v820_v31 = vcombine.high %v794_v25, %v802_v26  ;;  %v836_v32 = vcombine.high %v810_v27, %v818_v28 }
 0x41f   :  { %v827_v34 = vrot.slane %v819_v29, %v6925_v19  ;;  %v843_v35 = vrot.slane %v835_v30, %v6925_v19  ;;  %v834_v36 = vrot.slane %v820_v31, %v6925_v19  ;;  %v850_v38 = vrot.slane %v836_v32, %v6925_v19 }
 0x421   :  { %v852_v39 = vcombine.high %v827_v34, %v843_v35  ;;  %v851_v40 = vcombine.low %v827_v34, %v843_v35  ;;  %v853_v42 = vcombine.low %v834_v36, %v850_v38  ;;  %v854_v45 = vcombine.high %v834_v36, %v850_v38 }
 0x423   :  { %v856_v43 = vpack.c.bf16 %v852_v39, %v852_v39  ;;  %v858_v47 = vpack.c.bf16 %v854_v45, %v854_v45  ;;  %v855_v52 = vpack.c.bf16 %v851_v40, %v851_v40  ;;  %v857_v56 = vpack.c.bf16 %v853_v42, %v853_v42 }
 0x425   :  { %v1061_v44 = vsel %vm280_vm3, %v856_v43, 0  ;;  %v1153_v49 = vsel %vm280_vm3, %v858_v47, 0  ;;  %v1015_v60 = vsel %vm280_vm3, %v855_v52, 0  ;;  %v1107_v63 = vsel %vm280_vm3, %v857_v56, 0 }
 0x426   :  { %6019 = vmatpush3.bf16.xpose.msra.mxu1 %v1061_v44 }
 0x427   :  { %6030 = vmatprep.subr.bf16.mxu1 %v6685_v0 }
 0x42d   :  { %6021 = vmatmul.mubr.msk.bf16.vlgmr.msra.gmra.mxu1 %vm280_vm3, %v704_v48 }
 0x42e   :  { %6031 = vmatpush3.bf16.xpose.msra.mxu1 %v1153_v49  ;;  %6032 = vmatprep.mubr.msk.bf16.mxu1 %vm6686_vm0, %v6685_v0 }
 0x42f   :  { %6042 = vmatprep.subr.bf16.mxu1 %v6685_v0 }
 0x435   :  { %6033 = vmatmul.mubr.msk.bf16.vlgmr.msra.gmra.mxu1 %vm280_vm3, %v706_v51 }
 0x436   :  { %6044 = vmatprep.mubr.msk.bf16.mxu1 %vm6686_vm0, %v6685_v0 }
 0x46c   :  { %v429_v53 = vpop.f32.mrf.mxu0 }
 0x46d   :  { %v435_v54 = vpack.c.bf16 %v429_v53, %v429_v53 }
 0x46e   :  { %v5994_v59 = vpop.f32.mrf.mxu0 }
 0x46f   :  { %6001 = vmatmul.mubr.msk.bf16.vlgmr.msra.gmra.mxu0 %vm215_vm1, %v435_v54 }
 0x470   :  { %6013 = vmatpush3.bf16.xpose.msra.mxu0 %v1015_v60  ;;  %v432_v61 = vpop.f32.mrf.mxu0  ;;  %6014 = vmatprep.mubr.msk.bf16.mxu0 %vm6686_vm0, %v6685_v0 }
 0x471   :  { %6024 = vmatprep.subr.bf16.mxu0 %v6685_v0 }
 0x472   :  { %v5995_v55 = vpop.f32.mrf.mxu0 }
 0x477   :  { %6015 = vmatmul.mubr.msk.bf16.vlgmr.msra.gmra.mxu0 %vm280_vm3, %v703_v62 }
 0x478   :  { %6025 = vmatpush3.bf16.xpose.msra.mxu0 %v1107_v63  ;;  %6026 = vmatprep.mubr.msk.bf16.mxu0 %vm6686_vm0, %v6685_v0 }
 0x479   :  { %6036 = vmatprep.subr.bf16.mxu0 %v6685_v0 }
 0x47f   :  { %6027 = vmatmul.mubr.msk.bf16.vlgmr.msra.gmra.mxu0 %vm280_vm3, %v705_v1 }
 0x480   :  { %6038 = vmatprep.mubr.msk.bf16.mxu0 %vm6686_vm0, %v6685_v0 }
 0x4ed   :  { %v1097_v2 = vpop.f32.mrf.mxu1 }
 0x4ee   :  { %v1196_v57 = vmul.f32 0.35355338, %v1097_v2 }
 0x4ef   :  { %v6022_v3 = vpop.f32.mrf.mxu1 }
 0x4f0   :  { %v1202_v4 = vsel %vm280_vm3, %v1196_v57, -inf }
 0x4f1   :  { %1203 = vmax.xlane.f32.xlu1 %v1202_v4  ;;  %v1100_v5 = vpop.f32.mrf.mxu1 }
 0x4f3   :  { %v6023_v6 = vpop.f32.mrf.mxu1 }
 0x4f5   :  { %v1189_v7 = vpop.f32.mrf.mxu1 }
 0x4f7   :  { %v6034_v9 = vpop.f32.mrf.mxu1 }
 0x4f9   :  { %v1192_v10 = vpop.f32.mrf.mxu1 }
 0x4fb   :  { %v6035_v11 = vpop.f32.mrf.mxu1 }
 0x502   :  { %859 = vrot.lane.b32.xlu1 %v6885_v33, %s6679_s27  ;;  %v1198_v33 = vmul.f32 0.35355338, %v1189_v7 }
 0x504   :  { %v1208_v28 = vsel %vm280_vm3, %v1198_v33, -inf }
 0x506   :  { %863 = vrot.lane.b32.xlu1 %v6895_v41, %s6679_s27 }
 0x52f   :  { %v7006_v58 = vpop.f32.mrf.mxu0 }
 0x531   :  { %v6002_v13 = vpop.f32.mrf.mxu0 }
 0x533   :  { %v488_v14 = vpop.f32.mrf.mxu0 }
 0x535   :  { %v6003_v15 = vpop.f32.mrf.mxu0 }
 0x537   :  { %v1051_v16 = vpop.f32.mrf.mxu0 }
 0x538   :  { %v1195_v17 = vmul.f32 0.35355338, %v1051_v16 }
 0x539   :  { %v6016_v18 = vpop.f32.mrf.mxu0 }
 0x53a   :  { %v1199_v20 = vsel %vm280_vm3, %v1195_v17, -inf }
 0x53b   :  { %1200 = vmax.xlane.f32.xlu0 %v1199_v20  ;;  %v1054_v21 = vpop.f32.mrf.mxu0 }
 0x53d   :  { %v6017_v22 = vpop.f32.mrf.mxu0 }
 0x53f   :  { %v1143_v23 = vpop.f32.mrf.mxu0 }
 0x540   :  { %v1197_v24 = vmul.f32 0.35355338, %v1143_v23 }
 0x541   :  { %v6028_v25 = vpop.f32.mrf.mxu0 }
 0x542   :  { %v1205_v26 = vsel %vm280_vm3, %v1197_v24, -inf }
 0x543   :  { %1206 = vmax.xlane.f32.xlu0 %v1205_v26  ;;  %v1146_v41 = vpop.f32.mrf.mxu0 }
 0x545   :  { %v6029_v27 = vpop.f32.mrf.mxu0 }
 0x547   :  { %1209 = vmax.xlane.f32.xlu0 %v1208_v28 }
 0x57a   :  { %v1204_v29 = vpop.xlane.xlu1 %1203 }
 0x57b   :  { %v1212_v30 = vsub.f32 %v1196_v57, %v1204_v29 }
 0x57d   :  { %v1217_v31 = vmul.f32 1.442695, %v1212_v30 }
 0x57e   :  { %v860_v51 = vpop.permute.xlu1 %859 }
 0x57f   :  { %6425 = vpow2.f32 %v1217_v31 }
 0x582   :  { %v864_v52 = vpop.permute.xlu1 %863 }
 0x583   :  { %v871_v59 = vcombine.low %v860_v51, %v864_v52  ;;  %v872_v60 = vcombine.high %v860_v51, %v864_v52 }
 0x585   :  { %v879_v62 = vrot.slane %v871_v59, %v6909_v8  ;;  %v886_v63 = vrot.slane %v872_v60, %v6909_v8 }
 0x58c   :  { %v7011_v32 = vpop.eup %6425 }
 0x58d   :  { %v1226_v34 = vsel %vm280_vm3, %v7011_v32, 0.0 }
 0x58e   :  { %1227 = vadd.xlane.f32.xlu0 %v1226_v34 }
 0x5a4   :  { %861 = vrot.lane.b32.xlu0 %v6893_v37, %s6679_s27 }
 0x5c4   :  { %v1201_v35 = vpop.xlane.xlu0 %1200 }
 0x5c5   :  { %v1211_v36 = vsub.f32 %v1195_v17, %v1201_v35 }
 0x5c7   :  { %v1215_v38 = vmul.f32 1.442695, %v1211_v36 }
 0x5c9   :  { %6427 = vpow2.f32 %v1215_v38 }
 0x5cc   :  { %v1207_v39 = vpop.xlane.xlu0 %1206 }
 0x5cd   :  { %v1213_v40 = vsub.f32 %v1197_v24, %v1207_v39 }
 0x5cf   :  { %v1219_v42 = vmul.f32 1.442695, %v1213_v40 }
 0x5d0   :  { %v1210_v37 = vpop.xlane.xlu0 %1209 }
 0x5d1   :  { %6429 = vpow2.f32 %v1219_v42  ;;  %v1214_v47 = vsub.f32 %v1198_v33, %v1210_v37 }
 0x5d3   :  { %v1221_v48 = vmul.f32 1.442695, %v1214_v47 }
 0x5d5   :  { %6431 = vpow2.f32 %v1221_v48 }
 0x5d6   :  { %v7017_v43 = vpop.eup %6427 }
 0x5d7   :  { %v1223_v44 = vsel %vm280_vm3, %v7017_v43, 0.0 }
 0x5d8   :  { %1224 = vadd.xlane.f32.xlu1 %v1223_v44 }
 0x5de   :  { %v7021_v45 = vpop.eup %6429 }
 0x5df   :  { %v1229_v46 = vsel %vm280_vm3, %v7021_v45, 0.0 }
 0x5e0   :  { %1230 = vadd.xlane.f32.xlu0 %v1229_v46 }
 0x5e2   :  { %v7027_v49 = vpop.eup %6431 }
 0x5e3   :  { %v1232_v50 = vsel %vm280_vm3, %v7027_v49, 0.0 }
 0x5e9   :  { %865 = vrot.lane.b32.xlu1 %v6915_v12, %s6679_s27 }
 0x60d   :  { %1233 = vadd.xlane.f32.xlu1 %v1232_v50 }
 0x617   :  { %v1228_v53 = vpop.xlane.xlu0 %1227 }
 0x618   :  { %6433 = vrcp.f32 %v1228_v53 }
 0x61b   :  { %v862_v61 = vpop.permute.xlu0 %861 }
 0x625   :  { %v6434_v33 = vpop.eup %6433 }
 0x626   :  { %v1240_v40 = vmul.f32 %v6434_v33, %v7011_v32 }
 0x628   :  { %v1244_v50 = vpack.c.bf16 %v1240_v40, %v1240_v40 }
 0x661   :  { %v1225_v54 = vpop.xlane.xlu1 %1224 }
 0x662   :  { %6435 = vrcp.f32 %v1225_v54 }
 0x665   :  { %v866_v55 = vpop.permute.xlu1 %865 }
 0x666   :  { %v887_v56 = vcombine.low %v862_v61, %v866_v55  ;;  %v888_v12 = vcombine.high %v862_v61, %v866_v55 }
 0x668   :  { %v895_v1 = vrot.slane %v887_v56, %v6909_v8  ;;  %v902_v2 = vrot.slane %v888_v12, %v6909_v8 }
 0x669   :  { %v1231_v11 = vpop.xlane.xlu0 %1230 }
 0x66a   :  { %v903_v57 = vcombine.low %v879_v62, %v895_v1  ;;  %v904_v3 = vcombine.high %v879_v62, %v895_v1  ;;  %v919_v4 = vcombine.low %v886_v63, %v902_v2  ;;  %v920_v5 = vcombine.high %v886_v63, %v902_v2 }
 0x66b   :  { %6437 = vrcp.f32 %v1231_v11 }
 0x66c   :  { %v911_v6 = vrot.slane %v903_v57, %v6925_v19  ;;  %v918_v7 = vrot.slane %v904_v3, %v6925_v19  ;;  %v927_v9 = vrot.slane %v919_v4, %v6925_v19  ;;  %v934_v10 = vrot.slane %v920_v5, %v6925_v19 }
 0x66e   :  { %v939_v13 = vcombine.low %v911_v6, %v918_v7  ;;  %v5729_v14 = vcombine.high %v911_v6, %v918_v7  ;;  %v955_v15 = vcombine.low %v927_v9, %v934_v10  ;;  %v5730_v16 = vcombine.high %v927_v9, %v934_v10 }
 0x66f   :  { %v6436_v29 = vpop.eup %6435 }
 0x670   :  { %v946_v17 = vrot.slane %v939_v13, %v6909_v8  ;;  %v954_v18 = vrot.slane %v5729_v14, %v6909_v8  ;;  %v962_v20 = vrot.slane %v955_v15, %v6909_v8  ;;  %v970_v21 = vrot.slane %v5730_v16, %v6909_v8 }
 0x671   :  { %v1239_v39 = vmul.f32 %v6436_v29, %v7017_v43 }
 0x672   :  { %v971_v22 = vcombine.low %v946_v17, %v954_v18  ;;  %v987_v23 = vcombine.low %v962_v20, %v970_v21  ;;  %v972_v24 = vcombine.high %v946_v17, %v954_v18  ;;  %v988_v25 = vcombine.high %v962_v20, %v970_v21 }
 0x673   :  { %v1243_v48 = vpack.c.bf16 %v1239_v39, %v1239_v39 }
 0x674   :  { %v979_v26 = vrot.slane %v971_v22, %v6925_v19  ;;  %v995_v41 = vrot.slane %v987_v23, %v6925_v19  ;;  %v986_v27 = vrot.slane %v972_v24, %v6925_v19  ;;  %v1002_v28 = vrot.slane %v988_v25, %v6925_v19  ;;  %v6391_v22 = vld [vmem:[%s7904_s7 + $0x8] sm:$0xff]  }
 0x676   :  { %v1003_v30 = vcombine.low %v979_v26, %v995_v41  ;;  %v1004_v31 = vcombine.high %v979_v26, %v995_v41  ;;  %v1005_v34 = vcombine.low %v986_v27, %v1002_v28  ;;  %v1006_v35 = vcombine.high %v986_v27, %v1002_v28 }
 0x678   :  { %v1007_v36 = vpack.c.bf16 %v1003_v30, %v1003_v30  ;;  %v1008_v38 = vpack.c.bf16 %v1004_v31, %v1004_v31  ;;  %v1009_v46 = vpack.c.bf16 %v1005_v34, %v1005_v34  ;;  %v1010_v37 = vpack.c.bf16 %v1006_v35, %v1006_v35  ;;  %v6438_v47 = vpop.eup %6437  ;;  %v6392_v30 = vld [vmem:[%s7904_s7] sm:$0xff]  }
 0x679   :  { %v1241_v51 = vmul.f32 %v6438_v47, %v7021_v45 }
 0x67a   :  { %v1251_v42 = vsel %vm287_vm2, %v1007_v36, 0  ;;  %v1297_v44 = vsel %vm287_vm2, %v1008_v38, 0  ;;  %v1343_v32 = vsel %vm287_vm2, %v1009_v46, 0  ;;  %v1389_v43 = vsel %vm287_vm2, %v1010_v37, 0 }
 0x67b   :  { %6037 = vmatpush3.bf16.msra.mxu0 %v1251_v42  ;;  %6043 = vmatpush3.bf16.msra.mxu1 %v1297_v44  ;;  %v1245_v52 = vpack.c.bf16 %v1241_v51, %v1241_v51 }
 0x67c   :  { %6048 = vmatprep.subr.bf16.mxu0 %v6685_v0  ;;  %6054 = vmatprep.subr.bf16.mxu1 %v6685_v0 }
 0x67e   :  { %6039 = vmatmul.mubr.msk.bf16.vlgmr.msra.gmra.mxu0 %vm280_vm3, %v1243_v48  ;;  %6045 = vmatmul.mubr.msk.bf16.vlgmr.msra.gmra.mxu1 %vm280_vm3, %v1244_v50 }
 0x67f   :  { %6049 = vmatpush3.bf16.msra.mxu0 %v1343_v32  ;;  %6055 = vmatpush3.bf16.msra.mxu1 %v1389_v43 }
 0x680   :  { %6050 = vmatprep.mubr.msk.bf16.mxu0 %vm6686_vm0, %v6685_v0  ;;  %6056 = vmatprep.mubr.msk.bf16.mxu1 %vm6686_vm0, %v6685_v0 }
 0x681   :  { %6060 = vmatprep.subr.bf16.mxu0 %v6685_v0  ;;  %6068 = vmatprep.subr.bf16.mxu1 %v6685_v0 }
 0x686   :  { %6051 = vmatmul.mubr.msk.bf16.vlgmr.msra.gmra.mxu0 %vm280_vm3, %v1245_v52 }
 0x687   :  { %6064 = vmatprep.mubr.msk.bf16.mxu0 %vm6686_vm0, %v6685_v0  ;;  %6061 = vmatpush3.bf16.msra.mxu0 %v6391_v22 }
 0x688   :  { %6062 = vmatprep.subr.bf16.mxu0 %v6685_v0 }
 0x68b   :  { %6063 = vmatpush3.bf16.msra.mxu0 %v6392_v30 }
 0x68c   :  { %6076 = vmatprep.subr.bf16.mxu0 %v6685_v0 }
 0x696   :  { %v1234_v53 = vpop.xlane.xlu1 %1233 }
 0x697   :  { %6439 = vrcp.f32 %v1234_v53 }
 0x6a4   :  { %v6440_v54 = vpop.eup %6439 }
 0x6a5   :  { %v1242_v59 = vmul.f32 %v6440_v54, %v7027_v49 }
 0x6a7   :  { %v1246_v60 = vpack.c.bf16 %v1242_v59, %v1242_v59 }
 0x6a9   :  { %6057 = vmatmul.mubr.msk.bf16.vlgmr.msra.gmra.mxu1 %vm280_vm3, %v1246_v60 }
 0x6aa   :  { %6072 = vmatprep.mubr.msk.bf16.mxu1 %vm6686_vm0, %v6685_v0 }
 0x73e   :  { %v1287_v45 = vpop.f32.mrf.mxu0  ;;  %v1333_v61 = vpop.f32.mrf.mxu1 }
 0x740   :  { %v6040_v55 = vpop.f32.mrf.mxu0  ;;  %v6046_v56 = vpop.f32.mrf.mxu1 }
 0x742   :  { %v1290_v12 = vpop.f32.mrf.mxu0  ;;  %v1336_v62 = vpop.f32.mrf.mxu1 }
 0x743   :  { %v5720_v12 = vld [vmem:[#allocation2] ss:$0 sm:$0xff]  ;;  %v6394_v62 = vld [vmem:[#allocation7] sm:$0xff]  }
 0x744   :  { %v6041_v63 = vpop.f32.mrf.mxu0  ;;  %v6047_v1 = vpop.f32.mrf.mxu1 }
 0x746   :  { %v1379_v2 = vpop.f32.mrf.mxu0 }
 0x747   :  { %v1431_v5 = vcombine.low %v1287_v45, %v1379_v2  ;;  %v1432_v49 = vcombine.high %v1287_v45, %v1379_v2  ;;  %v6393_v45 = vld [vmem:[#allocation7 + $0x8] sm:$0xff]   ;;  %v6396_v2 = vld [vmem:[#allocation5] sm:$0xff]  }
 0x748   :  { %v6052_v57 = vpop.f32.mrf.mxu0 }
 0x749   :  { %v1439_v11 = vrot.slane %v1431_v5, %v6909_v8  ;;  %v1446_v13 = vrot.slane %v1432_v49, %v6909_v8  ;;  %v5744_v57 = vld [vmem:[%s7905_s8] ss:$0 sm:$0xff] }
 0x74a   :  { %v1382_v3 = vpop.f32.mrf.mxu0 }
 0x74c   :  { %v6053_v4 = vpop.f32.mrf.mxu0 }
 0x769   :  { %v1425_v6 = vpop.f32.mrf.mxu1 }
 0x76a   :  { %v1447_v7 = vcombine.low %v1333_v61, %v1425_v6  ;;  %v1448_v9 = vcombine.high %v1333_v61, %v1425_v6  ;;  %v7104_v61 = vld [vmem:[%s7934_s26] sm:$0xff] }
 0x76b   :  { %v6058_v10 = vpop.f32.mrf.mxu1  ;;  %v491_v55 = vadd.f32 %v7104_v61, %v7006_v58  ;;  %v6395_v58 = vld [vmem:[#allocation5 + $0x8] sm:$0xff]  }
 0x76c   :  { %v1455_v14 = vrot.slane %v1447_v7, %v6909_v8  ;;  %v1462_v15 = vrot.slane %v1448_v9, %v6909_v8  ;;  %6069 = vmatpush3.bf16.msra.mxu1 %v6395_v58  ;;  %v5749_v10 = vld [vmem:[%s7909_s12] ss:$0 sm:$0xff] }
 0x76d   :  { %v1428_v16 = vpop.f32.mrf.mxu1  ;;  %v498_v63 = vadd.f32 %v5720_v12, %v491_v55  ;;  %6070 = vmatprep.subr.bf16.mxu1 %v6685_v0 }
 0x76e   :  { %v1463_v17 = vcombine.low %v1439_v11, %v1455_v14  ;;  %v1464_v18 = vcombine.high %v1439_v11, %v1455_v14  ;;  %v1479_v20 = vcombine.low %v1446_v13, %v1462_v15  ;;  %v1480_v21 = vcombine.high %v1446_v13, %v1462_v15 }
 0x76f   :  { %v6059_v23 = vpop.f32.mrf.mxu1  ;;  %v1710_v1 = vpack.c.bf16 %v498_v63, %v498_v63 }
 0x770   :  { %v1471_v24 = vrot.slane %v1463_v17, %v6925_v19  ;;  %v1478_v25 = vrot.slane %v1464_v18, %v6925_v19  ;;  %v1487_v33 = vrot.slane %v1479_v20, %v6925_v19  ;;  %v1494_v26 = vrot.slane %v1480_v21, %v6925_v19  ;;  %6071 = vmatpush3.bf16.msra.mxu1 %v6396_v2 }
 0x771   :  { %6084 = vmatprep.subr.bf16.mxu1 %v6685_v0 }
 0x772   :  { %v1499_v41 = vcombine.low %v1471_v24, %v1478_v25  ;;  %v5739_v27 = vcombine.high %v1471_v24, %v1478_v25  ;;  %v1515_v28 = vcombine.low %v1487_v33, %v1494_v26  ;;  %v5740_v29 = vcombine.high %v1487_v33, %v1494_v26 }
 0x774   :  { %v1506_v31 = vrot.slane %v1499_v41, %v6909_v8  ;;  %v1514_v34 = vrot.slane %v5739_v27, %v6909_v8  ;;  %v1522_v35 = vrot.slane %v1515_v28, %v6909_v8  ;;  %v1530_v36 = vrot.slane %v5740_v29, %v6909_v8 }
 0x776   :  { %v1532_v38 = vcombine.high %v1506_v31, %v1514_v34  ;;  %v1548_v39 = vcombine.high %v1522_v35, %v1530_v36  ;;  %v1531_v40 = vcombine.low %v1506_v31, %v1514_v34  ;;  %v1547_v42 = vcombine.low %v1522_v35, %v1530_v36 }
 0x778   :  { %v1546_v44 = vrot.slane %v1532_v38, %v6925_v19  ;;  %v1562_v46 = vrot.slane %v1548_v39, %v6925_v19  ;;  %v1539_v37 = vrot.slane %v1531_v40, %v6925_v19  ;;  %v1555_v47 = vrot.slane %v1547_v42, %v6925_v19 }
 0x77a   :  { %v1565_v48 = vcombine.low %v1546_v44, %v1562_v46  ;;  %v1564_v50 = vcombine.high %v1539_v37, %v1555_v47  ;;  %v1563_v32 = vcombine.low %v1539_v37, %v1555_v47  ;;  %v1566_v43 = vcombine.high %v1546_v44, %v1562_v46 }
 0x77c   :  { %1572 = vrot.lane.b32.xlu1 %v1565_v48, %s6693_s11  ;;  %1568 = vrot.lane.b32.xlu0 %v1564_v50, %s6694_s2 }
 0x780   :  { %1576 = vrot.lane.b32.xlu0 %v1566_v43, %s7924_s25 }
 0x7ee   :  { %v1569_v51 = vpop.permute.xlu0 %1568  ;;  %v1573_v52 = vpop.permute.xlu1 %1572 }
 0x7ef   :  { %v1579_v53 = vsel %vm280_vm3, %v1563_v32, %v1569_v51 }
 0x7f0   :  { %v1581_v59 = vsel %vm1580_vm4, %v1579_v53, %v1573_v52 }
 0x7f2   :  { %v1577_v54 = vpop.permute.xlu0 %1576 }
 0x7f3   :  { %v1583_v60 = vsel %vm1582_vm5, %v1581_v59, %v1577_v54 }
 0x7f4   :  { %v1584_v56 = vpack.c.bf16 %v1583_v60, %v1583_v60 }
 0x7f6   :  { %6065 = vmatmul.mubr.msk.bf16.vlgmr.msra.gmra.mxu0 %vm215_vm1, %v1584_v56 }
 0x7f7   :  { %6077 = vmatpush3.bf16.msra.mxu0 %v6393_v45  ;;  %6080 = vmatprep.mubr.msk.bf16.mxu0 %vm6686_vm0, %v6685_v0 }
 0x7f8   :  { %6078 = vmatprep.subr.bf16.mxu0 %v6685_v0 }
 0x7fb   :  { %6079 = vmatpush3.bf16.msra.mxu0 %v6394_v62 }
 0x7fc   :  { %6090 = vmatprep.subr.bf16.mxu0 %v6685_v0 }
 0x7fe   :  { %6081 = vmatmul.mubr.msk.bf16.vlgmr.msra.gmra.mxu0 %vm215_vm1, %v1710_v1  ;;  %v5745_v1 = vld [vmem:[%s7907_s10] ss:$0 sm:$0xff] }
 0x7ff   :  { %6092 = vmatprep.mubr.msk.bf16.mxu0 %vm6686_vm0, %v6685_v0 }
 0x8b6   :  { %v1634_v3 = vpop.f32.mrf.mxu0 }
 0x8b7   :  { %v1640_v4 = vadd.f32 %v7104_v61, %v1634_v3 }
 0x8b8   :  { %v6066_v5 = vpop.f32.mrf.mxu0 }
 0x8b9   :  { %v1647_v49 = vadd.f32 %v5744_v57, %v1640_v4 }
 0x8ba   :  { %v1637_v6 = vpop.f32.mrf.mxu0 }
 0x8bb   :  { %v1648_v7 = vpack.c.bf16 %v1647_v49, %v1647_v49 }
 0x8bc   :  { %v6067_v9 = vpop.f32.mrf.mxu0 }
 0x8bd   :  { %6073 = vmatmul.mubr.msk.bf16.vlgmr.msra.gmra.mxu1 %vm215_vm1, %v1648_v7 }
 0x8be   :  { %v1766_v11 = vpop.f32.mrf.mxu0  ;;  %6086 = vmatprep.mubr.msk.bf16.mxu1 %vm6686_vm0, %v6685_v0 }
 0x8bf   :  { %v7128_v13 = vadd.f32 %v5749_v10, %v1766_v11 }
 0x8c0   :  { %v6082_v14 = vpop.f32.mrf.mxu0 }
 0x8c1   :  { %1926 = vrot.lane.b32.xlu0 %v7128_v13, %s6689_s9  ;;  %1923 = vrot.lane.b32.xlu1 %v7128_v13, %s6688_s17 }
 0x8c2   :  { %v1769_v15 = vpop.f32.mrf.mxu0 }
 0x8c4   :  { %v6083_v16 = vpop.f32.mrf.mxu0 }
 0x8c5   :  { %1929 = vrot.lane.b32.xlu1 %v7128_v13, %s6690_s24 }
 0x933   :  { %v7136_v17 = vpop.permute.xlu0 %1926  ;;  %v7138_v18 = vpop.permute.xlu1 %1923 }
 0x934   :  { %v1932_v20 = vcombine.low %v7128_v13, %v7136_v17  ;;  %v1933_v21 = vcombine.high %v7128_v13, %v7136_v17 }
 0x936   :  { %v1940_v25 = vrot.slane %v1932_v20, %v6909_v8  ;;  %v1947_v33 = vrot.slane %v1933_v21, %v6909_v8 }
 0x937   :  { %v7144_v22 = vpop.permute.xlu1 %1929 }
 0x938   :  { %v1948_v23 = vcombine.low %v7138_v18, %v7144_v22  ;;  %v1949_v24 = vcombine.high %v7138_v18, %v7144_v22 }
 0x93a   :  { %v1956_v26 = vrot.slane %v1948_v23, %v6909_v8  ;;  %v1963_v41 = vrot.slane %v1949_v24, %v6909_v8 }
 0x93c   :  { %v1964_v27 = vcombine.low %v1940_v25, %v1956_v26  ;;  %v1965_v28 = vcombine.high %v1940_v25, %v1956_v26  ;;  %v1980_v29 = vcombine.low %v1947_v33, %v1963_v41  ;;  %v1981_v30 = vcombine.high %v1947_v33, %v1963_v41 }
 0x93e   :  { %v1972_v31 = vrot.slane %v1964_v27, %v6925_v19  ;;  %v1979_v34 = vrot.slane %v1965_v28, %v6925_v19  ;;  %v1988_v35 = vrot.slane %v1980_v29, %v6925_v19  ;;  %v1995_v36 = vrot.slane %v1981_v30, %v6925_v19 }
 0x940   :  { %v2000_v38 = vcombine.low %v1972_v31, %v1979_v34  ;;  %v5755_v39 = vcombine.high %v1972_v31, %v1979_v34  ;;  %v2016_v40 = vcombine.low %v1988_v35, %v1995_v36  ;;  %v5756_v42 = vcombine.high %v1988_v35, %v1995_v36 }
 0x942   :  { %v2007_v44 = vrot.slane %v2000_v38, %v6909_v8  ;;  %v2015_v46 = vrot.slane %v5755_v39, %v6909_v8  ;;  %v2023_v37 = vrot.slane %v2016_v40, %v6909_v8  ;;  %v2031_v47 = vrot.slane %v5756_v42, %v6909_v8 }
 0x944   :  { %v2032_v48 = vcombine.low %v2007_v44, %v2015_v46  ;;  %v2048_v50 = vcombine.low %v2023_v37, %v2031_v47  ;;  %v2033_v32 = vcombine.high %v2007_v44, %v2015_v46  ;;  %v2049_v43 = vcombine.high %v2023_v37, %v2031_v47 }
 0x946   :  { %v2040_v51 = vrot.slane %v2032_v48, %v6925_v19  ;;  %v2056_v52 = vrot.slane %v2048_v50, %v6925_v19  ;;  %v2047_v53 = vrot.slane %v2033_v32, %v6925_v19  ;;  %v2063_v54 = vrot.slane %v2049_v43, %v6925_v19 }
 0x948   :  { %v2064_v59 = vcombine.low %v2040_v51, %v2056_v52  ;;  %v2065_v60 = vcombine.high %v2040_v51, %v2056_v52  ;;  %v7166_v45 = vcombine.low %v2047_v53, %v2063_v54  ;;  %v7168_v55 = vcombine.high %v2047_v53, %v2063_v54 }
 0x94a   :  { %v2068_v56 = vpack.c.bf16 %v2064_v59, %v2064_v59  ;;  %v2069_v12 = vpack.c.bf16 %v2065_v60, %v2065_v60  ;;  %v2070_v50 = vpack.c.bf16 %v7166_v45, %v7166_v45  ;;  %v2071_v32 = vpack.c.bf16 %v7168_v55, %v7168_v55 }
 0x94c   :  { %v2228_v62 = vsel %vm280_vm3, %v2068_v56, 0  ;;  %v2274_v63 = vsel %vm280_vm3, %v2069_v12, 0  ;;  %v2320_v54 = vsel %vm280_vm3, %v2070_v50, 0  ;;  %v2366_v59 = vsel %vm280_vm3, %v2071_v32, 0 }
 0x94d   :  { %6085 = vmatpush3.bf16.xpose.msra.mxu1 %v2228_v62  ;;  %6091 = vmatpush3.bf16.xpose.msra.mxu0 %v2274_v63 }
 0x94e   :  { %6096 = vmatprep.subr.bf16.mxu1 %v6685_v0  ;;  %6102 = vmatprep.subr.bf16.mxu0 %v6685_v0 }
 0x97d   :  { %v1704_v58 = vpop.f32.mrf.mxu1 }
 0x97e   :  { %v1705_v2 = vadd.f32 %v5745_v1, %v1704_v58 }
 0x97f   :  { %v6074_v57 = vpop.f32.mrf.mxu1 }
 0x980   :  { %1773 = vrot.lane.b32.xlu0 %v1705_v2, %s6688_s17  ;;  %1776 = vrot.lane.b32.xlu1 %v1705_v2, %s6689_s9 }
 0x981   :  { %v1707_v3 = vpop.f32.mrf.mxu1 }
 0x983   :  { %v6075_v4 = vpop.f32.mrf.mxu1 }
 0x984   :  { %1779 = vrot.lane.b32.xlu0 %v1705_v2, %s6690_s24 }
 0x9f2   :  { %v1774_v5 = vpop.permute.xlu0 %1773  ;;  %v1777_v49 = vpop.permute.xlu1 %1776 }
 0x9f3   :  { %v1782_v6 = vcombine.low %v1705_v2, %v1777_v49  ;;  %v1783_v7 = vcombine.high %v1705_v2, %v1777_v49 }
 0x9f5   :  { %v1790_v14 = vrot.slane %v1782_v6, %v6909_v8  ;;  %v1797_v15 = vrot.slane %v1783_v7, %v6909_v8 }
 0x9f6   :  { %v1780_v9 = vpop.permute.xlu0 %1779 }
 0x9f7   :  { %v1798_v10 = vcombine.low %v1774_v5, %v1780_v9  ;;  %v1799_v11 = vcombine.high %v1774_v5, %v1780_v9 }
 0x9f9   :  { %v1806_v16 = vrot.slane %v1798_v10, %v6909_v8  ;;  %v1813_v20 = vrot.slane %v1799_v11, %v6909_v8 }
 0x9fb   :  { %v1814_v21 = vcombine.low %v1790_v14, %v1806_v16  ;;  %v1815_v23 = vcombine.high %v1790_v14, %v1806_v16  ;;  %v1830_v24 = vcombine.low %v1797_v15, %v1813_v20  ;;  %v1831_v25 = vcombine.high %v1797_v15, %v1813_v20 }
 0x9fd   :  { %v1822_v33 = vrot.slane %v1814_v21, %v6925_v19  ;;  %v1829_v26 = vrot.slane %v1815_v23, %v6925_v19  ;;  %v1838_v41 = vrot.slane %v1830_v24, %v6925_v19  ;;  %v1845_v27 = vrot.slane %v1831_v25, %v6925_v19 }
 0x9ff   :  { %v1850_v28 = vcombine.low %v1822_v33, %v1829_v26  ;;  %v5753_v29 = vcombine.high %v1822_v33, %v1829_v26  ;;  %v1866_v30 = vcombine.low %v1838_v41, %v1845_v27  ;;  %v5754_v31 = vcombine.high %v1838_v41, %v1845_v27 }
 0xa01   :  { %v1857_v34 = vrot.slane %v1850_v28, %v6909_v8  ;;  %v1865_v35 = vrot.slane %v5753_v29, %v6909_v8  ;;  %v1873_v36 = vrot.slane %v1866_v30, %v6909_v8  ;;  %v1881_v38 = vrot.slane %v5754_v31, %v6909_v8 }
 0xa03   :  { %v1882_v39 = vcombine.low %v1857_v34, %v1865_v35  ;;  %v1898_v40 = vcombine.low %v1873_v36, %v1881_v38  ;;  %v1883_v42 = vcombine.high %v1857_v34, %v1865_v35  ;;  %v1899_v44 = vcombine.high %v1873_v36, %v1881_v38 }
 0xa05   :  { %v1890_v46 = vrot.slane %v1882_v39, %v6925_v19  ;;  %v1906_v37 = vrot.slane %v1898_v40, %v6925_v19  ;;  %v1897_v52 = vrot.slane %v1883_v42, %v6925_v19  ;;  %v1913_v53 = vrot.slane %v1899_v44, %v6925_v19 }
 0xa07   :  { %v1914_v47 = vcombine.low %v1890_v46, %v1906_v37  ;;  %v1915_v48 = vcombine.high %v1890_v46, %v1906_v37  ;;  %v1916_v60 = vcombine.low %v1897_v52, %v1913_v53  ;;  %v1917_v45 = vcombine.high %v1897_v52, %v1913_v53 }
 0xa09   :  { %v1918_v43 = vpack.c.bf16 %v1914_v47, %v1914_v47  ;;  %v1919_v51 = vpack.c.bf16 %v1915_v48, %v1915_v48  ;;  %v1920_v55 = vpack.c.bf16 %v1916_v60, %v1916_v60  ;;  %v1921_v56 = vpack.c.bf16 %v1917_v45, %v1917_v45 }
 0xa0b   :  { %6087 = vmatmul.mubr.msk.bf16.vlgmr.msra.gmra.mxu1 %vm280_vm3, %v1918_v43  ;;  %6093 = vmatmul.mubr.msk.bf16.vlgmr.msra.gmra.mxu0 %vm280_vm3, %v1919_v51 }
 0xa0c   :  { %6097 = vmatpush3.bf16.xpose.msra.mxu1 %v2320_v54  ;;  %6103 = vmatpush3.bf16.xpose.msra.mxu0 %v2366_v59 }
 0xa0d   :  { %6098 = vmatprep.mubr.msk.bf16.mxu1 %vm6686_vm0, %v6685_v0  ;;  %6104 = vmatprep.mubr.msk.bf16.mxu0 %vm6686_vm0, %v6685_v0 }
 0xa0e   :  { %6108 = vmatprep.subr.bf16.mxu1 %v6685_v0  ;;  %6114 = vmatprep.subr.bf16.mxu0 %v6685_v0 }
 0xa13   :  { %6099 = vmatmul.mubr.msk.bf16.vlgmr.msra.gmra.mxu1 %vm280_vm3, %v1920_v55  ;;  %6105 = vmatmul.mubr.msk.bf16.vlgmr.msra.gmra.mxu0 %vm280_vm3, %v1921_v56 }
 0xa14   :  { %6110 = vmatprep.mubr.msk.bf16.mxu1 %vm6686_vm0, %v6685_v0  ;;  %6116 = vmatprep.mubr.msk.bf16.mxu0 %vm6686_vm0, %v6685_v0 }
 0xacb   :  { %v2264_v12 = vpop.f32.mrf.mxu1  ;;  %v2310_v62 = vpop.f32.mrf.mxu0 }
 0xacc   :  { %v2408_v63 = vmul.f32 0.35355338, %v2264_v12  ;;  %v2409_v1 = vmul.f32 0.35355338, %v2310_v62 }
 0xacd   :  { %v6088_v58 = vpop.f32.mrf.mxu1  ;;  %v6094_v2 = vpop.f32.mrf.mxu0 }
 0xace   :  { %v2412_v57 = vsel %vm280_vm3, %v2408_v63, -inf  ;;  %v2415_v3 = vsel %vm280_vm3, %v2409_v1, -inf }
 0xacf   :  { %2413 = vmax.xlane.f32.xlu1 %v2412_v57  ;;  %v2267_v4 = vpop.f32.mrf.mxu1  ;;  %2416 = vmax.xlane.f32.xlu0 %v2415_v3  ;;  %v2313_v5 = vpop.f32.mrf.mxu0 }
 0xad1   :  { %v6089_v49 = vpop.f32.mrf.mxu1  ;;  %v6095_v6 = vpop.f32.mrf.mxu0 }
 0xad3   :  { %v2356_v7 = vpop.f32.mrf.mxu1  ;;  %v2402_v9 = vpop.f32.mrf.mxu0 }
 0xad4   :  { %v2410_v10 = vmul.f32 0.35355338, %v2356_v7  ;;  %v2411_v11 = vmul.f32 0.35355338, %v2402_v9 }
 0xad5   :  { %v6100_v14 = vpop.f32.mrf.mxu1  ;;  %v6106_v15 = vpop.f32.mrf.mxu0 }
 0xad6   :  { %v2418_v16 = vsel %vm280_vm3, %v2410_v10, -inf  ;;  %v2421_v20 = vsel %vm280_vm3, %v2411_v11, -inf }
 0xad7   :  { %v2359_v21 = vpop.f32.mrf.mxu1  ;;  %2419 = vmax.xlane.f32.xlu0 %v2418_v16  ;;  %2422 = vmax.xlane.f32.xlu1 %v2421_v20  ;;  %v2405_v23 = vpop.f32.mrf.mxu0 }
 0xad9   :  { %v6101_v24 = vpop.f32.mrf.mxu1  ;;  %v6107_v25 = vpop.f32.mrf.mxu0 }
 0xae8   :  { %2074 = vrot.lane.b32.xlu1 %v7138_v18, %s6687_s30 }
 0xaed   :  { %2072 = vrot.lane.b32.xlu0 %v7128_v13, %s6687_s30 }
 0xb58   :  { %v2414_v33 = vpop.xlane.xlu1 %2413  ;;  %v2417_v26 = vpop.xlane.xlu0 %2416 }
 0xb59   :  { %v2424_v41 = vsub.f32 %v2408_v63, %v2414_v33  ;;  %v2425_v27 = vsub.f32 %v2409_v1, %v2417_v26 }
 0xb5b   :  { %v2428_v28 = vmul.f32 1.442695, %v2424_v41  ;;  %v2430_v29 = vmul.f32 1.442695, %v2425_v27 }
 0xb5d   :  { %6441 = vpow2.f32 %v2428_v28 }
 0xb5e   :  { %6443 = vpow2.f32 %v2430_v29 }
 0xb60   :  { %v2423_v13 = vpop.xlane.xlu1 %2422  ;;  %v2420_v35 = vpop.xlane.xlu0 %2419 }
 0xb61   :  { %v2427_v36 = vsub.f32 %v2411_v11, %v2423_v13  ;;  %v2426_v38 = vsub.f32 %v2410_v10, %v2420_v35 }
 0xb63   :  { %v2434_v39 = vmul.f32 1.442695, %v2427_v36  ;;  %v2432_v40 = vmul.f32 1.442695, %v2426_v38 }
 0xb64   :  { %v2075_v37 = vpop.permute.xlu1 %2074 }
 0xb65   :  { %6445 = vpow2.f32 %v2434_v39 }
 0xb66   :  { %6447 = vpow2.f32 %v2432_v40 }
 0xb6a   :  { %v7224_v30 = vpop.eup %6441 }
 0xb6b   :  { %v7226_v31 = vpop.eup %6443  ;;  %v2436_v34 = vsel %vm280_vm3, %v7224_v30, 0.0 }
 0xb6c   :  { %2437 = vadd.xlane.f32.xlu0 %v2436_v34  ;;  %v2439_v18 = vsel %vm280_vm3, %v7226_v31, 0.0 }
 0xb6d   :  { %2440 = vadd.xlane.f32.xlu1 %v2439_v18 }
 0xb72   :  { %v7236_v42 = vpop.eup %6445 }
 0xb73   :  { %v7238_v44 = vpop.eup %6447  ;;  %v2445_v46 = vsel %vm280_vm3, %v7236_v42, 0.0 }
 0xb7e   :  { %2076 = vrot.lane.b32.xlu1 %v7136_v17, %s6687_s30  ;;  %v2442_v17 = vsel %vm280_vm3, %v7238_v44, 0.0 }
 0xb82   :  { %2078 = vrot.lane.b32.xlu0 %v7144_v22, %s6687_s30  ;;  %v2073_v22 = vpop.permute.xlu0 %2072 }
 0xba1   :  { %2446 = vadd.xlane.f32.xlu0 %v2445_v46 }
 0xba2   :  { %2443 = vadd.xlane.f32.xlu1 %v2442_v17 }
 0xbf5   :  { %v2438_v47 = vpop.xlane.xlu0 %2437 }
 0xbf6   :  { %v2441_v48 = vpop.xlane.xlu1 %2440  ;;  %6449 = vrcp.f32 %v2438_v47 }
 0xbf7   :  { %6451 = vrcp.f32 %v2441_v48 }
 0xbf9   :  { %v2079_v50 = vpop.permute.xlu0 %2078 }
 0xbfa   :  { %v2100_v32 = vcombine.low %v2075_v37, %v2079_v50  ;;  %v2101_v43 = vcombine.high %v2075_v37, %v2079_v50  ;;  %v2077_v51 = vpop.permute.xlu1 %2076 }
 0xbfb   :  { %v2084_v52 = vcombine.low %v2073_v22, %v2077_v51  ;;  %v2085_v53 = vcombine.high %v2073_v22, %v2077_v51 }
 0xbfc   :  { %v2108_v54 = vrot.slane %v2100_v32, %v6909_v8  ;;  %v2115_v59 = vrot.slane %v2101_v43, %v6909_v8 }
 0xbfd   :  { %v2092_v60 = vrot.slane %v2084_v52, %v6909_v8  ;;  %v2099_v45 = vrot.slane %v2085_v53, %v6909_v8 }
 0xbff   :  { %v2116_v55 = vcombine.low %v2092_v60, %v2108_v54  ;;  %v2117_v56 = vcombine.high %v2092_v60, %v2108_v54  ;;  %v2132_v12 = vcombine.low %v2099_v45, %v2115_v59  ;;  %v2133_v62 = vcombine.high %v2099_v45, %v2115_v59 }
 0xc01   :  { %v2124_v63 = vrot.slane %v2116_v55, %v6925_v19  ;;  %v2131_v1 = vrot.slane %v2117_v56, %v6925_v19  ;;  %v2140_v58 = vrot.slane %v2132_v12, %v6925_v19  ;;  %v2147_v2 = vrot.slane %v2133_v62, %v6925_v19 }
 0xc03   :  { %v2152_v57 = vcombine.low %v2124_v63, %v2131_v1  ;;  %v5757_v3 = vcombine.high %v2124_v63, %v2131_v1  ;;  %v2168_v4 = vcombine.low %v2140_v58, %v2147_v2  ;;  %v5758_v5 = vcombine.high %v2140_v58, %v2147_v2  ;;  %v6450_v16 = vpop.eup %6449 }
 0xc04   :  { %v6452_v25 = vpop.eup %6451  ;;  %v2452_v34 = vmul.f32 %v6450_v16, %v7224_v30 }
 0xc05   :  { %v2159_v49 = vrot.slane %v2152_v57, %v6909_v8  ;;  %v2167_v6 = vrot.slane %v5757_v3, %v6909_v8  ;;  %v2175_v7 = vrot.slane %v2168_v4, %v6909_v8  ;;  %v2183_v9 = vrot.slane %v5758_v5, %v6909_v8 }
 0xc06   :  { %v2453_v18 = vmul.f32 %v6452_v25, %v7226_v31  ;;  %v2456_v39 = vpack.c.bf16 %v2452_v34, %v2452_v34 }
 0xc07   :  { %v2184_v10 = vcombine.low %v2159_v49, %v2167_v6  ;;  %v2200_v11 = vcombine.low %v2175_v7, %v2183_v9  ;;  %v2185_v14 = vcombine.high %v2159_v49, %v2167_v6  ;;  %v2201_v15 = vcombine.high %v2175_v7, %v2183_v9 }
 0xc08   :  { %v2457_v40 = vpack.c.bf16 %v2453_v18, %v2453_v18 }
 0xc09   :  { %v2192_v20 = vrot.slane %v2184_v10, %v6925_v19  ;;  %v2208_v21 = vrot.slane %v2200_v11, %v6925_v19  ;;  %v2199_v23 = vrot.slane %v2185_v14, %v6925_v19  ;;  %v2215_v24 = vrot.slane %v2201_v15, %v6925_v19  ;;  %v6397_v11 = vld [vmem:[#allocation8 + $0x8] sm:$0xff]  }
 0xc0b   :  { %v2216_v33 = vcombine.low %v2192_v20, %v2208_v21  ;;  %v2217_v26 = vcombine.high %v2192_v20, %v2208_v21  ;;  %v2218_v41 = vcombine.low %v2199_v23, %v2215_v24  ;;  %v2219_v27 = vcombine.high %v2199_v23, %v2215_v24 }
 0xc0d   :  { %v2220_v28 = vpack.c.bf16 %v2216_v33, %v2216_v33  ;;  %v2221_v29 = vpack.c.bf16 %v2217_v26, %v2217_v26  ;;  %v2222_v36 = vpack.c.bf16 %v2218_v41, %v2218_v41  ;;  %v2223_v38 = vpack.c.bf16 %v2219_v27, %v2219_v27  ;;  %v6398_v26 = vld [vmem:[#allocation8] sm:$0xff]  }
 0xc0f   :  { %v2464_v13 = vsel %vm287_vm2, %v2220_v28, 0  ;;  %v2510_v35 = vsel %vm287_vm2, %v2221_v29, 0  ;;  %v2556_v30 = vsel %vm287_vm2, %v2222_v36, 0  ;;  %v2602_v31 = vsel %vm287_vm2, %v2223_v38, 0 }
 0xc10   :  { %6109 = vmatpush3.bf16.msra.mxu1 %v2464_v13  ;;  %6115 = vmatpush3.bf16.msra.mxu0 %v2510_v35 }
 0xc11   :  { %6120 = vmatprep.subr.bf16.mxu1 %v6685_v0  ;;  %6126 = vmatprep.subr.bf16.mxu0 %v6685_v0 }
 0xc13   :  { %6111 = vmatmul.mubr.msk.bf16.vlgmr.msra.gmra.mxu1 %vm280_vm3, %v2456_v39  ;;  %6117 = vmatmul.mubr.msk.bf16.vlgmr.msra.gmra.mxu0 %vm280_vm3, %v2457_v40 }
 0xc14   :  { %6121 = vmatpush3.bf16.msra.mxu1 %v2556_v30  ;;  %6127 = vmatpush3.bf16.msra.mxu0 %v2602_v31 }
 0xc15   :  { %6122 = vmatprep.mubr.msk.bf16.mxu1 %vm6686_vm0, %v6685_v0  ;;  %6128 = vmatprep.mubr.msk.bf16.mxu0 %vm6686_vm0, %v6685_v0 }
 0xc16   :  { %6132 = vmatprep.subr.bf16.mxu1 %v6685_v0  ;;  %6140 = vmatprep.subr.bf16.mxu0 %v6685_v0 }
 0xc2a   :  { %v2447_v46 = vpop.xlane.xlu0 %2446 }
 0xc2b   :  { %6453 = vrcp.f32 %v2447_v46  ;;  %v2444_v17 = vpop.xlane.xlu1 %2443 }
 0xc2c   :  { %6455 = vrcp.f32 %v2444_v17 }
 0xc38   :  { %v6454_v22 = vpop.eup %6453 }
 0xc39   :  { %v6456_v37 = vpop.eup %6455  ;;  %v2455_v47 = vmul.f32 %v6454_v22, %v7236_v42 }
 0xc3a   :  { %v2454_v48 = vmul.f32 %v6456_v37, %v7238_v44 }
 0xc3b   :  { %v2459_v50 = vpack.c.bf16 %v2455_v47, %v2455_v47 }
 0xc3c   :  { %v2458_v32 = vpack.c.bf16 %v2454_v48, %v2454_v48 }
 0xc3d   :  { %6129 = vmatmul.mubr.msk.bf16.vlgmr.msra.gmra.mxu0 %vm280_vm3, %v2459_v50 }
 0xc3e   :  { %6123 = vmatmul.mubr.msk.bf16.vlgmr.msra.gmra.mxu1 %vm280_vm3, %v2458_v32  ;;  %6144 = vmatprep.mubr.msk.bf16.mxu0 %vm6686_vm0, %v6685_v0 }
 0xc3f   :  { %6136 = vmatprep.mubr.msk.bf16.mxu1 %vm6686_vm0, %v6685_v0  ;;  %6133 = vmatpush3.bf16.msra.mxu1 %v6397_v11  ;;  %v6514_v11 = vld [vmem:[%s7933_s3 + $0x8] sm:$0xff]  }
 0xc40   :  { %6134 = vmatprep.subr.bf16.mxu1 %v6685_v0 }
 0xc43   :  { %6135 = vmatpush3.bf16.msra.mxu1 %v6398_v26  ;;  %v5775_v26 = vld [vmem:[%s7915_s18] ss:$0 sm:$0xff] }
 0xc44   :  { %6148 = vmatprep.subr.bf16.mxu1 %v6685_v0 }
 0xcd3   :  { %v2500_v43 = vpop.f32.mrf.mxu1  ;;  %v2546_v51 = vpop.f32.mrf.mxu0 }
 0xcd5   :  { %v6112_v52 = vpop.f32.mrf.mxu1  ;;  %v6118_v53 = vpop.f32.mrf.mxu0 }
 0xcd7   :  { %v2503_v54 = vpop.f32.mrf.mxu1  ;;  %v2549_v42 = vpop.f32.mrf.mxu0 }
 0xcd9   :  { %v6113_v59 = vpop.f32.mrf.mxu1  ;;  %v6119_v44 = vpop.f32.mrf.mxu0 }
 0xcfd   :  { %v2638_v60 = vpop.f32.mrf.mxu0 }
 0xcfe   :  { %v2592_v45 = vpop.f32.mrf.mxu1  ;;  %v2660_v55 = vcombine.low %v2546_v51, %v2638_v60  ;;  %v2661_v56 = vcombine.high %v2546_v51, %v2638_v60  ;;  %v5769_v51 = vld [vmem:[%s7911_s14] ss:$0 sm:$0xff] }
 0xcff   :  { %v2644_v12 = vcombine.low %v2500_v43, %v2592_v45  ;;  %v2645_v62 = vcombine.high %v2500_v43, %v2592_v45  ;;  %v6130_v63 = vpop.f32.mrf.mxu0 }
 0xd00   :  { %v2668_v1 = vrot.slane %v2660_v55, %v6909_v8  ;;  %v2675_v58 = vrot.slane %v2661_v56, %v6909_v8  ;;  %v6124_v2 = vpop.f32.mrf.mxu1  ;;  %v6399_v63 = vld [vmem:[#allocation10 + $0x8] sm:$0xff]  }
 0xd01   :  { %v2652_v57 = vrot.slane %v2644_v12, %v6909_v8  ;;  %v2659_v3 = vrot.slane %v2645_v62, %v6909_v8  ;;  %v2641_v4 = vpop.f32.mrf.mxu0  ;;  %6141 = vmatpush3.bf16.msra.mxu0 %v6399_v63 }
 0xd02   :  { %v2595_v5 = vpop.f32.mrf.mxu1  ;;  %6142 = vmatprep.subr.bf16.mxu0 %v6685_v0 }
 0xd03   :  { %v2676_v49 = vcombine.low %v2652_v57, %v2668_v1  ;;  %v2677_v6 = vcombine.high %v2652_v57, %v2668_v1  ;;  %v2692_v7 = vcombine.low %v2659_v3, %v2675_v58  ;;  %v2693_v9 = vcombine.high %v2659_v3, %v2675_v58  ;;  %v6131_v10 = vpop.f32.mrf.mxu0  ;;  %v6400_v1 = vld [vmem:[#allocation10] sm:$0xff]   ;;  %v5773_v5 = vld [vmem:[%s7912_s15] ss:$0 sm:$0xff] }
 0xd04   :  { %v6125_v14 = vpop.f32.mrf.mxu1  ;;  %v6402_v58 = vld [vmem:[%s7916_s19 + $0x30] sm:$0xff]  }
 0xd05   :  { %v2684_v15 = vrot.slane %v2676_v49, %v6925_v19  ;;  %v2691_v16 = vrot.slane %v2677_v6, %v6925_v19  ;;  %v2700_v20 = vrot.slane %v2692_v7, %v6925_v19  ;;  %v2707_v21 = vrot.slane %v2693_v9, %v6925_v19  ;;  %6143 = vmatpush3.bf16.msra.mxu0 %v6400_v1  ;;  %v5774_v6 = vld [vmem:[%s7913_s16] ss:$0 sm:$0xff]  ;;  %v7346_v14 = vld [vmem:[%s7934_s26 + $0x8] sm:$0xff] }
 0xd06   :  { %6168 = vmatprep.subr.bf16.mxu0 %v6685_v0 }
 0xd07   :  { %v2712_v23 = vcombine.low %v2684_v15, %v2691_v16  ;;  %v5767_v24 = vcombine.high %v2684_v15, %v2691_v16  ;;  %v2728_v25 = vcombine.low %v2700_v20, %v2707_v21  ;;  %v5768_v33 = vcombine.high %v2700_v20, %v2707_v21  ;;  %v6515_v16 = vld [vmem:[%s7933_s3] sm:$0xff]   ;;  %v6403_v20 = vld [vmem:[%s7916_s19 + $0x28] sm:$0xff]  }
 0xd08   :  { %v3052_v15 = vpack.c.bf16 %v7346_v14, %v7346_v14  ;;  %v6404_v21 = vld [vmem:[%s7916_s19 + $0x20] sm:$0xff]  }
 0xd09   :  { %v2719_v41 = vrot.slane %v2712_v23, %v6909_v8  ;;  %v2727_v27 = vrot.slane %v5767_v24, %v6909_v8  ;;  %v2735_v28 = vrot.slane %v2728_v25, %v6909_v8  ;;  %v2743_v29 = vrot.slane %v5768_v33, %v6909_v8  ;;  %v6405_v23 = vld [vmem:[%s7916_s19 + $0x18] sm:$0xff]   ;;  %v6406_v24 = vld [vmem:[%s7916_s19 + $0x10] sm:$0xff]   ;;  %v6407_v25 = vld [vmem:[%s7916_s19 + $0x8] sm:$0xff]  }
 0xd0a   :  { %v6408_v33 = vld [vmem:[%s7916_s19] sm:$0xff]  }
 0xd0b   :  { %v2745_v34 = vcombine.high %v2719_v41, %v2727_v27  ;;  %v2761_v18 = vcombine.high %v2735_v28, %v2743_v29  ;;  %v2744_v13 = vcombine.low %v2719_v41, %v2727_v27  ;;  %v2760_v35 = vcombine.low %v2735_v28, %v2743_v29 }
 0xd0d   :  { %v2759_v36 = vrot.slane %v2745_v34, %v6925_v19  ;;  %v2775_v38 = vrot.slane %v2761_v18, %v6925_v19  ;;  %v2752_v39 = vrot.slane %v2744_v13, %v6925_v19  ;;  %v2768_v40 = vrot.slane %v2760_v35, %v6925_v19  ;;  %v6516_v35 = vld [vmem:[%s7935_s0] ss:$0 sm:$0xff] }
 0xd0f   :  { %v2778_v30 = vcombine.low %v2759_v36, %v2775_v38  ;;  %v2777_v31 = vcombine.high %v2752_v39, %v2768_v40  ;;  %v2776_v46 = vcombine.low %v2752_v39, %v2768_v40  ;;  %v2779_v17 = vcombine.high %v2759_v36, %v2775_v38 }
 0xd11   :  { %2785 = vrot.lane.b32.xlu1 %v2778_v30, %s6693_s11  ;;  %2781 = vrot.lane.b32.xlu0 %v2777_v31, %s6694_s2 }
 0xd15   :  { %2789 = vrot.lane.b32.xlu1 %v2779_v17, %s7924_s25 }
 0xd83   :  { %v2786_v22 = vpop.permute.xlu1 %2785  ;;  %v2782_v37 = vpop.permute.xlu0 %2781 }
 0xd84   :  { %v2792_v47 = vsel %vm280_vm3, %v2776_v46, %v2782_v37 }
 0xd85   :  { %v2793_v50 = vsel %vm1580_vm4, %v2792_v47, %v2786_v22 }
 0xd87   :  { %v2790_v48 = vpop.permute.xlu1 %2789 }
 0xd88   :  { %v2794_v32 = vsel %vm1582_vm5, %v2793_v50, %v2790_v48  ;;  %v6517_v48 = vld [vmem:[%s7936_s4 + $0x8] sm:$0xff]   ;;  %v6518_v50 = vld [vmem:[%s7936_s4] sm:$0xff]  }
 0xd89   :  { %v2795_v43 = vpack.c.bf16 %v2794_v32, %v2794_v32 }
 0xd8b   :  { %6137 = vmatmul.mubr.msk.bf16.vlgmr.msra.gmra.mxu1 %vm215_vm1, %v2795_v43 }
 0xd8c   :  { %6164 = vmatprep.mubr.msk.bf16.mxu1 %vm6686_vm0, %v6685_v0 }
 0xe4b   :  { %v2851_v52 = vpop.f32.mrf.mxu1 }
 0xe4c   :  { %v2852_v53 = vadd.f32 %v5769_v51, %v2851_v52 }
 0xe4d   :  { %v6138_v54 = vpop.f32.mrf.mxu1 }
 0xe4e   :  { %v7315_v42 = vadd.f32 %v7104_v61, %v2852_v53  ;;  %v6401_v61 = vld [vmem:[%s7916_s19 + $0x38] sm:$0xff]   ;;  %v5779_v53 = vld [vmem:[%s7917_s20] ss:$0 sm:$0xff] }
 0xe4f   :  { %v2854_v59 = vpop.f32.mrf.mxu1  ;;  %6149 = vmatpush3.bf16.msra.mxu1 %v6401_v61 }
 0xe50   :  { %v2858_v44 = vsel %vm215_vm1, %v7315_v42, 0.0  ;;  %6150 = vmatprep.subr.bf16.mxu1 %v6685_v0 }
 0xe51   :  { %2859 = vadd.xlane.f32.xlu0 %v2858_v44  ;;  %v6139_v60 = vpop.f32.mrf.mxu1 }
 0xe53   :  { %6151 = vmatpush3.bf16.msra.mxu1 %v6402_v58 }
 0xe54   :  { %6152 = vmatprep.subr.bf16.mxu1 %v6685_v0 }
 0xe57   :  { %6153 = vmatpush3.bf16.msra.mxu1 %v6403_v20 }
 0xe58   :  { %6154 = vmatprep.subr.bf16.mxu1 %v6685_v0 }
 0xe5b   :  { %6155 = vmatpush3.bf16.msra.mxu1 %v6404_v21 }
 0xe5c   :  { %6156 = vmatprep.subr.bf16.mxu1 %v6685_v0 }
 0xe5f   :  { %6157 = vmatpush3.bf16.msra.mxu1 %v6405_v23 }
 0xe60   :  { %6158 = vmatprep.subr.bf16.mxu1 %v6685_v0 }
 0xe63   :  { %6159 = vmatpush3.bf16.msra.mxu1 %v6406_v24 }
 0xe64   :  { %6160 = vmatprep.subr.bf16.mxu1 %v6685_v0 }
 0xe67   :  { %6161 = vmatpush3.bf16.msra.mxu1 %v6407_v25 }
 0xe68   :  { %6162 = vmatprep.subr.bf16.mxu1 %v6685_v0 }
 0xe6b   :  { %6163 = vmatpush3.bf16.msra.mxu1 %v6408_v33 }
 0xe6c   :  { %6198 = vmatprep.subr.bf16.mxu1 %v6685_v0 }
 0xeda   :  { %v2860_v45 = vpop.xlane.xlu0 %2859 }
 0xedb   :  { %v2862_v55 = vmul.f32 0.03125, %v2860_v45 }
 0xedd   :  { %v2863_v56 = vsub.f32 %v7315_v42, %v2862_v55 }
 0xedf   :  { %v2864_v12 = vmul.f32 %v2863_v56, %v2863_v56 }
 0xee1   :  { %v2865_v62 = vsel %vm215_vm1, %v2864_v12, 0.0 }
 0xee2   :  { %2866 = vadd.xlane.f32.xlu1 %v2865_v62 }
 0xf6b   :  { %v2867_v2 = vpop.xlane.xlu1 %2866 }
 0xf6c   :  { %v2868_v57 = vmul.f32 0.03125, %v2867_v2 }
 0xf6e   :  { %v2869_v3 = vadd.f32 1e-05, %v2868_v57 }
 0xf70   :  { %6457 = vrsqrt.f32 %v2869_v3 }
 0xf7d   :  { %v6458_v4 = vpop.eup %6457 }
 0xf7e   :  { %v2871_v49 = vmul.f32 %v6458_v4, %v2863_v56 }
 0xf80   :  { %v2878_v7 = vmul.f32 %v5773_v5, %v2871_v49 }
 0xf82   :  { %v2885_v9 = vadd.f32 %v5774_v6, %v2878_v7 }
 0xf84   :  { %v2886_v10 = vpack.c.bf16 %v2885_v9, %v2885_v9 }
 0xf86   :  { %6145 = vmatmul.mubr.msk.bf16.vlgmr.msra.gmra.mxu0 %vm215_vm1, %v2886_v10 }
 0xf87   :  { %6169 = vmatpush3.bf16.msra.mxu0 %v6514_v11  ;;  %6172 = vmatprep.mubr.msk.bf16.mxu0 %vm6686_vm0, %v6685_v0 }
 0xf88   :  { %6170 = vmatprep.subr.bf16.mxu0 %v6685_v0 }
 0xf8b   :  { %6171 = vmatpush3.bf16.msra.mxu0 %v6515_v16 }
 0xf8e   :  { %6173 = vmatmul.mubr.msk.bf16.vlgmr.msra.gmra.mxu0 %vm215_vm1, %v3052_v15 }
0x1046   :  { %v2942_v41 = vpop.f32.mrf.mxu0 }
0x1047   :  { %v2943_v27 = vadd.f32 %v5775_v26, %v2942_v41 }
0x1048   :  { %v6146_v28 = vpop.f32.mrf.mxu0 }
0x1049   :  { %v2949_v29 = vmul.f32 0.70710677, %v2943_v27  ;;  %v2948_v17 = vmul.f32 0.5, %v2943_v27 }
0x104a   :  { %v2945_v34 = vpop.f32.mrf.mxu0 }
0x104b   :  { %6459 = verf.f32 %v2949_v29 }
0x104c   :  { %v6147_v18 = vpop.f32.mrf.mxu0 }
0x104e   :  { %v3090_v13 = vpop.f32.mrf.mxu0 }
0x104f   :  { %v3091_v36 = vadd.f32 %v6516_v35, %v3090_v13 }
0x1050   :  { %v6174_v38 = vpop.f32.mrf.mxu0 }
0x1051   :  { %v3096_v39 = vmax.f32 %v3091_v36, 0.0  ;;  %v6519_v36 = vld [vmem:[%s7903_s6] ss:$0 sm:$0xff] }
0x1052   :  { %v3093_v40 = vpop.f32.mrf.mxu0 }
0x1053   :  { %v7385_v30 = vpack.c.bf16 %v3096_v39, %v3096_v39 }
0x1054   :  { %v6175_v31 = vpop.f32.mrf.mxu0 }
0x1055   :  { %3098 = vxpose.xlu1.c.b16.start.end [1/1] (short) (narrow) %v7385_v30, 32  ;;  %3115 = vrot.lane.b32.xlu0 %v7385_v30, %s6687_s30 }
0x1058   :  { %v6460_v46 = vpop.eup %6459 }
0x1059   :  { %v2951_v22 = vadd.f32 1.0, %v6460_v46 }
0x105b   :  { %v2952_v37 = vmul.f32 %v2951_v22, %v2948_v17 }
0x105d   :  { %v2953_v47 = vpack.c.bf16 %v2952_v37, %v2952_v37 }
0x105f   :  { %6165 = vmatmul.mubr.bf16.vlgmr.msra.gmra.mxu1 %v2953_v47 }
0x1060   :  { %6199 = vmatpush3.bf16.msra.mxu1 %v6517_v48  ;;  %6202 = vmatprep.mubr.msk.bf16.mxu1 %vm6686_vm0, %v6685_v0 }
0x1061   :  { %6200 = vmatprep.subr.bf16.mxu1 %v6685_v0 }
0x1064   :  { %6201 = vmatpush3.bf16.msra.mxu1 %v6518_v50 }
0x1065   :  { %6212 = vmatprep.subr.bf16.mxu1 %v6685_v0 }
0x1067   :  { %6203 = vmatmul.mubr.msk.bf16.vlgmr.msra.gmra.mxu1 %vm215_vm1, %v3052_v15 }
0x1068   :  { %6214 = vmatprep.mubr.msk.bf16.mxu1 %vm6686_vm0, %v6685_v0 }
0x10b7   :  { %v3106_v32 = vpop.trf.xlu1 }
0x10b8   :  { %6178 = vmatprep.mubr.msk.bf16.mxu0 %vm280_vm3, %v3106_v32 }
0x10bb   :  { %v3107_v52 = vpop.trf.xlu1 }
0x10c7   :  { %v3116_v43 = vpop.permute.xlu0 %3115 }
0x10c8   :  { %v3124_v51 = vsel %vm287_vm2, %v3116_v43, 0  ;;  %6363 = vmatprep.subr.msk.bf16.mxu0 %vm287_vm2, %v3116_v43 }
0x10c9   :  { %6177 = vmatpush3.bf16.msra.mxu0 %v3124_v51 }
0x10ca   :  { %6182 = vmatprep.subr.bf16.mxu0 %v6685_v0 }
0x10cc   :  { %6179 = vmatmul.mubr.msk.bf16.vlgmr.msra.gmra.mxu0 %vm280_vm3, %v3107_v52 }
0x10cd   :  { %6186 = vmatprep.mubr.msk.bf16.mxu0 %vm6686_vm0, %v6685_v0 }
0x111f   :  { %v3042_v54 = vpop.f32.mrf.mxu1 }
0x1120   :  { %v3043_v59 = vadd.f32 %v5779_v53, %v3042_v54 }
0x1121   :  { %v6166_v44 = vpop.f32.mrf.mxu1 }
0x1122   :  { %v3048_v60 = vadd.f32 %v3043_v59, %v7315_v42 }
0x1123   :  { %v3045_v45 = vpop.f32.mrf.mxu1 }
0x1124   :  { %3049 = vst.msk [vmem:[#allocation11] sm:$0xff] %vm215_vm1, %v3048_v60 }
0x1125   :  { %v6167_v55 = vpop.f32.mrf.mxu1 }
0x1127   :  { %v3350_v5 = vpop.f32.mrf.mxu1 }
0x1128   :  { %v7426_v38 = vadd.f32 %v6519_v36, %v3350_v5 }
0x1129   :  { %v6204_v49 = vpop.f32.mrf.mxu1 }
0x112b   :  { %v3353_v6 = vpop.f32.mrf.mxu1 }
0x112d   :  { %v6205_v7 = vpop.f32.mrf.mxu1 }
0x118c   :  { %v6180_v56 = vpop.f32.mrf.mxu0 }
0x118d   :  { %v3177_v12 = vmul.f32 0.17677669, %v6180_v56 }
0x118e   :  { %v3160_v62 = vpop.f32.mrf.mxu0 }
0x118f   :  { %v3175_v63 = vmul.f32 0.17677669, %v3160_v62  ;;  %v3185_v1 = vsel %vm215_vm1, %v3177_v12, -inf }
0x1190   :  { %3186 = vmax.xlane.f32.xlu0 %v3185_v1  ;;  %v6181_v61 = vpop.f32.mrf.mxu0 }
0x1191   :  { %v3178_v58 = vmul.f32 0.17677669, %v6181_v61  ;;  %v3179_v3 = vsel %vm215_vm1, %v3175_v63, -inf }
0x1192   :  { %v3163_v2 = vpop.f32.mrf.mxu0 }
0x1193   :  { %v3176_v57 = vmul.f32 0.17677669, %v3163_v2  ;;  %v3188_v4 = vsel %vm215_vm1, %v3178_v58, -inf }
0x1194   :  { %3180 = vmax.xlane.f32.xlu0 %v3179_v3  ;;  %3189 = vmax.xlane.f32.xlu1 %v3188_v4 }
0x1195   :  { %v3182_v42 = vsel %vm215_vm1, %v3176_v57, -inf }
0x1198   :  { %3183 = vmax.xlane.f32.xlu0 %v3182_v42 }
0x1219   :  { %v3187_v9 = vpop.xlane.xlu0 %3186 }
0x121a   :  { %v3193_v10 = vsub.f32 %v3177_v12, %v3187_v9 }
0x121c   :  { %v3199_v11 = vmul.f32 1.442695, %v3193_v10 }
0x121d   :  { %v3181_v15 = vpop.xlane.xlu0 %3180  ;;  %v3190_v16 = vpop.xlane.xlu1 %3189 }
0x121e   :  { %6461 = vpow2.f32 %v3199_v11  ;;  %v3191_v20 = vsub.f32 %v3175_v63, %v3181_v15  ;;  %v3194_v21 = vsub.f32 %v3178_v58, %v3190_v16  ;;  %v6520_v16 = vld [vmem:[%s7937_s28 + $0x8] sm:$0xff]  }
0x1220   :  { %v3201_v23 = vmul.f32 1.442695, %v3194_v21  ;;  %v3195_v24 = vmul.f32 1.442695, %v3191_v20 }
0x1221   :  { %v3184_v25 = vpop.xlane.xlu0 %3183 }
0x1222   :  { %v3192_v33 = vsub.f32 %v3176_v57, %v3184_v25  ;;  %6463 = vpow2.f32 %v3201_v23 }
0x1223   :  { %6465 = vpow2.f32 %v3195_v24 }
0x1224   :  { %v3197_v26 = vmul.f32 1.442695, %v3192_v33 }
0x1226   :  { %6467 = vpow2.f32 %v3197_v26 }
0x122b   :  { %v6462_v41 = vpop.eup %6461 }
0x122c   :  { %v3209_v27 = vsel %vm215_vm1, %v6462_v41, 0.0 }
0x122d   :  { %3210 = vadd.xlane.f32.xlu0 %v3209_v27  ;;  %v6521_v27 = vld [vmem:[%s7937_s28] sm:$0xff]  }
0x122f   :  { %v6464_v28 = vpop.eup %6463 }
0x1230   :  { %v3212_v29 = vsel %vm215_vm1, %v6464_v28, 0.0  ;;  %v6466_v34 = vpop.eup %6465 }
0x1231   :  { %3213 = vadd.xlane.f32.xlu0 %v3212_v29  ;;  %v3203_v35 = vsel %vm215_vm1, %v6466_v34, 0.0 }
0x1233   :  { %v6468_v18 = vpop.eup %6467 }
0x1234   :  { %v3206_v13 = vsel %vm215_vm1, %v6468_v18, 0.0 }
0x1235   :  { %3207 = vadd.xlane.f32.xlu1 %v3206_v13  ;;  %3204 = vadd.xlane.f32.xlu0 %v3203_v35 }
0x1246   :  { %3357 = vrot.lane.b32.xlu1 %v7426_v38, %s6688_s17 }
0x124a   :  { %3360 = vrot.lane.b32.xlu1 %v7426_v38, %s6689_s9 }
0x124b   :  { %3225 = vrot.lane.b32.xlu0 %v7385_v30, %s6679_s27 }
0x124e   :  { %3363 = vrot.lane.b32.xlu1 %v7426_v38, %s6690_s24 }
0x124f   :  { %3506 = vrot.lane.b32.xlu0 %v7426_v38, %s6687_s30 }
0x12b6   :  { %v3211_v39 = vpop.xlane.xlu0 %3210 }
0x12b7   :  { %6469 = vrcp.f32 %v3211_v39 }
0x12ba   :  { %v3214_v40 = vpop.xlane.xlu0 %3213 }
0x12bb   :  { %6471 = vrcp.f32 %v3214_v40 }
0x12be   :  { %v3208_v31 = vpop.xlane.xlu1 %3207  ;;  %v3205_v46 = vpop.xlane.xlu0 %3204 }
0x12bf   :  { %6473 = vrcp.f32 %v3208_v31 }
0x12c0   :  { %6475 = vrcp.f32 %v3205_v46 }
0x12c2   :  { %v7438_v17 = vpop.permute.xlu1 %3357  ;;  %v3226_v7 = vpop.permute.xlu0 %3225 }
0x12c3   :  { %3508 = vrot.lane.b32.xlu1 %v7438_v17, %s6687_s30 }
0x12c4   :  { %v6470_v22 = vpop.eup %6469 }
0x12c5   :  { %v3221_v32 = vmul.f32 %v6470_v22, %v6462_v41 }
0x12c6   :  { %v7442_v30 = vpop.permute.xlu1 %3360 }
0x12c7   :  { %3510 = vrot.lane.b32.xlu0 %v7442_v30, %s6687_s30  ;;  %v3366_v37 = vcombine.low %v7426_v38, %v7442_v30  ;;  %v3367_v48 = vcombine.high %v7426_v38, %v7442_v30 }
0x12c8   :  { %v6472_v47 = vpop.eup %6471 }
0x12c9   :  { %v3222_v43 = vmul.f32 %v6472_v47, %v6464_v28  ;;  %v3374_v54 = vrot.slane %v3366_v37, %v6909_v8  ;;  %v3381_v60 = vrot.slane %v3367_v48, %v6909_v8 }
0x12ca   :  { %v7450_v50 = vpop.permute.xlu1 %3363 }
0x12cb   :  { %v3382_v51 = vcombine.low %v7438_v17, %v7450_v50  ;;  %v3383_v52 = vcombine.high %v7438_v17, %v7450_v50  ;;  %3512 = vrot.lane.b32.xlu1 %v7450_v50, %s6687_s30  ;;  %v3224_v59 = vpack.c.bf16 %v3222_v43, %v3221_v32 }
0x12cc   :  { %v6474_v53 = vpop.eup %6473 }
0x12cd   :  { %v6476_v44 = vpop.eup %6475  ;;  %v3390_v45 = vrot.slane %v3382_v51, %v6909_v8  ;;  %v3397_v55 = vrot.slane %v3383_v52, %v6909_v8  ;;  %v3220_v56 = vmul.f32 %v6474_v53, %v6468_v18  ;;  %6183 = vmatpush3.bf16.msra.mxu0 %v3224_v59 }
0x12ce   :  { %v3219_v12 = vmul.f32 %v6476_v44, %v6466_v34  ;;  %6184 = vmatprep.subr.bf16.mxu0 %v6685_v0  ;;  %v3507_v34 = vpop.permute.xlu0 %3506 }
0x12cf   :  { %v3398_v62 = vcombine.low %v3374_v54, %v3390_v45  ;;  %v3399_v63 = vcombine.high %v3374_v54, %v3390_v45  ;;  %v3414_v1 = vcombine.low %v3381_v60, %v3397_v55  ;;  %v3415_v61 = vcombine.high %v3381_v60, %v3397_v55 }
0x12d0   :  { %v3223_v58 = vpack.c.bf16 %v3220_v56, %v3219_v12 }
0x12d1   :  { %v3406_v2 = vrot.slane %v3398_v62, %v6925_v19  ;;  %v3413_v57 = vrot.slane %v3399_v63, %v6925_v19  ;;  %v3422_v3 = vrot.slane %v3414_v1, %v6925_v19  ;;  %v3429_v4 = vrot.slane %v3415_v61, %v6925_v19 }
0x12d2   :  { %6185 = vmatpush3.bf16.msra.mxu0 %v3223_v58 }
0x12d3   :  { %v3434_v42 = vcombine.low %v3406_v2, %v3413_v57  ;;  %v5795_v5 = vcombine.high %v3406_v2, %v3413_v57  ;;  %v3450_v49 = vcombine.low %v3422_v3, %v3429_v4  ;;  %v5796_v6 = vcombine.high %v3422_v3, %v3429_v4  ;;  %6190 = vmatprep.subr.bf16.mxu0 %v6685_v0 }
0x12d5   :  { %v3441_v9 = vrot.slane %v3434_v42, %v6909_v8  ;;  %v3449_v10 = vrot.slane %v5795_v5, %v6909_v8  ;;  %v3457_v11 = vrot.slane %v3450_v49, %v6909_v8  ;;  %v3465_v15 = vrot.slane %v5796_v6, %v6909_v8  ;;  %6187 = vmatmul.mubr.msk.bf16.vlgmr.msra.gmra.mxu0 %vm215_vm1, %v3226_v7 }
0x12d6   :  { %6191 = vmatpush3.bf16.msra.mxu0 %v6520_v16  ;;  %6194 = vmatprep.mubr.msk.bf16.mxu0 %vm6686_vm0, %v6685_v0 }
0x12d7   :  { %v3466_v20 = vcombine.low %v3441_v9, %v3449_v10  ;;  %v3482_v21 = vcombine.low %v3457_v11, %v3465_v15  ;;  %v3467_v23 = vcombine.high %v3441_v9, %v3449_v10  ;;  %v3483_v24 = vcombine.high %v3457_v11, %v3465_v15  ;;  %6192 = vmatprep.subr.bf16.mxu0 %v6685_v0 }
0x12d9   :  { %v3474_v25 = vrot.slane %v3466_v20, %v6925_v19  ;;  %v3490_v33 = vrot.slane %v3482_v21, %v6925_v19  ;;  %v3481_v26 = vrot.slane %v3467_v23, %v6925_v19  ;;  %v3497_v41 = vrot.slane %v3483_v24, %v6925_v19 }
0x12da   :  { %6193 = vmatpush3.bf16.msra.mxu0 %v6521_v27 }
0x12db   :  { %6206 = vmatprep.subr.bf16.mxu0 %v6685_v0  ;;  %v7487_v28 = vcombine.low %v3474_v25, %v3490_v33  ;;  %v7489_v29 = vcombine.low %v3481_v26, %v3497_v41  ;;  %v3499_v11 = vcombine.high %v3474_v25, %v3490_v33  ;;  %v3501_v21 = vcombine.high %v3481_v26, %v3497_v41 }
0x12dd   :  { %v3503_v16 = vpack.c.bf16 %v3499_v11, %v3499_v11  ;;  %v3505_v23 = vpack.c.bf16 %v3501_v21, %v3501_v21 }
0x1335   :  { %v3509_v18 = vpop.permute.xlu1 %3508 }
0x1339   :  { %v3511_v13 = vpop.permute.xlu0 %3510 }
0x133a   :  { %v3518_v35 = vcombine.low %v3507_v34, %v3511_v13  ;;  %v3519_v36 = vcombine.high %v3507_v34, %v3511_v13  ;;  %v3502_v13 = vpack.c.bf16 %v7487_v28, %v7487_v28 }
0x133c   :  { %v3526_v46 = vrot.slane %v3518_v35, %v6909_v8  ;;  %v3533_v22 = vrot.slane %v3519_v36, %v6909_v8  ;;  %v3504_v36 = vpack.c.bf16 %v7489_v29, %v7489_v29 }
0x133d   :  { %v3513_v39 = vpop.permute.xlu1 %3512 }
0x133e   :  { %v3534_v40 = vcombine.low %v3509_v18, %v3513_v39  ;;  %v3535_v31 = vcombine.high %v3509_v18, %v3513_v39 }
0x1340   :  { %v3542_v37 = vrot.slane %v3534_v40, %v6909_v8  ;;  %v3549_v47 = vrot.slane %v3535_v31, %v6909_v8 }
0x1342   :  { %v3550_v48 = vcombine.low %v3526_v46, %v3542_v37  ;;  %v3551_v32 = vcombine.high %v3526_v46, %v3542_v37  ;;  %v3566_v43 = vcombine.low %v3533_v22, %v3549_v47  ;;  %v3567_v51 = vcombine.high %v3533_v22, %v3549_v47 }
0x1344   :  { %v3558_v52 = vrot.slane %v3550_v48, %v6925_v19  ;;  %v3565_v53 = vrot.slane %v3551_v32, %v6925_v19  ;;  %v3574_v54 = vrot.slane %v3566_v43, %v6925_v19  ;;  %v3581_v59 = vrot.slane %v3567_v51, %v6925_v19 }
0x1346   :  { %v3586_v44 = vcombine.low %v3558_v52, %v3565_v53  ;;  %v5797_v60 = vcombine.high %v3558_v52, %v3565_v53  ;;  %v3602_v45 = vcombine.low %v3574_v54, %v3581_v59  ;;  %v5798_v55 = vcombine.high %v3574_v54, %v3581_v59 }
0x1348   :  { %v3593_v56 = vrot.slane %v3586_v44, %v6909_v8  ;;  %v3601_v12 = vrot.slane %v5797_v60, %v6909_v8  ;;  %v3609_v62 = vrot.slane %v3602_v45, %v6909_v8  ;;  %v3617_v63 = vrot.slane %v5798_v55, %v6909_v8 }
0x134a   :  { %v3618_v1 = vcombine.low %v3593_v56, %v3601_v12  ;;  %v3634_v61 = vcombine.low %v3609_v62, %v3617_v63  ;;  %v3619_v58 = vcombine.high %v3593_v56, %v3601_v12  ;;  %v3635_v2 = vcombine.high %v3609_v62, %v3617_v63 }
0x134c   :  { %v3626_v57 = vrot.slane %v3618_v1, %v6925_v19  ;;  %v3642_v3 = vrot.slane %v3634_v61, %v6925_v19  ;;  %v3633_v4 = vrot.slane %v3619_v58, %v6925_v19  ;;  %v3649_v42 = vrot.slane %v3635_v2, %v6925_v19 }
0x134e   :  { %v3651_v5 = vcombine.high %v3626_v57, %v3642_v3  ;;  %v3650_v49 = vcombine.low %v3626_v57, %v3642_v3  ;;  %v3652_v6 = vcombine.low %v3633_v4, %v3649_v42  ;;  %v3653_v10 = vcombine.high %v3633_v4, %v3649_v42 }
0x1350   :  { %v3655_v7 = vpack.c.bf16 %v3651_v5, %v3651_v5  ;;  %v3657_v15 = vpack.c.bf16 %v3653_v10, %v3653_v10  ;;  %v3654_v24 = vpack.c.bf16 %v3650_v49, %v3650_v49  ;;  %v3656_v41 = vpack.c.bf16 %v3652_v6, %v3652_v6 }
0x1352   :  { %v3860_v9 = vsel %vm280_vm3, %v3655_v7, 0  ;;  %v3952_v20 = vsel %vm280_vm3, %v3657_v15, 0  ;;  %v3814_v34 = vsel %vm280_vm3, %v3654_v24, 0  ;;  %v3906_v35 = vsel %vm280_vm3, %v3656_v41, 0 }
0x1353   :  { %6213 = vmatpush3.bf16.xpose.msra.mxu1 %v3860_v9 }
0x1354   :  { %6224 = vmatprep.subr.bf16.mxu1 %v6685_v0 }
0x135a   :  { %6215 = vmatmul.mubr.msk.bf16.vlgmr.msra.gmra.mxu1 %vm280_vm3, %v3503_v16 }
0x135b   :  { %6225 = vmatpush3.bf16.xpose.msra.mxu1 %v3952_v20  ;;  %6226 = vmatprep.mubr.msk.bf16.mxu1 %vm6686_vm0, %v6685_v0 }
0x135c   :  { %6236 = vmatprep.subr.bf16.mxu1 %v6685_v0 }
0x1362   :  { %6227 = vmatmul.mubr.msk.bf16.vlgmr.msra.gmra.mxu1 %vm280_vm3, %v3505_v23 }
0x1363   :  { %6238 = vmatprep.mubr.msk.bf16.mxu1 %vm6686_vm0, %v6685_v0 }
0x1395   :  { %v3264_v25 = vpop.f32.mrf.mxu0 }
0x1396   :  { %v3270_v33 = vpack.c.bf16 %v3264_v25, %v3264_v25 }
0x1397   :  { %v6188_v27 = vpop.f32.mrf.mxu0 }
0x1398   :  { %6195 = vmatmul.mubr.msk.bf16.vlgmr.msra.gmra.mxu0 %vm215_vm1, %v3270_v33 }
0x1399   :  { %6207 = vmatpush3.bf16.xpose.msra.mxu0 %v3814_v34  ;;  %v3267_v18 = vpop.f32.mrf.mxu0  ;;  %6208 = vmatprep.mubr.msk.bf16.mxu0 %vm6686_vm0, %v6685_v0 }
0x139a   :  { %6218 = vmatprep.subr.bf16.mxu0 %v6685_v0 }
0x139b   :  { %v6189_v26 = vpop.f32.mrf.mxu0 }
0x13a0   :  { %6209 = vmatmul.mubr.msk.bf16.vlgmr.msra.gmra.mxu0 %vm280_vm3, %v3502_v13 }
0x13a1   :  { %6219 = vmatpush3.bf16.xpose.msra.mxu0 %v3906_v35  ;;  %6220 = vmatprep.mubr.msk.bf16.mxu0 %vm6686_vm0, %v6685_v0 }
0x13a2   :  { %6230 = vmatprep.subr.bf16.mxu0 %v6685_v0 }
0x13a8   :  { %6221 = vmatmul.mubr.msk.bf16.vlgmr.msra.gmra.mxu0 %vm280_vm3, %v3504_v36 }
0x13a9   :  { %6232 = vmatprep.mubr.msk.bf16.mxu0 %vm6686_vm0, %v6685_v0 }
0x141a   :  { %v3896_v39 = vpop.f32.mrf.mxu1 }
0x141b   :  { %v3995_v28 = vmul.f32 0.35355338, %v3896_v39 }
0x141c   :  { %v6216_v40 = vpop.f32.mrf.mxu1 }
0x141d   :  { %v4001_v31 = vsel %vm280_vm3, %v3995_v28, -inf }
0x141e   :  { %4002 = vmax.xlane.f32.xlu1 %v4001_v31  ;;  %v3899_v46 = vpop.f32.mrf.mxu1 }
0x1420   :  { %v6217_v22 = vpop.f32.mrf.mxu1 }
0x1422   :  { %v3988_v37 = vpop.f32.mrf.mxu1 }
0x1423   :  { %v3997_v62 = vmul.f32 0.35355338, %v3988_v37 }
0x1424   :  { %v6228_v47 = vpop.f32.mrf.mxu1 }
0x1425   :  { %v4007_v58 = vsel %vm280_vm3, %v3997_v62, -inf }
0x1426   :  { %v3991_v48 = vpop.f32.mrf.mxu1 }
0x1428   :  { %v6229_v32 = vpop.f32.mrf.mxu1 }
0x1458   :  { %v7535_v43 = vpop.f32.mrf.mxu0 }
0x145a   :  { %v6196_v29 = vpop.f32.mrf.mxu0 }
0x145c   :  { %v3311_v51 = vpop.f32.mrf.mxu0 }
0x145e   :  { %v6197_v52 = vpop.f32.mrf.mxu0 }
0x1460   :  { %v3850_v53 = vpop.f32.mrf.mxu0 }
0x1461   :  { %v3994_v54 = vmul.f32 0.35355338, %v3850_v53 }
0x1462   :  { %v6210_v59 = vpop.f32.mrf.mxu0 }
0x1463   :  { %v3998_v44 = vsel %vm280_vm3, %v3994_v54, -inf }
0x1464   :  { %3999 = vmax.xlane.f32.xlu0 %v3998_v44  ;;  %v3853_v60 = vpop.f32.mrf.mxu0 }
0x1466   :  { %v6211_v45 = vpop.f32.mrf.mxu0 }
0x1468   :  { %v3942_v55 = vpop.f32.mrf.mxu0 }
0x1469   :  { %v3996_v56 = vmul.f32 0.35355338, %v3942_v55 }
0x146a   :  { %v6222_v12 = vpop.f32.mrf.mxu0 }
0x146b   :  { %v4004_v63 = vsel %vm280_vm3, %v3996_v56, -inf }
0x146c   :  { %4005 = vmax.xlane.f32.xlu0 %v4004_v63  ;;  %v3945_v1 = vpop.f32.mrf.mxu0 }
0x146e   :  { %v6223_v61 = vpop.f32.mrf.mxu0 }
0x1470   :  { %4008 = vmax.xlane.f32.xlu0 %v4007_v58 }
0x14a7   :  { %v4003_v2 = vpop.xlane.xlu1 %4002 }
0x14a8   :  { %v4011_v57 = vsub.f32 %v3995_v28, %v4003_v2 }
0x14aa   :  { %v4016_v3 = vmul.f32 1.442695, %v4011_v57 }
0x14ac   :  { %6477 = vpow2.f32 %v4016_v3 }
0x14b9   :  { %v7540_v4 = vpop.eup %6477 }
0x14ba   :  { %v4025_v42 = vsel %vm280_vm3, %v7540_v4, 0.0 }
0x14bb   :  { %4026 = vadd.xlane.f32.xlu1 %v4025_v42 }
0x14cc   :  { %3660 = vrot.lane.b32.xlu1 %v7438_v17, %s6679_s27 }
0x14d0   :  { %3662 = vrot.lane.b32.xlu1 %v7442_v30, %s6679_s27 }
0x14d4   :  { %3664 = vrot.lane.b32.xlu1 %v7450_v50, %s6679_s27 }
0x14ed   :  { %v4000_v5 = vpop.xlane.xlu0 %3999 }
0x14ee   :  { %v4010_v49 = vsub.f32 %v3994_v54, %v4000_v5 }
0x14f0   :  { %v4014_v6 = vmul.f32 1.442695, %v4010_v49 }
0x14f2   :  { %6479 = vpow2.f32 %v4014_v6 }
0x14f5   :  { %v4006_v7 = vpop.xlane.xlu0 %4005 }
0x14f6   :  { %v4012_v50 = vsub.f32 %v3996_v56, %v4006_v7 }
0x14f8   :  { %v4018_v20 = vmul.f32 1.442695, %v4012_v50 }
0x14f9   :  { %v4009_v9 = vpop.xlane.xlu0 %4008 }
0x14fa   :  { %v4013_v10 = vsub.f32 %v3997_v62, %v4009_v9 }
0x14fc   :  { %v4020_v11 = vmul.f32 1.442695, %v4013_v10 }
0x14fe   :  { %6481 = vpow2.f32 %v4020_v11 }
0x14ff   :  { %v7550_v15 = vpop.eup %6479  ;;  %6483 = vpow2.f32 %v4018_v20 }
0x1500   :  { %v4022_v17 = vsel %vm280_vm3, %v7550_v15, 0.0 }
0x1501   :  { %4023 = vadd.xlane.f32.xlu0 %v4022_v17 }
0x150b   :  { %v7554_v16 = vpop.eup %6481 }
0x150c   :  { %v4031_v30 = vsel %vm280_vm3, %v7554_v16, 0.0  ;;  %v7560_v21 = vpop.eup %6483 }
0x150d   :  { %4032 = vadd.xlane.f32.xlu1 %v4031_v30  ;;  %v4028_v23 = vsel %vm280_vm3, %v7560_v21, 0.0 }
0x1517   :  { %3658 = vrot.lane.b32.xlu0 %v7426_v38, %s6679_s27 }
0x1536   :  { %4029 = vadd.xlane.f32.xlu0 %v4028_v23 }
0x1544   :  { %v4027_v24 = vpop.xlane.xlu1 %4026 }
0x1545   :  { %6485 = vrcp.f32 %v4027_v24 }
0x1548   :  { %v3661_v25 = vpop.permute.xlu1 %3660 }
0x154c   :  { %v3663_v33 = vpop.permute.xlu1 %3662 }
0x1550   :  { %v3665_v27 = vpop.permute.xlu1 %3664 }
0x1551   :  { %v3686_v18 = vcombine.low %v3661_v25, %v3665_v27  ;;  %v3687_v26 = vcombine.high %v3661_v25, %v3665_v27  ;;  %v6522_v27 = vld [vmem:[#allocation5 + $0x8] sm:$0xff]  }
0x1552   :  { %v6486_v63 = vpop.eup %6485 }
0x1553   :  { %v3694_v38 = vrot.slane %v3686_v18, %v6909_v8  ;;  %v3701_v36 = vrot.slane %v3687_v26, %v6909_v8  ;;  %v4039_v10 = vmul.f32 %v6486_v63, %v7540_v4 }
0x1555   :  { %v4043_v24 = vpack.c.bf16 %v4039_v10, %v4039_v10 }
0x158a   :  { %v4024_v34 = vpop.xlane.xlu0 %4023 }
0x158b   :  { %6487 = vrcp.f32 %v4024_v34  ;;  %v6523_v34 = vld [vmem:[#allocation5] sm:$0xff]  }
0x158e   :  { %v3659_v41 = vpop.permute.xlu0 %3658 }
0x158f   :  { %v3670_v13 = vcombine.low %v3659_v41, %v3663_v33  ;;  %v3671_v35 = vcombine.high %v3659_v41, %v3663_v33 }
0x1591   :  { %v3678_v39 = vrot.slane %v3670_v13, %v6909_v8  ;;  %v3685_v28 = vrot.slane %v3671_v35, %v6909_v8  ;;  %v6524_v13 = vld [vmem:[%s7904_s7 + $0x8] sm:$0xff]   ;;  %v6525_v35 = vld [vmem:[%s7904_s7] sm:$0xff]   ;;  %s7938_s7 = smov 24  }
0x1593   :  { %v3702_v40 = vcombine.low %v3678_v39, %v3694_v38  ;;  %v3703_v31 = vcombine.high %v3678_v39, %v3694_v38  ;;  %v3718_v46 = vcombine.low %v3685_v28, %v3701_v36  ;;  %v3719_v22 = vcombine.high %v3685_v28, %v3701_v36 }
0x1595   :  { %v3710_v37 = vrot.slane %v3702_v40, %v6925_v19  ;;  %v3717_v47 = vrot.slane %v3703_v31, %v6925_v19  ;;  %v3726_v48 = vrot.slane %v3718_v46, %v6925_v19  ;;  %v3733_v32 = vrot.slane %v3719_v22, %v6925_v19 }
0x1596   :  { %v4033_v29 = vpop.xlane.xlu1 %4032 }
0x1597   :  { %v3738_v51 = vcombine.low %v3710_v37, %v3717_v47  ;;  %v5799_v52 = vcombine.high %v3710_v37, %v3717_v47  ;;  %v3754_v53 = vcombine.low %v3726_v48, %v3733_v32  ;;  %v5800_v54 = vcombine.high %v3726_v48, %v3733_v32 }
0x1598   :  { %6489 = vrcp.f32 %v4033_v29  ;;  %v6488_v57 = vpop.eup %6487 }
0x1599   :  { %v3745_v59 = vrot.slane %v3738_v51, %v6909_v8  ;;  %v3753_v44 = vrot.slane %v5799_v52, %v6909_v8  ;;  %v3761_v60 = vrot.slane %v3754_v53, %v6909_v8  ;;  %v3769_v45 = vrot.slane %v5800_v54, %v6909_v8 }
0x159a   :  { %v4038_v9 = vmul.f32 %v6488_v57, %v7550_v15 }
0x159b   :  { %v3770_v55 = vcombine.low %v3745_v59, %v3753_v44  ;;  %v3786_v56 = vcombine.low %v3761_v60, %v3769_v45  ;;  %v3771_v12 = vcombine.high %v3745_v59, %v3753_v44  ;;  %v3787_v62 = vcombine.high %v3761_v60, %v3769_v45 }
0x159c   :  { %v4042_v23 = vpack.c.bf16 %v4038_v9, %v4038_v9 }
0x159d   :  { %v3778_v1 = vrot.slane %v3770_v55, %v6925_v19  ;;  %v3794_v61 = vrot.slane %v3786_v56, %v6925_v19  ;;  %v3785_v58 = vrot.slane %v3771_v12, %v6925_v19  ;;  %v3801_v2 = vrot.slane %v3787_v62, %v6925_v19 }
0x159f   :  { %v3802_v3 = vcombine.low %v3778_v1, %v3794_v61  ;;  %v3803_v42 = vcombine.high %v3778_v1, %v3794_v61  ;;  %v3804_v5 = vcombine.low %v3785_v58, %v3801_v2  ;;  %v3805_v49 = vcombine.high %v3785_v58, %v3801_v2 }
0x15a1   :  { %v3806_v6 = vpack.c.bf16 %v3802_v3, %v3802_v3  ;;  %v3807_v7 = vpack.c.bf16 %v3803_v42, %v3803_v42  ;;  %v3808_v30 = vpack.c.bf16 %v3804_v5, %v3804_v5  ;;  %v3809_v50 = vpack.c.bf16 %v3805_v49, %v3805_v49 }
0x15a3   :  { %v4050_v11 = vsel %vm287_vm2, %v3806_v6, 0  ;;  %v4096_v17 = vsel %vm287_vm2, %v3807_v7, 0  ;;  %v4142_v4 = vsel %vm287_vm2, %v3808_v30, 0  ;;  %v4188_v15 = vsel %vm287_vm2, %v3809_v50, 0 }
0x15a4   :  { %6231 = vmatpush3.bf16.msra.mxu0 %v4050_v11  ;;  %6237 = vmatpush3.bf16.msra.mxu1 %v4096_v17 }
0x15a5   :  { %v6490_v20 = vpop.eup %6489  ;;  %6242 = vmatprep.subr.bf16.mxu0 %v6685_v0  ;;  %6248 = vmatprep.subr.bf16.mxu1 %v6685_v0 }
0x15a6   :  { %v4041_v25 = vmul.f32 %v6490_v20, %v7554_v16 }
0x15a7   :  { %6233 = vmatmul.mubr.msk.bf16.vlgmr.msra.gmra.mxu0 %vm280_vm3, %v4042_v23  ;;  %6239 = vmatmul.mubr.msk.bf16.vlgmr.msra.gmra.mxu1 %vm280_vm3, %v4043_v24 }
0x15a8   :  { %6243 = vmatpush3.bf16.msra.mxu0 %v4142_v4  ;;  %6249 = vmatpush3.bf16.msra.mxu1 %v4188_v15  ;;  %v4045_v33 = vpack.c.bf16 %v4041_v25, %v4041_v25 }
0x15a9   :  { %6250 = vmatprep.mubr.msk.bf16.mxu1 %vm6686_vm0, %v6685_v0  ;;  %6244 = vmatprep.mubr.msk.bf16.mxu0 %vm6686_vm0, %v6685_v0 }
0x15aa   :  { %6254 = vmatprep.subr.bf16.mxu0 %v6685_v0  ;;  %6262 = vmatprep.subr.bf16.mxu1 %v6685_v0 }
0x15af   :  { %6251 = vmatmul.mubr.msk.bf16.vlgmr.msra.gmra.mxu1 %vm280_vm3, %v4045_v33 }
0x15b0   :  { %6263 = vmatpush3.bf16.msra.mxu1 %v6522_v27  ;;  %6266 = vmatprep.mubr.msk.bf16.mxu1 %vm6686_vm0, %v6685_v0 }
0x15b1   :  { %6264 = vmatprep.subr.bf16.mxu1 %v6685_v0 }
0x15b4   :  { %6265 = vmatpush3.bf16.msra.mxu1 %v6523_v34 }
0x15b5   :  { %6278 = vmatprep.subr.bf16.mxu1 %v6685_v0 }
0x15bf   :  { %v4030_v16 = vpop.xlane.xlu0 %4029 }
0x15c0   :  { %6491 = vrcp.f32 %v4030_v16 }
0x15cd   :  { %v6492_v18 = vpop.eup %6491 }
0x15ce   :  { %v4040_v26 = vmul.f32 %v6492_v18, %v7560_v21 }
0x15d0   :  { %v4044_v41 = vpack.c.bf16 %v4040_v26, %v4040_v26 }
0x15d2   :  { %6245 = vmatmul.mubr.msk.bf16.vlgmr.msra.gmra.mxu0 %vm280_vm3, %v4044_v41 }
0x15d3   :  { %6255 = vmatpush3.bf16.msra.mxu0 %v6524_v13  ;;  %6258 = vmatprep.mubr.msk.bf16.mxu0 %vm6686_vm0, %v6685_v0 }
0x15d4   :  { %6256 = vmatprep.subr.bf16.mxu0 %v6685_v0 }
0x15d7   :  { %6257 = vmatpush3.bf16.msra.mxu0 %v6525_v35  ;;  %v3314_v35 = vadd.f32 %v7346_v14, %v7535_v43 }
0x15d8   :  { %6270 = vmatprep.subr.bf16.mxu0 %v6685_v0 }
0x1667   :  { %v4086_v21 = vpop.f32.mrf.mxu0  ;;  %v4132_v38 = vpop.f32.mrf.mxu1 }
0x1669   :  { %v6234_v36 = vpop.f32.mrf.mxu0  ;;  %v6240_v39 = vpop.f32.mrf.mxu1 }
0x166a   :  { %v6527_v36 = vld [vmem:[#allocation2] ss:$0 sm:$0xff] }
0x166b   :  { %v4089_v28 = vpop.f32.mrf.mxu0  ;;  %v4135_v40 = vpop.f32.mrf.mxu1  ;;  %v3315_v39 = vadd.f32 %v6527_v36, %v3314_v35 }
0x166c   :  { %v6528_v28 = vld [vmem:[#allocation7] sm:$0xff]  }
0x166d   :  { %v6235_v31 = vpop.f32.mrf.mxu0  ;;  %v6241_v46 = vpop.f32.mrf.mxu1  ;;  %v4471_v40 = vpack.c.bf16 %v3315_v39, %v3315_v39  ;;  %v6531_v39 = vld [vmem:[%s7907_s10] ss:$0 sm:$0xff] }
0x166f   :  { %v4224_v22 = vpop.f32.mrf.mxu1 }
0x1670   :  { %v4246_v32 = vcombine.low %v4132_v38, %v4224_v22  ;;  %v4247_v29 = vcombine.high %v4132_v38, %v4224_v22  ;;  %v6526_v38 = vld [vmem:[#allocation7 + $0x8] sm:$0xff]  }
0x1671   :  { %v6252_v37 = vpop.f32.mrf.mxu1  ;;  %v6529_v22 = vld [vmem:[%s7905_s8] ss:$0 sm:$0xff] }
0x1672   :  { %v4254_v59 = vrot.slane %v4246_v32, %v6909_v8  ;;  %v4261_v44 = vrot.slane %v4247_v29, %v6909_v8 }
0x1673   :  { %v4227_v47 = vpop.f32.mrf.mxu1 }
0x1675   :  { %v6253_v48 = vpop.f32.mrf.mxu1 }
0x1692   :  { %v4178_v51 = vpop.f32.mrf.mxu0 }
0x1693   :  { %v4230_v52 = vcombine.low %v4086_v21, %v4178_v51  ;;  %v4231_v53 = vcombine.high %v4086_v21, %v4178_v51  ;;  %v6530_v51 = vld [vmem:[%s7909_s12] ss:$0 sm:$0xff] }
0x1694   :  { %v6246_v54 = vpop.f32.mrf.mxu0 }
0x1695   :  { %v4238_v60 = vrot.slane %v4230_v52, %v6909_v8  ;;  %v4245_v45 = vrot.slane %v4231_v53, %v6909_v8 }
0x1696   :  { %v4181_v55 = vpop.f32.mrf.mxu0 }
0x1697   :  { %v4262_v56 = vcombine.low %v4238_v60, %v4254_v59  ;;  %v4263_v12 = vcombine.high %v4238_v60, %v4254_v59  ;;  %v4278_v62 = vcombine.low %v4245_v45, %v4261_v44  ;;  %v4279_v63 = vcombine.high %v4245_v45, %v4261_v44 }
0x1698   :  { %v6247_v1 = vpop.f32.mrf.mxu0 }
0x1699   :  { %v4270_v61 = vrot.slane %v4262_v56, %v6925_v19  ;;  %v4277_v58 = vrot.slane %v4263_v12, %v6925_v19  ;;  %v4286_v2 = vrot.slane %v4278_v62, %v6925_v19  ;;  %v4293_v57 = vrot.slane %v4279_v63, %v6925_v19 }
0x169b   :  { %v4298_v3 = vcombine.low %v4270_v61, %v4277_v58  ;;  %v5809_v42 = vcombine.high %v4270_v61, %v4277_v58  ;;  %v4314_v5 = vcombine.low %v4286_v2, %v4293_v57  ;;  %v5810_v49 = vcombine.high %v4286_v2, %v4293_v57 }
0x169d   :  { %v4305_v6 = vrot.slane %v4298_v3, %v6909_v8  ;;  %v4313_v7 = vrot.slane %v5809_v42, %v6909_v8  ;;  %v4321_v9 = vrot.slane %v4314_v5, %v6909_v8  ;;  %v4329_v10 = vrot.slane %v5810_v49, %v6909_v8 }
0x169f   :  { %v4331_v11 = vcombine.high %v4305_v6, %v4313_v7  ;;  %v4347_v17 = vcombine.high %v4321_v9, %v4329_v10  ;;  %v4330_v30 = vcombine.low %v4305_v6, %v4313_v7  ;;  %v4346_v50 = vcombine.low %v4321_v9, %v4329_v10 }
0x16a1   :  { %v4345_v20 = vrot.slane %v4331_v11, %v6925_v19  ;;  %v4361_v23 = vrot.slane %v4347_v17, %v6925_v19  ;;  %v4338_v24 = vrot.slane %v4330_v30, %v6925_v19  ;;  %v4354_v4 = vrot.slane %v4346_v50, %v6925_v19 }
0x16a3   :  { %v4364_v15 = vcombine.low %v4345_v20, %v4361_v23  ;;  %v4363_v25 = vcombine.high %v4338_v24, %v4354_v4  ;;  %v4362_v33 = vcombine.low %v4338_v24, %v4354_v4  ;;  %v4365_v27 = vcombine.high %v4345_v20, %v4361_v23 }
0x16a5   :  { %4371 = vrot.lane.b32.xlu1 %v4364_v15, %s6693_s11  ;;  %4367 = vrot.lane.b32.xlu0 %v4363_v25, %s6694_s2 }
0x16a9   :  { %4375 = vrot.lane.b32.xlu0 %v4365_v27, %s7938_s7 }
0x1717   :  { %v4368_v34 = vpop.permute.xlu0 %4367  ;;  %v4372_v16 = vpop.permute.xlu1 %4371 }
0x1718   :  { %v4378_v18 = vsel %vm280_vm3, %v4362_v33, %v4368_v34 }
0x1719   :  { %v4379_v41 = vsel %vm1580_vm4, %v4378_v18, %v4372_v16 }
0x171b   :  { %v4376_v26 = vpop.permute.xlu0 %4375 }
0x171c   :  { %v4380_v13 = vsel %vm1582_vm5, %v4379_v41, %v4376_v26 }
0x171d   :  { %v4381_v21 = vpack.c.bf16 %v4380_v13, %v4380_v13 }
0x171f   :  { %6259 = vmatmul.mubr.msk.bf16.vlgmr.msra.gmra.mxu0 %vm215_vm1, %v4381_v21 }
0x1720   :  { %6271 = vmatpush3.bf16.msra.mxu0 %v6526_v38  ;;  %6274 = vmatprep.mubr.msk.bf16.mxu0 %vm6686_vm0, %v6685_v0 }
0x1721   :  { %6272 = vmatprep.subr.bf16.mxu0 %v6685_v0 }
0x1724   :  { %6273 = vmatpush3.bf16.msra.mxu0 %v6528_v28 }
0x1725   :  { %6284 = vmatprep.subr.bf16.mxu0 %v6685_v0 }
0x1727   :  { %6275 = vmatmul.mubr.msk.bf16.vlgmr.msra.gmra.mxu0 %vm215_vm1, %v4471_v40 }
0x1728   :  { %6286 = vmatprep.mubr.msk.bf16.mxu0 %vm6686_vm0, %v6685_v0 }
0x17df   :  { %v4419_v43 = vpop.f32.mrf.mxu0 }
0x17e0   :  { %v4425_v31 = vadd.f32 %v7346_v14, %v4419_v43 }
0x17e1   :  { %v6260_v46 = vpop.f32.mrf.mxu0 }
0x17e2   :  { %v4426_v37 = vadd.f32 %v6529_v22, %v4425_v31 }
0x17e3   :  { %v4422_v47 = vpop.f32.mrf.mxu0 }
0x17e4   :  { %v4427_v48 = vpack.c.bf16 %v4426_v37, %v4426_v37 }
0x17e5   :  { %v6261_v32 = vpop.f32.mrf.mxu0 }
0x17e6   :  { %6267 = vmatmul.mubr.msk.bf16.vlgmr.msra.gmra.mxu1 %vm215_vm1, %v4427_v48 }
0x17e7   :  { %v4509_v29 = vpop.f32.mrf.mxu0  ;;  %6280 = vmatprep.mubr.msk.bf16.mxu1 %vm6686_vm0, %v6685_v0 }
0x17e8   :  { %v7656_v14 = vadd.f32 %v6530_v51, %v4509_v29 }
0x17e9   :  { %v6276_v52 = vpop.f32.mrf.mxu0 }
0x17ea   :  { %4669 = vrot.lane.b32.xlu0 %v7656_v14, %s6689_s9  ;;  %4666 = vrot.lane.b32.xlu1 %v7656_v14, %s6688_s17 }
0x17eb   :  { %v4512_v53 = vpop.f32.mrf.mxu0 }
0x17ed   :  { %v6277_v54 = vpop.f32.mrf.mxu0 }
0x17ee   :  { %4672 = vrot.lane.b32.xlu1 %v7656_v14, %s6690_s24 }
0x185c   :  { %v7664_v59 = vpop.permute.xlu0 %4669  ;;  %v7666_v44 = vpop.permute.xlu1 %4666 }
0x185d   :  { %v4675_v60 = vcombine.low %v7656_v14, %v7664_v59  ;;  %v4676_v45 = vcombine.high %v7656_v14, %v7664_v59 }
0x185f   :  { %v4683_v62 = vrot.slane %v4675_v60, %v6909_v8  ;;  %v4690_v63 = vrot.slane %v4676_v45, %v6909_v8 }
0x1860   :  { %v7672_v55 = vpop.permute.xlu1 %4672 }
0x1861   :  { %v4691_v56 = vcombine.low %v7666_v44, %v7672_v55  ;;  %v4692_v12 = vcombine.high %v7666_v44, %v7672_v55 }
0x1863   :  { %v4699_v1 = vrot.slane %v4691_v56, %v6909_v8  ;;  %v4706_v61 = vrot.slane %v4692_v12, %v6909_v8 }
0x1865   :  { %v4707_v58 = vcombine.low %v4683_v62, %v4699_v1  ;;  %v4708_v2 = vcombine.high %v4683_v62, %v4699_v1  ;;  %v4723_v57 = vcombine.low %v4690_v63, %v4706_v61  ;;  %v4724_v3 = vcombine.high %v4690_v63, %v4706_v61 }
0x1867   :  { %v4715_v42 = vrot.slane %v4707_v58, %v6925_v19  ;;  %v4722_v5 = vrot.slane %v4708_v2, %v6925_v19  ;;  %v4731_v49 = vrot.slane %v4723_v57, %v6925_v19  ;;  %v4738_v6 = vrot.slane %v4724_v3, %v6925_v19 }
0x1869   :  { %v4743_v7 = vcombine.low %v4715_v42, %v4722_v5  ;;  %v5816_v9 = vcombine.high %v4715_v42, %v4722_v5  ;;  %v4759_v10 = vcombine.low %v4731_v49, %v4738_v6  ;;  %v5817_v11 = vcombine.high %v4731_v49, %v4738_v6 }
0x186b   :  { %v4750_v17 = vrot.slane %v4743_v7, %v6909_v8  ;;  %v4758_v30 = vrot.slane %v5816_v9, %v6909_v8  ;;  %v4766_v50 = vrot.slane %v4759_v10, %v6909_v8  ;;  %v4774_v20 = vrot.slane %v5817_v11, %v6909_v8 }
0x186d   :  { %v4775_v23 = vcombine.low %v4750_v17, %v4758_v30  ;;  %v4791_v24 = vcombine.low %v4766_v50, %v4774_v20  ;;  %v4776_v4 = vcombine.high %v4750_v17, %v4758_v30  ;;  %v4792_v15 = vcombine.high %v4766_v50, %v4774_v20 }
0x186f   :  { %v4783_v25 = vrot.slane %v4775_v23, %v6925_v19  ;;  %v4799_v33 = vrot.slane %v4791_v24, %v6925_v19  ;;  %v4790_v27 = vrot.slane %v4776_v4, %v6925_v19  ;;  %v4806_v34 = vrot.slane %v4792_v15, %v6925_v19 }
0x1871   :  { %v4807_v16 = vcombine.low %v4783_v25, %v4799_v33  ;;  %v4808_v18 = vcombine.high %v4783_v25, %v4799_v33  ;;  %v7694_v26 = vcombine.low %v4790_v27, %v4806_v34  ;;  %v7696_v41 = vcombine.high %v4790_v27, %v4806_v34 }
0x1873   :  { %v4811_v13 = vpack.c.bf16 %v4807_v16, %v4807_v16  ;;  %v4812_v35 = vpack.c.bf16 %v4808_v18, %v4808_v18  ;;  %v4813_v23 = vpack.c.bf16 %v7694_v26, %v7694_v26  ;;  %v4814_v24 = vpack.c.bf16 %v7696_v41, %v7696_v41 }
0x1875   :  { %v4971_v21 = vsel %vm280_vm3, %v4811_v13, 0  ;;  %v5017_v38 = vsel %vm280_vm3, %v4812_v35, 0  ;;  %v5063_v27 = vsel %vm280_vm3, %v4813_v23, 0  ;;  %v5109_v34 = vsel %vm280_vm3, %v4814_v24, 0 }
0x1876   :  { %6279 = vmatpush3.bf16.xpose.msra.mxu1 %v4971_v21  ;;  %6285 = vmatpush3.bf16.xpose.msra.mxu0 %v5017_v38 }
0x1877   :  { %6290 = vmatprep.subr.bf16.mxu1 %v6685_v0  ;;  %6296 = vmatprep.subr.bf16.mxu0 %v6685_v0 }
0x18a6   :  { %v4465_v36 = vpop.f32.mrf.mxu1 }
0x18a7   :  { %v4466_v28 = vadd.f32 %v6531_v39, %v4465_v36 }
0x18a8   :  { %v6268_v40 = vpop.f32.mrf.mxu1 }
0x18a9   :  { %4516 = vrot.lane.b32.xlu0 %v4466_v28, %s6688_s17  ;;  %4519 = vrot.lane.b32.xlu1 %v4466_v28, %s6689_s9 }
0x18aa   :  { %v4468_v43 = vpop.f32.mrf.mxu1 }
0x18ac   :  { %v6269_v31 = vpop.f32.mrf.mxu1 }
0x18ad   :  { %4522 = vrot.lane.b32.xlu0 %v4466_v28, %s6690_s24 }
0x191b   :  { %v4517_v46 = vpop.permute.xlu0 %4516  ;;  %v4520_v22 = vpop.permute.xlu1 %4519 }
0x191c   :  { %v4525_v37 = vcombine.low %v4466_v28, %v4520_v22  ;;  %v4526_v47 = vcombine.high %v4466_v28, %v4520_v22 }
0x191e   :  { %v4533_v51 = vrot.slane %v4525_v37, %v6909_v8  ;;  %v4540_v52 = vrot.slane %v4526_v47, %v6909_v8 }
0x191f   :  { %v4523_v48 = vpop.permute.xlu0 %4522 }
0x1920   :  { %v4541_v32 = vcombine.low %v4517_v46, %v4523_v48  ;;  %v4542_v29 = vcombine.high %v4517_v46, %v4523_v48 }
0x1922   :  { %v4549_v53 = vrot.slane %v4541_v32, %v6909_v8  ;;  %v4556_v54 = vrot.slane %v4542_v29, %v6909_v8 }
0x1924   :  { %v4557_v60 = vcombine.low %v4533_v51, %v4549_v53  ;;  %v4558_v45 = vcombine.high %v4533_v51, %v4549_v53  ;;  %v4573_v56 = vcombine.low %v4540_v52, %v4556_v54  ;;  %v4574_v12 = vcombine.high %v4540_v52, %v4556_v54 }
0x1926   :  { %v4565_v62 = vrot.slane %v4557_v60, %v6925_v19  ;;  %v4572_v63 = vrot.slane %v4558_v45, %v6925_v19  ;;  %v4581_v1 = vrot.slane %v4573_v56, %v6925_v19  ;;  %v4588_v61 = vrot.slane %v4574_v12, %v6925_v19 }
0x1928   :  { %v4593_v58 = vcombine.low %v4565_v62, %v4572_v63  ;;  %v5814_v2 = vcombine.high %v4565_v62, %v4572_v63  ;;  %v4609_v57 = vcombine.low %v4581_v1, %v4588_v61  ;;  %v5815_v3 = vcombine.high %v4581_v1, %v4588_v61 }
0x192a   :  { %v4600_v42 = vrot.slane %v4593_v58, %v6909_v8  ;;  %v4608_v5 = vrot.slane %v5814_v2, %v6909_v8  ;;  %v4616_v49 = vrot.slane %v4609_v57, %v6909_v8  ;;  %v4624_v6 = vrot.slane %v5815_v3, %v6909_v8 }
0x192c   :  { %v4625_v7 = vcombine.low %v4600_v42, %v4608_v5  ;;  %v4641_v9 = vcombine.low %v4616_v49, %v4624_v6  ;;  %v4626_v10 = vcombine.high %v4600_v42, %v4608_v5  ;;  %v4642_v11 = vcombine.high %v4616_v49, %v4624_v6 }
0x192e   :  { %v4633_v17 = vrot.slane %v4625_v7, %v6925_v19  ;;  %v4649_v30 = vrot.slane %v4641_v9, %v6925_v19  ;;  %v4640_v25 = vrot.slane %v4626_v10, %v6925_v19  ;;  %v4656_v33 = vrot.slane %v4642_v11, %v6925_v19 }
0x1930   :  { %v4657_v50 = vcombine.low %v4633_v17, %v4649_v30  ;;  %v4658_v20 = vcombine.high %v4633_v17, %v4649_v30  ;;  %v4659_v16 = vcombine.low %v4640_v25, %v4656_v33  ;;  %v4660_v18 = vcombine.high %v4640_v25, %v4656_v33 }
0x1932   :  { %v4661_v4 = vpack.c.bf16 %v4657_v50, %v4657_v50  ;;  %v4662_v15 = vpack.c.bf16 %v4658_v20, %v4658_v20  ;;  %v4663_v26 = vpack.c.bf16 %v4659_v16, %v4659_v16  ;;  %v4664_v41 = vpack.c.bf16 %v4660_v18, %v4660_v18 }
0x1934   :  { %6281 = vmatmul.mubr.msk.bf16.vlgmr.msra.gmra.mxu1 %vm280_vm3, %v4661_v4  ;;  %6287 = vmatmul.mubr.msk.bf16.vlgmr.msra.gmra.mxu0 %vm280_vm3, %v4662_v15 }
0x1935   :  { %6291 = vmatpush3.bf16.xpose.msra.mxu1 %v5063_v27  ;;  %6297 = vmatpush3.bf16.xpose.msra.mxu0 %v5109_v34 }
0x1936   :  { %6292 = vmatprep.mubr.msk.bf16.mxu1 %vm6686_vm0, %v6685_v0  ;;  %6298 = vmatprep.mubr.msk.bf16.mxu0 %vm6686_vm0, %v6685_v0 }
0x1937   :  { %6302 = vmatprep.subr.bf16.mxu1 %v6685_v0  ;;  %6308 = vmatprep.subr.bf16.mxu0 %v6685_v0 }
0x193c   :  { %6293 = vmatmul.mubr.msk.bf16.vlgmr.msra.gmra.mxu1 %vm280_vm3, %v4663_v26  ;;  %6299 = vmatmul.mubr.msk.bf16.vlgmr.msra.gmra.mxu0 %vm280_vm3, %v4664_v41 }
0x193d   :  { %6304 = vmatprep.mubr.msk.bf16.mxu1 %vm6686_vm0, %v6685_v0  ;;  %6310 = vmatprep.mubr.msk.bf16.mxu0 %vm6686_vm0, %v6685_v0 }
0x19f4   :  { %v5007_v13 = vpop.f32.mrf.mxu1  ;;  %v5053_v35 = vpop.f32.mrf.mxu0 }
0x19f5   :  { %v5151_v21 = vmul.f32 0.35355338, %v5007_v13  ;;  %v5152_v38 = vmul.f32 0.35355338, %v5053_v35 }
0x19f6   :  { %v6282_v36 = vpop.f32.mrf.mxu1  ;;  %v6288_v39 = vpop.f32.mrf.mxu0 }
0x19f7   :  { %v5155_v28 = vsel %vm280_vm3, %v5151_v21, -inf  ;;  %v5158_v40 = vsel %vm280_vm3, %v5152_v38, -inf }
0x19f8   :  { %5156 = vmax.xlane.f32.xlu1 %v5155_v28  ;;  %v5010_v43 = vpop.f32.mrf.mxu1  ;;  %5159 = vmax.xlane.f32.xlu0 %v5158_v40  ;;  %v5056_v31 = vpop.f32.mrf.mxu0 }
0x19fa   :  { %v6283_v46 = vpop.f32.mrf.mxu1  ;;  %v6289_v22 = vpop.f32.mrf.mxu0 }
0x19fc   :  { %v5099_v37 = vpop.f32.mrf.mxu1  ;;  %v5145_v47 = vpop.f32.mrf.mxu0 }
0x19fd   :  { %v5153_v48 = vmul.f32 0.35355338, %v5099_v37  ;;  %v5154_v51 = vmul.f32 0.35355338, %v5145_v47 }
0x19fe   :  { %v6294_v32 = vpop.f32.mrf.mxu1  ;;  %v6300_v29 = vpop.f32.mrf.mxu0 }
0x19ff   :  { %v5161_v52 = vsel %vm280_vm3, %v5153_v48, -inf  ;;  %v5164_v56 = vsel %vm280_vm3, %v5154_v51, -inf }
0x1a00   :  { %v5102_v53 = vpop.f32.mrf.mxu1  ;;  %5162 = vmax.xlane.f32.xlu0 %v5161_v52  ;;  %v5148_v54 = vpop.f32.mrf.mxu0 }
0x1a02   :  { %v6295_v60 = vpop.f32.mrf.mxu1  ;;  %v6301_v45 = vpop.f32.mrf.mxu0 }
0x1a04   :  { %5165 = vmax.xlane.f32.xlu0 %v5164_v56 }
0x1a09   :  { %4815 = vrot.lane.b32.xlu1 %v7656_v14, %s6687_s30 }
0x1a81   :  { %v5157_v12 = vpop.xlane.xlu1 %5156  ;;  %v5160_v62 = vpop.xlane.xlu0 %5159 }
0x1a82   :  { %v5167_v63 = vsub.f32 %v5151_v21, %v5157_v12  ;;  %v5168_v1 = vsub.f32 %v5152_v38, %v5160_v62 }
0x1a84   :  { %v5171_v61 = vmul.f32 1.442695, %v5167_v63  ;;  %v5173_v58 = vmul.f32 1.442695, %v5168_v1 }
0x1a86   :  { %6493 = vpow2.f32 %v5171_v61 }
0x1a87   :  { %6495 = vpow2.f32 %v5173_v58 }
0x1a89   :  { %v5163_v14 = vpop.xlane.xlu0 %5162 }
0x1a8a   :  { %v5169_v6 = vsub.f32 %v5153_v48, %v5163_v14 }
0x1a8c   :  { %v5175_v9 = vmul.f32 1.442695, %v5169_v6 }
0x1a8d   :  { %v5166_v5 = vpop.xlane.xlu0 %5165 }
0x1a8e   :  { %v5170_v49 = vsub.f32 %v5154_v51, %v5166_v5 }
0x1a90   :  { %v5177_v7 = vmul.f32 1.442695, %v5170_v49 }
0x1a92   :  { %6497 = vpow2.f32 %v5177_v7 }
0x1a93   :  { %v7750_v2 = vpop.eup %6493  ;;  %6499 = vpow2.f32 %v5175_v9 }
0x1a94   :  { %v7752_v57 = vpop.eup %6495  ;;  %v5179_v3 = vsel %vm280_vm3, %v7750_v2, 0.0 }
0x1a95   :  { %5180 = vadd.xlane.f32.xlu1 %v5179_v3  ;;  %v5182_v42 = vsel %vm280_vm3, %v7752_v57, 0.0 }
0x1a96   :  { %5183 = vadd.xlane.f32.xlu0 %v5182_v42 }
0x1a9f   :  { %v7764_v10 = vpop.eup %6497 }
0x1aa0   :  { %v7766_v11 = vpop.eup %6499 }
0x1aa6   :  { %4819 = vrot.lane.b32.xlu1 %v7664_v59, %s6687_s30  ;;  %v5188_v59 = vsel %vm280_vm3, %v7764_v10, 0.0 }
0x1aaa   :  { %4821 = vrot.lane.b32.xlu1 %v7672_v55, %s6687_s30  ;;  %v5185_v55 = vsel %vm280_vm3, %v7766_v11, 0.0 }
0x1aac   :  { %4817 = vrot.lane.b32.xlu0 %v7666_v44, %s6687_s30  ;;  %v4816_v44 = vpop.permute.xlu1 %4815 }
0x1acb   :  { %5189 = vadd.xlane.f32.xlu0 %v5188_v59 }
0x1ace   :  { %5186 = vadd.xlane.f32.xlu1 %v5185_v55 }
0x1b1e   :  { %v5181_v17 = vpop.xlane.xlu1 %5180 }
0x1b1f   :  { %v5184_v30 = vpop.xlane.xlu0 %5183  ;;  %6501 = vrcp.f32 %v5181_v17 }
0x1b20   :  { %6503 = vrcp.f32 %v5184_v30 }
0x1b22   :  { %v4820_v50 = vpop.permute.xlu1 %4819 }
0x1b23   :  { %v4827_v20 = vcombine.low %v4816_v44, %v4820_v50  ;;  %v4828_v23 = vcombine.high %v4816_v44, %v4820_v50  ;;  %v4818_v24 = vpop.permute.xlu0 %4817 }
0x1b25   :  { %v4835_v33 = vrot.slane %v4827_v20, %v6909_v8  ;;  %v4842_v27 = vrot.slane %v4828_v23, %v6909_v8  ;;  %v6532_v23 = vld [vmem:[#allocation10 + $0x8] sm:$0xff]  }
0x1b26   :  { %v4822_v4 = vpop.permute.xlu1 %4821 }
0x1b27   :  { %v4843_v15 = vcombine.low %v4818_v24, %v4822_v4  ;;  %v4844_v25 = vcombine.high %v4818_v24, %v4822_v4  ;;  %v6533_v24 = vld [vmem:[#allocation8 + $0x8] sm:$0xff]  }
0x1b29   :  { %v4851_v34 = vrot.slane %v4843_v15, %v6909_v8  ;;  %v4858_v16 = vrot.slane %v4844_v25, %v6909_v8 }
0x1b2b   :  { %v4859_v18 = vcombine.low %v4835_v33, %v4851_v34  ;;  %v4860_v26 = vcombine.high %v4835_v33, %v4851_v34  ;;  %v4875_v41 = vcombine.low %v4842_v27, %v4858_v16  ;;  %v4876_v13 = vcombine.high %v4842_v27, %v4858_v16 }
0x1b2c   :  { %v6502_v51 = vpop.eup %6501 }
0x1b2d   :  { %v4867_v35 = vrot.slane %v4859_v18, %v6925_v19  ;;  %v4874_v21 = vrot.slane %v4860_v26, %v6925_v19  ;;  %v4883_v38 = vrot.slane %v4875_v41, %v6925_v19  ;;  %v4890_v36 = vrot.slane %v4876_v13, %v6925_v19  ;;  %v6504_v52 = vpop.eup %6503 }
0x1b2e   :  { %v5195_v58 = vmul.f32 %v6502_v51, %v7750_v2  ;;  %v5196_v3 = vmul.f32 %v6504_v52, %v7752_v57 }
0x1b2f   :  { %v4895_v39 = vcombine.low %v4867_v35, %v4874_v21  ;;  %v5818_v28 = vcombine.high %v4867_v35, %v4874_v21  ;;  %v4911_v40 = vcombine.low %v4883_v38, %v4890_v36  ;;  %v5819_v43 = vcombine.high %v4883_v38, %v4890_v36 }
0x1b30   :  { %v5199_v6 = vpack.c.bf16 %v5195_v58, %v5195_v58  ;;  %v5200_v7 = vpack.c.bf16 %v5196_v3, %v5196_v3 }
0x1b31   :  { %v4902_v31 = vrot.slane %v4895_v39, %v6909_v8  ;;  %v4910_v46 = vrot.slane %v5818_v28, %v6909_v8  ;;  %v4918_v22 = vrot.slane %v4911_v40, %v6909_v8  ;;  %v4926_v37 = vrot.slane %v5819_v43, %v6909_v8 }
0x1b33   :  { %v4927_v47 = vcombine.low %v4902_v31, %v4910_v46  ;;  %v4943_v48 = vcombine.low %v4918_v22, %v4926_v37  ;;  %v4928_v32 = vcombine.high %v4902_v31, %v4910_v46  ;;  %v4944_v29 = vcombine.high %v4918_v22, %v4926_v37 }
0x1b35   :  { %v4935_v53 = vrot.slane %v4927_v47, %v6925_v19  ;;  %v4951_v54 = vrot.slane %v4943_v48, %v6925_v19  ;;  %v4942_v60 = vrot.slane %v4928_v32, %v6925_v19  ;;  %v4958_v45 = vrot.slane %v4944_v29, %v6925_v19 }
0x1b37   :  { %v4959_v56 = vcombine.low %v4935_v53, %v4951_v54  ;;  %v4960_v12 = vcombine.high %v4935_v53, %v4951_v54  ;;  %v4961_v62 = vcombine.low %v4942_v60, %v4958_v45  ;;  %v4962_v63 = vcombine.high %v4942_v60, %v4958_v45 }
0x1b39   :  { %v4963_v1 = vpack.c.bf16 %v4959_v56, %v4959_v56  ;;  %v4964_v61 = vpack.c.bf16 %v4960_v12, %v4960_v12  ;;  %v4965_v5 = vpack.c.bf16 %v4961_v62, %v4961_v62  ;;  %v4966_v49 = vpack.c.bf16 %v4962_v63, %v4962_v63 }
0x1b3b   :  { %v5207_v42 = vsel %vm287_vm2, %v4963_v1, 0  ;;  %v5253_v14 = vsel %vm287_vm2, %v4964_v61, 0  ;;  %v5299_v2 = vsel %vm287_vm2, %v4965_v5, 0  ;;  %v5345_v57 = vsel %vm287_vm2, %v4966_v49, 0 }
0x1b3c   :  { %6303 = vmatpush3.bf16.msra.mxu1 %v5207_v42  ;;  %6309 = vmatpush3.bf16.msra.mxu0 %v5253_v14 }
0x1b3d   :  { %6314 = vmatprep.subr.bf16.mxu1 %v6685_v0  ;;  %6320 = vmatprep.subr.bf16.mxu0 %v6685_v0 }
0x1b3f   :  { %6305 = vmatmul.mubr.msk.bf16.vlgmr.msra.gmra.mxu1 %vm280_vm3, %v5199_v6  ;;  %6311 = vmatmul.mubr.msk.bf16.vlgmr.msra.gmra.mxu0 %vm280_vm3, %v5200_v7 }
0x1b40   :  { %6315 = vmatpush3.bf16.msra.mxu1 %v5299_v2  ;;  %6321 = vmatpush3.bf16.msra.mxu0 %v5345_v57 }
0x1b41   :  { %6322 = vmatprep.mubr.msk.bf16.mxu0 %vm6686_vm0, %v6685_v0  ;;  %6316 = vmatprep.mubr.msk.bf16.mxu1 %vm6686_vm0, %v6685_v0 }
0x1b42   :  { %6326 = vmatprep.subr.bf16.mxu1 %v6685_v0  ;;  %6334 = vmatprep.subr.bf16.mxu0 %v6685_v0 }
0x1b54   :  { %v5190_v9 = vpop.xlane.xlu0 %5189 }
0x1b55   :  { %6505 = vrcp.f32 %v5190_v9 }
0x1b57   :  { %v5187_v59 = vpop.xlane.xlu1 %5186 }
0x1b58   :  { %6507 = vrcp.f32 %v5187_v59 }
0x1b62   :  { %v6506_v55 = vpop.eup %6505 }
0x1b63   :  { %v5198_v44 = vmul.f32 %v6506_v55, %v7764_v10  ;;  %v6534_v10 = vld [vmem:[#allocation10] sm:$0xff]  }
0x1b65   :  { %v6508_v17 = vpop.eup %6507  ;;  %v5202_v30 = vpack.c.bf16 %v5198_v44, %v5198_v44 }
0x1b66   :  { %v5197_v50 = vmul.f32 %v6508_v17, %v7766_v11  ;;  %v6535_v11 = vld [vmem:[#allocation8] sm:$0xff]  }
0x1b67   :  { %6323 = vmatmul.mubr.msk.bf16.vlgmr.msra.gmra.mxu0 %vm280_vm3, %v5202_v30 }
0x1b68   :  { %v5201_v20 = vpack.c.bf16 %v5197_v50, %v5197_v50  ;;  %6335 = vmatpush3.bf16.msra.mxu0 %v6532_v23  ;;  %6338 = vmatprep.mubr.msk.bf16.mxu0 %vm6686_vm0, %v6685_v0  ;;  %v6536_v23 = vld [vmem:[%s7916_s19 + $0x38] sm:$0xff]  }
0x1b69   :  { %6336 = vmatprep.subr.bf16.mxu0 %v6685_v0 }
0x1b6a   :  { %6317 = vmatmul.mubr.msk.bf16.vlgmr.msra.gmra.mxu1 %vm280_vm3, %v5201_v20 }
0x1b6b   :  { %6327 = vmatpush3.bf16.msra.mxu1 %v6533_v24  ;;  %6330 = vmatprep.mubr.msk.bf16.mxu1 %vm6686_vm0, %v6685_v0  ;;  %v6537_v24 = vld [vmem:[%s7916_s19 + $0x30] sm:$0xff]  }
0x1b6c   :  { %6328 = vmatprep.subr.bf16.mxu1 %v6685_v0  ;;  %6337 = vmatpush3.bf16.msra.mxu0 %v6534_v10  ;;  %v6538_v10 = vld [vmem:[%s7916_s19 + $0x28] sm:$0xff]  }
0x1b6f   :  { %6329 = vmatpush3.bf16.msra.mxu1 %v6535_v11  ;;  %v6539_v11 = vld [vmem:[%s7916_s19 + $0x20] sm:$0xff]  }
0x1b70   :  { %6342 = vmatprep.subr.bf16.mxu1 %v6685_v0 }
0x1bff   :  { %v5243_v4 = vpop.f32.mrf.mxu1  ;;  %v5289_v15 = vpop.f32.mrf.mxu0 }
0x1c01   :  { %v6306_v25 = vpop.f32.mrf.mxu1  ;;  %v6312_v33 = vpop.f32.mrf.mxu0 }
0x1c02   :  { %v6542_v25 = vld [vmem:[%s7916_s19 + $0x8] sm:$0xff]   ;;  %v6543_v33 = vld [vmem:[%s7916_s19] sm:$0xff]  }
0x1c03   :  { %v5246_v27 = vpop.f32.mrf.mxu1  ;;  %v5292_v34 = vpop.f32.mrf.mxu0 }
0x1c04   :  { %v6544_v34 = vld [vmem:[%s7911_s14] ss:$0 sm:$0xff] }
0x1c05   :  { %v6307_v16 = vpop.f32.mrf.mxu1  ;;  %v6313_v18 = vpop.f32.mrf.mxu0 }
0x1c27   :  { %v5381_v26 = vpop.f32.mrf.mxu0 }
0x1c28   :  { %v5403_v41 = vcombine.low %v5289_v15, %v5381_v26  ;;  %v5404_v13 = vcombine.high %v5289_v15, %v5381_v26  ;;  %v6541_v15 = vld [vmem:[%s7916_s19 + $0x10] sm:$0xff]   ;;  %v6545_v26 = vld [vmem:[%s7934_s26 + $0x8] sm:$0xff] }
0x1c29   :  { %v6324_v35 = vpop.f32.mrf.mxu0 }
0x1c2a   :  { %v5335_v21 = vpop.f32.mrf.mxu1  ;;  %v5411_v40 = vrot.slane %v5403_v41, %v6909_v8  ;;  %v5418_v43 = vrot.slane %v5404_v13, %v6909_v8 }
0x1c2b   :  { %v5387_v38 = vcombine.low %v5243_v4, %v5335_v21  ;;  %v5388_v36 = vcombine.high %v5243_v4, %v5335_v21  ;;  %v5384_v39 = vpop.f32.mrf.mxu0  ;;  %v6540_v4 = vld [vmem:[%s7916_s19 + $0x18] sm:$0xff]  }
0x1c2c   :  { %v6318_v28 = vpop.f32.mrf.mxu1 }
0x1c2d   :  { %v5395_v31 = vrot.slane %v5387_v38, %v6909_v8  ;;  %v5402_v46 = vrot.slane %v5388_v36, %v6909_v8  ;;  %v6325_v22 = vpop.f32.mrf.mxu0 }
0x1c2e   :  { %v5338_v37 = vpop.f32.mrf.mxu1 }
0x1c2f   :  { %v5419_v47 = vcombine.low %v5395_v31, %v5411_v40  ;;  %v5420_v48 = vcombine.high %v5395_v31, %v5411_v40  ;;  %v5435_v32 = vcombine.low %v5402_v46, %v5418_v43  ;;  %v5436_v29 = vcombine.high %v5402_v46, %v5418_v43  ;;  %v6546_v37 = vld [vmem:[%s7912_s15] ss:$0 sm:$0xff]  ;;  %s6696_s15 = smov [#allocation11]  }
0x1c30   :  { %v6319_v51 = vpop.f32.mrf.mxu1 }
0x1c31   :  { %v5427_v52 = vrot.slane %v5419_v47, %v6925_v19  ;;  %v5434_v53 = vrot.slane %v5420_v48, %v6925_v19  ;;  %v5443_v54 = vrot.slane %v5435_v32, %v6925_v19  ;;  %v5450_v60 = vrot.slane %v5436_v29, %v6925_v19  ;;  %v6547_v48 = vld [vmem:[%s7913_s16] ss:$0 sm:$0xff]  ;;  %s5696_s16 = sshll.u32 %s6696_s15, 4  ;;  %s5697_s16 = int_to_ptr.vmem [resolvable:$true] %s5696_s16 }
0x1c32   :  { %p6655_p12 = scmp.lt.s32.totalorder %s5697_s16, %s5697_s16 }
0x1c33   :  { %v5455_v45 = vcombine.low %v5427_v52, %v5434_v53  ;;  %v5828_v56 = vcombine.high %v5427_v52, %v5434_v53  ;;  %v5471_v12 = vcombine.low %v5443_v54, %v5450_v60  ;;  %v5829_v62 = vcombine.high %v5443_v54, %v5450_v60  ;;  %v6548_v52 = vld [vmem:[%s7915_s18] ss:$0 sm:$0xff]  ;;  %s6650_s18 = scalar_lea.vmem %s5697_s16, 256 }
0x1c34   :  { %p6651_p11 = scmp.ne.s32.totalorder %s5697_s16, %s6650_s18  ;;  %p6656_p13 = scmp.lt.s32.totalorder %s6650_s18, %s6650_s18 }
0x1c35   :  { %v5462_v63 = vrot.slane %v5455_v45, %v6909_v8  ;;  %v5470_v1 = vrot.slane %v5828_v56, %v6909_v8  ;;  %v5478_v61 = vrot.slane %v5471_v12, %v6909_v8  ;;  %v5486_v58 = vrot.slane %v5829_v62, %v6909_v8 }
0x1c36   :  { %p6657_p0 = por %p6656_p13, %p6655_p12 }
0x1c37   :  { %v5488_v3 = vcombine.high %v5462_v63, %v5470_v1  ;;  %v5504_v42 = vcombine.high %v5478_v61, %v5486_v58  ;;  %v5487_v14 = vcombine.low %v5462_v63, %v5470_v1  ;;  %v5503_v5 = vcombine.low %v5478_v61, %v5486_v58 }
0x1c38   :  { %p6658_p1 = pnand %p6657_p0, %p6651_p11 }
0x1c39   :  { %v5502_v49 = vrot.slane %v5488_v3, %v6925_v19  ;;  %v5518_v6 = vrot.slane %v5504_v42, %v6925_v19  ;;  %v5495_v7 = vrot.slane %v5487_v14, %v6925_v19  ;;  %v5511_v2 = vrot.slane %v5503_v5, %v6925_v19  ;;  %v6549_v3 = vld [vmem:[%s7917_s20] ss:$0 sm:$0xff] }
0x1c3b   :  { %v5521_v57 = vcombine.low %v5502_v49, %v5518_v6  ;;  %v5520_v9 = vcombine.high %v5495_v7, %v5511_v2  ;;  %v5519_v59 = vcombine.low %v5495_v7, %v5511_v2  ;;  %v5522_v8 = vcombine.high %v5502_v49, %v5518_v6 }
0x1c3d   :  { %5528 = vrot.lane.b32.xlu1 %v5521_v57, %s6693_s11  ;;  %5524 = vrot.lane.b32.xlu0 %v5520_v9, %s6694_s2 }
0x1c41   :  { %5532 = vrot.lane.b32.xlu1 %v5522_v8, %s7938_s7 }
0x1caf   :  { %v5529_v55 = vpop.permute.xlu1 %5528  ;;  %v5525_v44 = vpop.permute.xlu0 %5524 }
0x1cb0   :  { %v5535_v17 = vsel %vm280_vm3, %v5519_v59, %v5525_v44 }
0x1cb1   :  { %v5536_v50 = vsel %vm1580_vm4, %v5535_v17, %v5529_v55 }
0x1cb3   :  { %v5533_v30 = vpop.permute.xlu1 %5532 }
0x1cb4   :  { %v5537_v20 = vsel %vm1582_vm5, %v5536_v50, %v5533_v30 }
0x1cb5   :  { %v5538_v19 = vpack.c.bf16 %v5537_v20, %v5537_v20 }
0x1cb7   :  { %6331 = vmatmul.mubr.msk.bf16.vlgmr.msra.gmra.mxu1 %vm215_vm1, %v5538_v19 }
0x1cb8   :  { %6343 = vmatpush3.bf16.msra.mxu1 %v6536_v23  ;;  %6358 = vmatprep.mubr.msk.bf16.mxu1 %vm6686_vm0, %v6685_v0 }
0x1cb9   :  { %6344 = vmatprep.subr.bf16.mxu1 %v6685_v0 }
0x1cbc   :  { %6345 = vmatpush3.bf16.msra.mxu1 %v6537_v24 }
0x1cbd   :  { %6346 = vmatprep.subr.bf16.mxu1 %v6685_v0 }
0x1cc0   :  { %6347 = vmatpush3.bf16.msra.mxu1 %v6538_v10 }
0x1cc1   :  { %6348 = vmatprep.subr.bf16.mxu1 %v6685_v0 }
0x1cc4   :  { %6349 = vmatpush3.bf16.msra.mxu1 %v6539_v11 }
0x1cc5   :  { %6350 = vmatprep.subr.bf16.mxu1 %v6685_v0 }
0x1cc8   :  { %6351 = vmatpush3.bf16.msra.mxu1 %v6540_v4 }
0x1cc9   :  { %6352 = vmatprep.subr.bf16.mxu1 %v6685_v0 }
0x1ccc   :  { %6353 = vmatpush3.bf16.msra.mxu1 %v6541_v15 }
0x1ccd   :  { %6354 = vmatprep.subr.bf16.mxu1 %v6685_v0 }
0x1cd0   :  { %6355 = vmatpush3.bf16.msra.mxu1 %v6542_v25 }
0x1cd1   :  { %6356 = vmatprep.subr.bf16.mxu1 %v6685_v0 }
0x1cd4   :  { %6357 = vmatpush3.bf16.msra.mxu1 %v6543_v33 }
0x1d77   :  { %v5576_v27 = vpop.f32.mrf.mxu1 }
0x1d78   :  { %v5577_v16 = vadd.f32 %v6544_v34, %v5576_v27 }
0x1d79   :  { %v6332_v18 = vpop.f32.mrf.mxu1 }
0x1d7a   :  { %v5582_v41 = vadd.f32 %v6545_v26, %v5577_v16 }
0x1d7b   :  { %v5579_v13 = vpop.f32.mrf.mxu1 }
0x1d7c   :  { %v5583_v0 = vsel %vm215_vm1, %v5582_v41, 0.0 }
0x1d7d   :  { %5584 = vadd.xlane.f32.xlu0 %v5583_v0  ;;  %v6333_v35 = vpop.f32.mrf.mxu1 }
0x1e06   :  { %v5585_v21 = vpop.xlane.xlu0 %5584 }
0x1e07   :  { %v5586_v38 = vmul.f32 0.03125, %v5585_v21 }
0x1e09   :  { %v5587_v36 = vsub.f32 %v5582_v41, %v5586_v38 }
0x1e0b   :  { %v5588_v39 = vmul.f32 %v5587_v36, %v5587_v36 }
0x1e0d   :  { %v5589_v28 = vsel %vm215_vm1, %v5588_v39, 0.0 }
0x1e0e   :  { %5590 = vadd.xlane.f32.xlu1 %v5589_v28 }
0x1e97   :  { %v5591_v40 = vpop.xlane.xlu1 %5590 }
0x1e98   :  { %v5592_v43 = vmul.f32 0.03125, %v5591_v40 }
0x1e9a   :  { %v5593_v31 = vadd.f32 1e-05, %v5592_v43 }
0x1e9c   :  { %6509 = vrsqrt.f32 %v5593_v31 }
0x1ea9   :  { %v6510_v46 = vpop.eup %6509 }
0x1eaa   :  { %v5595_v22 = vmul.f32 %v6510_v46, %v5587_v36 }
0x1eac   :  { %v5596_v47 = vmul.f32 %v6546_v37, %v5595_v22 }
0x1eae   :  { %v5597_v32 = vadd.f32 %v6547_v48, %v5596_v47 }
0x1eb0   :  { %v5598_v29 = vpack.c.bf16 %v5597_v32, %v5597_v32 }
0x1eb2   :  { %6339 = vmatmul.mubr.msk.bf16.vlgmr.msra.gmra.mxu0 %vm215_vm1, %v5598_v29 }
0x1f72   :  { %v5636_v51 = vpop.f32.mrf.mxu0 }
0x1f73   :  { %v5637_v53 = vadd.f32 %v6548_v52, %v5636_v51 }
0x1f74   :  { %v6340_v54 = vpop.f32.mrf.mxu0 }
0x1f75   :  { %v5643_v60 = vmul.f32 0.70710677, %v5637_v53  ;;  %v5642_v62 = vmul.f32 0.5, %v5637_v53 }
0x1f76   :  { %v5639_v45 = vpop.f32.mrf.mxu0 }
0x1f77   :  { %6511 = verf.f32 %v5643_v60 }
0x1f78   :  { %v6341_v56 = vpop.f32.mrf.mxu0 }
0x1f84   :  { %v6512_v12 = vpop.eup %6511 }
0x1f85   :  { %v5645_v63 = vadd.f32 1.0, %v6512_v12 }
0x1f87   :  { %v5646_v1 = vmul.f32 %v5645_v63, %v5642_v62 }
0x1f89   :  { %v5647_v61 = vpack.c.bf16 %v5646_v1, %v5646_v1 }
0x1f8b   :  { %6359 = vmatmul.mubr.bf16.vlgmr.msra.gmra.mxu1 %v5647_v61 }
0x204b   :  { %v5682_v58 = vpop.f32.mrf.mxu1 }
0x204c   :  { %v5683_v42 = vadd.f32 %v6549_v3, %v5682_v58 }
0x204d   :  { %v6360_v14 = vpop.f32.mrf.mxu1 }
0x204e   :  { %v5688_v5 = vadd.f32 %v5683_v42, %v5582_v41 }
0x204f   :  { %v5685_v49 = vpop.f32.mrf.mxu1 }
0x2050   :  { %5690 = vst.msk [vmem:[#allocation11 + $0x8] sm:$0xff] %vm215_vm1, %v5688_v5 }
0x2051   :  { %v6361_v6 = vpop.f32.mrf.mxu1 }
0x2052   :  { %6661 = shalt.err (!%p6658_p1)
}
0x2053   :  { %s6697_s9 = smov 128  }
0x2054   :  { %5702 = dma.vmem_to_hbm [thread:$0]  %s5697_s16, 256, %s7918_s21, [#allocation4], %s6697_s9, %s6697_s9, %s6694_s2  }
0x2055   :  { %6676 = dma.done.wait [#allocation4], 256  }
0x2056   :  { %6677 = vsyncadd [#allocation4], 4294967040 }
0x2057   :  { %5706 = vsyncpa [#allocation3], 1 }
0x2058   :  { %5707 = vsyncpa [#allocation6], 1 }
0x2059   :  { %5708 = vsyncpa [#allocation9], 1 }
0x205a   :  { %5709 = vsyncpa [#allocation4], 1 }

// kernel: grid_self_attention.1
= control target key start
LH: loop header
LB: loop body
LE: loop exit
PB: predicated region body
PF: predicated region fallthrough
CT: control target
= control target key end

     0   :  { %s7897_s0 = inlined_call_operand.vmem [shape: f32[2,8,32], index: 0, kind: input, shape index: {}]   ;;  %s7898_s1 = inlined_call_operand.vmem [shape: bf16[32,96], index: 1, kind: input, shape index: {}]   ;;  %s7899_s2 = inlined_call_operand.vmem [shape: f32[1,96], index: 2, kind: input, shape index: {}]   ;;  %s7900_s3 = inlined_call_operand.vmem [shape: bf16[32,32], index: 3, kind: input, shape index: {}]   ;;  %s7901_s4 = inlined_call_operand.hbm [shape: f32[1,32], index: 4, kind: input, shape index: {}]   ;;  %s7902_s5 = inlined_call_operand.vmem [shape: bf16[32,96], index: 5, kind: input, shape index: {}]   ;;  %s7903_s6 = inlined_call_operand.vmem [shape: f32[1,96], index: 6, kind: input, shape index: {}]   ;;  %s7904_s7 = inlined_call_operand.vmem [shape: bf16[32,32], index: 7, kind: input, shape index: {}]   ;;  %s7905_s8 = inlined_call_operand.vmem [shape: f32[1,32], index: 8, kind: input, shape index: {}]   ;;  %s7906_s9 = inlined_call_operand.hbm [shape: bf16[32,32], index: 9, kind: input, shape index: {}]   ;;  %s7907_s10 = inlined_call_operand.vmem [shape: f32[1,32], index: 10, kind: input, shape index: {}]   ;;  %s7908_s11 = inlined_call_operand.hbm [shape: bf16[32,64], index: 11, kind: input, shape index: {}]   ;;  %s7909_s12 = inlined_call_operand.vmem [shape: f32[1,64], index: 12, kind: input, shape index: {}]   ;;  %s7910_s13 = inlined_call_operand.hbm [shape: bf16[32,32], index: 13, kind: input, shape index: {}]   ;;  %s7911_s14 = inlined_call_operand.vmem [shape: f32[1,32], index: 14, kind: input, shape index: {}]   ;;  %s7912_s15 = inlined_call_operand.vmem [shape: f32[1,32], index: 15, kind: input, shape index: {}]   ;;  %s7913_s16 = inlined_call_operand.vmem [shape: f32[1,32], index: 16, kind: input, shape index: {}]   ;;  %s7914_s17 = inlined_call_operand.hbm [shape: bf16[32,128], index: 17, kind: input, shape index: {}]   ;;  %s7915_s18 = inlined_call_operand.vmem [shape: f32[1,128], index: 18, kind: input, shape index: {}]   ;;  %s7916_s19 = inlined_call_operand.vmem [shape: bf16[128,32], index: 19, kind: input, shape index: {}]   ;;  %s7917_s20 = inlined_call_operand.vmem [shape: f32[1,32], index: 20, kind: input, shape index: {}]   ;;  %s7918_s21 = inlined_call_operand.hbm [shape: f32[2,8,32], index: 21, kind: output, shape index: {}]  }
   0x1   :  { %7926 = sst [smem:[#allocation16_spill]] %s7897_s0 }
   0x2   :  { %7927 = sst [smem:[#allocation17_spill]] %s7898_s1 }
   0x3   :  { %7928 = sst [smem:[#allocation18_spill]] %s7899_s2 }
   0x4   :  { %7929 = sst [smem:[#allocation19_spill]] %s7900_s3 }
   0x5   :  { %7930 = sst [smem:[#allocation20_spill]] %s7901_s4 }
   0x6   :  { %7931 = sst [smem:[#allocation21_spill]] %s7902_s5 }
   0x7   :  { %26 = vsyncpa [#allocation3], 0 }
   0x8   :  { %27 = vsyncpa [#allocation6], 0 }
   0x9   :  { %28 = vsyncpa [#allocation9], 0 }
   0xa   :  { %29 = vsyncpa [#allocation4], 0  ;;  %s6678_s2 = smov [#allocation5]  }
   0xb   :  { %s61_s25 = sshll.u32 %s6678_s2, 4  ;;  %s62_s25 = int_to_ptr.vmem [resolvable:$true] %s61_s25 }
   0xc   :  { %s6558_s26 = scalar_lea.vmem %s62_s25, 256  ;;  %p6563_p1 = scmp.lt.s32.totalorder %s62_s25, %s62_s25 }
   0xd   :  { %p6559_p0 = scmp.ne.s32.totalorder %s62_s25, %s6558_s26  ;;  %p6564_p2 = scmp.lt.s32.totalorder %s6558_s26, %s6558_s26 }
   0xf   :  { %p6565_p3 = por %p6564_p2, %p6563_p1 }
  0x11   :  { %p6566_p4 = pnand %p6565_p3, %p6559_p0 }
  0x13   :  { %6569 = shalt.err (!%p6566_p4)
}
  0x14   :  { %s6679_s27 = smov 64   ;;  %s6680_s3 = smov 4  }
  0x15   :  { %67 = dma.hbm_to_vmem [thread:$0]  %s7906_s9, 256, %s62_s25, [#allocation6], %s6679_s27, %s6679_s27, %s6680_s3  }
  0x16   :  { %s6681_s0 = smov [#allocation8]   ;;  %s6682_s30 = smov [#allocation2]  }
  0x17   :  { %s89_s4 = sshll.u32 %s6681_s0, 4  ;;  %s44_s5 = sshll.u32 %s6682_s30, 4  ;;  %s90_s4 = int_to_ptr.vmem [resolvable:$true] %s89_s4  ;;  %s45_s5 = int_to_ptr.vmem [resolvable:$true] %s44_s5 }
  0x18   :  { %s6578_s22 = scalar_lea.vmem %s90_s4, 256  ;;  %p6583_p6 = scmp.lt.s32.totalorder %s90_s4, %s90_s4 }
  0x19   :  { %p6579_p5 = scmp.ne.s32.totalorder %s90_s4, %s6578_s22  ;;  %p6584_p7 = scmp.lt.s32.totalorder %s6578_s22, %s6578_s22 }
  0x1b   :  { %p6585_p8 = por %p6584_p7, %p6583_p6 }
  0x1d   :  { %p6586_p9 = pnand %p6585_p8, %p6579_p5 }
  0x1f   :  { %6589 = shalt.err (!%p6586_p9)
}
  0x20   :  { %95 = dma.hbm_to_vmem [thread:$0]  %s7910_s13, 256, %s90_s4, [#allocation9], %s6679_s27, %s6679_s27, %s6680_s3  }
  0x21   :  { %s6598_s9 = scalar_lea.vmem %s45_s5, 16  ;;  %s6602_s24 = scalar_lea.vmem %s45_s5, 32 }
  0x22   :  { %p6599_p10 = scmp.ne.s32.totalorder %s45_s5, %s6598_s9  ;;  %p6603_p11 = scmp.lt.s32.totalorder %s45_s5, %s45_s5 }
  0x23   :  { %p6604_p12 = scmp.lt.s32.totalorder %s6602_s24, %s6598_s9 }
  0x25   :  { %p6605_p13 = por %p6604_p12, %p6603_p11 }
  0x27   :  { %p6606_p0 = pnand %p6605_p13, %p6599_p10 }
  0x29   :  { %6609 = shalt.err (!%p6606_p0)
}
  0x2a   :  { %s7932_s26 = sld [smem:[#allocation20_spill]]  ;;  %s6683_s28 = smov [#allocation7]  }
  0x2b   :  { %s75_s29 = sshll.u32 %s6683_s28, 4  ;;  %s6684_s0 = smov [#allocation10]   ;;  %s76_s29 = int_to_ptr.vmem [resolvable:$true] %s75_s29 }
  0x2c   :  { %s107_s30 = sshll.u32 %s6684_s0, 4  ;;  %s6618_s22 = scalar_lea.vmem %s76_s29, 256  ;;  %s108_s30 = int_to_ptr.vmem [resolvable:$true] %s107_s30 }
  0x2d   :  { %p6619_p1 = scmp.ne.s32.totalorder %s76_s29, %s6618_s22  ;;  %p6623_p2 = scmp.lt.s32.totalorder %s76_s29, %s76_s29 }
  0x2e   :  { %p6624_p3 = scmp.lt.s32.totalorder %s6618_s22, %s6618_s22 }
  0x30   :  { %47 = dma.hbm_to_vmem [thread:$0]  %s7932_s26, 16, %s45_s5, [#allocation3]  }
  0x31   :  { %p6625_p4 = por %p6624_p3, %p6623_p2 }
  0x33   :  { %p6626_p5 = pnand %p6625_p4, %p6619_p1 }
  0x35   :  { %6629 = shalt.err (!%p6626_p5)
}
  0x36   :  { %81 = dma.hbm_to_vmem [thread:$0]  %s7908_s11, 256, %s76_s29, [#allocation6], %s6679_s27, %s6679_s27, %s6680_s3  }
  0x37   :  { %s6638_s5 = scalar_lea.vmem %s108_s30, 256  ;;  %p6643_p7 = scmp.lt.s32.totalorder %s108_s30, %s108_s30 }
  0x38   :  { %p6639_p6 = scmp.ne.s32.totalorder %s108_s30, %s6638_s5  ;;  %p6644_p8 = scmp.lt.s32.totalorder %s6638_s5, %s6638_s5 }
  0x3a   :  { %p6645_p9 = por %p6644_p8, %p6643_p7 }
  0x3c   :  { %p6646_p10 = pnand %p6645_p9, %p6639_p6 }
  0x3e   :  { %6649 = shalt.err (!%p6646_p10)
}
  0x3f   :  { %113 = dma.hbm_to_vmem [thread:$0]  %s7914_s17, 256, %s108_s30, [#allocation9], %s6679_s27, %s6679_s27, %s6680_s3  }
  0x40   :  { %6670 = dma.done.wait [#allocation3], 16  }
  0x41   :  { %6671 = vsyncadd [#allocation3], 4294967280 }
  0x42   :  { %6672 = dma.done.wait [#allocation6], 512  }
  0x43   :  { %6673 = vsyncadd [#allocation6], 4294966784 }
  0x44   :  { %6674 = dma.done.wait [#allocation9], 512  }
  0x45   :  { %6675 = vsyncadd [#allocation9], 4294966784  ;;  %v6685_v0 = vmov 0.0   ;;  %vm6686_vm0 = vmmov 0   ;;  %s7933_s3 = sld [smem:[#allocation17_spill]]  ;;  %vm215_vm1 = vcmask 261120  }
  0x46   :  { %5974 = vmatprep.subr.bf16.mxu0 %v6685_v0  ;;  %5978 = vmatprep.mubr.msk.bf16.mxu0 %vm6686_vm0, %v6685_v0  ;;  %s7934_s26 = sld [smem:[#allocation16_spill]]  ;;  %s6687_s30 = smov 96   ;;  %vm287_vm2 = vcmask 1043456   ;;  %vm280_vm3 = vcmask 64512   ;;  %v5721_v31 = vld [vmem:[%s7903_s6] ss:$0 sm:$0xff] }
  0x47   :  { %6004 = vmatprep.subr.bf16.mxu1 %v6685_v0  ;;  %6008 = vmatprep.mubr.msk.bf16.mxu1 %vm6686_vm0, %v6685_v0  ;;  %s7935_s0 = sld [smem:[#allocation18_spill]]  ;;  %s6688_s17 = smov 120   ;;  %v6691_v62 = vmov 1983009808   ;;  %vm1580_vm4 = vcmask 130048   ;;  %vm1582_vm5 = vcmask 195584  }
  0x48   :  { %s7936_s4 = sld [smem:[#allocation21_spill]]  ;;  %s6689_s9 = smov 112   ;;  %v570_v63 = vunpack.c.l.s4 %v6691_v62 }
  0x49   :  { %s6690_s24 = smov 104   ;;  %s7937_s28 = sld [smem:[#allocation19_spill]] }
  0x4a   :  { %s6693_s11 = smov 16   ;;  %s6694_s2 = smov 8  }
  0x4b   :  { %v6385_v1 = vld [vmem:[%s7933_s3 + $0x8] sm:$0xff]   ;;  %v6386_v2 = vld [vmem:[%s7933_s3] sm:$0xff]   ;;  %s7924_s25 = smov 24  }
  0x4c   :  { %5975 = vmatpush3.bf16.msra.mxu0 %v6385_v1  ;;  %v195_v3 = vld [vmem:[%s7934_s26] sm:$0xff]  ;;  %v572_v1 = vlaneseq }
  0x4d   :  { %5976 = vmatprep.subr.bf16.mxu0 %v6685_v0  ;;  %v196_v4 = vpack.c.bf16 %v195_v3, %v195_v3  ;;  %v5710_v5 = vld [vmem:[%s7935_s0] ss:$0 sm:$0xff]  ;;  %v571_v3 = vunpack.c.0.s8 %v570_v63 }
  0x4e   :  { %v6387_v13 = vld [vmem:[%s7936_s4 + $0x8] sm:$0xff]   ;;  %v6388_v14 = vld [vmem:[%s7936_s4] sm:$0xff]  }
  0x4f   :  { %6005 = vmatpush3.bf16.msra.mxu1 %v6387_v13 }
  0x50   :  { %5977 = vmatpush3.bf16.msra.mxu0 %v6386_v2  ;;  %6006 = vmatprep.subr.bf16.mxu1 %v6685_v0 }
  0x53   :  { %5979 = vmatmul.mubr.msk.bf16.vlgmr.msra.gmra.mxu0 %vm215_vm1, %v196_v4  ;;  %6007 = vmatpush3.bf16.msra.mxu1 %v6388_v14 }
  0x54   :  { %6018 = vmatprep.subr.bf16.mxu1 %v6685_v0 }
  0x56   :  { %6009 = vmatmul.mubr.msk.bf16.vlgmr.msra.gmra.mxu1 %vm215_vm1, %v196_v4  ;;  %v573_v4 = vshrl.u32 %v572_v1, 7 }
  0x57   :  { %6020 = vmatprep.mubr.msk.bf16.mxu1 %vm6686_vm0, %v6685_v0 }
 0x113   :  { %v253_v6 = vpop.f32.mrf.mxu0 }
 0x114   :  { %v254_v7 = vadd.f32 %v5710_v5, %v253_v6  ;;  %v6692_v5 = vmov 1934713408  }
 0x115   :  { %v5980_v8 = vpop.f32.mrf.mxu0  ;;  %v602_v6 = vunpack.c.l.s4 %v6692_v5 }
 0x116   :  { %v259_v9 = vmax.f32 %v254_v7, 0.0  ;;  %v551_v32 = vpop.f32.mrf.mxu1  ;;  %v6909_v8 = vsub.s32 %v571_v3, %v573_v4 }
 0x117   :  { %v256_v10 = vpop.f32.mrf.mxu0  ;;  %v6885_v33 = vadd.f32 %v5721_v31, %v551_v32 }
 0x118   :  { %v6855_v11 = vpack.c.bf16 %v259_v9, %v259_v9  ;;  %v6010_v34 = vpop.f32.mrf.mxu1 }
 0x119   :  { %v5981_v12 = vpop.f32.mrf.mxu0 }
 0x11a   :  { %278 = vrot.lane.b32.xlu0 %v6855_v11, %s6687_s30  ;;  %v554_v35 = vpop.f32.mrf.mxu1 }
 0x11c   :  { %v6011_v36 = vpop.f32.mrf.mxu1 }
 0x138   :  { %261 = vxpose.xlu0.c.b16.start.end [1/1] (short) (narrow) %v6855_v11, 32 }
 0x145   :  { %558 = vrot.lane.b32.xlu0 %v6885_v33, %s6688_s17 }
 0x149   :  { %561 = vrot.lane.b32.xlu0 %v6885_v33, %s6689_s9 }
 0x14d   :  { %707 = vrot.lane.b32.xlu0 %v6885_v33, %s6687_s30 }
 0x18c   :  { %v279_v15 = vpop.permute.xlu0 %278 }
 0x18d   :  { %6362 = vmatprep.subr.msk.bf16.mxu0 %vm287_vm2, %v279_v15  ;;  %v289_v16 = vsel %vm287_vm2, %v279_v15, 0 }
 0x18e   :  { %5983 = vmatpush3.bf16.msra.mxu0 %v289_v16 }
 0x18f   :  { %5988 = vmatprep.subr.bf16.mxu0 %v6685_v0 }
 0x19a   :  { %v269_v17 = vpop.trf.xlu0 }
 0x19b   :  { %5984 = vmatprep.mubr.msk.bf16.mxu0 %vm280_vm3, %v269_v17 }
 0x19e   :  { %v270_v18 = vpop.trf.xlu0 }
 0x19f   :  { %5985 = vmatmul.mubr.msk.bf16.vlgmr.msra.gmra.mxu0 %vm280_vm3, %v270_v18 }
 0x1a0   :  { %5992 = vmatprep.mubr.msk.bf16.mxu0 %vm6686_vm0, %v6685_v0 }
 0x1b7   :  { %v6893_v37 = vpop.permute.xlu0 %558 }
 0x1bb   :  { %v6895_v41 = vpop.permute.xlu0 %561 }
 0x1bc   :  { %711 = vrot.lane.b32.xlu0 %v6895_v41, %s6687_s30  ;;  %v567_v9 = vcombine.low %v6885_v33, %v6895_v41  ;;  %v568_v10 = vcombine.high %v6885_v33, %v6895_v41 }
 0x1be   :  { %v575_v17 = vrot.slane %v567_v9, %v6909_v8  ;;  %v582_v18 = vrot.slane %v568_v10, %v6909_v8 }
 0x25f   :  { %v5986_v19 = vpop.f32.mrf.mxu0 }
 0x260   :  { %v342_v20 = vmul.f32 0.17677669, %v5986_v19 }
 0x261   :  { %v325_v21 = vpop.f32.mrf.mxu0 }
 0x262   :  { %v340_v22 = vmul.f32 0.17677669, %v325_v21  ;;  %v350_v23 = vsel %vm215_vm1, %v342_v20, -inf }
 0x263   :  { %351 = vmax.xlane.f32.xlu1 %v350_v23  ;;  %v5987_v24 = vpop.f32.mrf.mxu0 }
 0x264   :  { %v343_v25 = vmul.f32 0.17677669, %v5987_v24  ;;  %v344_v26 = vsel %vm215_vm1, %v340_v22, -inf }
 0x265   :  { %v328_v27 = vpop.f32.mrf.mxu0 }
 0x266   :  { %v341_v28 = vmul.f32 0.17677669, %v328_v27  ;;  %v353_v29 = vsel %vm215_vm1, %v343_v25, -inf }
 0x267   :  { %345 = vmax.xlane.f32.xlu1 %v344_v26 }
 0x268   :  { %v347_v30 = vsel %vm215_vm1, %v341_v28, -inf }
 0x26b   :  { %354 = vmax.xlane.f32.xlu1 %v353_v29 }
 0x26f   :  { %348 = vmax.xlane.f32.xlu1 %v347_v30 }
 0x2ec   :  { %v352_v38 = vpop.xlane.xlu1 %351 }
 0x2ed   :  { %v358_v39 = vsub.f32 %v342_v20, %v352_v38 }
 0x2ef   :  { %v364_v40 = vmul.f32 1.442695, %v358_v39 }
 0x2f0   :  { %v346_v42 = vpop.xlane.xlu1 %345 }
 0x2f1   :  { %6409 = vpow2.f32 %v364_v40  ;;  %v356_v43 = vsub.f32 %v340_v22, %v346_v42 }
 0x2f3   :  { %v360_v44 = vmul.f32 1.442695, %v356_v43 }
 0x2f4   :  { %v355_v45 = vpop.xlane.xlu1 %354 }
 0x2f5   :  { %6411 = vpow2.f32 %v360_v44  ;;  %v359_v46 = vsub.f32 %v343_v25, %v355_v45 }
 0x2f7   :  { %v366_v47 = vmul.f32 1.442695, %v359_v46 }
 0x2f8   :  { %v349_v48 = vpop.xlane.xlu1 %348 }
 0x2f9   :  { %6413 = vpow2.f32 %v366_v47  ;;  %v357_v49 = vsub.f32 %v341_v28, %v349_v48 }
 0x2fb   :  { %v362_v50 = vmul.f32 1.442695, %v357_v49 }
 0x2fd   :  { %6415 = vpow2.f32 %v362_v50 }
 0x2fe   :  { %v6410_v51 = vpop.eup %6409 }
 0x2ff   :  { %v374_v52 = vsel %vm215_vm1, %v6410_v51, 0.0 }
 0x300   :  { %375 = vadd.xlane.f32.xlu1 %v374_v52 }
 0x302   :  { %v6412_v53 = vpop.eup %6411 }
 0x303   :  { %v368_v54 = vsel %vm215_vm1, %v6412_v53, 0.0 }
 0x304   :  { %369 = vadd.xlane.f32.xlu1 %v368_v54 }
 0x306   :  { %v6414_v55 = vpop.eup %6413 }
 0x307   :  { %v377_v56 = vsel %vm215_vm1, %v6414_v55, 0.0 }
 0x308   :  { %378 = vadd.xlane.f32.xlu1 %v377_v56 }
 0x30a   :  { %v6416_v57 = vpop.eup %6415 }
 0x30b   :  { %v371_v58 = vsel %vm215_vm1, %v6416_v57, 0.0 }
 0x30c   :  { %372 = vadd.xlane.f32.xlu1 %v371_v58 }
 0x31d   :  { %390 = vrot.lane.b32.xlu1 %v6855_v11, %s6679_s27  ;;  %v603_v11 = vunpack.c.0.s8 %v602_v6 }
 0x31f   :  { %v6925_v19 = vsub.s32 %v603_v11, %v573_v4 }
 0x321   :  { %564 = vrot.lane.b32.xlu1 %v6885_v33, %s6690_s24 }
 0x325   :  { %709 = vrot.lane.b32.xlu1 %v6893_v37, %s6687_s30 }
 0x389   :  { %v376_v59 = vpop.xlane.xlu1 %375 }
 0x38a   :  { %6417 = vrcp.f32 %v376_v59  ;;  %v6389_v59 = vld [vmem:[%s7937_s28 + $0x8] sm:$0xff]  }
 0x38d   :  { %v370_v60 = vpop.xlane.xlu1 %369 }
 0x391   :  { %v379_v61 = vpop.xlane.xlu1 %378 }
 0x392   :  { %6419 = vrcp.f32 %v379_v61  ;;  %v708_v61 = vpop.permute.xlu0 %707 }
 0x393   :  { %6421 = vrcp.f32 %v370_v60  ;;  %v6390_v60 = vld [vmem:[%s7937_s28] sm:$0xff]  }
 0x395   :  { %v373_v2 = vpop.xlane.xlu1 %372 }
 0x396   :  { %6423 = vrcp.f32 %v373_v2  ;;  %v712_v63 = vpop.permute.xlu0 %711 }
 0x397   :  { %v6418_v13 = vpop.eup %6417  ;;  %v719_v1 = vcombine.low %v708_v61, %v712_v63  ;;  %v720_v2 = vcombine.high %v708_v61, %v712_v63 }
 0x398   :  { %v386_v23 = vmul.f32 %v6418_v13, %v6410_v51 }
 0x399   :  { %v391_v7 = vpop.permute.xlu1 %390  ;;  %v727_v6 = vrot.slane %v719_v1, %v6909_v8 }
 0x39d   :  { %v6915_v12 = vpop.permute.xlu1 %564 }
 0x39e   :  { %v583_v14 = vcombine.low %v6893_v37, %v6915_v12  ;;  %v584_v15 = vcombine.high %v6893_v37, %v6915_v12  ;;  %713 = vrot.lane.b32.xlu1 %v6915_v12, %s6687_s30 }
 0x39f   :  { %v6420_v16 = vpop.eup %6419 }
 0x3a0   :  { %v591_v20 = vrot.slane %v583_v14, %v6909_v8  ;;  %v598_v21 = vrot.slane %v584_v15, %v6909_v8  ;;  %v387_v22 = vmul.f32 %v6420_v16, %v6414_v55  ;;  %v6422_v24 = vpop.eup %6421 }
 0x3a1   :  { %v384_v36 = vmul.f32 %v6422_v24, %v6412_v53  ;;  %v710_v62 = vpop.permute.xlu1 %709 }
 0x3a2   :  { %v599_v25 = vcombine.low %v575_v17, %v591_v20  ;;  %v600_v26 = vcombine.high %v575_v17, %v591_v20  ;;  %v615_v27 = vcombine.low %v582_v18, %v598_v21  ;;  %v616_v28 = vcombine.high %v582_v18, %v598_v21 }
 0x3a3   :  { %v6424_v29 = vpop.eup %6423  ;;  %v389_v30 = vpack.c.bf16 %v387_v22, %v386_v23 }
 0x3a4   :  { %v607_v31 = vrot.slane %v599_v25, %v6925_v19  ;;  %v614_v32 = vrot.slane %v600_v26, %v6925_v19  ;;  %v623_v34 = vrot.slane %v615_v27, %v6925_v19  ;;  %v630_v35 = vrot.slane %v616_v28, %v6925_v19 }
 0x3a5   :  { %5989 = vmatpush3.bf16.msra.mxu0 %v389_v30  ;;  %v385_v38 = vmul.f32 %v6424_v29, %v6416_v57 }
 0x3a6   :  { %v635_v39 = vcombine.low %v607_v31, %v614_v32  ;;  %v5725_v40 = vcombine.high %v607_v31, %v614_v32  ;;  %v651_v42 = vcombine.low %v623_v34, %v630_v35  ;;  %v5726_v43 = vcombine.high %v623_v34, %v630_v35  ;;  %5990 = vmatprep.subr.bf16.mxu0 %v6685_v0 }
 0x3a7   :  { %v388_v44 = vpack.c.bf16 %v385_v38, %v384_v36 }
 0x3a8   :  { %v642_v45 = vrot.slane %v635_v39, %v6909_v8  ;;  %v650_v46 = vrot.slane %v5725_v40, %v6909_v8  ;;  %v658_v47 = vrot.slane %v651_v42, %v6909_v8  ;;  %v666_v48 = vrot.slane %v5726_v43, %v6909_v8 }
 0x3a9   :  { %5991 = vmatpush3.bf16.msra.mxu0 %v388_v44 }
 0x3aa   :  { %v667_v49 = vcombine.low %v642_v45, %v650_v46  ;;  %v683_v50 = vcombine.low %v658_v47, %v666_v48  ;;  %v668_v51 = vcombine.high %v642_v45, %v650_v46  ;;  %v684_v52 = vcombine.high %v658_v47, %v666_v48  ;;  %5996 = vmatprep.subr.bf16.mxu0 %v6685_v0 }
 0x3ac   :  { %5993 = vmatmul.mubr.msk.bf16.vlgmr.msra.gmra.mxu0 %vm215_vm1, %v391_v7  ;;  %v675_v53 = vrot.slane %v667_v49, %v6925_v19  ;;  %v691_v54 = vrot.slane %v683_v50, %v6925_v19  ;;  %v682_v55 = vrot.slane %v668_v51, %v6925_v19  ;;  %v698_v56 = vrot.slane %v684_v52, %v6925_v19 }
 0x3ad   :  { %6000 = vmatprep.mubr.msk.bf16.mxu0 %vm6686_vm0, %v6685_v0  ;;  %5997 = vmatpush3.bf16.msra.mxu0 %v6389_v59  ;;  %v734_v7 = vrot.slane %v720_v2, %v6909_v8 }
 0x3ae   :  { %v6946_v57 = vcombine.low %v675_v53, %v691_v54  ;;  %v6948_v58 = vcombine.low %v682_v55, %v698_v56  ;;  %5998 = vmatprep.subr.bf16.mxu0 %v6685_v0  ;;  %v700_v46 = vcombine.high %v675_v53, %v691_v54  ;;  %v702_v50 = vcombine.high %v682_v55, %v698_v56 }
 0x3b0   :  { %v704_v48 = vpack.c.bf16 %v700_v46, %v700_v46  ;;  %v706_v51 = vpack.c.bf16 %v702_v50, %v702_v50  ;;  %v705_v1 = vpack.c.bf16 %v6948_v58, %v6948_v58 }
 0x3b1   :  { %5999 = vmatpush3.bf16.msra.mxu0 %v6390_v60 }
 0x3b2   :  { %6012 = vmatprep.subr.bf16.mxu0 %v6685_v0 }
 0x410   :  { %v714_v3 = vpop.permute.xlu1 %713 }
 0x411   :  { %v735_v4 = vcombine.low %v710_v62, %v714_v3  ;;  %v736_v5 = vcombine.high %v710_v62, %v714_v3  ;;  %v703_v62 = vpack.c.bf16 %v6946_v57, %v6946_v57 }
 0x413   :  { %v743_v9 = vrot.slane %v735_v4, %v6909_v8  ;;  %v750_v10 = vrot.slane %v736_v5, %v6909_v8 }
 0x415   :  { %v751_v11 = vcombine.low %v727_v6, %v743_v9  ;;  %v752_v13 = vcombine.high %v727_v6, %v743_v9  ;;  %v767_v14 = vcombine.low %v734_v7, %v750_v10  ;;  %v768_v15 = vcombine.high %v734_v7, %v750_v10 }
 0x417   :  { %v759_v16 = vrot.slane %v751_v11, %v6925_v19  ;;  %v766_v17 = vrot.slane %v752_v13, %v6925_v19  ;;  %v775_v18 = vrot.slane %v767_v14, %v6925_v19  ;;  %v782_v20 = vrot.slane %v768_v15, %v6925_v19 }
 0x419   :  { %v787_v21 = vcombine.low %v759_v16, %v766_v17  ;;  %v5727_v22 = vcombine.high %v759_v16, %v766_v17  ;;  %v803_v23 = vcombine.low %v775_v18, %v782_v20  ;;  %v5728_v24 = vcombine.high %v775_v18, %v782_v20 }
 0x41b   :  { %v794_v25 = vrot.slane %v787_v21, %v6909_v8  ;;  %v802_v26 = vrot.slane %v5727_v22, %v6909_v8  ;;  %v810_v27 = vrot.slane %v803_v23, %v6909_v8  ;;  %v818_v28 = vrot.slane %v5728_v24, %v6909_v8 }
 0x41d   :  { %v819_v29 = vcombine.low %v794_v25, %v802_v26  ;;  %v835_v30 = vcombine.low %v810_v27, %v818_v28  ;;  %v820_v31 = vcombine.high %v794_v25, %v802_v26  ;;  %v836_v32 = vcombine.high %v810_v27, %v818_v28 }
 0x41f   :  { %v827_v34 = vrot.slane %v819_v29, %v6925_v19  ;;  %v843_v35 = vrot.slane %v835_v30, %v6925_v19  ;;  %v834_v36 = vrot.slane %v820_v31, %v6925_v19  ;;  %v850_v38 = vrot.slane %v836_v32, %v6925_v19 }
 0x421   :  { %v852_v39 = vcombine.high %v827_v34, %v843_v35  ;;  %v851_v40 = vcombine.low %v827_v34, %v843_v35  ;;  %v853_v42 = vcombine.low %v834_v36, %v850_v38  ;;  %v854_v45 = vcombine.high %v834_v36, %v850_v38 }
 0x423   :  { %v856_v43 = vpack.c.bf16 %v852_v39, %v852_v39  ;;  %v858_v47 = vpack.c.bf16 %v854_v45, %v854_v45  ;;  %v855_v52 = vpack.c.bf16 %v851_v40, %v851_v40  ;;  %v857_v56 = vpack.c.bf16 %v853_v42, %v853_v42 }
 0x425   :  { %v1061_v44 = vsel %vm280_vm3, %v856_v43, 0  ;;  %v1153_v49 = vsel %vm280_vm3, %v858_v47, 0  ;;  %v1015_v60 = vsel %vm280_vm3, %v855_v52, 0  ;;  %v1107_v63 = vsel %vm280_vm3, %v857_v56, 0 }
 0x426   :  { %6019 = vmatpush3.bf16.xpose.msra.mxu1 %v1061_v44 }
 0x427   :  { %6030 = vmatprep.subr.bf16.mxu1 %v6685_v0 }
 0x42d   :  { %6021 = vmatmul.mubr.msk.bf16.vlgmr.msra.gmra.mxu1 %vm280_vm3, %v704_v48 }
 0x42e   :  { %6031 = vmatpush3.bf16.xpose.msra.mxu1 %v1153_v49  ;;  %6032 = vmatprep.mubr.msk.bf16.mxu1 %vm6686_vm0, %v6685_v0 }
 0x42f   :  { %6042 = vmatprep.subr.bf16.mxu1 %v6685_v0 }
 0x435   :  { %6033 = vmatmul.mubr.msk.bf16.vlgmr.msra.gmra.mxu1 %vm280_vm3, %v706_v51 }
 0x436   :  { %6044 = vmatprep.mubr.msk.bf16.mxu1 %vm6686_vm0, %v6685_v0 }
 0x46c   :  { %v429_v53 = vpop.f32.mrf.mxu0 }
 0x46d   :  { %v435_v54 = vpack.c.bf16 %v429_v53, %v429_v53 }
 0x46e   :  { %v5994_v59 = vpop.f32.mrf.mxu0 }
 0x46f   :  { %6001 = vmatmul.mubr.msk.bf16.vlgmr.msra.gmra.mxu0 %vm215_vm1, %v435_v54 }
 0x470   :  { %6013 = vmatpush3.bf16.xpose.msra.mxu0 %v1015_v60  ;;  %v432_v61 = vpop.f32.mrf.mxu0  ;;  %6014 = vmatprep.mubr.msk.bf16.mxu0 %vm6686_vm0, %v6685_v0 }
 0x471   :  { %6024 = vmatprep.subr.bf16.mxu0 %v6685_v0 }
 0x472   :  { %v5995_v55 = vpop.f32.mrf.mxu0 }
 0x477   :  { %6015 = vmatmul.mubr.msk.bf16.vlgmr.msra.gmra.mxu0 %vm280_vm3, %v703_v62 }
 0x478   :  { %6025 = vmatpush3.bf16.xpose.msra.mxu0 %v1107_v63  ;;  %6026 = vmatprep.mubr.msk.bf16.mxu0 %vm6686_vm0, %v6685_v0 }
 0x479   :  { %6036 = vmatprep.subr.bf16.mxu0 %v6685_v0 }
 0x47f   :  { %6027 = vmatmul.mubr.msk.bf16.vlgmr.msra.gmra.mxu0 %vm280_vm3, %v705_v1 }
 0x480   :  { %6038 = vmatprep.mubr.msk.bf16.mxu0 %vm6686_vm0, %v6685_v0 }
 0x4ed   :  { %v1097_v2 = vpop.f32.mrf.mxu1 }
 0x4ee   :  { %v1196_v57 = vmul.f32 0.35355338, %v1097_v2 }
 0x4ef   :  { %v6022_v3 = vpop.f32.mrf.mxu1 }
 0x4f0   :  { %v1202_v4 = vsel %vm280_vm3, %v1196_v57, -inf }
 0x4f1   :  { %1203 = vmax.xlane.f32.xlu1 %v1202_v4  ;;  %v1100_v5 = vpop.f32.mrf.mxu1 }
 0x4f3   :  { %v6023_v6 = vpop.f32.mrf.mxu1 }
 0x4f5   :  { %v1189_v7 = vpop.f32.mrf.mxu1 }
 0x4f7   :  { %v6034_v9 = vpop.f32.mrf.mxu1 }
 0x4f9   :  { %v1192_v10 = vpop.f32.mrf.mxu1 }
 0x4fb   :  { %v6035_v11 = vpop.f32.mrf.mxu1 }
 0x502   :  { %859 = vrot.lane.b32.xlu1 %v6885_v33, %s6679_s27  ;;  %v1198_v33 = vmul.f32 0.35355338, %v1189_v7 }
 0x504   :  { %v1208_v28 = vsel %vm280_vm3, %v1198_v33, -inf }
 0x506   :  { %863 = vrot.lane.b32.xlu1 %v6895_v41, %s6679_s27 }
 0x52f   :  { %v7006_v58 = vpop.f32.mrf.mxu0 }
 0x531   :  { %v6002_v13 = vpop.f32.mrf.mxu0 }
 0x533   :  { %v488_v14 = vpop.f32.mrf.mxu0 }
 0x535   :  { %v6003_v15 = vpop.f32.mrf.mxu0 }
 0x537   :  { %v1051_v16 = vpop.f32.mrf.mxu0 }
 0x538   :  { %v1195_v17 = vmul.f32 0.35355338, %v1051_v16 }
 0x539   :  { %v6016_v18 = vpop.f32.mrf.mxu0 }
 0x53a   :  { %v1199_v20 = vsel %vm280_vm3, %v1195_v17, -inf }
 0x53b   :  { %1200 = vmax.xlane.f32.xlu0 %v1199_v20  ;;  %v1054_v21 = vpop.f32.mrf.mxu0 }
 0x53d   :  { %v6017_v22 = vpop.f32.mrf.mxu0 }
 0x53f   :  { %v1143_v23 = vpop.f32.mrf.mxu0 }
 0x540   :  { %v1197_v24 = vmul.f32 0.35355338, %v1143_v23 }
 0x541   :  { %v6028_v25 = vpop.f32.mrf.mxu0 }
 0x542   :  { %v1205_v26 = vsel %vm280_vm3, %v1197_v24, -inf }
 0x543   :  { %1206 = vmax.xlane.f32.xlu0 %v1205_v26  ;;  %v1146_v41 = vpop.f32.mrf.mxu0 }
 0x545   :  { %v6029_v27 = vpop.f32.mrf.mxu0 }
 0x547   :  { %1209 = vmax.xlane.f32.xlu0 %v1208_v28 }
 0x57a   :  { %v1204_v29 = vpop.xlane.xlu1 %1203 }
 0x57b   :  { %v1212_v30 = vsub.f32 %v1196_v57, %v1204_v29 }
 0x57d   :  { %v1217_v31 = vmul.f32 1.442695, %v1212_v30 }
 0x57e   :  { %v860_v51 = vpop.permute.xlu1 %859 }
 0x57f   :  { %6425 = vpow2.f32 %v1217_v31 }
 0x582   :  { %v864_v52 = vpop.permute.xlu1 %863 }
 0x583   :  { %v871_v59 = vcombine.low %v860_v51, %v864_v52  ;;  %v872_v60 = vcombine.high %v860_v51, %v864_v52 }
 0x585   :  { %v879_v62 = vrot.slane %v871_v59, %v6909_v8  ;;  %v886_v63 = vrot.slane %v872_v60, %v6909_v8 }
 0x58c   :  { %v7011_v32 = vpop.eup %6425 }
 0x58d   :  { %v1226_v34 = vsel %vm280_vm3, %v7011_v32, 0.0 }
 0x58e   :  { %1227 = vadd.xlane.f32.xlu0 %v1226_v34 }
 0x5a4   :  { %861 = vrot.lane.b32.xlu0 %v6893_v37, %s6679_s27 }
 0x5c4   :  { %v1201_v35 = vpop.xlane.xlu0 %1200 }
 0x5c5   :  { %v1211_v36 = vsub.f32 %v1195_v17, %v1201_v35 }
 0x5c7   :  { %v1215_v38 = vmul.f32 1.442695, %v1211_v36 }
 0x5c9   :  { %6427 = vpow2.f32 %v1215_v38 }
 0x5cc   :  { %v1207_v39 = vpop.xlane.xlu0 %1206 }
 0x5cd   :  { %v1213_v40 = vsub.f32 %v1197_v24, %v1207_v39 }
 0x5cf   :  { %v1219_v42 = vmul.f32 1.442695, %v1213_v40 }
 0x5d0   :  { %v1210_v37 = vpop.xlane.xlu0 %1209 }
 0x5d1   :  { %6429 = vpow2.f32 %v1219_v42  ;;  %v1214_v47 = vsub.f32 %v1198_v33, %v1210_v37 }
 0x5d3   :  { %v1221_v48 = vmul.f32 1.442695, %v1214_v47 }
 0x5d5   :  { %6431 = vpow2.f32 %v1221_v48 }
 0x5d6   :  { %v7017_v43 = vpop.eup %6427 }
 0x5d7   :  { %v1223_v44 = vsel %vm280_vm3, %v7017_v43, 0.0 }
 0x5d8   :  { %1224 = vadd.xlane.f32.xlu1 %v1223_v44 }
 0x5de   :  { %v7021_v45 = vpop.eup %6429 }
 0x5df   :  { %v1229_v46 = vsel %vm280_vm3, %v7021_v45, 0.0 }
 0x5e0   :  { %1230 = vadd.xlane.f32.xlu0 %v1229_v46 }
 0x5e2   :  { %v7027_v49 = vpop.eup %6431 }
 0x5e3   :  { %v1232_v50 = vsel %vm280_vm3, %v7027_v49, 0.0 }
 0x5e9   :  { %865 = vrot.lane.b32.xlu1 %v6915_v12, %s6679_s27 }
 0x60d   :  { %1233 = vadd.xlane.f32.xlu1 %v1232_v50 }
 0x617   :  { %v1228_v53 = vpop.xlane.xlu0 %1227 }
 0x618   :  { %6433 = vrcp.f32 %v1228_v53 }
 0x61b   :  { %v862_v61 = vpop.permute.xlu0 %861 }
 0x625   :  { %v6434_v33 = vpop.eup %6433 }
 0x626   :  { %v1240_v40 = vmul.f32 %v6434_v33, %v7011_v32 }
 0x628   :  { %v1244_v50 = vpack.c.bf16 %v1240_v40, %v1240_v40 }
 0x661   :  { %v1225_v54 = vpop.xlane.xlu1 %1224 }
 0x662   :  { %6435 = vrcp.f32 %v1225_v54 }
 0x665   :  { %v866_v55 = vpop.permute.xlu1 %865 }
 0x666   :  { %v887_v56 = vcombine.low %v862_v61, %v866_v55  ;;  %v888_v12 = vcombine.high %v862_v61, %v866_v55 }
 0x668   :  { %v895_v1 = vrot.slane %v887_v56, %v6909_v8  ;;  %v902_v2 = vrot.slane %v888_v12, %v6909_v8 }
 0x669   :  { %v1231_v11 = vpop.xlane.xlu0 %1230 }
 0x66a   :  { %v903_v57 = vcombine.low %v879_v62, %v895_v1  ;;  %v904_v3 = vcombine.high %v879_v62, %v895_v1  ;;  %v919_v4 = vcombine.low %v886_v63, %v902_v2  ;;  %v920_v5 = vcombine.high %v886_v63, %v902_v2 }
 0x66b   :  { %6437 = vrcp.f32 %v1231_v11 }
 0x66c   :  { %v911_v6 = vrot.slane %v903_v57, %v6925_v19  ;;  %v918_v7 = vrot.slane %v904_v3, %v6925_v19  ;;  %v927_v9 = vrot.slane %v919_v4, %v6925_v19  ;;  %v934_v10 = vrot.slane %v920_v5, %v6925_v19 }
 0x66e   :  { %v939_v13 = vcombine.low %v911_v6, %v918_v7  ;;  %v5729_v14 = vcombine.high %v911_v6, %v918_v7  ;;  %v955_v15 = vcombine.low %v927_v9, %v934_v10  ;;  %v5730_v16 = vcombine.high %v927_v9, %v934_v10 }
 0x66f   :  { %v6436_v29 = vpop.eup %6435 }
 0x670   :  { %v946_v17 = vrot.slane %v939_v13, %v6909_v8  ;;  %v954_v18 = vrot.slane %v5729_v14, %v6909_v8  ;;  %v962_v20 = vrot.slane %v955_v15, %v6909_v8  ;;  %v970_v21 = vrot.slane %v5730_v16, %v6909_v8 }
 0x671   :  { %v1239_v39 = vmul.f32 %v6436_v29, %v7017_v43 }
 0x672   :  { %v971_v22 = vcombine.low %v946_v17, %v954_v18  ;;  %v987_v23 = vcombine.low %v962_v20, %v970_v21  ;;  %v972_v24 = vcombine.high %v946_v17, %v954_v18  ;;  %v988_v25 = vcombine.high %v962_v20, %v970_v21 }
 0x673   :  { %v1243_v48 = vpack.c.bf16 %v1239_v39, %v1239_v39 }
 0x674   :  { %v979_v26 = vrot.slane %v971_v22, %v6925_v19  ;;  %v995_v41 = vrot.slane %v987_v23, %v6925_v19  ;;  %v986_v27 = vrot.slane %v972_v24, %v6925_v19  ;;  %v1002_v28 = vrot.slane %v988_v25, %v6925_v19  ;;  %v6391_v22 = vld [vmem:[%s7904_s7 + $0x8] sm:$0xff]  }
 0x676   :  { %v1003_v30 = vcombine.low %v979_v26, %v995_v41  ;;  %v1004_v31 = vcombine.high %v979_v26, %v995_v41  ;;  %v1005_v34 = vcombine.low %v986_v27, %v1002_v28  ;;  %v1006_v35 = vcombine.high %v986_v27, %v1002_v28 }
 0x678   :  { %v1007_v36 = vpack.c.bf16 %v1003_v30, %v1003_v30  ;;  %v1008_v38 = vpack.c.bf16 %v1004_v31, %v1004_v31  ;;  %v1009_v46 = vpack.c.bf16 %v1005_v34, %v1005_v34  ;;  %v1010_v37 = vpack.c.bf16 %v1006_v35, %v1006_v35  ;;  %v6438_v47 = vpop.eup %6437  ;;  %v6392_v30 = vld [vmem:[%s7904_s7] sm:$0xff]  }
 0x679   :  { %v1241_v51 = vmul.f32 %v6438_v47, %v7021_v45 }
 0x67a   :  { %v1251_v42 = vsel %vm287_vm2, %v1007_v36, 0  ;;  %v1297_v44 = vsel %vm287_vm2, %v1008_v38, 0  ;;  %v1343_v32 = vsel %vm287_vm2, %v1009_v46, 0  ;;  %v1389_v43 = vsel %vm287_vm2, %v1010_v37, 0 }
 0x67b   :  { %6037 = vmatpush3.bf16.msra.mxu0 %v1251_v42  ;;  %6043 = vmatpush3.bf16.msra.mxu1 %v1297_v44  ;;  %v1245_v52 = vpack.c.bf16 %v1241_v51, %v1241_v51 }
 0x67c   :  { %6048 = vmatprep.subr.bf16.mxu0 %v6685_v0  ;;  %6054 = vmatprep.subr.bf16.mxu1 %v6685_v0 }
 0x67e   :  { %6039 = vmatmul.mubr.msk.bf16.vlgmr.msra.gmra.mxu0 %vm280_vm3, %v1243_v48  ;;  %6045 = vmatmul.mubr.msk.bf16.vlgmr.msra.gmra.mxu1 %vm280_vm3, %v1244_v50 }
 0x67f   :  { %6049 = vmatpush3.bf16.msra.mxu0 %v1343_v32  ;;  %6055 = vmatpush3.bf16.msra.mxu1 %v1389_v43 }
 0x680   :  { %6050 = vmatprep.mubr.msk.bf16.mxu0 %vm6686_vm0, %v6685_v0  ;;  %6056 = vmatprep.mubr.msk.bf16.mxu1 %vm6686_vm0, %v6685_v0 }
 0x681   :  { %6060 = vmatprep.subr.bf16.mxu0 %v6685_v0  ;;  %6068 = vmatprep.subr.bf16.mxu1 %v6685_v0 }
 0x686   :  { %6051 = vmatmul.mubr.msk.bf16.vlgmr.msra.gmra.mxu0 %vm280_vm3, %v1245_v52 }
 0x687   :  { %6064 = vmatprep.mubr.msk.bf16.mxu0 %vm6686_vm0, %v6685_v0  ;;  %6061 = vmatpush3.bf16.msra.mxu0 %v6391_v22 }
 0x688   :  { %6062 = vmatprep.subr.bf16.mxu0 %v6685_v0 }
 0x68b   :  { %6063 = vmatpush3.bf16.msra.mxu0 %v6392_v30 }
 0x68c   :  { %6076 = vmatprep.subr.bf16.mxu0 %v6685_v0 }
 0x696   :  { %v1234_v53 = vpop.xlane.xlu1 %1233 }
 0x697   :  { %6439 = vrcp.f32 %v1234_v53 }
 0x6a4   :  { %v6440_v54 = vpop.eup %6439 }
 0x6a5   :  { %v1242_v59 = vmul.f32 %v6440_v54, %v7027_v49 }
 0x6a7   :  { %v1246_v60 = vpack.c.bf16 %v1242_v59, %v1242_v59 }
 0x6a9   :  { %6057 = vmatmul.mubr.msk.bf16.vlgmr.msra.gmra.mxu1 %vm280_vm3, %v1246_v60 }
 0x6aa   :  { %6072 = vmatprep.mubr.msk.bf16.mxu1 %vm6686_vm0, %v6685_v0 }
 0x73e   :  { %v1287_v45 = vpop.f32.mrf.mxu0  ;;  %v1333_v61 = vpop.f32.mrf.mxu1 }
 0x740   :  { %v6040_v55 = vpop.f32.mrf.mxu0  ;;  %v6046_v56 = vpop.f32.mrf.mxu1 }
 0x742   :  { %v1290_v12 = vpop.f32.mrf.mxu0  ;;  %v1336_v62 = vpop.f32.mrf.mxu1 }
 0x743   :  { %v5720_v12 = vld [vmem:[#allocation2] ss:$0 sm:$0xff]  ;;  %v6394_v62 = vld [vmem:[#allocation7] sm:$0xff]  }
 0x744   :  { %v6041_v63 = vpop.f32.mrf.mxu0  ;;  %v6047_v1 = vpop.f32.mrf.mxu1 }
 0x746   :  { %v1379_v2 = vpop.f32.mrf.mxu0 }
 0x747   :  { %v1431_v5 = vcombine.low %v1287_v45, %v1379_v2  ;;  %v1432_v49 = vcombine.high %v1287_v45, %v1379_v2  ;;  %v6393_v45 = vld [vmem:[#allocation7 + $0x8] sm:$0xff]   ;;  %v6396_v2 = vld [vmem:[#allocation5] sm:$0xff]  }
 0x748   :  { %v6052_v57 = vpop.f32.mrf.mxu0 }
 0x749   :  { %v1439_v11 = vrot.slane %v1431_v5, %v6909_v8  ;;  %v1446_v13 = vrot.slane %v1432_v49, %v6909_v8  ;;  %v5744_v57 = vld [vmem:[%s7905_s8] ss:$0 sm:$0xff] }
 0x74a   :  { %v1382_v3 = vpop.f32.mrf.mxu0 }
 0x74c   :  { %v6053_v4 = vpop.f32.mrf.mxu0 }
 0x769   :  { %v1425_v6 = vpop.f32.mrf.mxu1 }
 0x76a   :  { %v1447_v7 = vcombine.low %v1333_v61, %v1425_v6  ;;  %v1448_v9 = vcombine.high %v1333_v61, %v1425_v6  ;;  %v7104_v61 = vld [vmem:[%s7934_s26] sm:$0xff] }
 0x76b   :  { %v6058_v10 = vpop.f32.mrf.mxu1  ;;  %v491_v55 = vadd.f32 %v7104_v61, %v7006_v58  ;;  %v6395_v58 = vld [vmem:[#allocation5 + $0x8] sm:$0xff]  }
 0x76c   :  { %v1455_v14 = vrot.slane %v1447_v7, %v6909_v8  ;;  %v1462_v15 = vrot.slane %v1448_v9, %v6909_v8  ;;  %6069 = vmatpush3.bf16.msra.mxu1 %v6395_v58  ;;  %v5749_v10 = vld [vmem:[%s7909_s12] ss:$0 sm:$0xff] }
 0x76d   :  { %v1428_v16 = vpop.f32.mrf.mxu1  ;;  %v498_v63 = vadd.f32 %v5720_v12, %v491_v55  ;;  %6070 = vmatprep.subr.bf16.mxu1 %v6685_v0 }
 0x76e   :  { %v1463_v17 = vcombine.low %v1439_v11, %v1455_v14  ;;  %v1464_v18 = vcombine.high %v1439_v11, %v1455_v14  ;;  %v1479_v20 = vcombine.low %v1446_v13, %v1462_v15  ;;  %v1480_v21 = vcombine.high %v1446_v13, %v1462_v15 }
 0x76f   :  { %v6059_v23 = vpop.f32.mrf.mxu1  ;;  %v1710_v1 = vpack.c.bf16 %v498_v63, %v498_v63 }
 0x770   :  { %v1471_v24 = vrot.slane %v1463_v17, %v6925_v19  ;;  %v1478_v25 = vrot.slane %v1464_v18, %v6925_v19  ;;  %v1487_v33 = vrot.slane %v1479_v20, %v6925_v19  ;;  %v1494_v26 = vrot.slane %v1480_v21, %v6925_v19  ;;  %6071 = vmatpush3.bf16.msra.mxu1 %v6396_v2 }
 0x771   :  { %6084 = vmatprep.subr.bf16.mxu1 %v6685_v0 }
 0x772   :  { %v1499_v41 = vcombine.low %v1471_v24, %v1478_v25  ;;  %v5739_v27 = vcombine.high %v1471_v24, %v1478_v25  ;;  %v1515_v28 = vcombine.low %v1487_v33, %v1494_v26  ;;  %v5740_v29 = vcombine.high %v1487_v33, %v1494_v26 }
 0x774   :  { %v1506_v31 = vrot.slane %v1499_v41, %v6909_v8  ;;  %v1514_v34 = vrot.slane %v5739_v27, %v6909_v8  ;;  %v1522_v35 = vrot.slane %v1515_v28, %v6909_v8  ;;  %v1530_v36 = vrot.slane %v5740_v29, %v6909_v8 }
 0x776   :  { %v1532_v38 = vcombine.high %v1506_v31, %v1514_v34  ;;  %v1548_v39 = vcombine.high %v1522_v35, %v1530_v36  ;;  %v1531_v40 = vcombine.low %v1506_v31, %v1514_v34  ;;  %v1547_v42 = vcombine.low %v1522_v35, %v1530_v36 }
 0x778   :  { %v1546_v44 = vrot.slane %v1532_v38, %v6925_v19  ;;  %v1562_v46 = vrot.slane %v1548_v39, %v6925_v19  ;;  %v1539_v37 = vrot.slane %v1531_v40, %v6925_v19  ;;  %v1555_v47 = vrot.slane %v1547_v42, %v6925_v19 }
 0x77a   :  { %v1565_v48 = vcombine.low %v1546_v44, %v1562_v46  ;;  %v1564_v50 = vcombine.high %v1539_v37, %v1555_v47  ;;  %v1563_v32 = vcombine.low %v1539_v37, %v1555_v47  ;;  %v1566_v43 = vcombine.high %v1546_v44, %v1562_v46 }
 0x77c   :  { %1572 = vrot.lane.b32.xlu1 %v1565_v48, %s6693_s11  ;;  %1568 = vrot.lane.b32.xlu0 %v1564_v50, %s6694_s2 }
 0x780   :  { %1576 = vrot.lane.b32.xlu0 %v1566_v43, %s7924_s25 }
 0x7ee   :  { %v1569_v51 = vpop.permute.xlu0 %1568  ;;  %v1573_v52 = vpop.permute.xlu1 %1572 }
 0x7ef   :  { %v1579_v53 = vsel %vm280_vm3, %v1563_v32, %v1569_v51 }
 0x7f0   :  { %v1581_v59 = vsel %vm1580_vm4, %v1579_v53, %v1573_v52 }
 0x7f2   :  { %v1577_v54 = vpop.permute.xlu0 %1576 }
 0x7f3   :  { %v1583_v60 = vsel %vm1582_vm5, %v1581_v59, %v1577_v54 }
 0x7f4   :  { %v1584_v56 = vpack.c.bf16 %v1583_v60, %v1583_v60 }
 0x7f6   :  { %6065 = vmatmul.mubr.msk.bf16.vlgmr.msra.gmra.mxu0 %vm215_vm1, %v1584_v56 }
 0x7f7   :  { %6077 = vmatpush3.bf16.msra.mxu0 %v6393_v45  ;;  %6080 = vmatprep.mubr.msk.bf16.mxu0 %vm6686_vm0, %v6685_v0 }
 0x7f8   :  { %6078 = vmatprep.subr.bf16.mxu0 %v6685_v0 }
 0x7fb   :  { %6079 = vmatpush3.bf16.msra.mxu0 %v6394_v62 }
 0x7fc   :  { %6090 = vmatprep.subr.bf16.mxu0 %v6685_v0 }
 0x7fe   :  { %6081 = vmatmul.mubr.msk.bf16.vlgmr.msra.gmra.mxu0 %vm215_vm1, %v1710_v1  ;;  %v5745_v1 = vld [vmem:[%s7907_s10] ss:$0 sm:$0xff] }
 0x7ff   :  { %6092 = vmatprep.mubr.msk.bf16.mxu0 %vm6686_vm0, %v6685_v0 }
 0x8b6   :  { %v1634_v3 = vpop.f32.mrf.mxu0 }
 0x8b7   :  { %v1640_v4 = vadd.f32 %v7104_v61, %v1634_v3 }
 0x8b8   :  { %v6066_v5 = vpop.f32.mrf.mxu0 }
 0x8b9   :  { %v1647_v49 = vadd.f32 %v5744_v57, %v1640_v4 }
 0x8ba   :  { %v1637_v6 = vpop.f32.mrf.mxu0 }
 0x8bb   :  { %v1648_v7 = vpack.c.bf16 %v1647_v49, %v1647_v49 }
 0x8bc   :  { %v6067_v9 = vpop.f32.mrf.mxu0 }
 0x8bd   :  { %6073 = vmatmul.mubr.msk.bf16.vlgmr.msra.gmra.mxu1 %vm215_vm1, %v1648_v7 }
 0x8be   :  { %v1766_v11 = vpop.f32.mrf.mxu0  ;;  %6086 = vmatprep.mubr.msk.bf16.mxu1 %vm6686_vm0, %v6685_v0 }
 0x8bf   :  { %v7128_v13 = vadd.f32 %v5749_v10, %v1766_v11 }
 0x8c0   :  { %v6082_v14 = vpop.f32.mrf.mxu0 }
 0x8c1   :  { %1926 = vrot.lane.b32.xlu0 %v7128_v13, %s6689_s9  ;;  %1923 = vrot.lane.b32.xlu1 %v7128_v13, %s6688_s17 }
 0x8c2   :  { %v1769_v15 = vpop.f32.mrf.mxu0 }
 0x8c4   :  { %v6083_v16 = vpop.f32.mrf.mxu0 }
 0x8c5   :  { %1929 = vrot.lane.b32.xlu1 %v7128_v13, %s6690_s24 }
 0x933   :  { %v7136_v17 = vpop.permute.xlu0 %1926  ;;  %v7138_v18 = vpop.permute.xlu1 %1923 }
 0x934   :  { %v1932_v20 = vcombine.low %v7128_v13, %v7136_v17  ;;  %v1933_v21 = vcombine.high %v7128_v13, %v7136_v17 }
 0x936   :  { %v1940_v25 = vrot.slane %v1932_v20, %v6909_v8  ;;  %v1947_v33 = vrot.slane %v1933_v21, %v6909_v8 }
 0x937   :  { %v7144_v22 = vpop.permute.xlu1 %1929 }
 0x938   :  { %v1948_v23 = vcombine.low %v7138_v18, %v7144_v22  ;;  %v1949_v24 = vcombine.high %v7138_v18, %v7144_v22 }
 0x93a   :  { %v1956_v26 = vrot.slane %v1948_v23, %v6909_v8  ;;  %v1963_v41 = vrot.slane %v1949_v24, %v6909_v8 }
 0x93c   :  { %v1964_v27 = vcombine.low %v1940_v25, %v1956_v26  ;;  %v1965_v28 = vcombine.high %v1940_v25, %v1956_v26  ;;  %v1980_v29 = vcombine.low %v1947_v33, %v1963_v41  ;;  %v1981_v30 = vcombine.high %v1947_v33, %v1963_v41 }
 0x93e   :  { %v1972_v31 = vrot.slane %v1964_v27, %v6925_v19  ;;  %v1979_v34 = vrot.slane %v1965_v28, %v6925_v19  ;;  %v1988_v35 = vrot.slane %v1980_v29, %v6925_v19  ;;  %v1995_v36 = vrot.slane %v1981_v30, %v6925_v19 }
 0x940   :  { %v2000_v38 = vcombine.low %v1972_v31, %v1979_v34  ;;  %v5755_v39 = vcombine.high %v1972_v31, %v1979_v34  ;;  %v2016_v40 = vcombine.low %v1988_v35, %v1995_v36  ;;  %v5756_v42 = vcombine.high %v1988_v35, %v1995_v36 }
 0x942   :  { %v2007_v44 = vrot.slane %v2000_v38, %v6909_v8  ;;  %v2015_v46 = vrot.slane %v5755_v39, %v6909_v8  ;;  %v2023_v37 = vrot.slane %v2016_v40, %v6909_v8  ;;  %v2031_v47 = vrot.slane %v5756_v42, %v6909_v8 }
 0x944   :  { %v2032_v48 = vcombine.low %v2007_v44, %v2015_v46  ;;  %v2048_v50 = vcombine.low %v2023_v37, %v2031_v47  ;;  %v2033_v32 = vcombine.high %v2007_v44, %v2015_v46  ;;  %v2049_v43 = vcombine.high %v2023_v37, %v2031_v47 }
 0x946   :  { %v2040_v51 = vrot.slane %v2032_v48, %v6925_v19  ;;  %v2056_v52 = vrot.slane %v2048_v50, %v6925_v19  ;;  %v2047_v53 = vrot.slane %v2033_v32, %v6925_v19  ;;  %v2063_v54 = vrot.slane %v2049_v43, %v6925_v19 }
 0x948   :  { %v2064_v59 = vcombine.low %v2040_v51, %v2056_v52  ;;  %v2065_v60 = vcombine.high %v2040_v51, %v2056_v52  ;;  %v7166_v45 = vcombine.low %v2047_v53, %v2063_v54  ;;  %v7168_v55 = vcombine.high %v2047_v53, %v2063_v54 }
 0x94a   :  { %v2068_v56 = vpack.c.bf16 %v2064_v59, %v2064_v59  ;;  %v2069_v12 = vpack.c.bf16 %v2065_v60, %v2065_v60  ;;  %v2070_v50 = vpack.c.bf16 %v7166_v45, %v7166_v45  ;;  %v2071_v32 = vpack.c.bf16 %v7168_v55, %v7168_v55 }
 0x94c   :  { %v2228_v62 = vsel %vm280_vm3, %v2068_v56, 0  ;;  %v2274_v63 = vsel %vm280_vm3, %v2069_v12, 0  ;;  %v2320_v54 = vsel %vm280_vm3, %v2070_v50, 0  ;;  %v2366_v59 = vsel %vm280_vm3, %v2071_v32, 0 }
 0x94d   :  { %6085 = vmatpush3.bf16.xpose.msra.mxu1 %v2228_v62  ;;  %6091 = vmatpush3.bf16.xpose.msra.mxu0 %v2274_v63 }
 0x94e   :  { %6096 = vmatprep.subr.bf16.mxu1 %v6685_v0  ;;  %6102 = vmatprep.subr.bf16.mxu0 %v6685_v0 }
 0x97d   :  { %v1704_v58 = vpop.f32.mrf.mxu1 }
 0x97e   :  { %v1705_v2 = vadd.f32 %v5745_v1, %v1704_v58 }
 0x97f   :  { %v6074_v57 = vpop.f32.mrf.mxu1 }
 0x980   :  { %1773 = vrot.lane.b32.xlu0 %v1705_v2, %s6688_s17  ;;  %1776 = vrot.lane.b32.xlu1 %v1705_v2, %s6689_s9 }
 0x981   :  { %v1707_v3 = vpop.f32.mrf.mxu1 }
 0x983   :  { %v6075_v4 = vpop.f32.mrf.mxu1 }
 0x984   :  { %1779 = vrot.lane.b32.xlu0 %v1705_v2, %s6690_s24 }
 0x9f2   :  { %v1774_v5 = vpop.permute.xlu0 %1773  ;;  %v1777_v49 = vpop.permute.xlu1 %1776 }
 0x9f3   :  { %v1782_v6 = vcombine.low %v1705_v2, %v1777_v49  ;;  %v1783_v7 = vcombine.high %v1705_v2, %v1777_v49 }
 0x9f5   :  { %v1790_v14 = vrot.slane %v1782_v6, %v6909_v8  ;;  %v1797_v15 = vrot.slane %v1783_v7, %v6909_v8 }
 0x9f6   :  { %v1780_v9 = vpop.permute.xlu0 %1779 }
 0x9f7   :  { %v1798_v10 = vcombine.low %v1774_v5, %v1780_v9  ;;  %v1799_v11 = vcombine.high %v1774_v5, %v1780_v9 }
 0x9f9   :  { %v1806_v16 = vrot.slane %v1798_v10, %v6909_v8  ;;  %v1813_v20 = vrot.slane %v1799_v11, %v6909_v8 }
 0x9fb   :  { %v1814_v21 = vcombine.low %v1790_v14, %v1806_v16  ;;  %v1815_v23 = vcombine.high %v1790_v14, %v1806_v16  ;;  %v1830_v24 = vcombine.low %v1797_v15, %v1813_v20  ;;  %v1831_v25 = vcombine.high %v1797_v15, %v1813_v20 }
 0x9fd   :  { %v1822_v33 = vrot.slane %v1814_v21, %v6925_v19  ;;  %v1829_v26 = vrot.slane %v1815_v23, %v6925_v19  ;;  %v1838_v41 = vrot.slane %v1830_v24, %v6925_v19  ;;  %v1845_v27 = vrot.slane %v1831_v25, %v6925_v19 }
 0x9ff   :  { %v1850_v28 = vcombine.low %v1822_v33, %v1829_v26  ;;  %v5753_v29 = vcombine.high %v1822_v33, %v1829_v26  ;;  %v1866_v30 = vcombine.low %v1838_v41, %v1845_v27  ;;  %v5754_v31 = vcombine.high %v1838_v41, %v1845_v27 }
 0xa01   :  { %v1857_v34 = vrot.slane %v1850_v28, %v6909_v8  ;;  %v1865_v35 = vrot.slane %v5753_v29, %v6909_v8  ;;  %v1873_v36 = vrot.slane %v1866_v30, %v6909_v8  ;;  %v1881_v38 = vrot.slane %v5754_v31, %v6909_v8 }
 0xa03   :  { %v1882_v39 = vcombine.low %v1857_v34, %v1865_v35  ;;  %v1898_v40 = vcombine.low %v1873_v36, %v1881_v38  ;;  %v1883_v42 = vcombine.high %v1857_v34, %v1865_v35  ;;  %v1899_v44 = vcombine.high %v1873_v36, %v1881_v38 }
 0xa05   :  { %v1890_v46 = vrot.slane %v1882_v39, %v6925_v19  ;;  %v1906_v37 = vrot.slane %v1898_v40, %v6925_v19  ;;  %v1897_v52 = vrot.slane %v1883_v42, %v6925_v19  ;;  %v1913_v53 = vrot.slane %v1899_v44, %v6925_v19 }
 0xa07   :  { %v1914_v47 = vcombine.low %v1890_v46, %v1906_v37  ;;  %v1915_v48 = vcombine.high %v1890_v46, %v1906_v37  ;;  %v1916_v60 = vcombine.low %v1897_v52, %v1913_v53  ;;  %v1917_v45 = vcombine.high %v1897_v52, %v1913_v53 }
 0xa09   :  { %v1918_v43 = vpack.c.bf16 %v1914_v47, %v1914_v47  ;;  %v1919_v51 = vpack.c.bf16 %v1915_v48, %v1915_v48  ;;  %v1920_v55 = vpack.c.bf16 %v1916_v60, %v1916_v60  ;;  %v1921_v56 = vpack.c.bf16 %v1917_v45, %v1917_v45 }
 0xa0b   :  { %6087 = vmatmul.mubr.msk.bf16.vlgmr.msra.gmra.mxu1 %vm280_vm3, %v1918_v43  ;;  %6093 = vmatmul.mubr.msk.bf16.vlgmr.msra.gmra.mxu0 %vm280_vm3, %v1919_v51 }
 0xa0c   :  { %6097 = vmatpush3.bf16.xpose.msra.mxu1 %v2320_v54  ;;  %6103 = vmatpush3.bf16.xpose.msra.mxu0 %v2366_v59 }
 0xa0d   :  { %6098 = vmatprep.mubr.msk.bf16.mxu1 %vm6686_vm0, %v6685_v0  ;;  %6104 = vmatprep.mubr.msk.bf16.mxu0 %vm6686_vm0, %v6685_v0 }
 0xa0e   :  { %6108 = vmatprep.subr.bf16.mxu1 %v6685_v0  ;;  %6114 = vmatprep.subr.bf16.mxu0 %v6685_v0 }
 0xa13   :  { %6099 = vmatmul.mubr.msk.bf16.vlgmr.msra.gmra.mxu1 %vm280_vm3, %v1920_v55  ;;  %6105 = vmatmul.mubr.msk.bf16.vlgmr.msra.gmra.mxu0 %vm280_vm3, %v1921_v56 }
 0xa14   :  { %6110 = vmatprep.mubr.msk.bf16.mxu1 %vm6686_vm0, %v6685_v0  ;;  %6116 = vmatprep.mubr.msk.bf16.mxu0 %vm6686_vm0, %v6685_v0 }
 0xacb   :  { %v2264_v12 = vpop.f32.mrf.mxu1  ;;  %v2310_v62 = vpop.f32.mrf.mxu0 }
 0xacc   :  { %v2408_v63 = vmul.f32 0.35355338, %v2264_v12  ;;  %v2409_v1 = vmul.f32 0.35355338, %v2310_v62 }
 0xacd   :  { %v6088_v58 = vpop.f32.mrf.mxu1  ;;  %v6094_v2 = vpop.f32.mrf.mxu0 }
 0xace   :  { %v2412_v57 = vsel %vm280_vm3, %v2408_v63, -inf  ;;  %v2415_v3 = vsel %vm280_vm3, %v2409_v1, -inf }
 0xacf   :  { %2413 = vmax.xlane.f32.xlu1 %v2412_v57  ;;  %v2267_v4 = vpop.f32.mrf.mxu1  ;;  %2416 = vmax.xlane.f32.xlu0 %v2415_v3  ;;  %v2313_v5 = vpop.f32.mrf.mxu0 }
 0xad1   :  { %v6089_v49 = vpop.f32.mrf.mxu1  ;;  %v6095_v6 = vpop.f32.mrf.mxu0 }
 0xad3   :  { %v2356_v7 = vpop.f32.mrf.mxu1  ;;  %v2402_v9 = vpop.f32.mrf.mxu0 }
 0xad4   :  { %v2410_v10 = vmul.f32 0.35355338, %v2356_v7  ;;  %v2411_v11 = vmul.f32 0.35355338, %v2402_v9 }
 0xad5   :  { %v6100_v14 = vpop.f32.mrf.mxu1  ;;  %v6106_v15 = vpop.f32.mrf.mxu0 }
 0xad6   :  { %v2418_v16 = vsel %vm280_vm3, %v2410_v10, -inf  ;;  %v2421_v20 = vsel %vm280_vm3, %v2411_v11, -inf }
 0xad7   :  { %v2359_v21 = vpop.f32.mrf.mxu1  ;;  %2419 = vmax.xlane.f32.xlu0 %v2418_v16  ;;  %2422 = vmax.xlane.f32.xlu1 %v2421_v20  ;;  %v2405_v23 = vpop.f32.mrf.mxu0 }
 0xad9   :  { %v6101_v24 = vpop.f32.mrf.mxu1  ;;  %v6107_v25 = vpop.f32.mrf.mxu0 }
 0xae8   :  { %2074 = vrot.lane.b32.xlu1 %v7138_v18, %s6687_s30 }
 0xaed   :  { %2072 = vrot.lane.b32.xlu0 %v7128_v13, %s6687_s30 }
 0xb58   :  { %v2414_v33 = vpop.xlane.xlu1 %2413  ;;  %v2417_v26 = vpop.xlane.xlu0 %2416 }
 0xb59   :  { %v2424_v41 = vsub.f32 %v2408_v63, %v2414_v33  ;;  %v2425_v27 = vsub.f32 %v2409_v1, %v2417_v26 }
 0xb5b   :  { %v2428_v28 = vmul.f32 1.442695, %v2424_v41  ;;  %v2430_v29 = vmul.f32 1.442695, %v2425_v27 }
 0xb5d   :  { %6441 = vpow2.f32 %v2428_v28 }
 0xb5e   :  { %6443 = vpow2.f32 %v2430_v29 }
 0xb60   :  { %v2423_v13 = vpop.xlane.xlu1 %2422  ;;  %v2420_v35 = vpop.xlane.xlu0 %2419 }
 0xb61   :  { %v2427_v36 = vsub.f32 %v2411_v11, %v2423_v13  ;;  %v2426_v38 = vsub.f32 %v2410_v10, %v2420_v35 }
 0xb63   :  { %v2434_v39 = vmul.f32 1.442695, %v2427_v36  ;;  %v2432_v40 = vmul.f32 1.442695, %v2426_v38 }
 0xb64   :  { %v2075_v37 = vpop.permute.xlu1 %2074 }
 0xb65   :  { %6445 = vpow2.f32 %v2434_v39 }
 0xb66   :  { %6447 = vpow2.f32 %v2432_v40 }
 0xb6a   :  { %v7224_v30 = vpop.eup %6441 }
 0xb6b   :  { %v7226_v31 = vpop.eup %6443  ;;  %v2436_v34 = vsel %vm280_vm3, %v7224_v30, 0.0 }
 0xb6c   :  { %2437 = vadd.xlane.f32.xlu0 %v2436_v34  ;;  %v2439_v18 = vsel %vm280_vm3, %v7226_v31, 0.0 }
 0xb6d   :  { %2440 = vadd.xlane.f32.xlu1 %v2439_v18 }
 0xb72   :  { %v7236_v42 = vpop.eup %6445 }
 0xb73   :  { %v7238_v44 = vpop.eup %6447  ;;  %v2445_v46 = vsel %vm280_vm3, %v7236_v42, 0.0 }
 0xb7e   :  { %2076 = vrot.lane.b32.xlu1 %v7136_v17, %s6687_s30  ;;  %v2442_v17 = vsel %vm280_vm3, %v7238_v44, 0.0 }
 0xb82   :  { %2078 = vrot.lane.b32.xlu0 %v7144_v22, %s6687_s30  ;;  %v2073_v22 = vpop.permute.xlu0 %2072 }
 0xba1   :  { %2446 = vadd.xlane.f32.xlu0 %v2445_v46 }
 0xba2   :  { %2443 = vadd.xlane.f32.xlu1 %v2442_v17 }
 0xbf5   :  { %v2438_v47 = vpop.xlane.xlu0 %2437 }
 0xbf6   :  { %v2441_v48 = vpop.xlane.xlu1 %2440  ;;  %6449 = vrcp.f32 %v2438_v47 }
 0xbf7   :  { %6451 = vrcp.f32 %v2441_v48 }
 0xbf9   :  { %v2079_v50 = vpop.permute.xlu0 %2078 }
 0xbfa   :  { %v2100_v32 = vcombine.low %v2075_v37, %v2079_v50  ;;  %v2101_v43 = vcombine.high %v2075_v37, %v2079_v50  ;;  %v2077_v51 = vpop.permute.xlu1 %2076 }
 0xbfb   :  { %v2084_v52 = vcombine.low %v2073_v22, %v2077_v51  ;;  %v2085_v53 = vcombine.high %v2073_v22, %v2077_v51 }
 0xbfc   :  { %v2108_v54 = vrot.slane %v2100_v32, %v6909_v8  ;;  %v2115_v59 = vrot.slane %v2101_v43, %v6909_v8 }
 0xbfd   :  { %v2092_v60 = vrot.slane %v2084_v52, %v6909_v8  ;;  %v2099_v45 = vrot.slane %v2085_v53, %v6909_v8 }
 0xbff   :  { %v2116_v55 = vcombine.low %v2092_v60, %v2108_v54  ;;  %v2117_v56 = vcombine.high %v2092_v60, %v2108_v54  ;;  %v2132_v12 = vcombine.low %v2099_v45, %v2115_v59  ;;  %v2133_v62 = vcombine.high %v2099_v45, %v2115_v59 }
 0xc01   :  { %v2124_v63 = vrot.slane %v2116_v55, %v6925_v19  ;;  %v2131_v1 = vrot.slane %v2117_v56, %v6925_v19  ;;  %v2140_v58 = vrot.slane %v2132_v12, %v6925_v19  ;;  %v2147_v2 = vrot.slane %v2133_v62, %v6925_v19 }
 0xc03   :  { %v2152_v57 = vcombine.low %v2124_v63, %v2131_v1  ;;  %v5757_v3 = vcombine.high %v2124_v63, %v2131_v1  ;;  %v2168_v4 = vcombine.low %v2140_v58, %v2147_v2  ;;  %v5758_v5 = vcombine.high %v2140_v58, %v2147_v2  ;;  %v6450_v16 = vpop.eup %6449 }
 0xc04   :  { %v6452_v25 = vpop.eup %6451  ;;  %v2452_v34 = vmul.f32 %v6450_v16, %v7224_v30 }
 0xc05   :  { %v2159_v49 = vrot.slane %v2152_v57, %v6909_v8  ;;  %v2167_v6 = vrot.slane %v5757_v3, %v6909_v8  ;;  %v2175_v7 = vrot.slane %v2168_v4, %v6909_v8  ;;  %v2183_v9 = vrot.slane %v5758_v5, %v6909_v8 }
 0xc06   :  { %v2453_v18 = vmul.f32 %v6452_v25, %v7226_v31  ;;  %v2456_v39 = vpack.c.bf16 %v2452_v34, %v2452_v34 }
 0xc07   :  { %v2184_v10 = vcombine.low %v2159_v49, %v2167_v6  ;;  %v2200_v11 = vcombine.low %v2175_v7, %v2183_v9  ;;  %v2185_v14 = vcombine.high %v2159_v49, %v2167_v6  ;;  %v2201_v15 = vcombine.high %v2175_v7, %v2183_v9 }
 0xc08   :  { %v2457_v40 = vpack.c.bf16 %v2453_v18, %v2453_v18 }
 0xc09   :  { %v2192_v20 = vrot.slane %v2184_v10, %v6925_v19  ;;  %v2208_v21 = vrot.slane %v2200_v11, %v6925_v19  ;;  %v2199_v23 = vrot.slane %v2185_v14, %v6925_v19  ;;  %v2215_v24 = vrot.slane %v2201_v15, %v6925_v19  ;;  %v6397_v11 = vld [vmem:[#allocation8 + $0x8] sm:$0xff]  }
 0xc0b   :  { %v2216_v33 = vcombine.low %v2192_v20, %v2208_v21  ;;  %v2217_v26 = vcombine.high %v2192_v20, %v2208_v21  ;;  %v2218_v41 = vcombine.low %v2199_v23, %v2215_v24  ;;  %v2219_v27 = vcombine.high %v2199_v23, %v2215_v24 }
 0xc0d   :  { %v2220_v28 = vpack.c.bf16 %v2216_v33, %v2216_v33  ;;  %v2221_v29 = vpack.c.bf16 %v2217_v26, %v2217_v26  ;;  %v2222_v36 = vpack.c.bf16 %v2218_v41, %v2218_v41  ;;  %v2223_v38 = vpack.c.bf16 %v2219_v27, %v2219_v27  ;;  %v6398_v26 = vld [vmem:[#allocation8] sm:$0xff]  }
 0xc0f   :  { %v2464_v13 = vsel %vm287_vm2, %v2220_v28, 0  ;;  %v2510_v35 = vsel %vm287_vm2, %v2221_v29, 0  ;;  %v2556_v30 = vsel %vm287_vm2, %v2222_v36, 0  ;;  %v2602_v31 = vsel %vm287_vm2, %v2223_v38, 0 }
 0xc10   :  { %6109 = vmatpush3.bf16.msra.mxu1 %v2464_v13  ;;  %6115 = vmatpush3.bf16.msra.mxu0 %v2510_v35 }
 0xc11   :  { %6120 = vmatprep.subr.bf16.mxu1 %v6685_v0  ;;  %6126 = vmatprep.subr.bf16.mxu0 %v6685_v0 }
 0xc13   :  { %6111 = vmatmul.mubr.msk.bf16.vlgmr.msra.gmra.mxu1 %vm280_vm3, %v2456_v39  ;;  %6117 = vmatmul.mubr.msk.bf16.vlgmr.msra.gmra.mxu0 %vm280_vm3, %v2457_v40 }
 0xc14   :  { %6121 = vmatpush3.bf16.msra.mxu1 %v2556_v30  ;;  %6127 = vmatpush3.bf16.msra.mxu0 %v2602_v31 }
 0xc15   :  { %6122 = vmatprep.mubr.msk.bf16.mxu1 %vm6686_vm0, %v6685_v0  ;;  %6128 = vmatprep.mubr.msk.bf16.mxu0 %vm6686_vm0, %v6685_v0 }
 0xc16   :  { %6132 = vmatprep.subr.bf16.mxu1 %v6685_v0  ;;  %6140 = vmatprep.subr.bf16.mxu0 %v6685_v0 }
 0xc2a   :  { %v2447_v46 = vpop.xlane.xlu0 %2446 }
 0xc2b   :  { %6453 = vrcp.f32 %v2447_v46  ;;  %v2444_v17 = vpop.xlane.xlu1 %2443 }
 0xc2c   :  { %6455 = vrcp.f32 %v2444_v17 }
 0xc38   :  { %v6454_v22 = vpop.eup %6453 }
 0xc39   :  { %v6456_v37 = vpop.eup %6455  ;;  %v2455_v47 = vmul.f32 %v6454_v22, %v7236_v42 }
 0xc3a   :  { %v2454_v48 = vmul.f32 %v6456_v37, %v7238_v44 }
 0xc3b   :  { %v2459_v50 = vpack.c.bf16 %v2455_v47, %v2455_v47 }
 0xc3c   :  { %v2458_v32 = vpack.c.bf16 %v2454_v48, %v2454_v48 }
 0xc3d   :  { %6129 = vmatmul.mubr.msk.bf16.vlgmr.msra.gmra.mxu0 %vm280_vm3, %v2459_v50 }
 0xc3e   :  { %6123 = vmatmul.mubr.msk.bf16.vlgmr.msra.gmra.mxu1 %vm280_vm3, %v2458_v32  ;;  %6144 = vmatprep.mubr.msk.bf16.mxu0 %vm6686_vm0, %v6685_v0 }
 0xc3f   :  { %6136 = vmatprep.mubr.msk.bf16.mxu1 %vm6686_vm0, %v6685_v0  ;;  %6133 = vmatpush3.bf16.msra.mxu1 %v6397_v11  ;;  %v6514_v11 = vld [vmem:[%s7933_s3 + $0x8] sm:$0xff]  }
 0xc40   :  { %6134 = vmatprep.subr.bf16.mxu1 %v6685_v0 }
 0xc43   :  { %6135 = vmatpush3.bf16.msra.mxu1 %v6398_v26  ;;  %v5775_v26 = vld [vmem:[%s7915_s18] ss:$0 sm:$0xff] }
 0xc44   :  { %6148 = vmatprep.subr.bf16.mxu1 %v6685_v0 }
 0xcd3   :  { %v2500_v43 = vpop.f32.mrf.mxu1  ;;  %v2546_v51 = vpop.f32.mrf.mxu0 }
 0xcd5   :  { %v6112_v52 = vpop.f32.mrf.mxu1  ;;  %v6118_v53 = vpop.f32.mrf.mxu0 }
 0xcd7   :  { %v2503_v54 = vpop.f32.mrf.mxu1  ;;  %v2549_v42 = vpop.f32.mrf.mxu0 }
 0xcd9   :  { %v6113_v59 = vpop.f32.mrf.mxu1  ;;  %v6119_v44 = vpop.f32.mrf.mxu0 }
 0xcfd   :  { %v2638_v60 = vpop.f32.mrf.mxu0 }
 0xcfe   :  { %v2592_v45 = vpop.f32.mrf.mxu1  ;;  %v2660_v55 = vcombine.low %v2546_v51, %v2638_v60  ;;  %v2661_v56 = vcombine.high %v2546_v51, %v2638_v60  ;;  %v5769_v51 = vld [vmem:[%s7911_s14] ss:$0 sm:$0xff] }
 0xcff   :  { %v2644_v12 = vcombine.low %v2500_v43, %v2592_v45  ;;  %v2645_v62 = vcombine.high %v2500_v43, %v2592_v45  ;;  %v6130_v63 = vpop.f32.mrf.mxu0 }
 0xd00   :  { %v2668_v1 = vrot.slane %v2660_v55, %v6909_v8  ;;  %v2675_v58 = vrot.slane %v2661_v56, %v6909_v8  ;;  %v6124_v2 = vpop.f32.mrf.mxu1  ;;  %v6399_v63 = vld [vmem:[#allocation10 + $0x8] sm:$0xff]  }
 0xd01   :  { %v2652_v57 = vrot.slane %v2644_v12, %v6909_v8  ;;  %v2659_v3 = vrot.slane %v2645_v62, %v6909_v8  ;;  %v2641_v4 = vpop.f32.mrf.mxu0  ;;  %6141 = vmatpush3.bf16.msra.mxu0 %v6399_v63 }
 0xd02   :  { %v2595_v5 = vpop.f32.mrf.mxu1  ;;  %6142 = vmatprep.subr.bf16.mxu0 %v6685_v0 }
 0xd03   :  { %v2676_v49 = vcombine.low %v2652_v57, %v2668_v1  ;;  %v2677_v6 = vcombine.high %v2652_v57, %v2668_v1  ;;  %v2692_v7 = vcombine.low %v2659_v3, %v2675_v58  ;;  %v2693_v9 = vcombine.high %v2659_v3, %v2675_v58  ;;  %v6131_v10 = vpop.f32.mrf.mxu0  ;;  %v6400_v1 = vld [vmem:[#allocation10] sm:$0xff]   ;;  %v5773_v5 = vld [vmem:[%s7912_s15] ss:$0 sm:$0xff] }
 0xd04   :  { %v6125_v14 = vpop.f32.mrf.mxu1  ;;  %v6402_v58 = vld [vmem:[%s7916_s19 + $0x30] sm:$0xff]  }
 0xd05   :  { %v2684_v15 = vrot.slane %v2676_v49, %v6925_v19  ;;  %v2691_v16 = vrot.slane %v2677_v6, %v6925_v19  ;;  %v2700_v20 = vrot.slane %v2692_v7, %v6925_v19  ;;  %v2707_v21 = vrot.slane %v2693_v9, %v6925_v19  ;;  %6143 = vmatpush3.bf16.msra.mxu0 %v6400_v1  ;;  %v5774_v6 = vld [vmem:[%s7913_s16] ss:$0 sm:$0xff]  ;;  %v7346_v14 = vld [vmem:[%s7934_s26 + $0x8] sm:$0xff] }
 0xd06   :  { %6168 = vmatprep.subr.bf16.mxu0 %v6685_v0 }
 0xd07   :  { %v2712_v23 = vcombine.low %v2684_v15, %v2691_v16  ;;  %v5767_v24 = vcombine.high %v2684_v15, %v2691_v16  ;;  %v2728_v25 = vcombine.low %v2700_v20, %v2707_v21  ;;  %v5768_v33 = vcombine.high %v2700_v20, %v2707_v21  ;;  %v6515_v16 = vld [vmem:[%s7933_s3] sm:$0xff]   ;;  %v6403_v20 = vld [vmem:[%s7916_s19 + $0x28] sm:$0xff]  }
 0xd08   :  { %v3052_v15 = vpack.c.bf16 %v7346_v14, %v7346_v14  ;;  %v6404_v21 = vld [vmem:[%s7916_s19 + $0x20] sm:$0xff]  }
 0xd09   :  { %v2719_v41 = vrot.slane %v2712_v23, %v6909_v8  ;;  %v2727_v27 = vrot.slane %v5767_v24, %v6909_v8  ;;  %v2735_v28 = vrot.slane %v2728_v25, %v6909_v8  ;;  %v2743_v29 = vrot.slane %v5768_v33, %v6909_v8  ;;  %v6405_v23 = vld [vmem:[%s7916_s19 + $0x18] sm:$0xff]   ;;  %v6406_v24 = vld [vmem:[%s7916_s19 + $0x10] sm:$0xff]   ;;  %v6407_v25 = vld [vmem:[%s7916_s19 + $0x8] sm:$0xff]  }
 0xd0a   :  { %v6408_v33 = vld [vmem:[%s7916_s19] sm:$0xff]  }
 0xd0b   :  { %v2745_v34 = vcombine.high %v2719_v41, %v2727_v27  ;;  %v2761_v18 = vcombine.high %v2735_v28, %v2743_v29  ;;  %v2744_v13 = vcombine.low %v2719_v41, %v2727_v27  ;;  %v2760_v35 = vcombine.low %v2735_v28, %v2743_v29 }
 0xd0d   :  { %v2759_v36 = vrot.slane %v2745_v34, %v6925_v19  ;;  %v2775_v38 = vrot.slane %v2761_v18, %v6925_v19  ;;  %v2752_v39 = vrot.slane %v2744_v13, %v6925_v19  ;;  %v2768_v40 = vrot.slane %v2760_v35, %v6925_v19  ;;  %v6516_v35 = vld [vmem:[%s7935_s0] ss:$0 sm:$0xff] }
 0xd0f   :  { %v2778_v30 = vcombine.low %v2759_v36, %v2775_v38  ;;  %v2777_v31 = vcombine.high %v2752_v39, %v2768_v40  ;;  %v2776_v46 = vcombine.low %v2752_v39, %v2768_v40  ;;  %v2779_v17 = vcombine.high %v2759_v36, %v2775_v38 }
 0xd11   :  { %2785 = vrot.lane.b32.xlu1 %v2778_v30, %s6693_s11  ;;  %2781 = vrot.lane.b32.xlu0 %v2777_v31, %s6694_s2 }
 0xd15   :  { %2789 = vrot.lane.b32.xlu1 %v2779_v17, %s7924_s25 }
 0xd83   :  { %v2786_v22 = vpop.permute.xlu1 %2785  ;;  %v2782_v37 = vpop.permute.xlu0 %2781 }
 0xd84   :  { %v2792_v47 = vsel %vm280_vm3, %v2776_v46, %v2782_v37 }
 0xd85   :  { %v2793_v50 = vsel %vm1580_vm4, %v2792_v47, %v2786_v22 }
 0xd87   :  { %v2790_v48 = vpop.permute.xlu1 %2789 }
 0xd88   :  { %v2794_v32 = vsel %vm1582_vm5, %v2793_v50, %v2790_v48  ;;  %v6517_v48 = vld [vmem:[%s7936_s4 + $0x8] sm:$0xff]   ;;  %v6518_v50 = vld [vmem:[%s7936_s4] sm:$0xff]  }
 0xd89   :  { %v2795_v43 = vpack.c.bf16 %v2794_v32, %v2794_v32 }
 0xd8b   :  { %6137 = vmatmul.mubr.msk.bf16.vlgmr.msra.gmra.mxu1 %vm215_vm1, %v2795_v43 }
 0xd8c   :  { %6164 = vmatprep.mubr.msk.bf16.mxu1 %vm6686_vm0, %v6685_v0 }
 0xe4b   :  { %v2851_v52 = vpop.f32.mrf.mxu1 }
 0xe4c   :  { %v2852_v53 = vadd.f32 %v5769_v51, %v2851_v52 }
 0xe4d   :  { %v6138_v54 = vpop.f32.mrf.mxu1 }
 0xe4e   :  { %v7315_v42 = vadd.f32 %v7104_v61, %v2852_v53  ;;  %v6401_v61 = vld [vmem:[%s7916_s19 + $0x38] sm:$0xff]   ;;  %v5779_v53 = vld [vmem:[%s7917_s20] ss:$0 sm:$0xff] }
 0xe4f   :  { %v2854_v59 = vpop.f32.mrf.mxu1  ;;  %6149 = vmatpush3.bf16.msra.mxu1 %v6401_v61 }
 0xe50   :  { %v2858_v44 = vsel %vm215_vm1, %v7315_v42, 0.0  ;;  %6150 = vmatprep.subr.bf16.mxu1 %v6685_v0 }
 0xe51   :  { %2859 = vadd.xlane.f32.xlu0 %v2858_v44  ;;  %v6139_v60 = vpop.f32.mrf.mxu1 }
 0xe53   :  { %6151 = vmatpush3.bf16.msra.mxu1 %v6402_v58 }
 0xe54   :  { %6152 = vmatprep.subr.bf16.mxu1 %v6685_v0 }
 0xe57   :  { %6153 = vmatpush3.bf16.msra.mxu1 %v6403_v20 }
 0xe58   :  { %6154 = vmatprep.subr.bf16.mxu1 %v6685_v0 }
 0xe5b   :  { %6155 = vmatpush3.bf16.msra.mxu1 %v6404_v21 }
 0xe5c   :  { %6156 = vmatprep.subr.bf16.mxu1 %v6685_v0 }
 0xe5f   :  { %6157 = vmatpush3.bf16.msra.mxu1 %v6405_v23 }
 0xe60   :  { %6158 = vmatprep.subr.bf16.mxu1 %v6685_v0 }
 0xe63   :  { %6159 = vmatpush3.bf16.msra.mxu1 %v6406_v24 }
 0xe64   :  { %6160 = vmatprep.subr.bf16.mxu1 %v6685_v0 }
 0xe67   :  { %6161 = vmatpush3.bf16.msra.mxu1 %v6407_v25 }
 0xe68   :  { %6162 = vmatprep.subr.bf16.mxu1 %v6685_v0 }
 0xe6b   :  { %6163 = vmatpush3.bf16.msra.mxu1 %v6408_v33 }
 0xe6c   :  { %6198 = vmatprep.subr.bf16.mxu1 %v6685_v0 }
 0xeda   :  { %v2860_v45 = vpop.xlane.xlu0 %2859 }
 0xedb   :  { %v2862_v55 = vmul.f32 0.03125, %v2860_v45 }
 0xedd   :  { %v2863_v56 = vsub.f32 %v7315_v42, %v2862_v55 }
 0xedf   :  { %v2864_v12 = vmul.f32 %v2863_v56, %v2863_v56 }
 0xee1   :  { %v2865_v62 = vsel %vm215_vm1, %v2864_v12, 0.0 }
 0xee2   :  { %2866 = vadd.xlane.f32.xlu1 %v2865_v62 }
 0xf6b   :  { %v2867_v2 = vpop.xlane.xlu1 %2866 }
 0xf6c   :  { %v2868_v57 = vmul.f32 0.03125, %v2867_v2 }
 0xf6e   :  { %v2869_v3 = vadd.f32 1e-05, %v2868_v57 }
 0xf70   :  { %6457 = vrsqrt.f32 %v2869_v3 }
 0xf7d   :  { %v6458_v4 = vpop.eup %6457 }
 0xf7e   :  { %v2871_v49 = vmul.f32 %v6458_v4, %v2863_v56 }
 0xf80   :  { %v2878_v7 = vmul.f32 %v5773_v5, %v2871_v49 }
 0xf82   :  { %v2885_v9 = vadd.f32 %v5774_v6, %v2878_v7 }
 0xf84   :  { %v2886_v10 = vpack.c.bf16 %v2885_v9, %v2885_v9 }
 0xf86   :  { %6145 = vmatmul.mubr.msk.bf16.vlgmr.msra.gmra.mxu0 %vm215_vm1, %v2886_v10 }
 0xf87   :  { %6169 = vmatpush3.bf16.msra.mxu0 %v6514_v11  ;;  %6172 = vmatprep.mubr.msk.bf16.mxu0 %vm6686_vm0, %v6685_v0 }
 0xf88   :  { %6170 = vmatprep.subr.bf16.mxu0 %v6685_v0 }
 0xf8b   :  { %6171 = vmatpush3.bf16.msra.mxu0 %v6515_v16 }
 0xf8e   :  { %6173 = vmatmul.mubr.msk.bf16.vlgmr.msra.gmra.mxu0 %vm215_vm1, %v3052_v15 }
0x1046   :  { %v2942_v41 = vpop.f32.mrf.mxu0 }
0x1047   :  { %v2943_v27 = vadd.f32 %v5775_v26, %v2942_v41 }
0x1048   :  { %v6146_v28 = vpop.f32.mrf.mxu0 }
0x1049   :  { %v2949_v29 = vmul.f32 0.70710677, %v2943_v27  ;;  %v2948_v17 = vmul.f32 0.5, %v2943_v27 }
0x104a   :  { %v2945_v34 = vpop.f32.mrf.mxu0 }
0x104b   :  { %6459 = verf.f32 %v2949_v29 }
0x104c   :  { %v6147_v18 = vpop.f32.mrf.mxu0 }
0x104e   :  { %v3090_v13 = vpop.f32.mrf.mxu0 }
0x104f   :  { %v3091_v36 = vadd.f32 %v6516_v35, %v3090_v13 }
0x1050   :  { %v6174_v38 = vpop.f32.mrf.mxu0 }
0x1051   :  { %v3096_v39 = vmax.f32 %v3091_v36, 0.0  ;;  %v6519_v36 = vld [vmem:[%s7903_s6] ss:$0 sm:$0xff] }
0x1052   :  { %v3093_v40 = vpop.f32.mrf.mxu0 }
0x1053   :  { %v7385_v30 = vpack.c.bf16 %v3096_v39, %v3096_v39 }
0x1054   :  { %v6175_v31 = vpop.f32.mrf.mxu0 }
0x1055   :  { %3098 = vxpose.xlu1.c.b16.start.end [1/1] (short) (narrow) %v7385_v30, 32  ;;  %3115 = vrot.lane.b32.xlu0 %v7385_v30, %s6687_s30 }
0x1058   :  { %v6460_v46 = vpop.eup %6459 }
0x1059   :  { %v2951_v22 = vadd.f32 1.0, %v6460_v46 }
0x105b   :  { %v2952_v37 = vmul.f32 %v2951_v22, %v2948_v17 }
0x105d   :  { %v2953_v47 = vpack.c.bf16 %v2952_v37, %v2952_v37 }
0x105f   :  { %6165 = vmatmul.mubr.bf16.vlgmr.msra.gmra.mxu1 %v2953_v47 }
0x1060   :  { %6199 = vmatpush3.bf16.msra.mxu1 %v6517_v48  ;;  %6202 = vmatprep.mubr.msk.bf16.mxu1 %vm6686_vm0, %v6685_v0 }
0x1061   :  { %6200 = vmatprep.subr.bf16.mxu1 %v6685_v0 }
0x1064   :  { %6201 = vmatpush3.bf16.msra.mxu1 %v6518_v50 }
0x1065   :  { %6212 = vmatprep.subr.bf16.mxu1 %v6685_v0 }
0x1067   :  { %6203 = vmatmul.mubr.msk.bf16.vlgmr.msra.gmra.mxu1 %vm215_vm1, %v3052_v15 }
0x1068   :  { %6214 = vmatprep.mubr.msk.bf16.mxu1 %vm6686_vm0, %v6685_v0 }
0x10b7   :  { %v3106_v32 = vpop.trf.xlu1 }
0x10b8   :  { %6178 = vmatprep.mubr.msk.bf16.mxu0 %vm280_vm3, %v3106_v32 }
0x10bb   :  { %v3107_v52 = vpop.trf.xlu1 }
0x10c7   :  { %v3116_v43 = vpop.permute.xlu0 %3115 }
0x10c8   :  { %v3124_v51 = vsel %vm287_vm2, %v3116_v43, 0  ;;  %6363 = vmatprep.subr.msk.bf16.mxu0 %vm287_vm2, %v3116_v43 }
0x10c9   :  { %6177 = vmatpush3.bf16.msra.mxu0 %v3124_v51 }
0x10ca   :  { %6182 = vmatprep.subr.bf16.mxu0 %v6685_v0 }
0x10cc   :  { %6179 = vmatmul.mubr.msk.bf16.vlgmr.msra.gmra.mxu0 %vm280_vm3, %v3107_v52 }
0x10cd   :  { %6186 = vmatprep.mubr.msk.bf16.mxu0 %vm6686_vm0, %v6685_v0 }
0x111f   :  { %v3042_v54 = vpop.f32.mrf.mxu1 }
0x1120   :  { %v3043_v59 = vadd.f32 %v5779_v53, %v3042_v54 }
0x1121   :  { %v6166_v44 = vpop.f32.mrf.mxu1 }
0x1122   :  { %v3048_v60 = vadd.f32 %v3043_v59, %v7315_v42 }
0x1123   :  { %v3045_v45 = vpop.f32.mrf.mxu1 }
0x1124   :  { %3049 = vst.msk [vmem:[#allocation11] sm:$0xff] %vm215_vm1, %v3048_v60 }
0x1125   :  { %v6167_v55 = vpop.f32.mrf.mxu1 }
0x1127   :  { %v3350_v5 = vpop.f32.mrf.mxu1 }
0x1128   :  { %v7426_v38 = vadd.f32 %v6519_v36, %v3350_v5 }
0x1129   :  { %v6204_v49 = vpop.f32.mrf.mxu1 }
0x112b   :  { %v3353_v6 = vpop.f32.mrf.mxu1 }
0x112d   :  { %v6205_v7 = vpop.f32.mrf.mxu1 }
0x118c   :  { %v6180_v56 = vpop.f32.mrf.mxu0 }
0x118d   :  { %v3177_v12 = vmul.f32 0.17677669, %v6180_v56 }
0x118e   :  { %v3160_v62 = vpop.f32.mrf.mxu0 }
0x118f   :  { %v3175_v63 = vmul.f32 0.17677669, %v3160_v62  ;;  %v3185_v1 = vsel %vm215_vm1, %v3177_v12, -inf }
0x1190   :  { %3186 = vmax.xlane.f32.xlu0 %v3185_v1  ;;  %v6181_v61 = vpop.f32.mrf.mxu0 }
0x1191   :  { %v3178_v58 = vmul.f32 0.17677669, %v6181_v61  ;;  %v3179_v3 = vsel %vm215_vm1, %v3175_v63, -inf }
0x1192   :  { %v3163_v2 = vpop.f32.mrf.mxu0 }
0x1193   :  { %v3176_v57 = vmul.f32 0.17677669, %v3163_v2  ;;  %v3188_v4 = vsel %vm215_vm1, %v3178_v58, -inf }
0x1194   :  { %3180 = vmax.xlane.f32.xlu0 %v3179_v3  ;;  %3189 = vmax.xlane.f32.xlu1 %v3188_v4 }
0x1195   :  { %v3182_v42 = vsel %vm215_vm1, %v3176_v57, -inf }
0x1198   :  { %3183 = vmax.xlane.f32.xlu0 %v3182_v42 }
0x1219   :  { %v3187_v9 = vpop.xlane.xlu0 %3186 }
0x121a   :  { %v3193_v10 = vsub.f32 %v3177_v12, %v3187_v9 }
0x121c   :  { %v3199_v11 = vmul.f32 1.442695, %v3193_v10 }
0x121d   :  { %v3181_v15 = vpop.xlane.xlu0 %3180  ;;  %v3190_v16 = vpop.xlane.xlu1 %3189 }
0x121e   :  { %6461 = vpow2.f32 %v3199_v11  ;;  %v3191_v20 = vsub.f32 %v3175_v63, %v3181_v15  ;;  %v3194_v21 = vsub.f32 %v3178_v58, %v3190_v16  ;;  %v6520_v16 = vld [vmem:[%s7937_s28 + $0x8] sm:$0xff]  }
0x1220   :  { %v3201_v23 = vmul.f32 1.442695, %v3194_v21  ;;  %v3195_v24 = vmul.f32 1.442695, %v3191_v20 }
0x1221   :  { %v3184_v25 = vpop.xlane.xlu0 %3183 }
0x1222   :  { %v3192_v33 = vsub.f32 %v3176_v57, %v3184_v25  ;;  %6463 = vpow2.f32 %v3201_v23 }
0x1223   :  { %6465 = vpow2.f32 %v3195_v24 }
0x1224   :  { %v3197_v26 = vmul.f32 1.442695, %v3192_v33 }
0x1226   :  { %6467 = vpow2.f32 %v3197_v26 }
0x122b   :  { %v6462_v41 = vpop.eup %6461 }
0x122c   :  { %v3209_v27 = vsel %vm215_vm1, %v6462_v41, 0.0 }
0x122d   :  { %3210 = vadd.xlane.f32.xlu0 %v3209_v27  ;;  %v6521_v27 = vld [vmem:[%s7937_s28] sm:$0xff]  }
0x122f   :  { %v6464_v28 = vpop.eup %6463 }
0x1230   :  { %v3212_v29 = vsel %vm215_vm1, %v6464_v28, 0.0  ;;  %v6466_v34 = vpop.eup %6465 }
0x1231   :  { %3213 = vadd.xlane.f32.xlu0 %v3212_v29  ;;  %v3203_v35 = vsel %vm215_vm1, %v6466_v34, 0.0 }
0x1233   :  { %v6468_v18 = vpop.eup %6467 }
0x1234   :  { %v3206_v13 = vsel %vm215_vm1, %v6468_v18, 0.0 }
0x1235   :  { %3207 = vadd.xlane.f32.xlu1 %v3206_v13  ;;  %3204 = vadd.xlane.f32.xlu0 %v3203_v35 }
0x1246   :  { %3357 = vrot.lane.b32.xlu1 %v7426_v38, %s6688_s17 }
0x124a   :  { %3360 = vrot.lane.b32.xlu1 %v7426_v38, %s6689_s9 }
0x124b   :  { %3225 = vrot.lane.b32.xlu0 %v7385_v30, %s6679_s27 }
0x124e   :  { %3363 = vrot.lane.b32.xlu1 %v7426_v38, %s6690_s24 }
0x124f   :  { %3506 = vrot.lane.b32.xlu0 %v7426_v38, %s6687_s30 }
0x12b6   :  { %v3211_v39 = vpop.xlane.xlu0 %3210 }
0x12b7   :  { %6469 = vrcp.f32 %v3211_v39 }
0x12ba   :  { %v3214_v40 = vpop.xlane.xlu0 %3213 }
0x12bb   :  { %6471 = vrcp.f32 %v3214_v40 }
0x12be   :  { %v3208_v31 = vpop.xlane.xlu1 %3207  ;;  %v3205_v46 = vpop.xlane.xlu0 %3204 }
0x12bf   :  { %6473 = vrcp.f32 %v3208_v31 }
0x12c0   :  { %6475 = vrcp.f32 %v3205_v46 }
0x12c2   :  { %v7438_v17 = vpop.permute.xlu1 %3357  ;;  %v3226_v7 = vpop.permute.xlu0 %3225 }
0x12c3   :  { %3508 = vrot.lane.b32.xlu1 %v7438_v17, %s6687_s30 }
0x12c4   :  { %v6470_v22 = vpop.eup %6469 }
0x12c5   :  { %v3221_v32 = vmul.f32 %v6470_v22, %v6462_v41 }
0x12c6   :  { %v7442_v30 = vpop.permute.xlu1 %3360 }
0x12c7   :  { %3510 = vrot.lane.b32.xlu0 %v7442_v30, %s6687_s30  ;;  %v3366_v37 = vcombine.low %v7426_v38, %v7442_v30  ;;  %v3367_v48 = vcombine.high %v7426_v38, %v7442_v30 }
0x12c8   :  { %v6472_v47 = vpop.eup %6471 }
0x12c9   :  { %v3222_v43 = vmul.f32 %v6472_v47, %v6464_v28  ;;  %v3374_v54 = vrot.slane %v3366_v37, %v6909_v8  ;;  %v3381_v60 = vrot.slane %v3367_v48, %v6909_v8 }
0x12ca   :  { %v7450_v50 = vpop.permute.xlu1 %3363 }
0x12cb   :  { %v3382_v51 = vcombine.low %v7438_v17, %v7450_v50  ;;  %v3383_v52 = vcombine.high %v7438_v17, %v7450_v50  ;;  %3512 = vrot.lane.b32.xlu1 %v7450_v50, %s6687_s30  ;;  %v3224_v59 = vpack.c.bf16 %v3222_v43, %v3221_v32 }
0x12cc   :  { %v6474_v53 = vpop.eup %6473 }
0x12cd   :  { %v6476_v44 = vpop.eup %6475  ;;  %v3390_v45 = vrot.slane %v3382_v51, %v6909_v8  ;;  %v3397_v55 = vrot.slane %v3383_v52, %v6909_v8  ;;  %v3220_v56 = vmul.f32 %v6474_v53, %v6468_v18  ;;  %6183 = vmatpush3.bf16.msra.mxu0 %v3224_v59 }
0x12ce   :  { %v3219_v12 = vmul.f32 %v6476_v44, %v6466_v34  ;;  %6184 = vmatprep.subr.bf16.mxu0 %v6685_v0  ;;  %v3507_v34 = vpop.permute.xlu0 %3506 }
0x12cf   :  { %v3398_v62 = vcombine.low %v3374_v54, %v3390_v45  ;;  %v3399_v63 = vcombine.high %v3374_v54, %v3390_v45  ;;  %v3414_v1 = vcombine.low %v3381_v60, %v3397_v55  ;;  %v3415_v61 = vcombine.high %v3381_v60, %v3397_v55 }
0x12d0   :  { %v3223_v58 = vpack.c.bf16 %v3220_v56, %v3219_v12 }
0x12d1   :  { %v3406_v2 = vrot.slane %v3398_v62, %v6925_v19  ;;  %v3413_v57 = vrot.slane %v3399_v63, %v6925_v19  ;;  %v3422_v3 = vrot.slane %v3414_v1, %v6925_v19  ;;  %v3429_v4 = vrot.slane %v3415_v61, %v6925_v19 }
0x12d2   :  { %6185 = vmatpush3.bf16.msra.mxu0 %v3223_v58 }
0x12d3   :  { %v3434_v42 = vcombine.low %v3406_v2, %v3413_v57  ;;  %v5795_v5 = vcombine.high %v3406_v2, %v3413_v57  ;;  %v3450_v49 = vcombine.low %v3422_v3, %v3429_v4  ;;  %v5796_v6 = vcombine.high %v3422_v3, %v3429_v4  ;;  %6190 = vmatprep.subr.bf16.mxu0 %v6685_v0 }
0x12d5   :  { %v3441_v9 = vrot.slane %v3434_v42, %v6909_v8  ;;  %v3449_v10 = vrot.slane %v5795_v5, %v6909_v8  ;;  %v3457_v11 = vrot.slane %v3450_v49, %v6909_v8  ;;  %v3465_v15 = vrot.slane %v5796_v6, %v6909_v8  ;;  %6187 = vmatmul.mubr.msk.bf16.vlgmr.msra.gmra.mxu0 %vm215_vm1, %v3226_v7 }
0x12d6   :  { %6191 = vmatpush3.bf16.msra.mxu0 %v6520_v16  ;;  %6194 = vmatprep.mubr.msk.bf16.mxu0 %vm6686_vm0, %v6685_v0 }
0x12d7   :  { %v3466_v20 = vcombine.low %v3441_v9, %v3449_v10  ;;  %v3482_v21 = vcombine.low %v3457_v11, %v3465_v15  ;;  %v3467_v23 = vcombine.high %v3441_v9, %v3449_v10  ;;  %v3483_v24 = vcombine.high %v3457_v11, %v3465_v15  ;;  %6192 = vmatprep.subr.bf16.mxu0 %v6685_v0 }
0x12d9   :  { %v3474_v25 = vrot.slane %v3466_v20, %v6925_v19  ;;  %v3490_v33 = vrot.slane %v3482_v21, %v6925_v19  ;;  %v3481_v26 = vrot.slane %v3467_v23, %v6925_v19  ;;  %v3497_v41 = vrot.slane %v3483_v24, %v6925_v19 }
0x12da   :  { %6193 = vmatpush3.bf16.msra.mxu0 %v6521_v27 }
0x12db   :  { %6206 = vmatprep.subr.bf16.mxu0 %v6685_v0  ;;  %v7487_v28 = vcombine.low %v3474_v25, %v3490_v33  ;;  %v7489_v29 = vcombine.low %v3481_v26, %v3497_v41  ;;  %v3499_v11 = vcombine.high %v3474_v25, %v3490_v33  ;;  %v3501_v21 = vcombine.high %v3481_v26, %v3497_v41 }
0x12dd   :  { %v3503_v16 = vpack.c.bf16 %v3499_v11, %v3499_v11  ;;  %v3505_v23 = vpack.c.bf16 %v3501_v21, %v3501_v21 }
0x1335   :  { %v3509_v18 = vpop.permute.xlu1 %3508 }
0x1339   :  { %v3511_v13 = vpop.permute.xlu0 %3510 }
0x133a   :  { %v3518_v35 = vcombine.low %v3507_v34, %v3511_v13  ;;  %v3519_v36 = vcombine.high %v3507_v34, %v3511_v13  ;;  %v3502_v13 = vpack.c.bf16 %v7487_v28, %v7487_v28 }
0x133c   :  { %v3526_v46 = vrot.slane %v3518_v35, %v6909_v8  ;;  %v3533_v22 = vrot.slane %v3519_v36, %v6909_v8  ;;  %v3504_v36 = vpack.c.bf16 %v7489_v29, %v7489_v29 }
0x133d   :  { %v3513_v39 = vpop.permute.xlu1 %3512 }
0x133e   :  { %v3534_v40 = vcombine.low %v3509_v18, %v3513_v39  ;;  %v3535_v31 = vcombine.high %v3509_v18, %v3513_v39 }
0x1340   :  { %v3542_v37 = vrot.slane %v3534_v40, %v6909_v8  ;;  %v3549_v47 = vrot.slane %v3535_v31, %v6909_v8 }
0x1342   :  { %v3550_v48 = vcombine.low %v3526_v46, %v3542_v37  ;;  %v3551_v32 = vcombine.high %v3526_v46, %v3542_v37  ;;  %v3566_v43 = vcombine.low %v3533_v22, %v3549_v47  ;;  %v3567_v51 = vcombine.high %v3533_v22, %v3549_v47 }
0x1344   :  { %v3558_v52 = vrot.slane %v3550_v48, %v6925_v19  ;;  %v3565_v53 = vrot.slane %v3551_v32, %v6925_v19  ;;  %v3574_v54 = vrot.slane %v3566_v43, %v6925_v19  ;;  %v3581_v59 = vrot.slane %v3567_v51, %v6925_v19 }
0x1346   :  { %v3586_v44 = vcombine.low %v3558_v52, %v3565_v53  ;;  %v5797_v60 = vcombine.high %v3558_v52, %v3565_v53  ;;  %v3602_v45 = vcombine.low %v3574_v54, %v3581_v59  ;;  %v5798_v55 = vcombine.high %v3574_v54, %v3581_v59 }
0x1348   :  { %v3593_v56 = vrot.slane %v3586_v44, %v6909_v8  ;;  %v3601_v12 = vrot.slane %v5797_v60, %v6909_v8  ;;  %v3609_v62 = vrot.slane %v3602_v45, %v6909_v8  ;;  %v3617_v63 = vrot.slane %v5798_v55, %v6909_v8 }
0x134a   :  { %v3618_v1 = vcombine.low %v3593_v56, %v3601_v12  ;;  %v3634_v61 = vcombine.low %v3609_v62, %v3617_v63  ;;  %v3619_v58 = vcombine.high %v3593_v56, %v3601_v12  ;;  %v3635_v2 = vcombine.high %v3609_v62, %v3617_v63 }
0x134c   :  { %v3626_v57 = vrot.slane %v3618_v1, %v6925_v19  ;;  %v3642_v3 = vrot.slane %v3634_v61, %v6925_v19  ;;  %v3633_v4 = vrot.slane %v3619_v58, %v6925_v19  ;;  %v3649_v42 = vrot.slane %v3635_v2, %v6925_v19 }
0x134e   :  { %v3651_v5 = vcombine.high %v3626_v57, %v3642_v3  ;;  %v3650_v49 = vcombine.low %v3626_v57, %v3642_v3  ;;  %v3652_v6 = vcombine.low %v3633_v4, %v3649_v42  ;;  %v3653_v10 = vcombine.high %v3633_v4, %v3649_v42 }
0x1350   :  { %v3655_v7 = vpack.c.bf16 %v3651_v5, %v3651_v5  ;;  %v3657_v15 = vpack.c.bf16 %v3653_v10, %v3653_v10  ;;  %v3654_v24 = vpack.c.bf16 %v3650_v49, %v3650_v49  ;;  %v3656_v41 = vpack.c.bf16 %v3652_v6, %v3652_v6 }
0x1352   :  { %v3860_v9 = vsel %vm280_vm3, %v3655_v7, 0  ;;  %v3952_v20 = vsel %vm280_vm3, %v3657_v15, 0  ;;  %v3814_v34 = vsel %vm280_vm3, %v3654_v24, 0  ;;  %v3906_v35 = vsel %vm280_vm3, %v3656_v41, 0 }
0x1353   :  { %6213 = vmatpush3.bf16.xpose.msra.mxu1 %v3860_v9 }
0x1354   :  { %6224 = vmatprep.subr.bf16.mxu1 %v6685_v0 }
0x135a   :  { %6215 = vmatmul.mubr.msk.bf16.vlgmr.msra.gmra.mxu1 %vm280_vm3, %v3503_v16 }
0x135b   :  { %6225 = vmatpush3.bf16.xpose.msra.mxu1 %v3952_v20  ;;  %6226 = vmatprep.mubr.msk.bf16.mxu1 %vm6686_vm0, %v6685_v0 }
0x135c   :  { %6236 = vmatprep.subr.bf16.mxu1 %v6685_v0 }
0x1362   :  { %6227 = vmatmul.mubr.msk.bf16.vlgmr.msra.gmra.mxu1 %vm280_vm3, %v3505_v23 }
0x1363   :  { %6238 = vmatprep.mubr.msk.bf16.mxu1 %vm6686_vm0, %v6685_v0 }
0x1395   :  { %v3264_v25 = vpop.f32.mrf.mxu0 }
0x1396   :  { %v3270_v33 = vpack.c.bf16 %v3264_v25, %v3264_v25 }
0x1397   :  { %v6188_v27 = vpop.f32.mrf.mxu0 }
0x1398   :  { %6195 = vmatmul.mubr.msk.bf16.vlgmr.msra.gmra.mxu0 %vm215_vm1, %v3270_v33 }
0x1399   :  { %6207 = vmatpush3.bf16.xpose.msra.mxu0 %v3814_v34  ;;  %v3267_v18 = vpop.f32.mrf.mxu0  ;;  %6208 = vmatprep.mubr.msk.bf16.mxu0 %vm6686_vm0, %v6685_v0 }
0x139a   :  { %6218 = vmatprep.subr.bf16.mxu0 %v6685_v0 }
0x139b   :  { %v6189_v26 = vpop.f32.mrf.mxu0 }
0x13a0   :  { %6209 = vmatmul.mubr.msk.bf16.vlgmr.msra.gmra.mxu0 %vm280_vm3, %v3502_v13 }
0x13a1   :  { %6219 = vmatpush3.bf16.xpose.msra.mxu0 %v3906_v35  ;;  %6220 = vmatprep.mubr.msk.bf16.mxu0 %vm6686_vm0, %v6685_v0 }
0x13a2   :  { %6230 = vmatprep.subr.bf16.mxu0 %v6685_v0 }
0x13a8   :  { %6221 = vmatmul.mubr.msk.bf16.vlgmr.msra.gmra.mxu0 %vm280_vm3, %v3504_v36 }
0x13a9   :  { %6232 = vmatprep.mubr.msk.bf16.mxu0 %vm6686_vm0, %v6685_v0 }
0x141a   :  { %v3896_v39 = vpop.f32.mrf.mxu1 }
0x141b   :  { %v3995_v28 = vmul.f32 0.35355338, %v3896_v39 }
0x141c   :  { %v6216_v40 = vpop.f32.mrf.mxu1 }
0x141d   :  { %v4001_v31 = vsel %vm280_vm3, %v3995_v28, -inf }
0x141e   :  { %4002 = vmax.xlane.f32.xlu1 %v4001_v31  ;;  %v3899_v46 = vpop.f32.mrf.mxu1 }
0x1420   :  { %v6217_v22 = vpop.f32.mrf.mxu1 }
0x1422   :  { %v3988_v37 = vpop.f32.mrf.mxu1 }
0x1423   :  { %v3997_v62 = vmul.f32 0.35355338, %v3988_v37 }
0x1424   :  { %v6228_v47 = vpop.f32.mrf.mxu1 }
0x1425   :  { %v4007_v58 = vsel %vm280_vm3, %v3997_v62, -inf }
0x1426   :  { %v3991_v48 = vpop.f32.mrf.mxu1 }
0x1428   :  { %v6229_v32 = vpop.f32.mrf.mxu1 }
0x1458   :  { %v7535_v43 = vpop.f32.mrf.mxu0 }
0x145a   :  { %v6196_v29 = vpop.f32.mrf.mxu0 }
0x145c   :  { %v3311_v51 = vpop.f32.mrf.mxu0 }
0x145e   :  { %v6197_v52 = vpop.f32.mrf.mxu0 }
0x1460   :  { %v3850_v53 = vpop.f32.mrf.mxu0 }
0x1461   :  { %v3994_v54 = vmul.f32 0.35355338, %v3850_v53 }
0x1462   :  { %v6210_v59 = vpop.f32.mrf.mxu0 }
0x1463   :  { %v3998_v44 = vsel %vm280_vm3, %v3994_v54, -inf }
0x1464   :  { %3999 = vmax.xlane.f32.xlu0 %v3998_v44  ;;  %v3853_v60 = vpop.f32.mrf.mxu0 }
0x1466   :  { %v6211_v45 = vpop.f32.mrf.mxu0 }
0x1468   :  { %v3942_v55 = vpop.f32.mrf.mxu0 }
0x1469   :  { %v3996_v56 = vmul.f32 0.35355338, %v3942_v55 }
0x146a   :  { %v6222_v12 = vpop.f32.mrf.mxu0 }
0x146b   :  { %v4004_v63 = vsel %vm280_vm3, %v3996_v56, -inf }
0x146c   :  { %4005 = vmax.xlane.f32.xlu0 %v4004_v63  ;;  %v3945_v1 = vpop.f32.mrf.mxu0 }
0x146e   :  { %v6223_v61 = vpop.f32.mrf.mxu0 }
0x1470   :  { %4008 = vmax.xlane.f32.xlu0 %v4007_v58 }
0x14a7   :  { %v4003_v2 = vpop.xlane.xlu1 %4002 }
0x14a8   :  { %v4011_v57 = vsub.f32 %v3995_v28, %v4003_v2 }
0x14aa   :  { %v4016_v3 = vmul.f32 1.442695, %v4011_v57 }
0x14ac   :  { %6477 = vpow2.f32 %v4016_v3 }
0x14b9   :  { %v7540_v4 = vpop.eup %6477 }
0x14ba   :  { %v4025_v42 = vsel %vm280_vm3, %v7540_v4, 0.0 }
0x14bb   :  { %4026 = vadd.xlane.f32.xlu1 %v4025_v42 }
0x14cc   :  { %3660 = vrot.lane.b32.xlu1 %v7438_v17, %s6679_s27 }
0x14d0   :  { %3662 = vrot.lane.b32.xlu1 %v7442_v30, %s6679_s27 }
0x14d4   :  { %3664 = vrot.lane.b32.xlu1 %v7450_v50, %s6679_s27 }
0x14ed   :  { %v4000_v5 = vpop.xlane.xlu0 %3999 }
0x14ee   :  { %v4010_v49 = vsub.f32 %v3994_v54, %v4000_v5 }
0x14f0   :  { %v4014_v6 = vmul.f32 1.442695, %v4010_v49 }
0x14f2   :  { %6479 = vpow2.f32 %v4014_v6 }
0x14f5   :  { %v4006_v7 = vpop.xlane.xlu0 %4005 }
0x14f6   :  { %v4012_v50 = vsub.f32 %v3996_v56, %v4006_v7 }
0x14f8   :  { %v4018_v20 = vmul.f32 1.442695, %v4012_v50 }
0x14f9   :  { %v4009_v9 = vpop.xlane.xlu0 %4008 }
0x14fa   :  { %v4013_v10 = vsub.f32 %v3997_v62, %v4009_v9 }
0x14fc   :  { %v4020_v11 = vmul.f32 1.442695, %v4013_v10 }
0x14fe   :  { %6481 = vpow2.f32 %v4020_v11 }
0x14ff   :  { %v7550_v15 = vpop.eup %6479  ;;  %6483 = vpow2.f32 %v4018_v20 }
0x1500   :  { %v4022_v17 = vsel %vm280_vm3, %v7550_v15, 0.0 }
0x1501   :  { %4023 = vadd.xlane.f32.xlu0 %v4022_v17 }
0x150b   :  { %v7554_v16 = vpop.eup %6481 }
0x150c   :  { %v4031_v30 = vsel %vm280_vm3, %v7554_v16, 0.0  ;;  %v7560_v21 = vpop.eup %6483 }
0x150d   :  { %4032 = vadd.xlane.f32.xlu1 %v4031_v30  ;;  %v4028_v23 = vsel %vm280_vm3, %v7560_v21, 0.0 }
0x1517   :  { %3658 = vrot.lane.b32.xlu0 %v7426_v38, %s6679_s27 }
0x1536   :  { %4029 = vadd.xlane.f32.xlu0 %v4028_v23 }
0x1544   :  { %v4027_v24 = vpop.xlane.xlu1 %4026 }
0x1545   :  { %6485 = vrcp.f32 %v4027_v24 }
0x1548   :  { %v3661_v25 = vpop.permute.xlu1 %3660 }
0x154c   :  { %v3663_v33 = vpop.permute.xlu1 %3662 }
0x1550   :  { %v3665_v27 = vpop.permute.xlu1 %3664 }
0x1551   :  { %v3686_v18 = vcombine.low %v3661_v25, %v3665_v27  ;;  %v3687_v26 = vcombine.high %v3661_v25, %v3665_v27  ;;  %v6522_v27 = vld [vmem:[#allocation5 + $0x8] sm:$0xff]  }
0x1552   :  { %v6486_v63 = vpop.eup %6485 }
0x1553   :  { %v3694_v38 = vrot.slane %v3686_v18, %v6909_v8  ;;  %v3701_v36 = vrot.slane %v3687_v26, %v6909_v8  ;;  %v4039_v10 = vmul.f32 %v6486_v63, %v7540_v4 }
0x1555   :  { %v4043_v24 = vpack.c.bf16 %v4039_v10, %v4039_v10 }
0x158a   :  { %v4024_v34 = vpop.xlane.xlu0 %4023 }
0x158b   :  { %6487 = vrcp.f32 %v4024_v34  ;;  %v6523_v34 = vld [vmem:[#allocation5] sm:$0xff]  }
0x158e   :  { %v3659_v41 = vpop.permute.xlu0 %3658 }
0x158f   :  { %v3670_v13 = vcombine.low %v3659_v41, %v3663_v33  ;;  %v3671_v35 = vcombine.high %v3659_v41, %v3663_v33 }
0x1591   :  { %v3678_v39 = vrot.slane %v3670_v13, %v6909_v8  ;;  %v3685_v28 = vrot.slane %v3671_v35, %v6909_v8  ;;  %v6524_v13 = vld [vmem:[%s7904_s7 + $0x8] sm:$0xff]   ;;  %v6525_v35 = vld [vmem:[%s7904_s7] sm:$0xff]   ;;  %s7938_s7 = smov 24  }
0x1593   :  { %v3702_v40 = vcombine.low %v3678_v39, %v3694_v38  ;;  %v3703_v31 = vcombine.high %v3678_v39, %v3694_v38  ;;  %v3718_v46 = vcombine.low %v3685_v28, %v3701_v36  ;;  %v3719_v22 = vcombine.high %v3685_v28, %v3701_v36 }
0x1595   :  { %v3710_v37 = vrot.slane %v3702_v40, %v6925_v19  ;;  %v3717_v47 = vrot.slane %v3703_v31, %v6925_v19  ;;  %v3726_v48 = vrot.slane %v3718_v46, %v6925_v19  ;;  %v3733_v32 = vrot.slane %v3719_v22, %v6925_v19 }
0x1596   :  { %v4033_v29 = vpop.xlane.xlu1 %4032 }
0x1597   :  { %v3738_v51 = vcombine.low %v3710_v37, %v3717_v47  ;;  %v5799_v52 = vcombine.high %v3710_v37, %v3717_v47  ;;  %v3754_v53 = vcombine.low %v3726_v48, %v3733_v32  ;;  %v5800_v54 = vcombine.high %v3726_v48, %v3733_v32 }
0x1598   :  { %6489 = vrcp.f32 %v4033_v29  ;;  %v6488_v57 = vpop.eup %6487 }
0x1599   :  { %v3745_v59 = vrot.slane %v3738_v51, %v6909_v8  ;;  %v3753_v44 = vrot.slane %v5799_v52, %v6909_v8  ;;  %v3761_v60 = vrot.slane %v3754_v53, %v6909_v8  ;;  %v3769_v45 = vrot.slane %v5800_v54, %v6909_v8 }
0x159a   :  { %v4038_v9 = vmul.f32 %v6488_v57, %v7550_v15 }
0x159b   :  { %v3770_v55 = vcombine.low %v3745_v59, %v3753_v44  ;;  %v3786_v56 = vcombine.low %v3761_v60, %v3769_v45  ;;  %v3771_v12 = vcombine.high %v3745_v59, %v3753_v44  ;;  %v3787_v62 = vcombine.high %v3761_v60, %v3769_v45 }
0x159c   :  { %v4042_v23 = vpack.c.bf16 %v4038_v9, %v4038_v9 }
0x159d   :  { %v3778_v1 = vrot.slane %v3770_v55, %v6925_v19  ;;  %v3794_v61 = vrot.slane %v3786_v56, %v6925_v19  ;;  %v3785_v58 = vrot.slane %v3771_v12, %v6925_v19  ;;  %v3801_v2 = vrot.slane %v3787_v62, %v6925_v19 }
0x159f   :  { %v3802_v3 = vcombine.low %v3778_v1, %v3794_v61  ;;  %v3803_v42 = vcombine.high %v3778_v1, %v3794_v61  ;;  %v3804_v5 = vcombine.low %v3785_v58, %v3801_v2  ;;  %v3805_v49 = vcombine.high %v3785_v58, %v3801_v2 }
0x15a1   :  { %v3806_v6 = vpack.c.bf16 %v3802_v3, %v3802_v3  ;;  %v3807_v7 = vpack.c.bf16 %v3803_v42, %v3803_v42  ;;  %v3808_v30 = vpack.c.bf16 %v3804_v5, %v3804_v5  ;;  %v3809_v50 = vpack.c.bf16 %v3805_v49, %v3805_v49 }
0x15a3   :  { %v4050_v11 = vsel %vm287_vm2, %v3806_v6, 0  ;;  %v4096_v17 = vsel %vm287_vm2, %v3807_v7, 0  ;;  %v4142_v4 = vsel %vm287_vm2, %v3808_v30, 0  ;;  %v4188_v15 = vsel %vm287_vm2, %v3809_v50, 0 }
0x15a4   :  { %6231 = vmatpush3.bf16.msra.mxu0 %v4050_v11  ;;  %6237 = vmatpush3.bf16.msra.mxu1 %v4096_v17 }
0x15a5   :  { %v6490_v20 = vpop.eup %6489  ;;  %6242 = vmatprep.subr.bf16.mxu0 %v6685_v0  ;;  %6248 = vmatprep.subr.bf16.mxu1 %v6685_v0 }
0x15a6   :  { %v4041_v25 = vmul.f32 %v6490_v20, %v7554_v16 }
0x15a7   :  { %6233 = vmatmul.mubr.msk.bf16.vlgmr.msra.gmra.mxu0 %vm280_vm3, %v4042_v23  ;;  %6239 = vmatmul.mubr.msk.bf16.vlgmr.msra.gmra.mxu1 %vm280_vm3, %v4043_v24 }
0x15a8   :  { %6243 = vmatpush3.bf16.msra.mxu0 %v4142_v4  ;;  %6249 = vmatpush3.bf16.msra.mxu1 %v4188_v15  ;;  %v4045_v33 = vpack.c.bf16 %v4041_v25, %v4041_v25 }
0x15a9   :  { %6250 = vmatprep.mubr.msk.bf16.mxu1 %vm6686_vm0, %v6685_v0  ;;  %6244 = vmatprep.mubr.msk.bf16.mxu0 %vm6686_vm0, %v6685_v0 }
0x15aa   :  { %6254 = vmatprep.subr.bf16.mxu0 %v6685_v0  ;;  %6262 = vmatprep.subr.bf16.mxu1 %v6685_v0 }
0x15af   :  { %6251 = vmatmul.mubr.msk.bf16.vlgmr.msra.gmra.mxu1 %vm280_vm3, %v4045_v33 }
0x15b0   :  { %6263 = vmatpush3.bf16.msra.mxu1 %v6522_v27  ;;  %6266 = vmatprep.mubr.msk.bf16.mxu1 %vm6686_vm0, %v6685_v0 }
0x15b1   :  { %6264 = vmatprep.subr.bf16.mxu1 %v6685_v0 }
0x15b4   :  { %6265 = vmatpush3.bf16.msra.mxu1 %v6523_v34 }
0x15b5   :  { %6278 = vmatprep.subr.bf16.mxu1 %v6685_v0 }
0x15bf   :  { %v4030_v16 = vpop.xlane.xlu0 %4029 }
0x15c0   :  { %6491 = vrcp.f32 %v4030_v16 }
0x15cd   :  { %v6492_v18 = vpop.eup %6491 }
0x15ce   :  { %v4040_v26 = vmul.f32 %v6492_v18, %v7560_v21 }
0x15d0   :  { %v4044_v41 = vpack.c.bf16 %v4040_v26, %v4040_v26 }
0x15d2   :  { %6245 = vmatmul.mubr.msk.bf16.vlgmr.msra.gmra.mxu0 %vm280_vm3, %v4044_v41 }
0x15d3   :  { %6255 = vmatpush3.bf16.msra.mxu0 %v6524_v13  ;;  %6258 = vmatprep.mubr.msk.bf16.mxu0 %vm6686_vm0, %v6685_v0 }
0x15d4   :  { %6256 = vmatprep.subr.bf16.mxu0 %v6685_v0 }
0x15d7   :  { %6257 = vmatpush3.bf16.msra.mxu0 %v6525_v35  ;;  %v3314_v35 = vadd.f32 %v7346_v14, %v7535_v43 }
0x15d8   :  { %6270 = vmatprep.subr.bf16.mxu0 %v6685_v0 }
0x1667   :  { %v4086_v21 = vpop.f32.mrf.mxu0  ;;  %v4132_v38 = vpop.f32.mrf.mxu1 }
0x1669   :  { %v6234_v36 = vpop.f32.mrf.mxu0  ;;  %v6240_v39 = vpop.f32.mrf.mxu1 }
0x166a   :  { %v6527_v36 = vld [vmem:[#allocation2] ss:$0 sm:$0xff] }
0x166b   :  { %v4089_v28 = vpop.f32.mrf.mxu0  ;;  %v4135_v40 = vpop.f32.mrf.mxu1  ;;  %v3315_v39 = vadd.f32 %v6527_v36, %v3314_v35 }
0x166c   :  { %v6528_v28 = vld [vmem:[#allocation7] sm:$0xff]  }
0x166d   :  { %v6235_v31 = vpop.f32.mrf.mxu0  ;;  %v6241_v46 = vpop.f32.mrf.mxu1  ;;  %v4471_v40 = vpack.c.bf16 %v3315_v39, %v3315_v39  ;;  %v6531_v39 = vld [vmem:[%s7907_s10] ss:$0 sm:$0xff] }
0x166f   :  { %v4224_v22 = vpop.f32.mrf.mxu1 }
0x1670   :  { %v4246_v32 = vcombine.low %v4132_v38, %v4224_v22  ;;  %v4247_v29 = vcombine.high %v4132_v38, %v4224_v22  ;;  %v6526_v38 = vld [vmem:[#allocation7 + $0x8] sm:$0xff]  }
0x1671   :  { %v6252_v37 = vpop.f32.mrf.mxu1  ;;  %v6529_v22 = vld [vmem:[%s7905_s8] ss:$0 sm:$0xff] }
0x1672   :  { %v4254_v59 = vrot.slane %v4246_v32, %v6909_v8  ;;  %v4261_v44 = vrot.slane %v4247_v29, %v6909_v8 }
0x1673   :  { %v4227_v47 = vpop.f32.mrf.mxu1 }
0x1675   :  { %v6253_v48 = vpop.f32.mrf.mxu1 }
0x1692   :  { %v4178_v51 = vpop.f32.mrf.mxu0 }
0x1693   :  { %v4230_v52 = vcombine.low %v4086_v21, %v4178_v51  ;;  %v4231_v53 = vcombine.high %v4086_v21, %v4178_v51  ;;  %v6530_v51 = vld [vmem:[%s7909_s12] ss:$0 sm:$0xff] }
0x1694   :  { %v6246_v54 = vpop.f32.mrf.mxu0 }
0x1695   :  { %v4238_v60 = vrot.slane %v4230_v52, %v6909_v8  ;;  %v4245_v45 = vrot.slane %v4231_v53, %v6909_v8 }
0x1696   :  { %v4181_v55 = vpop.f32.mrf.mxu0 }
0x1697   :  { %v4262_v56 = vcombine.low %v4238_v60, %v4254_v59  ;;  %v4263_v12 = vcombine.high %v4238_v60, %v4254_v59  ;;  %v4278_v62 = vcombine.low %v4245_v45, %v4261_v44  ;;  %v4279_v63 = vcombine.high %v4245_v45, %v4261_v44 }
0x1698   :  { %v6247_v1 = vpop.f32.mrf.mxu0 }
0x1699   :  { %v4270_v61 = vrot.slane %v4262_v56, %v6925_v19  ;;  %v4277_v58 = vrot.slane %v4263_v12, %v6925_v19  ;;  %v4286_v2 = vrot.slane %v4278_v62, %v6925_v19  ;;  %v4293_v57 = vrot.slane %v4279_v63, %v6925_v19 }
0x169b   :  { %v4298_v3 = vcombine.low %v4270_v61, %v4277_v58  ;;  %v5809_v42 = vcombine.high %v4270_v61, %v4277_v58  ;;  %v4314_v5 = vcombine.low %v4286_v2, %v4293_v57  ;;  %v5810_v49 = vcombine.high %v4286_v2, %v4293_v57 }
0x169d   :  { %v4305_v6 = vrot.slane %v4298_v3, %v6909_v8  ;;  %v4313_v7 = vrot.slane %v5809_v42, %v6909_v8  ;;  %v4321_v9 = vrot.slane %v4314_v5, %v6909_v8  ;;  %v4329_v10 = vrot.slane %v5810_v49, %v6909_v8 }
0x169f   :  { %v4331_v11 = vcombine.high %v4305_v6, %v4313_v7  ;;  %v4347_v17 = vcombine.high %v4321_v9, %v4329_v10  ;;  %v4330_v30 = vcombine.low %v4305_v6, %v4313_v7  ;;  %v4346_v50 = vcombine.low %v4321_v9, %v4329_v10 }
0x16a1   :  { %v4345_v20 = vrot.slane %v4331_v11, %v6925_v19  ;;  %v4361_v23 = vrot.slane %v4347_v17, %v6925_v19  ;;  %v4338_v24 = vrot.slane %v4330_v30, %v6925_v19  ;;  %v4354_v4 = vrot.slane %v4346_v50, %v6925_v19 }
0x16a3   :  { %v4364_v15 = vcombine.low %v4345_v20, %v4361_v23  ;;  %v4363_v25 = vcombine.high %v4338_v24, %v4354_v4  ;;  %v4362_v33 = vcombine.low %v4338_v24, %v4354_v4  ;;  %v4365_v27 = vcombine.high %v4345_v20, %v4361_v23 }
0x16a5   :  { %4371 = vrot.lane.b32.xlu1 %v4364_v15, %s6693_s11  ;;  %4367 = vrot.lane.b32.xlu0 %v4363_v25, %s6694_s2 }
0x16a9   :  { %4375 = vrot.lane.b32.xlu0 %v4365_v27, %s7938_s7 }
0x1717   :  { %v4368_v34 = vpop.permute.xlu0 %4367  ;;  %v4372_v16 = vpop.permute.xlu1 %4371 }
0x1718   :  { %v4378_v18 = vsel %vm280_vm3, %v4362_v33, %v4368_v34 }
0x1719   :  { %v4379_v41 = vsel %vm1580_vm4, %v4378_v18, %v4372_v16 }
0x171b   :  { %v4376_v26 = vpop.permute.xlu0 %4375 }
0x171c   :  { %v4380_v13 = vsel %vm1582_vm5, %v4379_v41, %v4376_v26 }
0x171d   :  { %v4381_v21 = vpack.c.bf16 %v4380_v13, %v4380_v13 }
0x171f   :  { %6259 = vmatmul.mubr.msk.bf16.vlgmr.msra.gmra.mxu0 %vm215_vm1, %v4381_v21 }
0x1720   :  { %6271 = vmatpush3.bf16.msra.mxu0 %v6526_v38  ;;  %6274 = vmatprep.mubr.msk.bf16.mxu0 %vm6686_vm0, %v6685_v0 }
0x1721   :  { %6272 = vmatprep.subr.bf16.mxu0 %v6685_v0 }
0x1724   :  { %6273 = vmatpush3.bf16.msra.mxu0 %v6528_v28 }
0x1725   :  { %6284 = vmatprep.subr.bf16.mxu0 %v6685_v0 }
0x1727   :  { %6275 = vmatmul.mubr.msk.bf16.vlgmr.msra.gmra.mxu0 %vm215_vm1, %v4471_v40 }
0x1728   :  { %6286 = vmatprep.mubr.msk.bf16.mxu0 %vm6686_vm0, %v6685_v0 }
0x17df   :  { %v4419_v43 = vpop.f32.mrf.mxu0 }
0x17e0   :  { %v4425_v31 = vadd.f32 %v7346_v14, %v4419_v43 }
0x17e1   :  { %v6260_v46 = vpop.f32.mrf.mxu0 }
0x17e2   :  { %v4426_v37 = vadd.f32 %v6529_v22, %v4425_v31 }
0x17e3   :  { %v4422_v47 = vpop.f32.mrf.mxu0 }
0x17e4   :  { %v4427_v48 = vpack.c.bf16 %v4426_v37, %v4426_v37 }
0x17e5   :  { %v6261_v32 = vpop.f32.mrf.mxu0 }
0x17e6   :  { %6267 = vmatmul.mubr.msk.bf16.vlgmr.msra.gmra.mxu1 %vm215_vm1, %v4427_v48 }
0x17e7   :  { %v4509_v29 = vpop.f32.mrf.mxu0  ;;  %6280 = vmatprep.mubr.msk.bf16.mxu1 %vm6686_vm0, %v6685_v0 }
0x17e8   :  { %v7656_v14 = vadd.f32 %v6530_v51, %v4509_v29 }
0x17e9   :  { %v6276_v52 = vpop.f32.mrf.mxu0 }
0x17ea   :  { %4669 = vrot.lane.b32.xlu0 %v7656_v14, %s6689_s9  ;;  %4666 = vrot.lane.b32.xlu1 %v7656_v14, %s6688_s17 }
0x17eb   :  { %v4512_v53 = vpop.f32.mrf.mxu0 }
0x17ed   :  { %v6277_v54 = vpop.f32.mrf.mxu0 }
0x17ee   :  { %4672 = vrot.lane.b32.xlu1 %v7656_v14, %s6690_s24 }
0x185c   :  { %v7664_v59 = vpop.permute.xlu0 %4669  ;;  %v7666_v44 = vpop.permute.xlu1 %4666 }
0x185d   :  { %v4675_v60 = vcombine.low %v7656_v14, %v7664_v59  ;;  %v4676_v45 = vcombine.high %v7656_v14, %v7664_v59 }
0x185f   :  { %v4683_v62 = vrot.slane %v4675_v60, %v6909_v8  ;;  %v4690_v63 = vrot.slane %v4676_v45, %v6909_v8 }
0x1860   :  { %v7672_v55 = vpop.permute.xlu1 %4672 }
0x1861   :  { %v4691_v56 = vcombine.low %v7666_v44, %v7672_v55  ;;  %v4692_v12 = vcombine.high %v7666_v44, %v7672_v55 }
0x1863   :  { %v4699_v1 = vrot.slane %v4691_v56, %v6909_v8  ;;  %v4706_v61 = vrot.slane %v4692_v12, %v6909_v8 }
0x1865   :  { %v4707_v58 = vcombine.low %v4683_v62, %v4699_v1  ;;  %v4708_v2 = vcombine.high %v4683_v62, %v4699_v1  ;;  %v4723_v57 = vcombine.low %v4690_v63, %v4706_v61  ;;  %v4724_v3 = vcombine.high %v4690_v63, %v4706_v61 }
0x1867   :  { %v4715_v42 = vrot.slane %v4707_v58, %v6925_v19  ;;  %v4722_v5 = vrot.slane %v4708_v2, %v6925_v19  ;;  %v4731_v49 = vrot.slane %v4723_v57, %v6925_v19  ;;  %v4738_v6 = vrot.slane %v4724_v3, %v6925_v19 }
0x1869   :  { %v4743_v7 = vcombine.low %v4715_v42, %v4722_v5  ;;  %v5816_v9 = vcombine.high %v4715_v42, %v4722_v5  ;;  %v4759_v10 = vcombine.low %v4731_v49, %v4738_v6  ;;  %v5817_v11 = vcombine.high %v4731_v49, %v4738_v6 }
0x186b   :  { %v4750_v17 = vrot.slane %v4743_v7, %v6909_v8  ;;  %v4758_v30 = vrot.slane %v5816_v9, %v6909_v8  ;;  %v4766_v50 = vrot.slane %v4759_v10, %v6909_v8  ;;  %v4774_v20 = vrot.slane %v5817_v11, %v6909_v8 }
0x186d   :  { %v4775_v23 = vcombine.low %v4750_v17, %v4758_v30  ;;  %v4791_v24 = vcombine.low %v4766_v50, %v4774_v20  ;;  %v4776_v4 = vcombine.high %v4750_v17, %v4758_v30  ;;  %v4792_v15 = vcombine.high %v4766_v50, %v4774_v20 }
0x186f   :  { %v4783_v25 = vrot.slane %v4775_v23, %v6925_v19  ;;  %v4799_v33 = vrot.slane %v4791_v24, %v6925_v19  ;;  %v4790_v27 = vrot.slane %v4776_v4, %v6925_v19  ;;  %v4806_v34 = vrot.slane %v4792_v15, %v6925_v19 }
0x1871   :  { %v4807_v16 = vcombine.low %v4783_v25, %v4799_v33  ;;  %v4808_v18 = vcombine.high %v4783_v25, %v4799_v33  ;;  %v7694_v26 = vcombine.low %v4790_v27, %v4806_v34  ;;  %v7696_v41 = vcombine.high %v4790_v27, %v4806_v34 }
0x1873   :  { %v4811_v13 = vpack.c.bf16 %v4807_v16, %v4807_v16  ;;  %v4812_v35 = vpack.c.bf16 %v4808_v18, %v4808_v18  ;;  %v4813_v23 = vpack.c.bf16 %v7694_v26, %v7694_v26  ;;  %v4814_v24 = vpack.c.bf16 %v7696_v41, %v7696_v41 }
0x1875   :  { %v4971_v21 = vsel %vm280_vm3, %v4811_v13, 0  ;;  %v5017_v38 = vsel %vm280_vm3, %v4812_v35, 0  ;;  %v5063_v27 = vsel %vm280_vm3, %v4813_v23, 0  ;;  %v5109_v34 = vsel %vm280_vm3, %v4814_v24, 0 }
0x1876   :  { %6279 = vmatpush3.bf16.xpose.msra.mxu1 %v4971_v21  ;;  %6285 = vmatpush3.bf16.xpose.msra.mxu0 %v5017_v38 }
0x1877   :  { %6290 = vmatprep.subr.bf16.mxu1 %v6685_v0  ;;  %6296 = vmatprep.subr.bf16.mxu0 %v6685_v0 }
0x18a6   :  { %v4465_v36 = vpop.f32.mrf.mxu1 }
0x18a7   :  { %v4466_v28 = vadd.f32 %v6531_v39, %v4465_v36 }
0x18a8   :  { %v6268_v40 = vpop.f32.mrf.mxu1 }
0x18a9   :  { %4516 = vrot.lane.b32.xlu0 %v4466_v28, %s6688_s17  ;;  %4519 = vrot.lane.b32.xlu1 %v4466_v28, %s6689_s9 }
0x18aa   :  { %v4468_v43 = vpop.f32.mrf.mxu1 }
0x18ac   :  { %v6269_v31 = vpop.f32.mrf.mxu1 }
0x18ad   :  { %4522 = vrot.lane.b32.xlu0 %v4466_v28, %s6690_s24 }
0x191b   :  { %v4517_v46 = vpop.permute.xlu0 %4516  ;;  %v4520_v22 = vpop.permute.xlu1 %4519 }
0x191c   :  { %v4525_v37 = vcombine.low %v4466_v28, %v4520_v22  ;;  %v4526_v47 = vcombine.high %v4466_v28, %v4520_v22 }
0x191e   :  { %v4533_v51 = vrot.slane %v4525_v37, %v6909_v8  ;;  %v4540_v52 = vrot.slane %v4526_v47, %v6909_v8 }
0x191f   :  { %v4523_v48 = vpop.permute.xlu0 %4522 }
0x1920   :  { %v4541_v32 = vcombine.low %v4517_v46, %v4523_v48  ;;  %v4542_v29 = vcombine.high %v4517_v46, %v4523_v48 }
0x1922   :  { %v4549_v53 = vrot.slane %v4541_v32, %v6909_v8  ;;  %v4556_v54 = vrot.slane %v4542_v29, %v6909_v8 }
0x1924   :  { %v4557_v60 = vcombine.low %v4533_v51, %v4549_v53  ;;  %v4558_v45 = vcombine.high %v4533_v51, %v4549_v53  ;;  %v4573_v56 = vcombine.low %v4540_v52, %v4556_v54  ;;  %v4574_v12 = vcombine.high %v4540_v52, %v4556_v54 }
0x1926   :  { %v4565_v62 = vrot.slane %v4557_v60, %v6925_v19  ;;  %v4572_v63 = vrot.slane %v4558_v45, %v6925_v19  ;;  %v4581_v1 = vrot.slane %v4573_v56, %v6925_v19  ;;  %v4588_v61 = vrot.slane %v4574_v12, %v6925_v19 }
0x1928   :  { %v4593_v58 = vcombine.low %v4565_v62, %v4572_v63  ;;  %v5814_v2 = vcombine.high %v4565_v62, %v4572_v63  ;;  %v4609_v57 = vcombine.low %v4581_v1, %v4588_v61  ;;  %v5815_v3 = vcombine.high %v4581_v1, %v4588_v61 }
0x192a   :  { %v4600_v42 = vrot.slane %v4593_v58, %v6909_v8  ;;  %v4608_v5 = vrot.slane %v5814_v2, %v6909_v8  ;;  %v4616_v49 = vrot.slane %v4609_v57, %v6909_v8  ;;  %v4624_v6 = vrot.slane %v5815_v3, %v6909_v8 }
0x192c   :  { %v4625_v7 = vcombine.low %v4600_v42, %v4608_v5  ;;  %v4641_v9 = vcombine.low %v4616_v49, %v4624_v6  ;;  %v4626_v10 = vcombine.high %v4600_v42, %v4608_v5  ;;  %v4642_v11 = vcombine.high %v4616_v49, %v4624_v6 }
0x192e   :  { %v4633_v17 = vrot.slane %v4625_v7, %v6925_v19  ;;  %v4649_v30 = vrot.slane %v4641_v9, %v6925_v19  ;;  %v4640_v25 = vrot.slane %v4626_v10, %v6925_v19  ;;  %v4656_v33 = vrot.slane %v4642_v11, %v6925_v19 }
0x1930   :  { %v4657_v50 = vcombine.low %v4633_v17, %v4649_v30  ;;  %v4658_v20 = vcombine.high %v4633_v17, %v4649_v30  ;;  %v4659_v16 = vcombine.low %v4640_v25, %v4656_v33  ;;  %v4660_v18 = vcombine.high %v4640_v25, %v4656_v33 }
0x1932   :  { %v4661_v4 = vpack.c.bf16 %v4657_v50, %v4657_v50  ;;  %v4662_v15 = vpack.c.bf16 %v4658_v20, %v4658_v20  ;;  %v4663_v26 = vpack.c.bf16 %v4659_v16, %v4659_v16  ;;  %v4664_v41 = vpack.c.bf16 %v4660_v18, %v4660_v18 }
0x1934   :  { %6281 = vmatmul.mubr.msk.bf16.vlgmr.msra.gmra.mxu1 %vm280_vm3, %v4661_v4  ;;  %6287 = vmatmul.mubr.msk.bf16.vlgmr.msra.gmra.mxu0 %vm280_vm3, %v4662_v15 }
0x1935   :  { %6291 = vmatpush3.bf16.xpose.msra.mxu1 %v5063_v27  ;;  %6297 = vmatpush3.bf16.xpose.msra.mxu0 %v5109_v34 }
0x1936   :  { %6292 = vmatprep.mubr.msk.bf16.mxu1 %vm6686_vm0, %v6685_v0  ;;  %6298 = vmatprep.mubr.msk.bf16.mxu0 %vm6686_vm0, %v6685_v0 }
0x1937   :  { %6302 = vmatprep.subr.bf16.mxu1 %v6685_v0  ;;  %6308 = vmatprep.subr.bf16.mxu0 %v6685_v0 }
0x193c   :  { %6293 = vmatmul.mubr.msk.bf16.vlgmr.msra.gmra.mxu1 %vm280_vm3, %v4663_v26  ;;  %6299 = vmatmul.mubr.msk.bf16.vlgmr.msra.gmra.mxu0 %vm280_vm3, %v4664_v41 }
0x193d   :  { %6304 = vmatprep.mubr.msk.bf16.mxu1 %vm6686_vm0, %v6685_v0  ;;  %6310 = vmatprep.mubr.msk.bf16.mxu0 %vm6686_vm0, %v6685_v0 }
0x19f4   :  { %v5007_v13 = vpop.f32.mrf.mxu1  ;;  %v5053_v35 = vpop.f32.mrf.mxu0 }
0x19f5   :  { %v5151_v21 = vmul.f32 0.35355338, %v5007_v13  ;;  %v5152_v38 = vmul.f32 0.35355338, %v5053_v35 }
0x19f6   :  { %v6282_v36 = vpop.f32.mrf.mxu1  ;;  %v6288_v39 = vpop.f32.mrf.mxu0 }
0x19f7   :  { %v5155_v28 = vsel %vm280_vm3, %v5151_v21, -inf  ;;  %v5158_v40 = vsel %vm280_vm3, %v5152_v38, -inf }
0x19f8   :  { %5156 = vmax.xlane.f32.xlu1 %v5155_v28  ;;  %v5010_v43 = vpop.f32.mrf.mxu1  ;;  %5159 = vmax.xlane.f32.xlu0 %v5158_v40  ;;  %v5056_v31 = vpop.f32.mrf.mxu0 }
0x19fa   :  { %v6283_v46 = vpop.f32.mrf.mxu1  ;;  %v6289_v22 = vpop.f32.mrf.mxu0 }
0x19fc   :  { %v5099_v37 = vpop.f32.mrf.mxu1  ;;  %v5145_v47 = vpop.f32.mrf.mxu0 }
0x19fd   :  { %v5153_v48 = vmul.f32 0.35355338, %v5099_v37  ;;  %v5154_v51 = vmul.f32 0.35355338, %v5145_v47 }
0x19fe   :  { %v6294_v32 = vpop.f32.mrf.mxu1  ;;  %v6300_v29 = vpop.f32.mrf.mxu0 }
0x19ff   :  { %v5161_v52 = vsel %vm280_vm3, %v5153_v48, -inf  ;;  %v5164_v56 = vsel %vm280_vm3, %v5154_v51, -inf }
0x1a00   :  { %v5102_v53 = vpop.f32.mrf.mxu1  ;;  %5162 = vmax.xlane.f32.xlu0 %v5161_v52  ;;  %v5148_v54 = vpop.f32.mrf.mxu0 }
0x1a02   :  { %v6295_v60 = vpop.f32.mrf.mxu1  ;;  %v6301_v45 = vpop.f32.mrf.mxu0 }
0x1a04   :  { %5165 = vmax.xlane.f32.xlu0 %v5164_v56 }
0x1a09   :  { %4815 = vrot.lane.b32.xlu1 %v7656_v14, %s6687_s30 }
0x1a81   :  { %v5157_v12 = vpop.xlane.xlu1 %5156  ;;  %v5160_v62 = vpop.xlane.xlu0 %5159 }
0x1a82   :  { %v5167_v63 = vsub.f32 %v5151_v21, %v5157_v12  ;;  %v5168_v1 = vsub.f32 %v5152_v38, %v5160_v62 }
0x1a84   :  { %v5171_v61 = vmul.f32 1.442695, %v5167_v63  ;;  %v5173_v58 = vmul.f32 1.442695, %v5168_v1 }
0x1a86   :  { %6493 = vpow2.f32 %v5171_v61 }
0x1a87   :  { %6495 = vpow2.f32 %v5173_v58 }
0x1a89   :  { %v5163_v14 = vpop.xlane.xlu0 %5162 }
0x1a8a   :  { %v5169_v6 = vsub.f32 %v5153_v48, %v5163_v14 }
0x1a8c   :  { %v5175_v9 = vmul.f32 1.442695, %v5169_v6 }
0x1a8d   :  { %v5166_v5 = vpop.xlane.xlu0 %5165 }
0x1a8e   :  { %v5170_v49 = vsub.f32 %v5154_v51, %v5166_v5 }
0x1a90   :  { %v5177_v7 = vmul.f32 1.442695, %v5170_v49 }
0x1a92   :  { %6497 = vpow2.f32 %v5177_v7 }
0x1a93   :  { %v7750_v2 = vpop.eup %6493  ;;  %6499 = vpow2.f32 %v5175_v9 }
0x1a94   :  { %v7752_v57 = vpop.eup %6495  ;;  %v5179_v3 = vsel %vm280_vm3, %v7750_v2, 0.0 }
0x1a95   :  { %5180 = vadd.xlane.f32.xlu1 %v5179_v3  ;;  %v5182_v42 = vsel %vm280_vm3, %v7752_v57, 0.0 }
0x1a96   :  { %5183 = vadd.xlane.f32.xlu0 %v5182_v42 }
0x1a9f   :  { %v7764_v10 = vpop.eup %6497 }
0x1aa0   :  { %v7766_v11 = vpop.eup %6499 }
0x1aa6   :  { %4819 = vrot.lane.b32.xlu1 %v7664_v59, %s6687_s30  ;;  %v5188_v59 = vsel %vm280_vm3, %v7764_v10, 0.0 }
0x1aaa   :  { %4821 = vrot.lane.b32.xlu1 %v7672_v55, %s6687_s30  ;;  %v5185_v55 = vsel %vm280_vm3, %v7766_v11, 0.0 }
0x1aac   :  { %4817 = vrot.lane.b32.xlu0 %v7666_v44, %s6687_s30  ;;  %v4816_v44 = vpop.permute.xlu1 %4815 }
0x1acb   :  { %5189 = vadd.xlane.f32.xlu0 %v5188_v59 }
0x1ace   :  { %5186 = vadd.xlane.f32.xlu1 %v5185_v55 }
0x1b1e   :  { %v5181_v17 = vpop.xlane.xlu1 %5180 }
0x1b1f   :  { %v5184_v30 = vpop.xlane.xlu0 %5183  ;;  %6501 = vrcp.f32 %v5181_v17 }
0x1b20   :  { %6503 = vrcp.f32 %v5184_v30 }
0x1b22   :  { %v4820_v50 = vpop.permute.xlu1 %4819 }
0x1b23   :  { %v4827_v20 = vcombine.low %v4816_v44, %v4820_v50  ;;  %v4828_v23 = vcombine.high %v4816_v44, %v4820_v50  ;;  %v4818_v24 = vpop.permute.xlu0 %4817 }
0x1b25   :  { %v4835_v33 = vrot.slane %v4827_v20, %v6909_v8  ;;  %v4842_v27 = vrot.slane %v4828_v23, %v6909_v8  ;;  %v6532_v23 = vld [vmem:[#allocation10 + $0x8] sm:$0xff]  }
0x1b26   :  { %v4822_v4 = vpop.permute.xlu1 %4821 }
0x1b27   :  { %v4843_v15 = vcombine.low %v4818_v24, %v4822_v4  ;;  %v4844_v25 = vcombine.high %v4818_v24, %v4822_v4  ;;  %v6533_v24 = vld [vmem:[#allocation8 + $0x8] sm:$0xff]  }
0x1b29   :  { %v4851_v34 = vrot.slane %v4843_v15, %v6909_v8  ;;  %v4858_v16 = vrot.slane %v4844_v25, %v6909_v8 }
0x1b2b   :  { %v4859_v18 = vcombine.low %v4835_v33, %v4851_v34  ;;  %v4860_v26 = vcombine.high %v4835_v33, %v4851_v34  ;;  %v4875_v41 = vcombine.low %v4842_v27, %v4858_v16  ;;  %v4876_v13 = vcombine.high %v4842_v27, %v4858_v16 }
0x1b2c   :  { %v6502_v51 = vpop.eup %6501 }
0x1b2d   :  { %v4867_v35 = vrot.slane %v4859_v18, %v6925_v19  ;;  %v4874_v21 = vrot.slane %v4860_v26, %v6925_v19  ;;  %v4883_v38 = vrot.slane %v4875_v41, %v6925_v19  ;;  %v4890_v36 = vrot.slane %v4876_v13, %v6925_v19  ;;  %v6504_v52 = vpop.eup %6503 }
0x1b2e   :  { %v5195_v58 = vmul.f32 %v6502_v51, %v7750_v2  ;;  %v5196_v3 = vmul.f32 %v6504_v52, %v7752_v57 }
0x1b2f   :  { %v4895_v39 = vcombine.low %v4867_v35, %v4874_v21  ;;  %v5818_v28 = vcombine.high %v4867_v35, %v4874_v21  ;;  %v4911_v40 = vcombine.low %v4883_v38, %v4890_v36  ;;  %v5819_v43 = vcombine.high %v4883_v38, %v4890_v36 }
0x1b30   :  { %v5199_v6 = vpack.c.bf16 %v5195_v58, %v5195_v58  ;;  %v5200_v7 = vpack.c.bf16 %v5196_v3, %v5196_v3 }
0x1b31   :  { %v4902_v31 = vrot.slane %v4895_v39, %v6909_v8  ;;  %v4910_v46 = vrot.slane %v5818_v28, %v6909_v8  ;;  %v4918_v22 = vrot.slane %v4911_v40, %v6909_v8  ;;  %v4926_v37 = vrot.slane %v5819_v43, %v6909_v8 }
0x1b33   :  { %v4927_v47 = vcombine.low %v4902_v31, %v4910_v46  ;;  %v4943_v48 = vcombine.low %v4918_v22, %v4926_v37  ;;  %v4928_v32 = vcombine.high %v4902_v31, %v4910_v46  ;;  %v4944_v29 = vcombine.high %v4918_v22, %v4926_v37 }
0x1b35   :  { %v4935_v53 = vrot.slane %v4927_v47, %v6925_v19  ;;  %v4951_v54 = vrot.slane %v4943_v48, %v6925_v19  ;;  %v4942_v60 = vrot.slane %v4928_v32, %v6925_v19  ;;  %v4958_v45 = vrot.slane %v4944_v29, %v6925_v19 }
0x1b37   :  { %v4959_v56 = vcombine.low %v4935_v53, %v4951_v54  ;;  %v4960_v12 = vcombine.high %v4935_v53, %v4951_v54  ;;  %v4961_v62 = vcombine.low %v4942_v60, %v4958_v45  ;;  %v4962_v63 = vcombine.high %v4942_v60, %v4958_v45 }
0x1b39   :  { %v4963_v1 = vpack.c.bf16 %v4959_v56, %v4959_v56  ;;  %v4964_v61 = vpack.c.bf16 %v4960_v12, %v4960_v12  ;;  %v4965_v5 = vpack.c.bf16 %v4961_v62, %v4961_v62  ;;  %v4966_v49 = vpack.c.bf16 %v4962_v63, %v4962_v63 }
0x1b3b   :  { %v5207_v42 = vsel %vm287_vm2, %v4963_v1, 0  ;;  %v5253_v14 = vsel %vm287_vm2, %v4964_v61, 0  ;;  %v5299_v2 = vsel %vm287_vm2, %v4965_v5, 0  ;;  %v5345_v57 = vsel %vm287_vm2, %v4966_v49, 0 }
0x1b3c   :  { %6303 = vmatpush3.bf16.msra.mxu1 %v5207_v42  ;;  %6309 = vmatpush3.bf16.msra.mxu0 %v5253_v14 }
0x1b3d   :  { %6314 = vmatprep.subr.bf16.mxu1 %v6685_v0  ;;  %6320 = vmatprep.subr.bf16.mxu0 %v6685_v0 }
0x1b3f   :  { %6305 = vmatmul.mubr.msk.bf16.vlgmr.msra.gmra.mxu1 %vm280_vm3, %v5199_v6  ;;  %6311 = vmatmul.mubr.msk.bf16.vlgmr.msra.gmra.mxu0 %vm280_vm3, %v5200_v7 }
0x1b40   :  { %6315 = vmatpush3.bf16.msra.mxu1 %v5299_v2  ;;  %6321 = vmatpush3.bf16.msra.mxu0 %v5345_v57 }
0x1b41   :  { %6322 = vmatprep.mubr.msk.bf16.mxu0 %vm6686_vm0, %v6685_v0  ;;  %6316 = vmatprep.mubr.msk.bf16.mxu1 %vm6686_vm0, %v6685_v0 }
0x1b42   :  { %6326 = vmatprep.subr.bf16.mxu1 %v6685_v0  ;;  %6334 = vmatprep.subr.bf16.mxu0 %v6685_v0 }
0x1b54   :  { %v5190_v9 = vpop.xlane.xlu0 %5189 }
0x1b55   :  { %6505 = vrcp.f32 %v5190_v9 }
0x1b57   :  { %v5187_v59 = vpop.xlane.xlu1 %5186 }
0x1b58   :  { %6507 = vrcp.f32 %v5187_v59 }
0x1b62   :  { %v6506_v55 = vpop.eup %6505 }
0x1b63   :  { %v5198_v44 = vmul.f32 %v6506_v55, %v7764_v10  ;;  %v6534_v10 = vld [vmem:[#allocation10] sm:$0xff]  }
0x1b65   :  { %v6508_v17 = vpop.eup %6507  ;;  %v5202_v30 = vpack.c.bf16 %v5198_v44, %v5198_v44 }
0x1b66   :  { %v5197_v50 = vmul.f32 %v6508_v17, %v7766_v11  ;;  %v6535_v11 = vld [vmem:[#allocation8] sm:$0xff]  }
0x1b67   :  { %6323 = vmatmul.mubr.msk.bf16.vlgmr.msra.gmra.mxu0 %vm280_vm3, %v5202_v30 }
0x1b68   :  { %v5201_v20 = vpack.c.bf16 %v5197_v50, %v5197_v50  ;;  %6335 = vmatpush3.bf16.msra.mxu0 %v6532_v23  ;;  %6338 = vmatprep.mubr.msk.bf16.mxu0 %vm6686_vm0, %v6685_v0  ;;  %v6536_v23 = vld [vmem:[%s7916_s19 + $0x38] sm:$0xff]  }
0x1b69   :  { %6336 = vmatprep.subr.bf16.mxu0 %v6685_v0 }
0x1b6a   :  { %6317 = vmatmul.mubr.msk.bf16.vlgmr.msra.gmra.mxu1 %vm280_vm3, %v5201_v20 }
0x1b6b   :  { %6327 = vmatpush3.bf16.msra.mxu1 %v6533_v24  ;;  %6330 = vmatprep.mubr.msk.bf16.mxu1 %vm6686_vm0, %v6685_v0  ;;  %v6537_v24 = vld [vmem:[%s7916_s19 + $0x30] sm:$0xff]  }
0x1b6c   :  { %6328 = vmatprep.subr.bf16.mxu1 %v6685_v0  ;;  %6337 = vmatpush3.bf16.msra.mxu0 %v6534_v10  ;;  %v6538_v10 = vld [vmem:[%s7916_s19 + $0x28] sm:$0xff]  }
0x1b6f   :  { %6329 = vmatpush3.bf16.msra.mxu1 %v6535_v11  ;;  %v6539_v11 = vld [vmem:[%s7916_s19 + $0x20] sm:$0xff]  }
0x1b70   :  { %6342 = vmatprep.subr.bf16.mxu1 %v6685_v0 }
0x1bff   :  { %v5243_v4 = vpop.f32.mrf.mxu1  ;;  %v5289_v15 = vpop.f32.mrf.mxu0 }
0x1c01   :  { %v6306_v25 = vpop.f32.mrf.mxu1  ;;  %v6312_v33 = vpop.f32.mrf.mxu0 }
0x1c02   :  { %v6542_v25 = vld [vmem:[%s7916_s19 + $0x8] sm:$0xff]   ;;  %v6543_v33 = vld [vmem:[%s7916_s19] sm:$0xff]  }
0x1c03   :  { %v5246_v27 = vpop.f32.mrf.mxu1  ;;  %v5292_v34 = vpop.f32.mrf.mxu0 }
0x1c04   :  { %v6544_v34 = vld [vmem:[%s7911_s14] ss:$0 sm:$0xff] }
0x1c05   :  { %v6307_v16 = vpop.f32.mrf.mxu1  ;;  %v6313_v18 = vpop.f32.mrf.mxu0 }
0x1c27   :  { %v5381_v26 = vpop.f32.mrf.mxu0 }
0x1c28   :  { %v5403_v41 = vcombine.low %v5289_v15, %v5381_v26  ;;  %v5404_v13 = vcombine.high %v5289_v15, %v5381_v26  ;;  %v6541_v15 = vld [vmem:[%s7916_s19 + $0x10] sm:$0xff]   ;;  %v6545_v26 = vld [vmem:[%s7934_s26 + $0x8] sm:$0xff] }
0x1c29   :  { %v6324_v35 = vpop.f32.mrf.mxu0 }
0x1c2a   :  { %v5335_v21 = vpop.f32.mrf.mxu1  ;;  %v5411_v40 = vrot.slane %v5403_v41, %v6909_v8  ;;  %v5418_v43 = vrot.slane %v5404_v13, %v6909_v8 }
0x1c2b   :  { %v5387_v38 = vcombine.low %v5243_v4, %v5335_v21  ;;  %v5388_v36 = vcombine.high %v5243_v4, %v5335_v21  ;;  %v5384_v39 = vpop.f32.mrf.mxu0  ;;  %v6540_v4 = vld [vmem:[%s7916_s19 + $0x18] sm:$0xff]  }
0x1c2c   :  { %v6318_v28 = vpop.f32.mrf.mxu1 }
0x1c2d   :  { %v5395_v31 = vrot.slane %v5387_v38, %v6909_v8  ;;  %v5402_v46 = vrot.slane %v5388_v36, %v6909_v8  ;;  %v6325_v22 = vpop.f32.mrf.mxu0 }
0x1c2e   :  { %v5338_v37 = vpop.f32.mrf.mxu1 }
0x1c2f   :  { %v5419_v47 = vcombine.low %v5395_v31, %v5411_v40  ;;  %v5420_v48 = vcombine.high %v5395_v31, %v5411_v40  ;;  %v5435_v32 = vcombine.low %v5402_v46, %v5418_v43  ;;  %v5436_v29 = vcombine.high %v5402_v46, %v5418_v43  ;;  %v6546_v37 = vld [vmem:[%s7912_s15] ss:$0 sm:$0xff]  ;;  %s6696_s15 = smov [#allocation11]  }
0x1c30   :  { %v6319_v51 = vpop.f32.mrf.mxu1 }
0x1c31   :  { %v5427_v52 = vrot.slane %v5419_v47, %v6925_v19  ;;  %v5434_v53 = vrot.slane %v5420_v48, %v6925_v19  ;;  %v5443_v54 = vrot.slane %v5435_v32, %v6925_v19  ;;  %v5450_v60 = vrot.slane %v5436_v29, %v6925_v19  ;;  %v6547_v48 = vld [vmem:[%s7913_s16] ss:$0 sm:$0xff]  ;;  %s5696_s16 = sshll.u32 %s6696_s15, 4  ;;  %s5697_s16 = int_to_ptr.vmem [resolvable:$true] %s5696_s16 }
0x1c32   :  { %p6655_p12 = scmp.lt.s32.totalorder %s5697_s16, %s5697_s16 }
0x1c33   :  { %v5455_v45 = vcombine.low %v5427_v52, %v5434_v53  ;;  %v5828_v56 = vcombine.high %v5427_v52, %v5434_v53  ;;  %v5471_v12 = vcombine.low %v5443_v54, %v5450_v60  ;;  %v5829_v62 = vcombine.high %v5443_v54, %v5450_v60  ;;  %v6548_v52 = vld [vmem:[%s7915_s18] ss:$0 sm:$0xff]  ;;  %s6650_s18 = scalar_lea.vmem %s5697_s16, 256 }
0x1c34   :  { %p6651_p11 = scmp.ne.s32.totalorder %s5697_s16, %s6650_s18  ;;  %p6656_p13 = scmp.lt.s32.totalorder %s6650_s18, %s6650_s18 }
0x1c35   :  { %v5462_v63 = vrot.slane %v5455_v45, %v6909_v8  ;;  %v5470_v1 = vrot.slane %v5828_v56, %v6909_v8  ;;  %v5478_v61 = vrot.slane %v5471_v12, %v6909_v8  ;;  %v5486_v58 = vrot.slane %v5829_v62, %v6909_v8 }
0x1c36   :  { %p6657_p0 = por %p6656_p13, %p6655_p12 }
0x1c37   :  { %v5488_v3 = vcombine.high %v5462_v63, %v5470_v1  ;;  %v5504_v42 = vcombine.high %v5478_v61, %v5486_v58  ;;  %v5487_v14 = vcombine.low %v5462_v63, %v5470_v1  ;;  %v5503_v5 = vcombine.low %v5478_v61, %v5486_v58 }
0x1c38   :  { %p6658_p1 = pnand %p6657_p0, %p6651_p11 }
0x1c39   :  { %v5502_v49 = vrot.slane %v5488_v3, %v6925_v19  ;;  %v5518_v6 = vrot.slane %v5504_v42, %v6925_v19  ;;  %v5495_v7 = vrot.slane %v5487_v14, %v6925_v19  ;;  %v5511_v2 = vrot.slane %v5503_v5, %v6925_v19  ;;  %v6549_v3 = vld [vmem:[%s7917_s20] ss:$0 sm:$0xff] }
0x1c3b   :  { %v5521_v57 = vcombine.low %v5502_v49, %v5518_v6  ;;  %v5520_v9 = vcombine.high %v5495_v7, %v5511_v2  ;;  %v5519_v59 = vcombine.low %v5495_v7, %v5511_v2  ;;  %v5522_v8 = vcombine.high %v5502_v49, %v5518_v6 }
0x1c3d   :  { %5528 = vrot.lane.b32.xlu1 %v5521_v57, %s6693_s11  ;;  %5524 = vrot.lane.b32.xlu0 %v5520_v9, %s6694_s2 }
0x1c41   :  { %5532 = vrot.lane.b32.xlu1 %v5522_v8, %s7938_s7 }
0x1caf   :  { %v5529_v55 = vpop.permute.xlu1 %5528  ;;  %v5525_v44 = vpop.permute.xlu0 %5524 }
0x1cb0   :  { %v5535_v17 = vsel %vm280_vm3, %v5519_v59, %v5525_v44 }
0x1cb1   :  { %v5536_v50 = vsel %vm1580_vm4, %v5535_v17, %v5529_v55 }
0x1cb3   :  { %v5533_v30 = vpop.permute.xlu1 %5532 }
0x1cb4   :  { %v5537_v20 = vsel %vm1582_vm5, %v5536_v50, %v5533_v30 }
0x1cb5   :  { %v5538_v19 = vpack.c.bf16 %v5537_v20, %v5537_v20 }
0x1cb7   :  { %6331 = vmatmul.mubr.msk.bf16.vlgmr.msra.gmra.mxu1 %vm215_vm1, %v5538_v19 }
0x1cb8   :  { %6343 = vmatpush3.bf16.msra.mxu1 %v6536_v23  ;;  %6358 = vmatprep.mubr.msk.bf16.mxu1 %vm6686_vm0, %v6685_v0 }
0x1cb9   :  { %6344 = vmatprep.subr.bf16.mxu1 %v6685_v0 }
0x1cbc   :  { %6345 = vmatpush3.bf16.msra.mxu1 %v6537_v24 }
0x1cbd   :  { %6346 = vmatprep.subr.bf16.mxu1 %v6685_v0 }
0x1cc0   :  { %6347 = vmatpush3.bf16.msra.mxu1 %v6538_v10 }
0x1cc1   :  { %6348 = vmatprep.subr.bf16.mxu1 %v6685_v0 }
0x1cc4   :  { %6349 = vmatpush3.bf16.msra.mxu1 %v6539_v11 }
0x1cc5   :  { %6350 = vmatprep.subr.bf16.mxu1 %v6685_v0 }
0x1cc8   :  { %6351 = vmatpush3.bf16.msra.mxu1 %v6540_v4 }
0x1cc9   :  { %6352 = vmatprep.subr.bf16.mxu1 %v6685_v0 }
0x1ccc   :  { %6353 = vmatpush3.bf16.msra.mxu1 %v6541_v15 }
0x1ccd   :  { %6354 = vmatprep.subr.bf16.mxu1 %v6685_v0 }
0x1cd0   :  { %6355 = vmatpush3.bf16.msra.mxu1 %v6542_v25 }
0x1cd1   :  { %6356 = vmatprep.subr.bf16.mxu1 %v6685_v0 }
0x1cd4   :  { %6357 = vmatpush3.bf16.msra.mxu1 %v6543_v33 }
0x1d77   :  { %v5576_v27 = vpop.f32.mrf.mxu1 }
0x1d78   :  { %v5577_v16 = vadd.f32 %v6544_v34, %v5576_v27 }
0x1d79   :  { %v6332_v18 = vpop.f32.mrf.mxu1 }
0x1d7a   :  { %v5582_v41 = vadd.f32 %v6545_v26, %v5577_v16 }
0x1d7b   :  { %v5579_v13 = vpop.f32.mrf.mxu1 }
0x1d7c   :  { %v5583_v0 = vsel %vm215_vm1, %v5582_v41, 0.0 }
0x1d7d   :  { %5584 = vadd.xlane.f32.xlu0 %v5583_v0  ;;  %v6333_v35 = vpop.f32.mrf.mxu1 }
0x1e06   :  { %v5585_v21 = vpop.xlane.xlu0 %5584 }
0x1e07   :  { %v5586_v38 = vmul.f32 0.03125, %v5585_v21 }
0x1e09   :  { %v5587_v36 = vsub.f32 %v5582_v41, %v5586_v38 }
0x1e0b   :  { %v5588_v39 = vmul.f32 %v5587_v36, %v5587_v36 }
0x1e0d   :  { %v5589_v28 = vsel %vm215_vm1, %v5588_v39, 0.0 }
0x1e0e   :  { %5590 = vadd.xlane.f32.xlu1 %v5589_v28 }
0x1e97   :  { %v5591_v40 = vpop.xlane.xlu1 %5590 }
0x1e98   :  { %v5592_v43 = vmul.f32 0.03125, %v5591_v40 }
0x1e9a   :  { %v5593_v31 = vadd.f32 1e-05, %v5592_v43 }
0x1e9c   :  { %6509 = vrsqrt.f32 %v5593_v31 }
0x1ea9   :  { %v6510_v46 = vpop.eup %6509 }
0x1eaa   :  { %v5595_v22 = vmul.f32 %v6510_v46, %v5587_v36 }
0x1eac   :  { %v5596_v47 = vmul.f32 %v6546_v37, %v5595_v22 }
0x1eae   :  { %v5597_v32 = vadd.f32 %v6547_v48, %v5596_v47 }
0x1eb0   :  { %v5598_v29 = vpack.c.bf16 %v5597_v32, %v5597_v32 }
0x1eb2   :  { %6339 = vmatmul.mubr.msk.bf16.vlgmr.msra.gmra.mxu0 %vm215_vm1, %v5598_v29 }
0x1f72   :  { %v5636_v51 = vpop.f32.mrf.mxu0 }
0x1f73   :  { %v5637_v53 = vadd.f32 %v6548_v52, %v5636_v51 }
0x1f74   :  { %v6340_v54 = vpop.f32.mrf.mxu0 }
0x1f75   :  { %v5643_v60 = vmul.f32 0.70710677, %v5637_v53  ;;  %v5642_v62 = vmul.f32 0.5, %v5637_v53 }
0x1f76   :  { %v5639_v45 = vpop.f32.mrf.mxu0 }
0x1f77   :  { %6511 = verf.f32 %v5643_v60 }
0x1f78   :  { %v6341_v56 = vpop.f32.mrf.mxu0 }
0x1f84   :  { %v6512_v12 = vpop.eup %6511 }
0x1f85   :  { %v5645_v63 = vadd.f32 1.0, %v6512_v12 }
0x1f87   :  { %v5646_v1 = vmul.f32 %v5645_v63, %v5642_v62 }
0x1f89   :  { %v5647_v61 = vpack.c.bf16 %v5646_v1, %v5646_v1 }
0x1f8b   :  { %6359 = vmatmul.mubr.bf16.vlgmr.msra.gmra.mxu1 %v5647_v61 }
0x204b   :  { %v5682_v58 = vpop.f32.mrf.mxu1 }
0x204c   :  { %v5683_v42 = vadd.f32 %v6549_v3, %v5682_v58 }
0x204d   :  { %v6360_v14 = vpop.f32.mrf.mxu1 }
0x204e   :  { %v5688_v5 = vadd.f32 %v5683_v42, %v5582_v41 }
0x204f   :  { %v5685_v49 = vpop.f32.mrf.mxu1 }
0x2050   :  { %5690 = vst.msk [vmem:[#allocation11 + $0x8] sm:$0xff] %vm215_vm1, %v5688_v5 }
0x2051   :  { %v6361_v6 = vpop.f32.mrf.mxu1 }
0x2052   :  { %6661 = shalt.err (!%p6658_p1)
}
0x2053   :  { %s6697_s9 = smov 128  }
0x2054   :  { %5702 = dma.vmem_to_hbm [thread:$0]  %s5697_s16, 256, %s7918_s21, [#allocation4], %s6697_s9, %s6697_s9, %s6694_s2  }
0x2055   :  { %6676 = dma.done.wait [#allocation4], 256  }
0x2056   :  { %6677 = vsyncadd [#allocation4], 4294967040 }
0x2057   :  { %5706 = vsyncpa [#allocation3], 1 }
0x2058   :  { %5707 = vsyncpa [#allocation6], 1 }
0x2059   :  { %5708 = vsyncpa [#allocation9], 1 }
0x205a   :  { %5709 = vsyncpa [#allocation4], 1 }

</bundles_post_ra>
